<compile_context>
chip_gen: v5e
topology: v5e:2x2
jax: 0.10.0
libtpu: 0.0.40
codegen_flags: <defaults>
</compile_context>

<pallas_src>
import functools

import jax
import jax.numpy as jnp
import numpy as np
from jax.experimental import pallas as pl
from jax.experimental.pallas import tpu as pltpu

_BN_EPS = 1e-5
_LANE = 128

# MobileNetV2 features[1..14]: (in_ch, out_ch, stride, expand_ratio)
IR_CONFIGS = [
    (32, 16, 1, 1),
    (16, 24, 2, 6),
    (24, 24, 1, 6),
    (24, 32, 2, 6),
    (32, 32, 1, 6),
    (32, 32, 1, 6),
    (32, 64, 2, 6),
    (64, 64, 1, 6),
    (64, 64, 1, 6),
    (64, 64, 1, 6),
    (64, 96, 1, 6),
    (96, 96, 1, 6),
    (96, 96, 1, 6),
    (96, 160, 2, 6),
]

# IR-layer index spans of the 5 macro blocks (block 0 also contains the stem):
# model[:2], model[2], model[3:5], model[5:8], model[8:15]
_BLOCK_SPANS = ((0, 1), (1, 2), (2, 4), (4, 7), (7, 14))


# ----------------------------------------------------------------------------
# Fused whole-network Pallas kernel
# ----------------------------------------------------------------------------
def _build_network_kernel(block_plans):
    """Kernel refs: (x, bias_packed, dw_packed, *per-layer weights, out0..out4).

    Per-layer weight refs (consumed sequentially, bf16, BN scale folded):
      linear : w (K, C)
      ir     : [pw1_w (Cin, H)]  if expand != 1
               [S (9, Mo, Mi)]   if spatial > 1x1
               pw2_w (H, Cout)
    Biases / depthwise weights are read from the two packed f32 slabs at
    static lane-aligned offsets.
    """
    n_out = len(block_plans)

    def kernel(*refs):
        x_ref, bias_ref, dw_ref = refs[0], refs[1], refs[2]
        out_refs = refs[len(refs) - n_out:]
        arg_refs = refs[3:len(refs) - n_out]
        pos = [0]

        def nxt():
            r = arg_refs[pos[0]]
            pos[0] += 1
            return r

        def bias(off, c):                       # (1, c) f32 from the packed slab
            return bias_ref[:, pl.ds(off, c)]

        def mm(a_f32, w_ref):                   # bf16 MXU matmul, f32 accumulate
            return jnp.dot(a_f32.astype(jnp.bfloat16), w_ref[...],
                           preferred_element_type=jnp.float32)

        x = x_ref[...].astype(jnp.float32)
        for blk, plan in enumerate(block_plans):
            for spec in plan:
                if spec["kind"] == "linear":
                    y = mm(x, nxt()) + bias(spec["b_off"], spec["cout"])
                    x = jnp.clip(y, 0.0, 6.0) if spec["relu6"] else y
                    continue

                # ---- inverted residual --------------------------------------
                hid, oup = spec["hid"], spec["oup"]
                x_in = x
                if spec["expand"]:
                    h = mm(x, nxt()) + bias(spec["b1_off"], hid)
                    h = jnp.clip(h, 0.0, 6.0)
                else:
                    h = x

                dw_off = spec["dw_off"]
                if spec["spatial_1x1"]:
                    # 1x1 spatial map with pad=1: only the centre tap is in bounds.
                    acc = h * dw_ref[pl.ds(4, 1), pl.ds(dw_off, hid)]
                else:
                    s_ref = nxt()
                    hb = h.astype(jnp.bfloat16)
                    acc = None
                    for t in range(9):  # unrolled 9-tap MAC via MXU row-gather
                        tap = jnp.dot(s_ref[t], hb,
                                      preferred_element_type=jnp.float32)
                        tap = tap * dw_ref[pl.ds(t, 1), pl.ds(dw_off, hid)]
                        acc = tap if acc is None else acc + tap
                h = jnp.clip(acc + bias(spec["bd_off"], hid), 0.0, 6.0)

                y = mm(h, nxt()) + bias(spec["b2_off"], oup)
                if spec["use_res"]:
                    y = y + x_in
                x = y

            out_refs[blk][...] = x.astype(out_refs[blk].dtype)

    return kernel


# ----------------------------------------------------------------------------
# Constant depthwise tap-selection matrices (built once at trace time)
# ----------------------------------------------------------------------------
def _make_tap_mats(n, h, w, stride):
    """0/1 matrices S[t] of shape (M_out, M_in): row gather for depthwise tap t."""
    ho = (h + 2 - 3) // stride + 1
    wo = (w + 2 - 3) // stride + 1
    s = np.zeros((9, n * ho * wo, n * h * w), np.float32)
    for dy in range(3):
        for dx in range(3):
            t = dy * 3 + dx
            for b in range(n):
                for yo in range(ho):
                    yi = yo * stride + dy - 1
                    if not 0 <= yi < h:
                        continue
                    for xo in range(wo):
                        xi = xo * stride + dx - 1
                        if not 0 <= xi < w:
                            continue
                        s[t, (b * ho + yo) * wo + xo, (b * h + yi) * w + xi] = 1.0
    return jnp.asarray(s, dtype=jnp.bfloat16)


# ----------------------------------------------------------------------------
# Parameter construction (deterministic synthetic; inference BN folded)
# ----------------------------------------------------------------------------
def _make_bn(key, c):
    kg, kb, km, kv = jax.random.split(key, 4)
    gamma = 1.0 + 0.1 * jax.random.normal(kg, (c,), jnp.float32)
    beta = 0.05 * jax.random.normal(kb, (c,), jnp.float32)
    rmean = 0.05 * jax.random.normal(km, (c,), jnp.float32)
    rvar = jax.random.uniform(kv, (c,), jnp.float32, minval=0.5, maxval=1.5)
    scale = gamma * jax.lax.rsqrt(rvar + _BN_EPS)
    bias = beta - rmean * scale
    return scale, bias


def _pack_lanes(segs, align=_LANE):
    """Concat 2-D arrays along lanes at 128-aligned offsets -> one VMEM slab."""
    offs, pieces, cur = [], [], 0
    for a in segs:
        a = np.asarray(a, np.float32)
        offs.append(cur)
        c = a.shape[-1]
        cpad = -(-c // align) * align
        pieces.append(np.pad(a, ((0, 0), (0, cpad - c))))
        cur += cpad
    return jnp.asarray(np.concatenate(pieces, axis=-1)), tuple(offs)


def build_params(key):
    keys = jax.random.split(key, 1 + len(IR_CONFIGS))
    bias_segs, dw_segs = [], []

    def add_bias(b):
        bias_segs.append(np.asarray(b, np.float32).reshape(1, -1))
        return len(bias_segs) - 1

    # features[0]: Conv2d(3, 32, k=3, s=2, p=1, bias=False) + BN + ReLU6
    k_w, k_bn = jax.random.split(keys[0], 2)
    w0 = 0.1 * jax.random.normal(k_w, (9 * 3, 32), jnp.float32)
    s0, b0 = _make_bn(k_bn, 32)
    stem = {"w": (w0 * s0[None, :]).astype(jnp.bfloat16),   # BN scale folded
            "b_seg": add_bias(b0), "cout": 32}

    irs = []
    for i, (inp, oup, stride, expand) in enumerate(IR_CONFIGS):
        hidden = inp * expand
        ks = jax.random.split(keys[1 + i], 6)
        p = {"stride": stride, "expand": expand != 1, "hid": hidden, "oup": oup,
             "use_res": (stride == 1 and inp == oup)}
        if expand != 1:
            w1 = 0.1 * jax.random.normal(ks[0], (inp, hidden), jnp.float32)
            s1, b1 = _make_bn(ks[1], hidden)
            p["pw1_w"] = (w1 * s1[None, :]).astype(jnp.bfloat16)
            p["b1_seg"] = add_bias(b1)
        wd = 0.1 * jax.random.normal(ks[2], (9, hidden), jnp.float32)
        sd, bd = _make_bn(ks[3], hidden)
        dw_segs.append(np.asarray(wd * sd[None, :], np.float32))  # scale folded
        p["dw_seg"] = len(dw_segs) - 1
        p["bd_seg"] = add_bias(bd)
        w2 = 0.1 * jax.random.normal(ks[4], (hidden, oup), jnp.float32)
        s2, b2 = _make_bn(ks[5], oup)
        p["pw2_w"] = (w2 * s2[None, :]).astype(jnp.bfloat16)
        p["b2_seg"] = add_bias(b2)
        irs.append(p)

    bias_packed, bias_offs = _pack_lanes(bias_segs)
    dw_packed, dw_offs = _pack_lanes(dw_segs)
    return {"stem": stem, "irs": irs,
            "bias_packed": bias_packed, "bias_offs": bias_offs,
            "dw_packed": dw_packed, "dw_offs": dw_offs}


# ----------------------------------------------------------------------------
# Forward pass: one fused pallas_call returning the 5 block embeddings
# ----------------------------------------------------------------------------
def mobstyle_forward(x_nchw, params):
    x = jnp.transpose(x_nchw, (0, 2, 3, 1)).astype(jnp.float32)   # -> NHWC
    n, h, w, cin = x.shape

    # Stem conv (3x3, s=2, p=1) lowered to a matmul via im2col on the tiny raw
    # network input (a few KB of XLA glue, executed exactly once).
    ho, wo = (h + 2 - 3) // 2 + 1, (w + 2 - 3) // 2 + 1
    xp = jnp.pad(x, ((0, 0), (1, 1), (1, 1), (0, 0)))
    patches = [xp[:, dy:dy + 2 * (ho - 1) + 1:2, dx:dx + 2 * (wo - 1) + 1:2, :]
               for dy in range(3) for dx in range(3)]
    x2d = jnp.stack(patches, axis=3).reshape(n * ho * wo, 9 * cin)

    bias_offs, dw_offs, stem = params["bias_offs"], params["dw_offs"], params["stem"]

    cur_h, cur_w = ho, wo
    block_plans, layer_args, out_shapes, out_dims = [], [], [], []
    for blk, (lo, hi) in enumerate(_BLOCK_SPANS):
        plan = []
        if blk == 0:  # stem conv + BN + ReLU6 fused into the kernel
            plan.append({"kind": "linear", "relu6": True, "cout": stem["cout"],
                         "b_off": bias_offs[stem["b_seg"]]})
            layer_args.append(stem["w"])
        for i in range(lo, hi):
            p = params["irs"][i]
            spatial_1x1 = (cur_h == 1 and cur_w == 1)
            spec = {"kind": "ir", "expand": p["expand"], "use_res": p["use_res"],
                    "spatial_1x1": spatial_1x1, "hid": p["hid"], "oup": p["oup"],
                    "dw_off": dw_offs[p["dw_seg"]],
                    "bd_off": bias_offs[p["bd_seg"]],
                    "b2_off": bias_offs[p["b2_seg"]]}
            if p["expand"]:
                spec["b1_off"] = bias_offs[p["b1_seg"]]
                layer_args.append(p["pw1_w"])
            if not spatial_1x1:
                layer_args.append(_make_tap_mats(n, cur_h, cur_w, p["stride"]))
            layer_args.append(p["pw2_w"])
            plan.append(spec)
            cur_h = (cur_h + 2 - 3) // p["stride"] + 1
            cur_w = (cur_w + 2 - 3) // p["stride"] + 1
            cur_c = p["oup"]
        block_plans.append(tuple(plan))
        out_shapes.append(jax.ShapeDtypeStruct((n * cur_h * cur_w, cur_c),
                                               jnp.float32))
        out_dims.append((cur_h, cur_w, cur_c))

    vmem = pl.BlockSpec(memory_space=pltpu.MemorySpace.VMEM)
    n_in = 3 + len(layer_args)
    outs = pl.pallas_call(
        _build_network_kernel(tuple(block_plans)),
        in_specs=[vmem] * n_in,
        out_specs=tuple(vmem for _ in out_shapes),
        out_shape=tuple(out_shapes),
    )(x2d, params["bias_packed"], params["dw_packed"], *layer_args)

    embeddings = []
    for o, (bh, bw, bc) in zip(outs, out_dims):
        emb = o.reshape(n, bh, bw, bc)
        embeddings.append(jnp.transpose(emb, (0, 3, 1, 2)))   # back to NCHW
    return embeddings


# ----------------------------------------------------------------------------
# Main
# ----------------------------------------------------------------------------
if __name__ == "__main__":
    key = jax.random.PRNGKey(0)
    k_params, k_x = jax.random.split(key)

    params = build_params(k_params)
    x = jax.random.normal(k_x, (2, 3, 16, 16), jnp.float32)   # NCHW RGB input

    fwd = jax.jit(functools.partial(mobstyle_forward, params=params))
    embs = jax.block_until_ready(fwd(x))

    expected = [(2, 16, 8, 8), (2, 24, 4, 4), (2, 32, 2, 2),
                (2, 64, 1, 1), (2, 160, 1, 1)]
    assert len(embs) == 5
    for e, shp in zip(embs, expected):
        assert tuple(e.shape) == shp, (e.shape, shp)
        assert bool(jnp.all(jnp.isfinite(e)))

    print("KERNEL_OK")
</pallas_src>

<mosaic_0001>
module attributes {stable_mosaic.version = 11 : i64} {
  func.func @kernel(%arg0: memref<128x27xf32, #tpu.memory_space<vmem>>, %arg1: memref<1x11904xf32, #tpu.memory_space<vmem>>, %arg2: memref<9x4992xf32, #tpu.memory_space<vmem>>, %arg3: memref<27x32xbf16, #tpu.memory_space<vmem>>, %arg4: memref<9x128x128xbf16, #tpu.memory_space<vmem>>, %arg5: memref<32x16xbf16, #tpu.memory_space<vmem>>, %arg6: memref<16x96xbf16, #tpu.memory_space<vmem>>, %arg7: memref<9x32x128xbf16, #tpu.memory_space<vmem>>, %arg8: memref<96x24xbf16, #tpu.memory_space<vmem>>, %arg9: memref<24x144xbf16, #tpu.memory_space<vmem>>, %arg10: memref<9x32x32xbf16, #tpu.memory_space<vmem>>, %arg11: memref<144x24xbf16, #tpu.memory_space<vmem>>, %arg12: memref<24x144xbf16, #tpu.memory_space<vmem>>, %arg13: memref<9x8x32xbf16, #tpu.memory_space<vmem>>, %arg14: memref<144x32xbf16, #tpu.memory_space<vmem>>, %arg15: memref<32x192xbf16, #tpu.memory_space<vmem>>, %arg16: memref<9x8x8xbf16, #tpu.memory_space<vmem>>, %arg17: memref<192x32xbf16, #tpu.memory_space<vmem>>, %arg18: memref<32x192xbf16, #tpu.memory_space<vmem>>, %arg19: memref<9x8x8xbf16, #tpu.memory_space<vmem>>, %arg20: memref<192x32xbf16, #tpu.memory_space<vmem>>, %arg21: memref<32x192xbf16, #tpu.memory_space<vmem>>, %arg22: memref<9x2x8xbf16, #tpu.memory_space<vmem>>, %arg23: memref<192x64xbf16, #tpu.memory_space<vmem>>, %arg24: memref<64x384xbf16, #tpu.memory_space<vmem>>, %arg25: memref<384x64xbf16, #tpu.memory_space<vmem>>, %arg26: memref<64x384xbf16, #tpu.memory_space<vmem>>, %arg27: memref<384x64xbf16, #tpu.memory_space<vmem>>, %arg28: memref<64x384xbf16, #tpu.memory_space<vmem>>, %arg29: memref<384x64xbf16, #tpu.memory_space<vmem>>, %arg30: memref<64x384xbf16, #tpu.memory_space<vmem>>, %arg31: memref<384x96xbf16, #tpu.memory_space<vmem>>, %arg32: memref<96x576xbf16, #tpu.memory_space<vmem>>, %arg33: memref<576x96xbf16, #tpu.memory_space<vmem>>, %arg34: memref<96x576xbf16, #tpu.memory_space<vmem>>, %arg35: memref<576x96xbf16, #tpu.memory_space<vmem>>, %arg36: memref<96x576xbf16, #tpu.memory_space<vmem>>, %arg37: memref<576x160xbf16, #tpu.memory_space<vmem>>, %arg38: memref<128x16xf32, #tpu.memory_space<vmem>>, %arg39: memref<32x24xf32, #tpu.memory_space<vmem>>, %arg40: memref<8x32xf32, #tpu.memory_space<vmem>>, %arg41: memref<2x64xf32, #tpu.memory_space<vmem>>, %arg42: memref<2x160xf32, #tpu.memory_space<vmem>>) attributes {dimension_semantics = [], scalar_prefetch = 0 : i64, scratch_operands = 0 : i64, tpu.core_type = #tpu.core_type<tc>} {
    %c0 = arith.constant 0 : index
    %c0_0 = arith.constant 0 : index
    %0 = vector.load %arg0[%c0, %c0_0] : memref<128x27xf32, #tpu.memory_space<vmem>>, vector<128x27xf32>
    %1 = arith.truncf %0 : vector<128x27xf32> to vector<128x27xbf16>
    %c0_1 = arith.constant 0 : index
    %c0_2 = arith.constant 0 : index
    %2 = vector.load %arg3[%c0_1, %c0_2] : memref<27x32xbf16, #tpu.memory_space<vmem>>, vector<27x32xbf16>
    %cst = arith.constant dense<0.000000e+00> : vector<128x32xf32>
    %3 = tpu.matmul %1, %2, %cst {dimension_numbers = #tpu.dot_dimension_numbers<[1], [0], [0], [1], [0, 0, 1, 1], [], []>} : vector<128x27xbf16>, vector<27x32xbf16>, vector<128x32xf32> -> vector<128x32xf32>
    %c0_3 = arith.constant 0 : index
    %c0_4 = arith.constant 0 : index
    %4 = vector.load %arg1[%c0_3, %c0_4] : memref<1x11904xf32, #tpu.memory_space<vmem>>, vector<1x32xf32>
    %5 = vector.broadcast %4 : vector<1x32xf32> to vector<128x32xf32>
    %6 = arith.addf %3, %5 : vector<128x32xf32>
    %cst_5 = arith.constant 0.000000e+00 : f32
    %cst_6 = arith.constant 6.000000e+00 : f32
    %7 = vector.broadcast %cst_5 : f32 to vector<128x32xf32>
    %8 = arith.maximumf %7, %6 : vector<128x32xf32>
    %9 = vector.broadcast %cst_6 : f32 to vector<128x32xf32>
    %10 = arith.minimumf %9, %8 : vector<128x32xf32>
    %11 = arith.truncf %10 : vector<128x32xf32> to vector<128x32xbf16>
    %c0_7 = arith.constant 0 : index
    %c0_8 = arith.constant 0 : index
    %c0_9 = arith.constant 0 : index
    %12 = vector.load %arg4[%c0_7, %c0_8, %c0_9] : memref<9x128x128xbf16, #tpu.memory_space<vmem>>, vector<1x128x128xbf16>
    %13 = vector.shape_cast %12 : vector<1x128x128xbf16> to vector<128x128xbf16>
    %cst_10 = arith.constant dense<0.000000e+00> : vector<128x32xf32>
    %14 = tpu.matmul %13, %11, %cst_10 {dimension_numbers = #tpu.dot_dimension_numbers<[1], [0], [0], [1], [0, 0, 1, 1], [], []>} : vector<128x128xbf16>, vector<128x32xbf16>, vector<128x32xf32> -> vector<128x32xf32>
    %c0_11 = arith.constant 0 : index
    %c0_12 = arith.constant 0 : index
    %15 = vector.load %arg2[%c0_11, %c0_12] : memref<9x4992xf32, #tpu.memory_space<vmem>>, vector<1x32xf32>
    %16 = vector.broadcast %15 : vector<1x32xf32> to vector<128x32xf32>
    %17 = arith.mulf %14, %16 : vector<128x32xf32>
    %c1 = arith.constant 1 : index
    %c0_13 = arith.constant 0 : index
    %c0_14 = arith.constant 0 : index
    %18 = vector.load %arg4[%c1, %c0_13, %c0_14] : memref<9x128x128xbf16, #tpu.memory_space<vmem>>, vector<1x128x128xbf16>
    %19 = vector.shape_cast %18 : vector<1x128x128xbf16> to vector<128x128xbf16>
    %cst_15 = arith.constant dense<0.000000e+00> : vector<128x32xf32>
    %20 = tpu.matmul %19, %11, %cst_15 {dimension_numbers = #tpu.dot_dimension_numbers<[1], [0], [0], [1], [0, 0, 1, 1], [], []>} : vector<128x128xbf16>, vector<128x32xbf16>, vector<128x32xf32> -> vector<128x32xf32>
    %c1_16 = arith.constant 1 : index
    %c0_17 = arith.constant 0 : index
    %21 = vector.load %arg2[%c1_16, %c0_17] : memref<9x4992xf32, #tpu.memory_space<vmem>>, vector<1x32xf32>
    %22 = vector.broadcast %21 : vector<1x32xf32> to vector<128x32xf32>
    %23 = arith.mulf %20, %22 : vector<128x32xf32>
    %24 = arith.addf %17, %23 : vector<128x32xf32>
    %c2 = arith.constant 2 : index
    %c0_18 = arith.constant 0 : index
    %c0_19 = arith.constant 0 : index
    %25 = vector.load %arg4[%c2, %c0_18, %c0_19] : memref<9x128x128xbf16, #tpu.memory_space<vmem>>, vector<1x128x128xbf16>
    %26 = vector.shape_cast %25 : vector<1x128x128xbf16> to vector<128x128xbf16>
    %cst_20 = arith.constant dense<0.000000e+00> : vector<128x32xf32>
    %27 = tpu.matmul %26, %11, %cst_20 {dimension_numbers = #tpu.dot_dimension_numbers<[1], [0], [0], [1], [0, 0, 1, 1], [], []>} : vector<128x128xbf16>, vector<128x32xbf16>, vector<128x32xf32> -> vector<128x32xf32>
    %c2_21 = arith.constant 2 : index
    %c0_22 = arith.constant 0 : index
    %28 = vector.load %arg2[%c2_21, %c0_22] : memref<9x4992xf32, #tpu.memory_space<vmem>>, vector<1x32xf32>
    %29 = vector.broadcast %28 : vector<1x32xf32> to vector<128x32xf32>
    %30 = arith.mulf %27, %29 : vector<128x32xf32>
    %31 = arith.addf %24, %30 : vector<128x32xf32>
    %c3 = arith.constant 3 : index
    %c0_23 = arith.constant 0 : index
    %c0_24 = arith.constant 0 : index
    %32 = vector.load %arg4[%c3, %c0_23, %c0_24] : memref<9x128x128xbf16, #tpu.memory_space<vmem>>, vector<1x128x128xbf16>
    %33 = vector.shape_cast %32 : vector<1x128x128xbf16> to vector<128x128xbf16>
    %cst_25 = arith.constant dense<0.000000e+00> : vector<128x32xf32>
    %34 = tpu.matmul %33, %11, %cst_25 {dimension_numbers = #tpu.dot_dimension_numbers<[1], [0], [0], [1], [0, 0, 1, 1], [], []>} : vector<128x128xbf16>, vector<128x32xbf16>, vector<128x32xf32> -> vector<128x32xf32>
    %c3_26 = arith.constant 3 : index
    %c0_27 = arith.constant 0 : index
    %35 = vector.load %arg2[%c3_26, %c0_27] : memref<9x4992xf32, #tpu.memory_space<vmem>>, vector<1x32xf32>
    %36 = vector.broadcast %35 : vector<1x32xf32> to vector<128x32xf32>
    %37 = arith.mulf %34, %36 : vector<128x32xf32>
    %38 = arith.addf %31, %37 : vector<128x32xf32>
    %c4 = arith.constant 4 : index
    %c0_28 = arith.constant 0 : index
    %c0_29 = arith.constant 0 : index
    %39 = vector.load %arg4[%c4, %c0_28, %c0_29] : memref<9x128x128xbf16, #tpu.memory_space<vmem>>, vector<1x128x128xbf16>
    %40 = vector.shape_cast %39 : vector<1x128x128xbf16> to vector<128x128xbf16>
    %cst_30 = arith.constant dense<0.000000e+00> : vector<128x32xf32>
    %41 = tpu.matmul %40, %11, %cst_30 {dimension_numbers = #tpu.dot_dimension_numbers<[1], [0], [0], [1], [0, 0, 1, 1], [], []>} : vector<128x128xbf16>, vector<128x32xbf16>, vector<128x32xf32> -> vector<128x32xf32>
    %c4_31 = arith.constant 4 : index
    %c0_32 = arith.constant 0 : index
    %42 = vector.load %arg2[%c4_31, %c0_32] : memref<9x4992xf32, #tpu.memory_space<vmem>>, vector<1x32xf32>
    %43 = vector.broadcast %42 : vector<1x32xf32> to vector<128x32xf32>
    %44 = arith.mulf %41, %43 : vector<128x32xf32>
    %45 = arith.addf %38, %44 : vector<128x32xf32>
    %c5 = arith.constant 5 : index
    %c0_33 = arith.constant 0 : index
    %c0_34 = arith.constant 0 : index
    %46 = vector.load %arg4[%c5, %c0_33, %c0_34] : memref<9x128x128xbf16, #tpu.memory_space<vmem>>, vector<1x128x128xbf16>
    %47 = vector.shape_cast %46 : vector<1x128x128xbf16> to vector<128x128xbf16>
    %cst_35 = arith.constant dense<0.000000e+00> : vector<128x32xf32>
    %48 = tpu.matmul %47, %11, %cst_35 {dimension_numbers = #tpu.dot_dimension_numbers<[1], [0], [0], [1], [0, 0, 1, 1], [], []>} : vector<128x128xbf16>, vector<128x32xbf16>, vector<128x32xf32> -> vector<128x32xf32>
    %c5_36 = arith.constant 5 : index
    %c0_37 = arith.constant 0 : index
    %49 = vector.load %arg2[%c5_36, %c0_37] : memref<9x4992xf32, #tpu.memory_space<vmem>>, vector<1x32xf32>
    %50 = vector.broadcast %49 : vector<1x32xf32> to vector<128x32xf32>
    %51 = arith.mulf %48, %50 : vector<128x32xf32>
    %52 = arith.addf %45, %51 : vector<128x32xf32>
    %c6 = arith.constant 6 : index
    %c0_38 = arith.constant 0 : index
    %c0_39 = arith.constant 0 : index
    %53 = vector.load %arg4[%c6, %c0_38, %c0_39] : memref<9x128x128xbf16, #tpu.memory_space<vmem>>, vector<1x128x128xbf16>
    %54 = vector.shape_cast %53 : vector<1x128x128xbf16> to vector<128x128xbf16>
    %cst_40 = arith.constant dense<0.000000e+00> : vector<128x32xf32>
    %55 = tpu.matmul %54, %11, %cst_40 {dimension_numbers = #tpu.dot_dimension_numbers<[1], [0], [0], [1], [0, 0, 1, 1], [], []>} : vector<128x128xbf16>, vector<128x32xbf16>, vector<128x32xf32> -> vector<128x32xf32>
    %c6_41 = arith.constant 6 : index
    %c0_42 = arith.constant 0 : index
    %56 = vector.load %arg2[%c6_41, %c0_42] : memref<9x4992xf32, #tpu.memory_space<vmem>>, vector<1x32xf32>
    %57 = vector.broadcast %56 : vector<1x32xf32> to vector<128x32xf32>
    %58 = arith.mulf %55, %57 : vector<128x32xf32>
    %59 = arith.addf %52, %58 : vector<128x32xf32>
    %c7 = arith.constant 7 : index
    %c0_43 = arith.constant 0 : index
    %c0_44 = arith.constant 0 : index
    %60 = vector.load %arg4[%c7, %c0_43, %c0_44] : memref<9x128x128xbf16, #tpu.memory_space<vmem>>, vector<1x128x128xbf16>
    %61 = vector.shape_cast %60 : vector<1x128x128xbf16> to vector<128x128xbf16>
    %cst_45 = arith.constant dense<0.000000e+00> : vector<128x32xf32>
    %62 = tpu.matmul %61, %11, %cst_45 {dimension_numbers = #tpu.dot_dimension_numbers<[1], [0], [0], [1], [0, 0, 1, 1], [], []>} : vector<128x128xbf16>, vector<128x32xbf16>, vector<128x32xf32> -> vector<128x32xf32>
    %c7_46 = arith.constant 7 : index
    %c0_47 = arith.constant 0 : index
    %63 = vector.load %arg2[%c7_46, %c0_47] : memref<9x4992xf32, #tpu.memory_space<vmem>>, vector<1x32xf32>
    %64 = vector.broadcast %63 : vector<1x32xf32> to vector<128x32xf32>
    %65 = arith.mulf %62, %64 : vector<128x32xf32>
    %66 = arith.addf %59, %65 : vector<128x32xf32>
    %c8 = arith.constant 8 : index
    %c0_48 = arith.constant 0 : index
    %c0_49 = arith.constant 0 : index
    %67 = vector.load %arg4[%c8, %c0_48, %c0_49] : memref<9x128x128xbf16, #tpu.memory_space<vmem>>, vector<1x128x128xbf16>
    %68 = vector.shape_cast %67 : vector<1x128x128xbf16> to vector<128x128xbf16>
    %cst_50 = arith.constant dense<0.000000e+00> : vector<128x32xf32>
    %69 = tpu.matmul %68, %11, %cst_50 {dimension_numbers = #tpu.dot_dimension_numbers<[1], [0], [0], [1], [0, 0, 1, 1], [], []>} : vector<128x128xbf16>, vector<128x32xbf16>, vector<128x32xf32> -> vector<128x32xf32>
    %c8_51 = arith.constant 8 : index
    %c0_52 = arith.constant 0 : index
    %70 = vector.load %arg2[%c8_51, %c0_52] : memref<9x4992xf32, #tpu.memory_space<vmem>>, vector<1x32xf32>
    %71 = vector.broadcast %70 : vector<1x32xf32> to vector<128x32xf32>
    %72 = arith.mulf %69, %71 : vector<128x32xf32>
    %73 = arith.addf %66, %72 : vector<128x32xf32>
    %c0_53 = arith.constant 0 : index
    %c128 = arith.constant 128 : index
    %74 = vector.load %arg1[%c0_53, %c128] : memref<1x11904xf32, #tpu.memory_space<vmem>>, vector<1x32xf32>
    %75 = vector.broadcast %74 : vector<1x32xf32> to vector<128x32xf32>
    %76 = arith.addf %73, %75 : vector<128x32xf32>
    %cst_54 = arith.constant 0.000000e+00 : f32
    %cst_55 = arith.constant 6.000000e+00 : f32
    %77 = vector.broadcast %cst_54 : f32 to vector<128x32xf32>
    %78 = arith.maximumf %77, %76 : vector<128x32xf32>
    %79 = vector.broadcast %cst_55 : f32 to vector<128x32xf32>
    %80 = arith.minimumf %79, %78 : vector<128x32xf32>
    %81 = arith.truncf %80 : vector<128x32xf32> to vector<128x32xbf16>
    %c0_56 = arith.constant 0 : index
    %c0_57 = arith.constant 0 : index
    %82 = vector.load %arg5[%c0_56, %c0_57] : memref<32x16xbf16, #tpu.memory_space<vmem>>, vector<32x16xbf16>
    %cst_58 = arith.constant dense<0.000000e+00> : vector<128x16xf32>
    %83 = tpu.matmul %81, %82, %cst_58 {dimension_numbers = #tpu.dot_dimension_numbers<[1], [0], [0], [1], [0, 0, 1, 1], [], []>} : vector<128x32xbf16>, vector<32x16xbf16>, vector<128x16xf32> -> vector<128x16xf32>
    %c0_59 = arith.constant 0 : index
    %c256 = arith.constant 256 : index
    %84 = vector.load %arg1[%c0_59, %c256] : memref<1x11904xf32, #tpu.memory_space<vmem>>, vector<1x16xf32>
    %85 = vector.broadcast %84 : vector<1x16xf32> to vector<128x16xf32>
    %86 = arith.addf %83, %85 : vector<128x16xf32>
    %c0_60 = arith.constant 0 : index
    %c0_61 = arith.constant 0 : index
    %87 = vector.load %arg38[%c0_60, %c0_61] : memref<128x16xf32, #tpu.memory_space<vmem>>, vector<128x16xf32>
    tpu.vector_store %arg38[%c0_60, %c0_61], %86 {strides = array<i32>} : memref<128x16xf32, #tpu.memory_space<vmem>>, vector<128x16xf32>,
    %88 = arith.truncf %86 : vector<128x16xf32> to vector<128x16xbf16>
    %c0_62 = arith.constant 0 : index
    %c0_63 = arith.constant 0 : index
    %89 = vector.load %arg6[%c0_62, %c0_63] : memref<16x96xbf16, #tpu.memory_space<vmem>>, vector<16x96xbf16>
    %cst_64 = arith.constant dense<0.000000e+00> : vector<128x96xf32>
    %90 = tpu.matmul %88, %89, %cst_64 {dimension_numbers = #tpu.dot_dimension_numbers<[1], [0], [0], [1], [0, 0, 1, 1], [], []>} : vector<128x16xbf16>, vector<16x96xbf16>, vector<128x96xf32> -> vector<128x96xf32>
    %c0_65 = arith.constant 0 : index
    %c384 = arith.constant 384 : index
    %91 = vector.load %arg1[%c0_65, %c384] : memref<1x11904xf32, #tpu.memory_space<vmem>>, vector<1x96xf32>
    %92 = vector.broadcast %91 : vector<1x96xf32> to vector<128x96xf32>
    %93 = arith.addf %90, %92 : vector<128x96xf32>
    %cst_66 = arith.constant 0.000000e+00 : f32
    %cst_67 = arith.constant 6.000000e+00 : f32
    %94 = vector.broadcast %cst_66 : f32 to vector<128x96xf32>
    %95 = arith.maximumf %94, %93 : vector<128x96xf32>
    %96 = vector.broadcast %cst_67 : f32 to vector<128x96xf32>
    %97 = arith.minimumf %96, %95 : vector<128x96xf32>
    %98 = arith.truncf %97 : vector<128x96xf32> to vector<128x96xbf16>
    %c0_68 = arith.constant 0 : index
    %c0_69 = arith.constant 0 : index
    %c0_70 = arith.constant 0 : index
    %99 = vector.load %arg7[%c0_68, %c0_69, %c0_70] : memref<9x32x128xbf16, #tpu.memory_space<vmem>>, vector<1x32x128xbf16>
    %100 = vector.shape_cast %99 : vector<1x32x128xbf16> to vector<32x128xbf16>
    %cst_71 = arith.constant dense<0.000000e+00> : vector<32x96xf32>
    %101 = tpu.matmul %100, %98, %cst_71 {dimension_numbers = #tpu.dot_dimension_numbers<[1], [0], [0], [1], [0, 0, 1, 1], [], []>} : vector<32x128xbf16>, vector<128x96xbf16>, vector<32x96xf32> -> vector<32x96xf32>
    %c0_72 = arith.constant 0 : index
    %c128_73 = arith.constant 128 : index
    %102 = vector.load %arg2[%c0_72, %c128_73] : memref<9x4992xf32, #tpu.memory_space<vmem>>, vector<1x96xf32>
    %103 = vector.broadcast %102 : vector<1x96xf32> to vector<32x96xf32>
    %104 = arith.mulf %101, %103 : vector<32x96xf32>
    %c1_74 = arith.constant 1 : index
    %c0_75 = arith.constant 0 : index
    %c0_76 = arith.constant 0 : index
    %105 = vector.load %arg7[%c1_74, %c0_75, %c0_76] : memref<9x32x128xbf16, #tpu.memory_space<vmem>>, vector<1x32x128xbf16>
    %106 = vector.shape_cast %105 : vector<1x32x128xbf16> to vector<32x128xbf16>
    %cst_77 = arith.constant dense<0.000000e+00> : vector<32x96xf32>
    %107 = tpu.matmul %106, %98, %cst_77 {dimension_numbers = #tpu.dot_dimension_numbers<[1], [0], [0], [1], [0, 0, 1, 1], [], []>} : vector<32x128xbf16>, vector<128x96xbf16>, vector<32x96xf32> -> vector<32x96xf32>
    %c1_78 = arith.constant 1 : index
    %c128_79 = arith.constant 128 : index
    %108 = vector.load %arg2[%c1_78, %c128_79] : memref<9x4992xf32, #tpu.memory_space<vmem>>, vector<1x96xf32>
    %109 = vector.broadcast %108 : vector<1x96xf32> to vector<32x96xf32>
    %110 = arith.mulf %107, %109 : vector<32x96xf32>
    %111 = arith.addf %104, %110 : vector<32x96xf32>
    %c2_80 = arith.constant 2 : index
    %c0_81 = arith.constant 0 : index
    %c0_82 = arith.constant 0 : index
    %112 = vector.load %arg7[%c2_80, %c0_81, %c0_82] : memref<9x32x128xbf16, #tpu.memory_space<vmem>>, vector<1x32x128xbf16>
    %113 = vector.shape_cast %112 : vector<1x32x128xbf16> to vector<32x128xbf16>
    %cst_83 = arith.constant dense<0.000000e+00> : vector<32x96xf32>
    %114 = tpu.matmul %113, %98, %cst_83 {dimension_numbers = #tpu.dot_dimension_numbers<[1], [0], [0], [1], [0, 0, 1, 1], [], []>} : vector<32x128xbf16>, vector<128x96xbf16>, vector<32x96xf32> -> vector<32x96xf32>
    %c2_84 = arith.constant 2 : index
    %c128_85 = arith.constant 128 : index
    %115 = vector.load %arg2[%c2_84, %c128_85] : memref<9x4992xf32, #tpu.memory_space<vmem>>, vector<1x96xf32>
    %116 = vector.broadcast %115 : vector<1x96xf32> to vector<32x96xf32>
    %117 = arith.mulf %114, %116 : vector<32x96xf32>
    %118 = arith.addf %111, %117 : vector<32x96xf32>
    %c3_86 = arith.constant 3 : index
    %c0_87 = arith.constant 0 : index
    %c0_88 = arith.constant 0 : index
    %119 = vector.load %arg7[%c3_86, %c0_87, %c0_88] : memref<9x32x128xbf16, #tpu.memory_space<vmem>>, vector<1x32x128xbf16>
    %120 = vector.shape_cast %119 : vector<1x32x128xbf16> to vector<32x128xbf16>
    %cst_89 = arith.constant dense<0.000000e+00> : vector<32x96xf32>
    %121 = tpu.matmul %120, %98, %cst_89 {dimension_numbers = #tpu.dot_dimension_numbers<[1], [0], [0], [1], [0, 0, 1, 1], [], []>} : vector<32x128xbf16>, vector<128x96xbf16>, vector<32x96xf32> -> vector<32x96xf32>
    %c3_90 = arith.constant 3 : index
    %c128_91 = arith.constant 128 : index
    %122 = vector.load %arg2[%c3_90, %c128_91] : memref<9x4992xf32, #tpu.memory_space<vmem>>, vector<1x96xf32>
    %123 = vector.broadcast %122 : vector<1x96xf32> to vector<32x96xf32>
    %124 = arith.mulf %121, %123 : vector<32x96xf32>
    %125 = arith.addf %118, %124 : vector<32x96xf32>
    %c4_92 = arith.constant 4 : index
    %c0_93 = arith.constant 0 : index
    %c0_94 = arith.constant 0 : index
    %126 = vector.load %arg7[%c4_92, %c0_93, %c0_94] : memref<9x32x128xbf16, #tpu.memory_space<vmem>>, vector<1x32x128xbf16>
    %127 = vector.shape_cast %126 : vector<1x32x128xbf16> to vector<32x128xbf16>
    %cst_95 = arith.constant dense<0.000000e+00> : vector<32x96xf32>
    %128 = tpu.matmul %127, %98, %cst_95 {dimension_numbers = #tpu.dot_dimension_numbers<[1], [0], [0], [1], [0, 0, 1, 1], [], []>} : vector<32x128xbf16>, vector<128x96xbf16>, vector<32x96xf32> -> vector<32x96xf32>
    %c4_96 = arith.constant 4 : index
    %c128_97 = arith.constant 128 : index
    %129 = vector.load %arg2[%c4_96, %c128_97] : memref<9x4992xf32, #tpu.memory_space<vmem>>, vector<1x96xf32>
    %130 = vector.broadcast %129 : vector<1x96xf32> to vector<32x96xf32>
    %131 = arith.mulf %128, %130 : vector<32x96xf32>
    %132 = arith.addf %125, %131 : vector<32x96xf32>
    %c5_98 = arith.constant 5 : index
    %c0_99 = arith.constant 0 : index
    %c0_100 = arith.constant 0 : index
    %133 = vector.load %arg7[%c5_98, %c0_99, %c0_100] : memref<9x32x128xbf16, #tpu.memory_space<vmem>>, vector<1x32x128xbf16>
    %134 = vector.shape_cast %133 : vector<1x32x128xbf16> to vector<32x128xbf16>
    %cst_101 = arith.constant dense<0.000000e+00> : vector<32x96xf32>
    %135 = tpu.matmul %134, %98, %cst_101 {dimension_numbers = #tpu.dot_dimension_numbers<[1], [0], [0], [1], [0, 0, 1, 1], [], []>} : vector<32x128xbf16>, vector<128x96xbf16>, vector<32x96xf32> -> vector<32x96xf32>
    %c5_102 = arith.constant 5 : index
    %c128_103 = arith.constant 128 : index
    %136 = vector.load %arg2[%c5_102, %c128_103] : memref<9x4992xf32, #tpu.memory_space<vmem>>, vector<1x96xf32>
    %137 = vector.broadcast %136 : vector<1x96xf32> to vector<32x96xf32>
    %138 = arith.mulf %135, %137 : vector<32x96xf32>
    %139 = arith.addf %132, %138 : vector<32x96xf32>
    %c6_104 = arith.constant 6 : index
    %c0_105 = arith.constant 0 : index
    %c0_106 = arith.constant 0 : index
    %140 = vector.load %arg7[%c6_104, %c0_105, %c0_106] : memref<9x32x128xbf16, #tpu.memory_space<vmem>>, vector<1x32x128xbf16>
    %141 = vector.shape_cast %140 : vector<1x32x128xbf16> to vector<32x128xbf16>
    %cst_107 = arith.constant dense<0.000000e+00> : vector<32x96xf32>
    %142 = tpu.matmul %141, %98, %cst_107 {dimension_numbers = #tpu.dot_dimension_numbers<[1], [0], [0], [1], [0, 0, 1, 1], [], []>} : vector<32x128xbf16>, vector<128x96xbf16>, vector<32x96xf32> -> vector<32x96xf32>
    %c6_108 = arith.constant 6 : index
    %c128_109 = arith.constant 128 : index
    %143 = vector.load %arg2[%c6_108, %c128_109] : memref<9x4992xf32, #tpu.memory_space<vmem>>, vector<1x96xf32>
    %144 = vector.broadcast %143 : vector<1x96xf32> to vector<32x96xf32>
    %145 = arith.mulf %142, %144 : vector<32x96xf32>
    %146 = arith.addf %139, %145 : vector<32x96xf32>
    %c7_110 = arith.constant 7 : index
    %c0_111 = arith.constant 0 : index
    %c0_112 = arith.constant 0 : index
    %147 = vector.load %arg7[%c7_110, %c0_111, %c0_112] : memref<9x32x128xbf16, #tpu.memory_space<vmem>>, vector<1x32x128xbf16>
    %148 = vector.shape_cast %147 : vector<1x32x128xbf16> to vector<32x128xbf16>
    %cst_113 = arith.constant dense<0.000000e+00> : vector<32x96xf32>
    %149 = tpu.matmul %148, %98, %cst_113 {dimension_numbers = #tpu.dot_dimension_numbers<[1], [0], [0], [1], [0, 0, 1, 1], [], []>} : vector<32x128xbf16>, vector<128x96xbf16>, vector<32x96xf32> -> vector<32x96xf32>
    %c7_114 = arith.constant 7 : index
    %c128_115 = arith.constant 128 : index
    %150 = vector.load %arg2[%c7_114, %c128_115] : memref<9x4992xf32, #tpu.memory_space<vmem>>, vector<1x96xf32>
    %151 = vector.broadcast %150 : vector<1x96xf32> to vector<32x96xf32>
    %152 = arith.mulf %149, %151 : vector<32x96xf32>
    %153 = arith.addf %146, %152 : vector<32x96xf32>
    %c8_116 = arith.constant 8 : index
    %c0_117 = arith.constant 0 : index
    %c0_118 = arith.constant 0 : index
    %154 = vector.load %arg7[%c8_116, %c0_117, %c0_118] : memref<9x32x128xbf16, #tpu.memory_space<vmem>>, vector<1x32x128xbf16>
    %155 = vector.shape_cast %154 : vector<1x32x128xbf16> to vector<32x128xbf16>
    %cst_119 = arith.constant dense<0.000000e+00> : vector<32x96xf32>
    %156 = tpu.matmul %155, %98, %cst_119 {dimension_numbers = #tpu.dot_dimension_numbers<[1], [0], [0], [1], [0, 0, 1, 1], [], []>} : vector<32x128xbf16>, vector<128x96xbf16>, vector<32x96xf32> -> vector<32x96xf32>
    %c8_120 = arith.constant 8 : index
    %c128_121 = arith.constant 128 : index
    %157 = vector.load %arg2[%c8_120, %c128_121] : memref<9x4992xf32, #tpu.memory_space<vmem>>, vector<1x96xf32>
    %158 = vector.broadcast %157 : vector<1x96xf32> to vector<32x96xf32>
    %159 = arith.mulf %156, %158 : vector<32x96xf32>
    %160 = arith.addf %153, %159 : vector<32x96xf32>
    %c0_122 = arith.constant 0 : index
    %c512 = arith.constant 512 : index
    %161 = vector.load %arg1[%c0_122, %c512] : memref<1x11904xf32, #tpu.memory_space<vmem>>, vector<1x96xf32>
    %162 = vector.broadcast %161 : vector<1x96xf32> to vector<32x96xf32>
    %163 = arith.addf %160, %162 : vector<32x96xf32>
    %cst_123 = arith.constant 0.000000e+00 : f32
    %cst_124 = arith.constant 6.000000e+00 : f32
    %164 = vector.broadcast %cst_123 : f32 to vector<32x96xf32>
    %165 = arith.maximumf %164, %163 : vector<32x96xf32>
    %166 = vector.broadcast %cst_124 : f32 to vector<32x96xf32>
    %167 = arith.minimumf %166, %165 : vector<32x96xf32>
    %168 = arith.truncf %167 : vector<32x96xf32> to vector<32x96xbf16>
    %c0_125 = arith.constant 0 : index
    %c0_126 = arith.constant 0 : index
    %169 = vector.load %arg8[%c0_125, %c0_126] : memref<96x24xbf16, #tpu.memory_space<vmem>>, vector<96x24xbf16>
    %cst_127 = arith.constant dense<0.000000e+00> : vector<32x24xf32>
    %170 = tpu.matmul %168, %169, %cst_127 {dimension_numbers = #tpu.dot_dimension_numbers<[1], [0], [0], [1], [0, 0, 1, 1], [], []>} : vector<32x96xbf16>, vector<96x24xbf16>, vector<32x24xf32> -> vector<32x24xf32>
    %c0_128 = arith.constant 0 : index
    %c640 = arith.constant 640 : index
    %171 = vector.load %arg1[%c0_128, %c640] : memref<1x11904xf32, #tpu.memory_space<vmem>>, vector<1x24xf32>
    %172 = vector.broadcast %171 : vector<1x24xf32> to vector<32x24xf32>
    %173 = arith.addf %170, %172 : vector<32x24xf32>
    %c0_129 = arith.constant 0 : index
    %c0_130 = arith.constant 0 : index
    %174 = vector.load %arg39[%c0_129, %c0_130] : memref<32x24xf32, #tpu.memory_space<vmem>>, vector<32x24xf32>
    tpu.vector_store %arg39[%c0_129, %c0_130], %173 {strides = array<i32>} : memref<32x24xf32, #tpu.memory_space<vmem>>, vector<32x24xf32>,
    %175 = arith.truncf %173 : vector<32x24xf32> to vector<32x24xbf16>
    %c0_131 = arith.constant 0 : index
    %c0_132 = arith.constant 0 : index
    %176 = vector.load %arg9[%c0_131, %c0_132] : memref<24x144xbf16, #tpu.memory_space<vmem>>, vector<24x144xbf16>
    %cst_133 = arith.constant dense<0.000000e+00> : vector<32x144xf32>
    %177 = tpu.matmul %175, %176, %cst_133 {dimension_numbers = #tpu.dot_dimension_numbers<[1], [0], [0], [1], [0, 0, 1, 1], [], []>} : vector<32x24xbf16>, vector<24x144xbf16>, vector<32x144xf32> -> vector<32x144xf32>
    %c0_134 = arith.constant 0 : index
    %c768 = arith.constant 768 : index
    %178 = vector.load %arg1[%c0_134, %c768] : memref<1x11904xf32, #tpu.memory_space<vmem>>, vector<1x144xf32>
    %179 = vector.broadcast %178 : vector<1x144xf32> to vector<32x144xf32>
    %180 = arith.addf %177, %179 : vector<32x144xf32>
    %cst_135 = arith.constant 0.000000e+00 : f32
    %cst_136 = arith.constant 6.000000e+00 : f32
    %181 = vector.broadcast %cst_135 : f32 to vector<32x144xf32>
    %182 = arith.maximumf %181, %180 : vector<32x144xf32>
    %183 = vector.broadcast %cst_136 : f32 to vector<32x144xf32>
    %184 = arith.minimumf %183, %182 : vector<32x144xf32>
    %185 = arith.truncf %184 : vector<32x144xf32> to vector<32x144xbf16>
    %c0_137 = arith.constant 0 : index
    %c0_138 = arith.constant 0 : index
    %c0_139 = arith.constant 0 : index
    %186 = vector.load %arg10[%c0_137, %c0_138, %c0_139] : memref<9x32x32xbf16, #tpu.memory_space<vmem>>, vector<1x32x32xbf16>
    %187 = vector.shape_cast %186 : vector<1x32x32xbf16> to vector<32x32xbf16>
    %cst_140 = arith.constant dense<0.000000e+00> : vector<32x144xf32>
    %188 = tpu.matmul %187, %185, %cst_140 {dimension_numbers = #tpu.dot_dimension_numbers<[1], [0], [0], [1], [0, 0, 1, 1], [], []>} : vector<32x32xbf16>, vector<32x144xbf16>, vector<32x144xf32> -> vector<32x144xf32>
    %c0_141 = arith.constant 0 : index
    %c256_142 = arith.constant 256 : index
    %189 = vector.load %arg2[%c0_141, %c256_142] : memref<9x4992xf32, #tpu.memory_space<vmem>>, vector<1x144xf32>
    %190 = vector.broadcast %189 : vector<1x144xf32> to vector<32x144xf32>
    %191 = arith.mulf %188, %190 : vector<32x144xf32>
    %c1_143 = arith.constant 1 : index
    %c0_144 = arith.constant 0 : index
    %c0_145 = arith.constant 0 : index
    %192 = vector.load %arg10[%c1_143, %c0_144, %c0_145] : memref<9x32x32xbf16, #tpu.memory_space<vmem>>, vector<1x32x32xbf16>
    %193 = vector.shape_cast %192 : vector<1x32x32xbf16> to vector<32x32xbf16>
    %cst_146 = arith.constant dense<0.000000e+00> : vector<32x144xf32>
    %194 = tpu.matmul %193, %185, %cst_146 {dimension_numbers = #tpu.dot_dimension_numbers<[1], [0], [0], [1], [0, 0, 1, 1], [], []>} : vector<32x32xbf16>, vector<32x144xbf16>, vector<32x144xf32> -> vector<32x144xf32>
    %c1_147 = arith.constant 1 : index
    %c256_148 = arith.constant 256 : index
    %195 = vector.load %arg2[%c1_147, %c256_148] : memref<9x4992xf32, #tpu.memory_space<vmem>>, vector<1x144xf32>
    %196 = vector.broadcast %195 : vector<1x144xf32> to vector<32x144xf32>
    %197 = arith.mulf %194, %196 : vector<32x144xf32>
    %198 = arith.addf %191, %197 : vector<32x144xf32>
    %c2_149 = arith.constant 2 : index
    %c0_150 = arith.constant 0 : index
    %c0_151 = arith.constant 0 : index
    %199 = vector.load %arg10[%c2_149, %c0_150, %c0_151] : memref<9x32x32xbf16, #tpu.memory_space<vmem>>, vector<1x32x32xbf16>
    %200 = vector.shape_cast %199 : vector<1x32x32xbf16> to vector<32x32xbf16>
    %cst_152 = arith.constant dense<0.000000e+00> : vector<32x144xf32>
    %201 = tpu.matmul %200, %185, %cst_152 {dimension_numbers = #tpu.dot_dimension_numbers<[1], [0], [0], [1], [0, 0, 1, 1], [], []>} : vector<32x32xbf16>, vector<32x144xbf16>, vector<32x144xf32> -> vector<32x144xf32>
    %c2_153 = arith.constant 2 : index
    %c256_154 = arith.constant 256 : index
    %202 = vector.load %arg2[%c2_153, %c256_154] : memref<9x4992xf32, #tpu.memory_space<vmem>>, vector<1x144xf32>
    %203 = vector.broadcast %202 : vector<1x144xf32> to vector<32x144xf32>
    %204 = arith.mulf %201, %203 : vector<32x144xf32>
    %205 = arith.addf %198, %204 : vector<32x144xf32>
    %c3_155 = arith.constant 3 : index
    %c0_156 = arith.constant 0 : index
    %c0_157 = arith.constant 0 : index
    %206 = vector.load %arg10[%c3_155, %c0_156, %c0_157] : memref<9x32x32xbf16, #tpu.memory_space<vmem>>, vector<1x32x32xbf16>
    %207 = vector.shape_cast %206 : vector<1x32x32xbf16> to vector<32x32xbf16>
    %cst_158 = arith.constant dense<0.000000e+00> : vector<32x144xf32>
    %208 = tpu.matmul %207, %185, %cst_158 {dimension_numbers = #tpu.dot_dimension_numbers<[1], [0], [0], [1], [0, 0, 1, 1], [], []>} : vector<32x32xbf16>, vector<32x144xbf16>, vector<32x144xf32> -> vector<32x144xf32>
    %c3_159 = arith.constant 3 : index
    %c256_160 = arith.constant 256 : index
    %209 = vector.load %arg2[%c3_159, %c256_160] : memref<9x4992xf32, #tpu.memory_space<vmem>>, vector<1x144xf32>
    %210 = vector.broadcast %209 : vector<1x144xf32> to vector<32x144xf32>
    %211 = arith.mulf %208, %210 : vector<32x144xf32>
    %212 = arith.addf %205, %211 : vector<32x144xf32>
    %c4_161 = arith.constant 4 : index
    %c0_162 = arith.constant 0 : index
    %c0_163 = arith.constant 0 : index
    %213 = vector.load %arg10[%c4_161, %c0_162, %c0_163] : memref<9x32x32xbf16, #tpu.memory_space<vmem>>, vector<1x32x32xbf16>
    %214 = vector.shape_cast %213 : vector<1x32x32xbf16> to vector<32x32xbf16>
    %cst_164 = arith.constant dense<0.000000e+00> : vector<32x144xf32>
    %215 = tpu.matmul %214, %185, %cst_164 {dimension_numbers = #tpu.dot_dimension_numbers<[1], [0], [0], [1], [0, 0, 1, 1], [], []>} : vector<32x32xbf16>, vector<32x144xbf16>, vector<32x144xf32> -> vector<32x144xf32>
    %c4_165 = arith.constant 4 : index
    %c256_166 = arith.constant 256 : index
    %216 = vector.load %arg2[%c4_165, %c256_166] : memref<9x4992xf32, #tpu.memory_space<vmem>>, vector<1x144xf32>
    %217 = vector.broadcast %216 : vector<1x144xf32> to vector<32x144xf32>
    %218 = arith.mulf %215, %217 : vector<32x144xf32>
    %219 = arith.addf %212, %218 : vector<32x144xf32>
    %c5_167 = arith.constant 5 : index
    %c0_168 = arith.constant 0 : index
    %c0_169 = arith.constant 0 : index
    %220 = vector.load %arg10[%c5_167, %c0_168, %c0_169] : memref<9x32x32xbf16, #tpu.memory_space<vmem>>, vector<1x32x32xbf16>
    %221 = vector.shape_cast %220 : vector<1x32x32xbf16> to vector<32x32xbf16>
    %cst_170 = arith.constant dense<0.000000e+00> : vector<32x144xf32>
    %222 = tpu.matmul %221, %185, %cst_170 {dimension_numbers = #tpu.dot_dimension_numbers<[1], [0], [0], [1], [0, 0, 1, 1], [], []>} : vector<32x32xbf16>, vector<32x144xbf16>, vector<32x144xf32> -> vector<32x144xf32>
    %c5_171 = arith.constant 5 : index
    %c256_172 = arith.constant 256 : index
    %223 = vector.load %arg2[%c5_171, %c256_172] : memref<9x4992xf32, #tpu.memory_space<vmem>>, vector<1x144xf32>
    %224 = vector.broadcast %223 : vector<1x144xf32> to vector<32x144xf32>
    %225 = arith.mulf %222, %224 : vector<32x144xf32>
    %226 = arith.addf %219, %225 : vector<32x144xf32>
    %c6_173 = arith.constant 6 : index
    %c0_174 = arith.constant 0 : index
    %c0_175 = arith.constant 0 : index
    %227 = vector.load %arg10[%c6_173, %c0_174, %c0_175] : memref<9x32x32xbf16, #tpu.memory_space<vmem>>, vector<1x32x32xbf16>
    %228 = vector.shape_cast %227 : vector<1x32x32xbf16> to vector<32x32xbf16>
    %cst_176 = arith.constant dense<0.000000e+00> : vector<32x144xf32>
    %229 = tpu.matmul %228, %185, %cst_176 {dimension_numbers = #tpu.dot_dimension_numbers<[1], [0], [0], [1], [0, 0, 1, 1], [], []>} : vector<32x32xbf16>, vector<32x144xbf16>, vector<32x144xf32> -> vector<32x144xf32>
    %c6_177 = arith.constant 6 : index
    %c256_178 = arith.constant 256 : index
    %230 = vector.load %arg2[%c6_177, %c256_178] : memref<9x4992xf32, #tpu.memory_space<vmem>>, vector<1x144xf32>
    %231 = vector.broadcast %230 : vector<1x144xf32> to vector<32x144xf32>
    %232 = arith.mulf %229, %231 : vector<32x144xf32>
    %233 = arith.addf %226, %232 : vector<32x144xf32>
    %c7_179 = arith.constant 7 : index
    %c0_180 = arith.constant 0 : index
    %c0_181 = arith.constant 0 : index
    %234 = vector.load %arg10[%c7_179, %c0_180, %c0_181] : memref<9x32x32xbf16, #tpu.memory_space<vmem>>, vector<1x32x32xbf16>
    %235 = vector.shape_cast %234 : vector<1x32x32xbf16> to vector<32x32xbf16>
    %cst_182 = arith.constant dense<0.000000e+00> : vector<32x144xf32>
    %236 = tpu.matmul %235, %185, %cst_182 {dimension_numbers = #tpu.dot_dimension_numbers<[1], [0], [0], [1], [0, 0, 1, 1], [], []>} : vector<32x32xbf16>, vector<32x144xbf16>, vector<32x144xf32> -> vector<32x144xf32>
    %c7_183 = arith.constant 7 : index
    %c256_184 = arith.constant 256 : index
    %237 = vector.load %arg2[%c7_183, %c256_184] : memref<9x4992xf32, #tpu.memory_space<vmem>>, vector<1x144xf32>
    %238 = vector.broadcast %237 : vector<1x144xf32> to vector<32x144xf32>
    %239 = arith.mulf %236, %238 : vector<32x144xf32>
    %240 = arith.addf %233, %239 : vector<32x144xf32>
    %c8_185 = arith.constant 8 : index
    %c0_186 = arith.constant 0 : index
    %c0_187 = arith.constant 0 : index
    %241 = vector.load %arg10[%c8_185, %c0_186, %c0_187] : memref<9x32x32xbf16, #tpu.memory_space<vmem>>, vector<1x32x32xbf16>
    %242 = vector.shape_cast %241 : vector<1x32x32xbf16> to vector<32x32xbf16>
    %cst_188 = arith.constant dense<0.000000e+00> : vector<32x144xf32>
    %243 = tpu.matmul %242, %185, %cst_188 {dimension_numbers = #tpu.dot_dimension_numbers<[1], [0], [0], [1], [0, 0, 1, 1], [], []>} : vector<32x32xbf16>, vector<32x144xbf16>, vector<32x144xf32> -> vector<32x144xf32>
    %c8_189 = arith.constant 8 : index
    %c256_190 = arith.constant 256 : index
    %244 = vector.load %arg2[%c8_189, %c256_190] : memref<9x4992xf32, #tpu.memory_space<vmem>>, vector<1x144xf32>
    %245 = vector.broadcast %244 : vector<1x144xf32> to vector<32x144xf32>
    %246 = arith.mulf %243, %245 : vector<32x144xf32>
    %247 = arith.addf %240, %246 : vector<32x144xf32>
    %c0_191 = arith.constant 0 : index
    %c1024 = arith.constant 1024 : index
    %248 = vector.load %arg1[%c0_191, %c1024] : memref<1x11904xf32, #tpu.memory_space<vmem>>, vector<1x144xf32>
    %249 = vector.broadcast %248 : vector<1x144xf32> to vector<32x144xf32>
    %250 = arith.addf %247, %249 : vector<32x144xf32>
    %cst_192 = arith.constant 0.000000e+00 : f32
    %cst_193 = arith.constant 6.000000e+00 : f32
    %251 = vector.broadcast %cst_192 : f32 to vector<32x144xf32>
    %252 = arith.maximumf %251, %250 : vector<32x144xf32>
    %253 = vector.broadcast %cst_193 : f32 to vector<32x144xf32>
    %254 = arith.minimumf %253, %252 : vector<32x144xf32>
    %255 = arith.truncf %254 : vector<32x144xf32> to vector<32x144xbf16>
    %c0_194 = arith.constant 0 : index
    %c0_195 = arith.constant 0 : index
    %256 = vector.load %arg11[%c0_194, %c0_195] : memref<144x24xbf16, #tpu.memory_space<vmem>>, vector<144x24xbf16>
    %cst_196 = arith.constant dense<0.000000e+00> : vector<32x24xf32>
    %257 = tpu.matmul %255, %256, %cst_196 {dimension_numbers = #tpu.dot_dimension_numbers<[1], [0], [0], [1], [0, 0, 1, 1], [], []>} : vector<32x144xbf16>, vector<144x24xbf16>, vector<32x24xf32> -> vector<32x24xf32>
    %c0_197 = arith.constant 0 : index
    %c1280 = arith.constant 1280 : index
    %258 = vector.load %arg1[%c0_197, %c1280] : memref<1x11904xf32, #tpu.memory_space<vmem>>, vector<1x24xf32>
    %259 = vector.broadcast %258 : vector<1x24xf32> to vector<32x24xf32>
    %260 = arith.addf %257, %259 : vector<32x24xf32>
    %261 = arith.addf %260, %173 : vector<32x24xf32>
    %262 = arith.truncf %261 : vector<32x24xf32> to vector<32x24xbf16>
    %c0_198 = arith.constant 0 : index
    %c0_199 = arith.constant 0 : index
    %263 = vector.load %arg12[%c0_198, %c0_199] : memref<24x144xbf16, #tpu.memory_space<vmem>>, vector<24x144xbf16>
    %cst_200 = arith.constant dense<0.000000e+00> : vector<32x144xf32>
    %264 = tpu.matmul %262, %263, %cst_200 {dimension_numbers = #tpu.dot_dimension_numbers<[1], [0], [0], [1], [0, 0, 1, 1], [], []>} : vector<32x24xbf16>, vector<24x144xbf16>, vector<32x144xf32> -> vector<32x144xf32>
    %c0_201 = arith.constant 0 : index
    %c1408 = arith.constant 1408 : index
    %265 = vector.load %arg1[%c0_201, %c1408] : memref<1x11904xf32, #tpu.memory_space<vmem>>, vector<1x144xf32>
    %266 = vector.broadcast %265 : vector<1x144xf32> to vector<32x144xf32>
    %267 = arith.addf %264, %266 : vector<32x144xf32>
    %cst_202 = arith.constant 0.000000e+00 : f32
    %cst_203 = arith.constant 6.000000e+00 : f32
    %268 = vector.broadcast %cst_202 : f32 to vector<32x144xf32>
    %269 = arith.maximumf %268, %267 : vector<32x144xf32>
    %270 = vector.broadcast %cst_203 : f32 to vector<32x144xf32>
    %271 = arith.minimumf %270, %269 : vector<32x144xf32>
    %272 = arith.truncf %271 : vector<32x144xf32> to vector<32x144xbf16>
    %c0_204 = arith.constant 0 : index
    %c0_205 = arith.constant 0 : index
    %c0_206 = arith.constant 0 : index
    %273 = vector.load %arg13[%c0_204, %c0_205, %c0_206] : memref<9x8x32xbf16, #tpu.memory_space<vmem>>, vector<1x8x32xbf16>
    %274 = vector.shape_cast %273 : vector<1x8x32xbf16> to vector<8x32xbf16>
    %cst_207 = arith.constant dense<0.000000e+00> : vector<8x144xf32>
    %275 = tpu.matmul %274, %272, %cst_207 {dimension_numbers = #tpu.dot_dimension_numbers<[1], [0], [0], [1], [0, 0, 1, 1], [], []>} : vector<8x32xbf16>, vector<32x144xbf16>, vector<8x144xf32> -> vector<8x144xf32>
    %c0_208 = arith.constant 0 : index
    %c512_209 = arith.constant 512 : index
    %276 = vector.load %arg2[%c0_208, %c512_209] : memref<9x4992xf32, #tpu.memory_space<vmem>>, vector<1x144xf32>
    %277 = vector.broadcast %276 : vector<1x144xf32> to vector<8x144xf32>
    %278 = arith.mulf %275, %277 : vector<8x144xf32>
    %c1_210 = arith.constant 1 : index
    %c0_211 = arith.constant 0 : index
    %c0_212 = arith.constant 0 : index
    %279 = vector.load %arg13[%c1_210, %c0_211, %c0_212] : memref<9x8x32xbf16, #tpu.memory_space<vmem>>, vector<1x8x32xbf16>
    %280 = vector.shape_cast %279 : vector<1x8x32xbf16> to vector<8x32xbf16>
    %cst_213 = arith.constant dense<0.000000e+00> : vector<8x144xf32>
    %281 = tpu.matmul %280, %272, %cst_213 {dimension_numbers = #tpu.dot_dimension_numbers<[1], [0], [0], [1], [0, 0, 1, 1], [], []>} : vector<8x32xbf16>, vector<32x144xbf16>, vector<8x144xf32> -> vector<8x144xf32>
    %c1_214 = arith.constant 1 : index
    %c512_215 = arith.constant 512 : index
    %282 = vector.load %arg2[%c1_214, %c512_215] : memref<9x4992xf32, #tpu.memory_space<vmem>>, vector<1x144xf32>
    %283 = vector.broadcast %282 : vector<1x144xf32> to vector<8x144xf32>
    %284 = arith.mulf %281, %283 : vector<8x144xf32>
    %285 = arith.addf %278, %284 : vector<8x144xf32>
    %c2_216 = arith.constant 2 : index
    %c0_217 = arith.constant 0 : index
    %c0_218 = arith.constant 0 : index
    %286 = vector.load %arg13[%c2_216, %c0_217, %c0_218] : memref<9x8x32xbf16, #tpu.memory_space<vmem>>, vector<1x8x32xbf16>
    %287 = vector.shape_cast %286 : vector<1x8x32xbf16> to vector<8x32xbf16>
    %cst_219 = arith.constant dense<0.000000e+00> : vector<8x144xf32>
    %288 = tpu.matmul %287, %272, %cst_219 {dimension_numbers = #tpu.dot_dimension_numbers<[1], [0], [0], [1], [0, 0, 1, 1], [], []>} : vector<8x32xbf16>, vector<32x144xbf16>, vector<8x144xf32> -> vector<8x144xf32>
    %c2_220 = arith.constant 2 : index
    %c512_221 = arith.constant 512 : index
    %289 = vector.load %arg2[%c2_220, %c512_221] : memref<9x4992xf32, #tpu.memory_space<vmem>>, vector<1x144xf32>
    %290 = vector.broadcast %289 : vector<1x144xf32> to vector<8x144xf32>
    %291 = arith.mulf %288, %290 : vector<8x144xf32>
    %292 = arith.addf %285, %291 : vector<8x144xf32>
    %c3_222 = arith.constant 3 : index
    %c0_223 = arith.constant 0 : index
    %c0_224 = arith.constant 0 : index
    %293 = vector.load %arg13[%c3_222, %c0_223, %c0_224] : memref<9x8x32xbf16, #tpu.memory_space<vmem>>, vector<1x8x32xbf16>
    %294 = vector.shape_cast %293 : vector<1x8x32xbf16> to vector<8x32xbf16>
    %cst_225 = arith.constant dense<0.000000e+00> : vector<8x144xf32>
    %295 = tpu.matmul %294, %272, %cst_225 {dimension_numbers = #tpu.dot_dimension_numbers<[1], [0], [0], [1], [0, 0, 1, 1], [], []>} : vector<8x32xbf16>, vector<32x144xbf16>, vector<8x144xf32> -> vector<8x144xf32>
    %c3_226 = arith.constant 3 : index
    %c512_227 = arith.constant 512 : index
    %296 = vector.load %arg2[%c3_226, %c512_227] : memref<9x4992xf32, #tpu.memory_space<vmem>>, vector<1x144xf32>
    %297 = vector.broadcast %296 : vector<1x144xf32> to vector<8x144xf32>
    %298 = arith.mulf %295, %297 : vector<8x144xf32>
    %299 = arith.addf %292, %298 : vector<8x144xf32>
    %c4_228 = arith.constant 4 : index
    %c0_229 = arith.constant 0 : index
    %c0_230 = arith.constant 0 : index
    %300 = vector.load %arg13[%c4_228, %c0_229, %c0_230] : memref<9x8x32xbf16, #tpu.memory_space<vmem>>, vector<1x8x32xbf16>
    %301 = vector.shape_cast %300 : vector<1x8x32xbf16> to vector<8x32xbf16>
    %cst_231 = arith.constant dense<0.000000e+00> : vector<8x144xf32>
    %302 = tpu.matmul %301, %272, %cst_231 {dimension_numbers = #tpu.dot_dimension_numbers<[1], [0], [0], [1], [0, 0, 1, 1], [], []>} : vector<8x32xbf16>, vector<32x144xbf16>, vector<8x144xf32> -> vector<8x144xf32>
    %c4_232 = arith.constant 4 : index
    %c512_233 = arith.constant 512 : index
    %303 = vector.load %arg2[%c4_232, %c512_233] : memref<9x4992xf32, #tpu.memory_space<vmem>>, vector<1x144xf32>
    %304 = vector.broadcast %303 : vector<1x144xf32> to vector<8x144xf32>
    %305 = arith.mulf %302, %304 : vector<8x144xf32>
    %306 = arith.addf %299, %305 : vector<8x144xf32>
    %c5_234 = arith.constant 5 : index
    %c0_235 = arith.constant 0 : index
    %c0_236 = arith.constant 0 : index
    %307 = vector.load %arg13[%c5_234, %c0_235, %c0_236] : memref<9x8x32xbf16, #tpu.memory_space<vmem>>, vector<1x8x32xbf16>
    %308 = vector.shape_cast %307 : vector<1x8x32xbf16> to vector<8x32xbf16>
    %cst_237 = arith.constant dense<0.000000e+00> : vector<8x144xf32>
    %309 = tpu.matmul %308, %272, %cst_237 {dimension_numbers = #tpu.dot_dimension_numbers<[1], [0], [0], [1], [0, 0, 1, 1], [], []>} : vector<8x32xbf16>, vector<32x144xbf16>, vector<8x144xf32> -> vector<8x144xf32>
    %c5_238 = arith.constant 5 : index
    %c512_239 = arith.constant 512 : index
    %310 = vector.load %arg2[%c5_238, %c512_239] : memref<9x4992xf32, #tpu.memory_space<vmem>>, vector<1x144xf32>
    %311 = vector.broadcast %310 : vector<1x144xf32> to vector<8x144xf32>
    %312 = arith.mulf %309, %311 : vector<8x144xf32>
    %313 = arith.addf %306, %312 : vector<8x144xf32>
    %c6_240 = arith.constant 6 : index
    %c0_241 = arith.constant 0 : index
    %c0_242 = arith.constant 0 : index
    %314 = vector.load %arg13[%c6_240, %c0_241, %c0_242] : memref<9x8x32xbf16, #tpu.memory_space<vmem>>, vector<1x8x32xbf16>
    %315 = vector.shape_cast %314 : vector<1x8x32xbf16> to vector<8x32xbf16>
    %cst_243 = arith.constant dense<0.000000e+00> : vector<8x144xf32>
    %316 = tpu.matmul %315, %272, %cst_243 {dimension_numbers = #tpu.dot_dimension_numbers<[1], [0], [0], [1], [0, 0, 1, 1], [], []>} : vector<8x32xbf16>, vector<32x144xbf16>, vector<8x144xf32> -> vector<8x144xf32>
    %c6_244 = arith.constant 6 : index
    %c512_245 = arith.constant 512 : index
    %317 = vector.load %arg2[%c6_244, %c512_245] : memref<9x4992xf32, #tpu.memory_space<vmem>>, vector<1x144xf32>
    %318 = vector.broadcast %317 : vector<1x144xf32> to vector<8x144xf32>
    %319 = arith.mulf %316, %318 : vector<8x144xf32>
    %320 = arith.addf %313, %319 : vector<8x144xf32>
    %c7_246 = arith.constant 7 : index
    %c0_247 = arith.constant 0 : index
    %c0_248 = arith.constant 0 : index
    %321 = vector.load %arg13[%c7_246, %c0_247, %c0_248] : memref<9x8x32xbf16, #tpu.memory_space<vmem>>, vector<1x8x32xbf16>
    %322 = vector.shape_cast %321 : vector<1x8x32xbf16> to vector<8x32xbf16>
    %cst_249 = arith.constant dense<0.000000e+00> : vector<8x144xf32>
    %323 = tpu.matmul %322, %272, %cst_249 {dimension_numbers = #tpu.dot_dimension_numbers<[1], [0], [0], [1], [0, 0, 1, 1], [], []>} : vector<8x32xbf16>, vector<32x144xbf16>, vector<8x144xf32> -> vector<8x144xf32>
    %c7_250 = arith.constant 7 : index
    %c512_251 = arith.constant 512 : index
    %324 = vector.load %arg2[%c7_250, %c512_251] : memref<9x4992xf32, #tpu.memory_space<vmem>>, vector<1x144xf32>
    %325 = vector.broadcast %324 : vector<1x144xf32> to vector<8x144xf32>
    %326 = arith.mulf %323, %325 : vector<8x144xf32>
    %327 = arith.addf %320, %326 : vector<8x144xf32>
    %c8_252 = arith.constant 8 : index
    %c0_253 = arith.constant 0 : index
    %c0_254 = arith.constant 0 : index
    %328 = vector.load %arg13[%c8_252, %c0_253, %c0_254] : memref<9x8x32xbf16, #tpu.memory_space<vmem>>, vector<1x8x32xbf16>
    %329 = vector.shape_cast %328 : vector<1x8x32xbf16> to vector<8x32xbf16>
    %cst_255 = arith.constant dense<0.000000e+00> : vector<8x144xf32>
    %330 = tpu.matmul %329, %272, %cst_255 {dimension_numbers = #tpu.dot_dimension_numbers<[1], [0], [0], [1], [0, 0, 1, 1], [], []>} : vector<8x32xbf16>, vector<32x144xbf16>, vector<8x144xf32> -> vector<8x144xf32>
    %c8_256 = arith.constant 8 : index
    %c512_257 = arith.constant 512 : index
    %331 = vector.load %arg2[%c8_256, %c512_257] : memref<9x4992xf32, #tpu.memory_space<vmem>>, vector<1x144xf32>
    %332 = vector.broadcast %331 : vector<1x144xf32> to vector<8x144xf32>
    %333 = arith.mulf %330, %332 : vector<8x144xf32>
    %334 = arith.addf %327, %333 : vector<8x144xf32>
    %c0_258 = arith.constant 0 : index
    %c1664 = arith.constant 1664 : index
    %335 = vector.load %arg1[%c0_258, %c1664] : memref<1x11904xf32, #tpu.memory_space<vmem>>, vector<1x144xf32>
    %336 = vector.broadcast %335 : vector<1x144xf32> to vector<8x144xf32>
    %337 = arith.addf %334, %336 : vector<8x144xf32>
    %cst_259 = arith.constant 0.000000e+00 : f32
    %cst_260 = arith.constant 6.000000e+00 : f32
    %338 = vector.broadcast %cst_259 : f32 to vector<8x144xf32>
    %339 = arith.maximumf %338, %337 : vector<8x144xf32>
    %340 = vector.broadcast %cst_260 : f32 to vector<8x144xf32>
    %341 = arith.minimumf %340, %339 : vector<8x144xf32>
    %342 = arith.truncf %341 : vector<8x144xf32> to vector<8x144xbf16>
    %c0_261 = arith.constant 0 : index
    %c0_262 = arith.constant 0 : index
    %343 = vector.load %arg14[%c0_261, %c0_262] : memref<144x32xbf16, #tpu.memory_space<vmem>>, vector<144x32xbf16>
    %cst_263 = arith.constant dense<0.000000e+00> : vector<8x32xf32>
    %344 = tpu.matmul %342, %343, %cst_263 {dimension_numbers = #tpu.dot_dimension_numbers<[1], [0], [0], [1], [0, 0, 1, 1], [], []>} : vector<8x144xbf16>, vector<144x32xbf16>, vector<8x32xf32> -> vector<8x32xf32>
    %c0_264 = arith.constant 0 : index
    %c1920 = arith.constant 1920 : index
    %345 = vector.load %arg1[%c0_264, %c1920] : memref<1x11904xf32, #tpu.memory_space<vmem>>, vector<1x32xf32>
    %346 = vector.broadcast %345 : vector<1x32xf32> to vector<8x32xf32>
    %347 = arith.addf %344, %346 : vector<8x32xf32>
    %c0_265 = arith.constant 0 : index
    %c0_266 = arith.constant 0 : index
    %348 = vector.load %arg40[%c0_265, %c0_266] : memref<8x32xf32, #tpu.memory_space<vmem>>, vector<8x32xf32>
    tpu.vector_store %arg40[%c0_265, %c0_266], %347 {strides = array<i32>} : memref<8x32xf32, #tpu.memory_space<vmem>>, vector<8x32xf32>,
    %349 = arith.truncf %347 : vector<8x32xf32> to vector<8x32xbf16>
    %c0_267 = arith.constant 0 : index
    %c0_268 = arith.constant 0 : index
    %350 = vector.load %arg15[%c0_267, %c0_268] : memref<32x192xbf16, #tpu.memory_space<vmem>>, vector<32x192xbf16>
    %cst_269 = arith.constant dense<0.000000e+00> : vector<8x192xf32>
    %351 = tpu.matmul %349, %350, %cst_269 {dimension_numbers = #tpu.dot_dimension_numbers<[1], [0], [0], [1], [0, 0, 1, 1], [], []>} : vector<8x32xbf16>, vector<32x192xbf16>, vector<8x192xf32> -> vector<8x192xf32>
    %c0_270 = arith.constant 0 : index
    %c2048 = arith.constant 2048 : index
    %352 = vector.load %arg1[%c0_270, %c2048] : memref<1x11904xf32, #tpu.memory_space<vmem>>, vector<1x192xf32>
    %353 = vector.broadcast %352 : vector<1x192xf32> to vector<8x192xf32>
    %354 = arith.addf %351, %353 : vector<8x192xf32>
    %cst_271 = arith.constant 0.000000e+00 : f32
    %cst_272 = arith.constant 6.000000e+00 : f32
    %355 = vector.broadcast %cst_271 : f32 to vector<8x192xf32>
    %356 = arith.maximumf %355, %354 : vector<8x192xf32>
    %357 = vector.broadcast %cst_272 : f32 to vector<8x192xf32>
    %358 = arith.minimumf %357, %356 : vector<8x192xf32>
    %359 = arith.truncf %358 : vector<8x192xf32> to vector<8x192xbf16>
    %c0_273 = arith.constant 0 : index
    %c0_274 = arith.constant 0 : index
    %c0_275 = arith.constant 0 : index
    %360 = vector.load %arg16[%c0_273, %c0_274, %c0_275] : memref<9x8x8xbf16, #tpu.memory_space<vmem>>, vector<1x8x8xbf16>
    %361 = vector.shape_cast %360 : vector<1x8x8xbf16> to vector<8x8xbf16>
    %cst_276 = arith.constant dense<0.000000e+00> : vector<8x192xf32>
    %362 = tpu.matmul %361, %359, %cst_276 {dimension_numbers = #tpu.dot_dimension_numbers<[1], [0], [0], [1], [0, 0, 1, 1], [], []>} : vector<8x8xbf16>, vector<8x192xbf16>, vector<8x192xf32> -> vector<8x192xf32>
    %c0_277 = arith.constant 0 : index
    %c768_278 = arith.constant 768 : index
    %363 = vector.load %arg2[%c0_277, %c768_278] : memref<9x4992xf32, #tpu.memory_space<vmem>>, vector<1x192xf32>
    %364 = vector.broadcast %363 : vector<1x192xf32> to vector<8x192xf32>
    %365 = arith.mulf %362, %364 : vector<8x192xf32>
    %c1_279 = arith.constant 1 : index
    %c0_280 = arith.constant 0 : index
    %c0_281 = arith.constant 0 : index
    %366 = vector.load %arg16[%c1_279, %c0_280, %c0_281] : memref<9x8x8xbf16, #tpu.memory_space<vmem>>, vector<1x8x8xbf16>
    %367 = vector.shape_cast %366 : vector<1x8x8xbf16> to vector<8x8xbf16>
    %cst_282 = arith.constant dense<0.000000e+00> : vector<8x192xf32>
    %368 = tpu.matmul %367, %359, %cst_282 {dimension_numbers = #tpu.dot_dimension_numbers<[1], [0], [0], [1], [0, 0, 1, 1], [], []>} : vector<8x8xbf16>, vector<8x192xbf16>, vector<8x192xf32> -> vector<8x192xf32>
    %c1_283 = arith.constant 1 : index
    %c768_284 = arith.constant 768 : index
    %369 = vector.load %arg2[%c1_283, %c768_284] : memref<9x4992xf32, #tpu.memory_space<vmem>>, vector<1x192xf32>
    %370 = vector.broadcast %369 : vector<1x192xf32> to vector<8x192xf32>
    %371 = arith.mulf %368, %370 : vector<8x192xf32>
    %372 = arith.addf %365, %371 : vector<8x192xf32>
    %c2_285 = arith.constant 2 : index
    %c0_286 = arith.constant 0 : index
    %c0_287 = arith.constant 0 : index
    %373 = vector.load %arg16[%c2_285, %c0_286, %c0_287] : memref<9x8x8xbf16, #tpu.memory_space<vmem>>, vector<1x8x8xbf16>
    %374 = vector.shape_cast %373 : vector<1x8x8xbf16> to vector<8x8xbf16>
    %cst_288 = arith.constant dense<0.000000e+00> : vector<8x192xf32>
    %375 = tpu.matmul %374, %359, %cst_288 {dimension_numbers = #tpu.dot_dimension_numbers<[1], [0], [0], [1], [0, 0, 1, 1], [], []>} : vector<8x8xbf16>, vector<8x192xbf16>, vector<8x192xf32> -> vector<8x192xf32>
    %c2_289 = arith.constant 2 : index
    %c768_290 = arith.constant 768 : index
    %376 = vector.load %arg2[%c2_289, %c768_290] : memref<9x4992xf32, #tpu.memory_space<vmem>>, vector<1x192xf32>
    %377 = vector.broadcast %376 : vector<1x192xf32> to vector<8x192xf32>
    %378 = arith.mulf %375, %377 : vector<8x192xf32>
    %379 = arith.addf %372, %378 : vector<8x192xf32>
    %c3_291 = arith.constant 3 : index
    %c0_292 = arith.constant 0 : index
    %c0_293 = arith.constant 0 : index
    %380 = vector.load %arg16[%c3_291, %c0_292, %c0_293] : memref<9x8x8xbf16, #tpu.memory_space<vmem>>, vector<1x8x8xbf16>
    %381 = vector.shape_cast %380 : vector<1x8x8xbf16> to vector<8x8xbf16>
    %cst_294 = arith.constant dense<0.000000e+00> : vector<8x192xf32>
    %382 = tpu.matmul %381, %359, %cst_294 {dimension_numbers = #tpu.dot_dimension_numbers<[1], [0], [0], [1], [0, 0, 1, 1], [], []>} : vector<8x8xbf16>, vector<8x192xbf16>, vector<8x192xf32> -> vector<8x192xf32>
    %c3_295 = arith.constant 3 : index
    %c768_296 = arith.constant 768 : index
    %383 = vector.load %arg2[%c3_295, %c768_296] : memref<9x4992xf32, #tpu.memory_space<vmem>>, vector<1x192xf32>
    %384 = vector.broadcast %383 : vector<1x192xf32> to vector<8x192xf32>
    %385 = arith.mulf %382, %384 : vector<8x192xf32>
    %386 = arith.addf %379, %385 : vector<8x192xf32>
    %c4_297 = arith.constant 4 : index
    %c0_298 = arith.constant 0 : index
    %c0_299 = arith.constant 0 : index
    %387 = vector.load %arg16[%c4_297, %c0_298, %c0_299] : memref<9x8x8xbf16, #tpu.memory_space<vmem>>, vector<1x8x8xbf16>
    %388 = vector.shape_cast %387 : vector<1x8x8xbf16> to vector<8x8xbf16>
    %cst_300 = arith.constant dense<0.000000e+00> : vector<8x192xf32>
    %389 = tpu.matmul %388, %359, %cst_300 {dimension_numbers = #tpu.dot_dimension_numbers<[1], [0], [0], [1], [0, 0, 1, 1], [], []>} : vector<8x8xbf16>, vector<8x192xbf16>, vector<8x192xf32> -> vector<8x192xf32>
    %c4_301 = arith.constant 4 : index
    %c768_302 = arith.constant 768 : index
    %390 = vector.load %arg2[%c4_301, %c768_302] : memref<9x4992xf32, #tpu.memory_space<vmem>>, vector<1x192xf32>
    %391 = vector.broadcast %390 : vector<1x192xf32> to vector<8x192xf32>
    %392 = arith.mulf %389, %391 : vector<8x192xf32>
    %393 = arith.addf %386, %392 : vector<8x192xf32>
    %c5_303 = arith.constant 5 : index
    %c0_304 = arith.constant 0 : index
    %c0_305 = arith.constant 0 : index
    %394 = vector.load %arg16[%c5_303, %c0_304, %c0_305] : memref<9x8x8xbf16, #tpu.memory_space<vmem>>, vector<1x8x8xbf16>
    %395 = vector.shape_cast %394 : vector<1x8x8xbf16> to vector<8x8xbf16>
    %cst_306 = arith.constant dense<0.000000e+00> : vector<8x192xf32>
    %396 = tpu.matmul %395, %359, %cst_306 {dimension_numbers = #tpu.dot_dimension_numbers<[1], [0], [0], [1], [0, 0, 1, 1], [], []>} : vector<8x8xbf16>, vector<8x192xbf16>, vector<8x192xf32> -> vector<8x192xf32>
    %c5_307 = arith.constant 5 : index
    %c768_308 = arith.constant 768 : index
    %397 = vector.load %arg2[%c5_307, %c768_308] : memref<9x4992xf32, #tpu.memory_space<vmem>>, vector<1x192xf32>
    %398 = vector.broadcast %397 : vector<1x192xf32> to vector<8x192xf32>
    %399 = arith.mulf %396, %398 : vector<8x192xf32>
    %400 = arith.addf %393, %399 : vector<8x192xf32>
    %c6_309 = arith.constant 6 : index
    %c0_310 = arith.constant 0 : index
    %c0_311 = arith.constant 0 : index
    %401 = vector.load %arg16[%c6_309, %c0_310, %c0_311] : memref<9x8x8xbf16, #tpu.memory_space<vmem>>, vector<1x8x8xbf16>
    %402 = vector.shape_cast %401 : vector<1x8x8xbf16> to vector<8x8xbf16>
    %cst_312 = arith.constant dense<0.000000e+00> : vector<8x192xf32>
    %403 = tpu.matmul %402, %359, %cst_312 {dimension_numbers = #tpu.dot_dimension_numbers<[1], [0], [0], [1], [0, 0, 1, 1], [], []>} : vector<8x8xbf16>, vector<8x192xbf16>, vector<8x192xf32> -> vector<8x192xf32>
    %c6_313 = arith.constant 6 : index
    %c768_314 = arith.constant 768 : index
    %404 = vector.load %arg2[%c6_313, %c768_314] : memref<9x4992xf32, #tpu.memory_space<vmem>>, vector<1x192xf32>
    %405 = vector.broadcast %404 : vector<1x192xf32> to vector<8x192xf32>
    %406 = arith.mulf %403, %405 : vector<8x192xf32>
    %407 = arith.addf %400, %406 : vector<8x192xf32>
    %c7_315 = arith.constant 7 : index
    %c0_316 = arith.constant 0 : index
    %c0_317 = arith.constant 0 : index
    %408 = vector.load %arg16[%c7_315, %c0_316, %c0_317] : memref<9x8x8xbf16, #tpu.memory_space<vmem>>, vector<1x8x8xbf16>
    %409 = vector.shape_cast %408 : vector<1x8x8xbf16> to vector<8x8xbf16>
    %cst_318 = arith.constant dense<0.000000e+00> : vector<8x192xf32>
    %410 = tpu.matmul %409, %359, %cst_318 {dimension_numbers = #tpu.dot_dimension_numbers<[1], [0], [0], [1], [0, 0, 1, 1], [], []>} : vector<8x8xbf16>, vector<8x192xbf16>, vector<8x192xf32> -> vector<8x192xf32>
    %c7_319 = arith.constant 7 : index
    %c768_320 = arith.constant 768 : index
    %411 = vector.load %arg2[%c7_319, %c768_320] : memref<9x4992xf32, #tpu.memory_space<vmem>>, vector<1x192xf32>
    %412 = vector.broadcast %411 : vector<1x192xf32> to vector<8x192xf32>
    %413 = arith.mulf %410, %412 : vector<8x192xf32>
    %414 = arith.addf %407, %413 : vector<8x192xf32>
    %c8_321 = arith.constant 8 : index
    %c0_322 = arith.constant 0 : index
    %c0_323 = arith.constant 0 : index
    %415 = vector.load %arg16[%c8_321, %c0_322, %c0_323] : memref<9x8x8xbf16, #tpu.memory_space<vmem>>, vector<1x8x8xbf16>
    %416 = vector.shape_cast %415 : vector<1x8x8xbf16> to vector<8x8xbf16>
    %cst_324 = arith.constant dense<0.000000e+00> : vector<8x192xf32>
    %417 = tpu.matmul %416, %359, %cst_324 {dimension_numbers = #tpu.dot_dimension_numbers<[1], [0], [0], [1], [0, 0, 1, 1], [], []>} : vector<8x8xbf16>, vector<8x192xbf16>, vector<8x192xf32> -> vector<8x192xf32>
    %c8_325 = arith.constant 8 : index
    %c768_326 = arith.constant 768 : index
    %418 = vector.load %arg2[%c8_325, %c768_326] : memref<9x4992xf32, #tpu.memory_space<vmem>>, vector<1x192xf32>
    %419 = vector.broadcast %418 : vector<1x192xf32> to vector<8x192xf32>
    %420 = arith.mulf %417, %419 : vector<8x192xf32>
    %421 = arith.addf %414, %420 : vector<8x192xf32>
    %c0_327 = arith.constant 0 : index
    %c2304 = arith.constant 2304 : index
    %422 = vector.load %arg1[%c0_327, %c2304] : memref<1x11904xf32, #tpu.memory_space<vmem>>, vector<1x192xf32>
    %423 = vector.broadcast %422 : vector<1x192xf32> to vector<8x192xf32>
    %424 = arith.addf %421, %423 : vector<8x192xf32>
    %cst_328 = arith.constant 0.000000e+00 : f32
    %cst_329 = arith.constant 6.000000e+00 : f32
    %425 = vector.broadcast %cst_328 : f32 to vector<8x192xf32>
    %426 = arith.maximumf %425, %424 : vector<8x192xf32>
    %427 = vector.broadcast %cst_329 : f32 to vector<8x192xf32>
    %428 = arith.minimumf %427, %426 : vector<8x192xf32>
    %429 = arith.truncf %428 : vector<8x192xf32> to vector<8x192xbf16>
    %c0_330 = arith.constant 0 : index
    %c0_331 = arith.constant 0 : index
    %430 = vector.load %arg17[%c0_330, %c0_331] : memref<192x32xbf16, #tpu.memory_space<vmem>>, vector<192x32xbf16>
    %cst_332 = arith.constant dense<0.000000e+00> : vector<8x32xf32>
    %431 = tpu.matmul %429, %430, %cst_332 {dimension_numbers = #tpu.dot_dimension_numbers<[1], [0], [0], [1], [0, 0, 1, 1], [], []>} : vector<8x192xbf16>, vector<192x32xbf16>, vector<8x32xf32> -> vector<8x32xf32>
    %c0_333 = arith.constant 0 : index
    %c2560 = arith.constant 2560 : index
    %432 = vector.load %arg1[%c0_333, %c2560] : memref<1x11904xf32, #tpu.memory_space<vmem>>, vector<1x32xf32>
    %433 = vector.broadcast %432 : vector<1x32xf32> to vector<8x32xf32>
    %434 = arith.addf %431, %433 : vector<8x32xf32>
    %435 = arith.addf %434, %347 : vector<8x32xf32>
    %436 = arith.truncf %435 : vector<8x32xf32> to vector<8x32xbf16>
    %c0_334 = arith.constant 0 : index
    %c0_335 = arith.constant 0 : index
    %437 = vector.load %arg18[%c0_334, %c0_335] : memref<32x192xbf16, #tpu.memory_space<vmem>>, vector<32x192xbf16>
    %cst_336 = arith.constant dense<0.000000e+00> : vector<8x192xf32>
    %438 = tpu.matmul %436, %437, %cst_336 {dimension_numbers = #tpu.dot_dimension_numbers<[1], [0], [0], [1], [0, 0, 1, 1], [], []>} : vector<8x32xbf16>, vector<32x192xbf16>, vector<8x192xf32> -> vector<8x192xf32>
    %c0_337 = arith.constant 0 : index
    %c2688 = arith.constant 2688 : index
    %439 = vector.load %arg1[%c0_337, %c2688] : memref<1x11904xf32, #tpu.memory_space<vmem>>, vector<1x192xf32>
    %440 = vector.broadcast %439 : vector<1x192xf32> to vector<8x192xf32>
    %441 = arith.addf %438, %440 : vector<8x192xf32>
    %cst_338 = arith.constant 0.000000e+00 : f32
    %cst_339 = arith.constant 6.000000e+00 : f32
    %442 = vector.broadcast %cst_338 : f32 to vector<8x192xf32>
    %443 = arith.maximumf %442, %441 : vector<8x192xf32>
    %444 = vector.broadcast %cst_339 : f32 to vector<8x192xf32>
    %445 = arith.minimumf %444, %443 : vector<8x192xf32>
    %446 = arith.truncf %445 : vector<8x192xf32> to vector<8x192xbf16>
    %c0_340 = arith.constant 0 : index
    %c0_341 = arith.constant 0 : index
    %c0_342 = arith.constant 0 : index
    %447 = vector.load %arg19[%c0_340, %c0_341, %c0_342] : memref<9x8x8xbf16, #tpu.memory_space<vmem>>, vector<1x8x8xbf16>
    %448 = vector.shape_cast %447 : vector<1x8x8xbf16> to vector<8x8xbf16>
    %cst_343 = arith.constant dense<0.000000e+00> : vector<8x192xf32>
    %449 = tpu.matmul %448, %446, %cst_343 {dimension_numbers = #tpu.dot_dimension_numbers<[1], [0], [0], [1], [0, 0, 1, 1], [], []>} : vector<8x8xbf16>, vector<8x192xbf16>, vector<8x192xf32> -> vector<8x192xf32>
    %c0_344 = arith.constant 0 : index
    %c1024_345 = arith.constant 1024 : index
    %450 = vector.load %arg2[%c0_344, %c1024_345] : memref<9x4992xf32, #tpu.memory_space<vmem>>, vector<1x192xf32>
    %451 = vector.broadcast %450 : vector<1x192xf32> to vector<8x192xf32>
    %452 = arith.mulf %449, %451 : vector<8x192xf32>
    %c1_346 = arith.constant 1 : index
    %c0_347 = arith.constant 0 : index
    %c0_348 = arith.constant 0 : index
    %453 = vector.load %arg19[%c1_346, %c0_347, %c0_348] : memref<9x8x8xbf16, #tpu.memory_space<vmem>>, vector<1x8x8xbf16>
    %454 = vector.shape_cast %453 : vector<1x8x8xbf16> to vector<8x8xbf16>
    %cst_349 = arith.constant dense<0.000000e+00> : vector<8x192xf32>
    %455 = tpu.matmul %454, %446, %cst_349 {dimension_numbers = #tpu.dot_dimension_numbers<[1], [0], [0], [1], [0, 0, 1, 1], [], []>} : vector<8x8xbf16>, vector<8x192xbf16>, vector<8x192xf32> -> vector<8x192xf32>
    %c1_350 = arith.constant 1 : index
    %c1024_351 = arith.constant 1024 : index
    %456 = vector.load %arg2[%c1_350, %c1024_351] : memref<9x4992xf32, #tpu.memory_space<vmem>>, vector<1x192xf32>
    %457 = vector.broadcast %456 : vector<1x192xf32> to vector<8x192xf32>
    %458 = arith.mulf %455, %457 : vector<8x192xf32>
    %459 = arith.addf %452, %458 : vector<8x192xf32>
    %c2_352 = arith.constant 2 : index
    %c0_353 = arith.constant 0 : index
    %c0_354 = arith.constant 0 : index
    %460 = vector.load %arg19[%c2_352, %c0_353, %c0_354] : memref<9x8x8xbf16, #tpu.memory_space<vmem>>, vector<1x8x8xbf16>
    %461 = vector.shape_cast %460 : vector<1x8x8xbf16> to vector<8x8xbf16>
    %cst_355 = arith.constant dense<0.000000e+00> : vector<8x192xf32>
    %462 = tpu.matmul %461, %446, %cst_355 {dimension_numbers = #tpu.dot_dimension_numbers<[1], [0], [0], [1], [0, 0, 1, 1], [], []>} : vector<8x8xbf16>, vector<8x192xbf16>, vector<8x192xf32> -> vector<8x192xf32>
    %c2_356 = arith.constant 2 : index
    %c1024_357 = arith.constant 1024 : index
    %463 = vector.load %arg2[%c2_356, %c1024_357] : memref<9x4992xf32, #tpu.memory_space<vmem>>, vector<1x192xf32>
    %464 = vector.broadcast %463 : vector<1x192xf32> to vector<8x192xf32>
    %465 = arith.mulf %462, %464 : vector<8x192xf32>
    %466 = arith.addf %459, %465 : vector<8x192xf32>
    %c3_358 = arith.constant 3 : index
    %c0_359 = arith.constant 0 : index
    %c0_360 = arith.constant 0 : index
    %467 = vector.load %arg19[%c3_358, %c0_359, %c0_360] : memref<9x8x8xbf16, #tpu.memory_space<vmem>>, vector<1x8x8xbf16>
    %468 = vector.shape_cast %467 : vector<1x8x8xbf16> to vector<8x8xbf16>
    %cst_361 = arith.constant dense<0.000000e+00> : vector<8x192xf32>
    %469 = tpu.matmul %468, %446, %cst_361 {dimension_numbers = #tpu.dot_dimension_numbers<[1], [0], [0], [1], [0, 0, 1, 1], [], []>} : vector<8x8xbf16>, vector<8x192xbf16>, vector<8x192xf32> -> vector<8x192xf32>
    %c3_362 = arith.constant 3 : index
    %c1024_363 = arith.constant 1024 : index
    %470 = vector.load %arg2[%c3_362, %c1024_363] : memref<9x4992xf32, #tpu.memory_space<vmem>>, vector<1x192xf32>
    %471 = vector.broadcast %470 : vector<1x192xf32> to vector<8x192xf32>
    %472 = arith.mulf %469, %471 : vector<8x192xf32>
    %473 = arith.addf %466, %472 : vector<8x192xf32>
    %c4_364 = arith.constant 4 : index
    %c0_365 = arith.constant 0 : index
    %c0_366 = arith.constant 0 : index
    %474 = vector.load %arg19[%c4_364, %c0_365, %c0_366] : memref<9x8x8xbf16, #tpu.memory_space<vmem>>, vector<1x8x8xbf16>
    %475 = vector.shape_cast %474 : vector<1x8x8xbf16> to vector<8x8xbf16>
    %cst_367 = arith.constant dense<0.000000e+00> : vector<8x192xf32>
    %476 = tpu.matmul %475, %446, %cst_367 {dimension_numbers = #tpu.dot_dimension_numbers<[1], [0], [0], [1], [0, 0, 1, 1], [], []>} : vector<8x8xbf16>, vector<8x192xbf16>, vector<8x192xf32> -> vector<8x192xf32>
    %c4_368 = arith.constant 4 : index
    %c1024_369 = arith.constant 1024 : index
    %477 = vector.load %arg2[%c4_368, %c1024_369] : memref<9x4992xf32, #tpu.memory_space<vmem>>, vector<1x192xf32>
    %478 = vector.broadcast %477 : vector<1x192xf32> to vector<8x192xf32>
    %479 = arith.mulf %476, %478 : vector<8x192xf32>
    %480 = arith.addf %473, %479 : vector<8x192xf32>
    %c5_370 = arith.constant 5 : index
    %c0_371 = arith.constant 0 : index
    %c0_372 = arith.constant 0 : index
    %481 = vector.load %arg19[%c5_370, %c0_371, %c0_372] : memref<9x8x8xbf16, #tpu.memory_space<vmem>>, vector<1x8x8xbf16>
    %482 = vector.shape_cast %481 : vector<1x8x8xbf16> to vector<8x8xbf16>
    %cst_373 = arith.constant dense<0.000000e+00> : vector<8x192xf32>
    %483 = tpu.matmul %482, %446, %cst_373 {dimension_numbers = #tpu.dot_dimension_numbers<[1], [0], [0], [1], [0, 0, 1, 1], [], []>} : vector<8x8xbf16>, vector<8x192xbf16>, vector<8x192xf32> -> vector<8x192xf32>
    %c5_374 = arith.constant 5 : index
    %c1024_375 = arith.constant 1024 : index
    %484 = vector.load %arg2[%c5_374, %c1024_375] : memref<9x4992xf32, #tpu.memory_space<vmem>>, vector<1x192xf32>
    %485 = vector.broadcast %484 : vector<1x192xf32> to vector<8x192xf32>
    %486 = arith.mulf %483, %485 : vector<8x192xf32>
    %487 = arith.addf %480, %486 : vector<8x192xf32>
    %c6_376 = arith.constant 6 : index
    %c0_377 = arith.constant 0 : index
    %c0_378 = arith.constant 0 : index
    %488 = vector.load %arg19[%c6_376, %c0_377, %c0_378] : memref<9x8x8xbf16, #tpu.memory_space<vmem>>, vector<1x8x8xbf16>
    %489 = vector.shape_cast %488 : vector<1x8x8xbf16> to vector<8x8xbf16>
    %cst_379 = arith.constant dense<0.000000e+00> : vector<8x192xf32>
    %490 = tpu.matmul %489, %446, %cst_379 {dimension_numbers = #tpu.dot_dimension_numbers<[1], [0], [0], [1], [0, 0, 1, 1], [], []>} : vector<8x8xbf16>, vector<8x192xbf16>, vector<8x192xf32> -> vector<8x192xf32>
    %c6_380 = arith.constant 6 : index
    %c1024_381 = arith.constant 1024 : index
    %491 = vector.load %arg2[%c6_380, %c1024_381] : memref<9x4992xf32, #tpu.memory_space<vmem>>, vector<1x192xf32>
    %492 = vector.broadcast %491 : vector<1x192xf32> to vector<8x192xf32>
    %493 = arith.mulf %490, %492 : vector<8x192xf32>
    %494 = arith.addf %487, %493 : vector<8x192xf32>
    %c7_382 = arith.constant 7 : index
    %c0_383 = arith.constant 0 : index
    %c0_384 = arith.constant 0 : index
    %495 = vector.load %arg19[%c7_382, %c0_383, %c0_384] : memref<9x8x8xbf16, #tpu.memory_space<vmem>>, vector<1x8x8xbf16>
    %496 = vector.shape_cast %495 : vector<1x8x8xbf16> to vector<8x8xbf16>
    %cst_385 = arith.constant dense<0.000000e+00> : vector<8x192xf32>
    %497 = tpu.matmul %496, %446, %cst_385 {dimension_numbers = #tpu.dot_dimension_numbers<[1], [0], [0], [1], [0, 0, 1, 1], [], []>} : vector<8x8xbf16>, vector<8x192xbf16>, vector<8x192xf32> -> vector<8x192xf32>
    %c7_386 = arith.constant 7 : index
    %c1024_387 = arith.constant 1024 : index
    %498 = vector.load %arg2[%c7_386, %c1024_387] : memref<9x4992xf32, #tpu.memory_space<vmem>>, vector<1x192xf32>
    %499 = vector.broadcast %498 : vector<1x192xf32> to vector<8x192xf32>
    %500 = arith.mulf %497, %499 : vector<8x192xf32>
    %501 = arith.addf %494, %500 : vector<8x192xf32>
    %c8_388 = arith.constant 8 : index
    %c0_389 = arith.constant 0 : index
    %c0_390 = arith.constant 0 : index
    %502 = vector.load %arg19[%c8_388, %c0_389, %c0_390] : memref<9x8x8xbf16, #tpu.memory_space<vmem>>, vector<1x8x8xbf16>
    %503 = vector.shape_cast %502 : vector<1x8x8xbf16> to vector<8x8xbf16>
    %cst_391 = arith.constant dense<0.000000e+00> : vector<8x192xf32>
    %504 = tpu.matmul %503, %446, %cst_391 {dimension_numbers = #tpu.dot_dimension_numbers<[1], [0], [0], [1], [0, 0, 1, 1], [], []>} : vector<8x8xbf16>, vector<8x192xbf16>, vector<8x192xf32> -> vector<8x192xf32>
    %c8_392 = arith.constant 8 : index
    %c1024_393 = arith.constant 1024 : index
    %505 = vector.load %arg2[%c8_392, %c1024_393] : memref<9x4992xf32, #tpu.memory_space<vmem>>, vector<1x192xf32>
    %506 = vector.broadcast %505 : vector<1x192xf32> to vector<8x192xf32>
    %507 = arith.mulf %504, %506 : vector<8x192xf32>
    %508 = arith.addf %501, %507 : vector<8x192xf32>
    %c0_394 = arith.constant 0 : index
    %c2944 = arith.constant 2944 : index
    %509 = vector.load %arg1[%c0_394, %c2944] : memref<1x11904xf32, #tpu.memory_space<vmem>>, vector<1x192xf32>
    %510 = vector.broadcast %509 : vector<1x192xf32> to vector<8x192xf32>
    %511 = arith.addf %508, %510 : vector<8x192xf32>
    %cst_395 = arith.constant 0.000000e+00 : f32
    %cst_396 = arith.constant 6.000000e+00 : f32
    %512 = vector.broadcast %cst_395 : f32 to vector<8x192xf32>
    %513 = arith.maximumf %512, %511 : vector<8x192xf32>
    %514 = vector.broadcast %cst_396 : f32 to vector<8x192xf32>
    %515 = arith.minimumf %514, %513 : vector<8x192xf32>
    %516 = arith.truncf %515 : vector<8x192xf32> to vector<8x192xbf16>
    %c0_397 = arith.constant 0 : index
    %c0_398 = arith.constant 0 : index
    %517 = vector.load %arg20[%c0_397, %c0_398] : memref<192x32xbf16, #tpu.memory_space<vmem>>, vector<192x32xbf16>
    %cst_399 = arith.constant dense<0.000000e+00> : vector<8x32xf32>
    %518 = tpu.matmul %516, %517, %cst_399 {dimension_numbers = #tpu.dot_dimension_numbers<[1], [0], [0], [1], [0, 0, 1, 1], [], []>} : vector<8x192xbf16>, vector<192x32xbf16>, vector<8x32xf32> -> vector<8x32xf32>
    %c0_400 = arith.constant 0 : index
    %c3200 = arith.constant 3200 : index
    %519 = vector.load %arg1[%c0_400, %c3200] : memref<1x11904xf32, #tpu.memory_space<vmem>>, vector<1x32xf32>
    %520 = vector.broadcast %519 : vector<1x32xf32> to vector<8x32xf32>
    %521 = arith.addf %518, %520 : vector<8x32xf32>
    %522 = arith.addf %521, %435 : vector<8x32xf32>
    %523 = arith.truncf %522 : vector<8x32xf32> to vector<8x32xbf16>
    %c0_401 = arith.constant 0 : index
    %c0_402 = arith.constant 0 : index
    %524 = vector.load %arg21[%c0_401, %c0_402] : memref<32x192xbf16, #tpu.memory_space<vmem>>, vector<32x192xbf16>
    %cst_403 = arith.constant dense<0.000000e+00> : vector<8x192xf32>
    %525 = tpu.matmul %523, %524, %cst_403 {dimension_numbers = #tpu.dot_dimension_numbers<[1], [0], [0], [1], [0, 0, 1, 1], [], []>} : vector<8x32xbf16>, vector<32x192xbf16>, vector<8x192xf32> -> vector<8x192xf32>
    %c0_404 = arith.constant 0 : index
    %c3328 = arith.constant 3328 : index
    %526 = vector.load %arg1[%c0_404, %c3328] : memref<1x11904xf32, #tpu.memory_space<vmem>>, vector<1x192xf32>
    %527 = vector.broadcast %526 : vector<1x192xf32> to vector<8x192xf32>
    %528 = arith.addf %525, %527 : vector<8x192xf32>
    %cst_405 = arith.constant 0.000000e+00 : f32
    %cst_406 = arith.constant 6.000000e+00 : f32
    %529 = vector.broadcast %cst_405 : f32 to vector<8x192xf32>
    %530 = arith.maximumf %529, %528 : vector<8x192xf32>
    %531 = vector.broadcast %cst_406 : f32 to vector<8x192xf32>
    %532 = arith.minimumf %531, %530 : vector<8x192xf32>
    %533 = arith.truncf %532 : vector<8x192xf32> to vector<8x192xbf16>
    %c0_407 = arith.constant 0 : index
    %c0_408 = arith.constant 0 : index
    %c0_409 = arith.constant 0 : index
    %534 = vector.load %arg22[%c0_407, %c0_408, %c0_409] : memref<9x2x8xbf16, #tpu.memory_space<vmem>>, vector<1x2x8xbf16>
    %535 = vector.shape_cast %534 : vector<1x2x8xbf16> to vector<2x8xbf16>
    %cst_410 = arith.constant dense<0.000000e+00> : vector<2x192xf32>
    %536 = tpu.matmul %535, %533, %cst_410 {dimension_numbers = #tpu.dot_dimension_numbers<[1], [0], [0], [1], [0, 0, 1, 1], [], []>} : vector<2x8xbf16>, vector<8x192xbf16>, vector<2x192xf32> -> vector<2x192xf32>
    %c0_411 = arith.constant 0 : index
    %c1280_412 = arith.constant 1280 : index
    %537 = vector.load %arg2[%c0_411, %c1280_412] : memref<9x4992xf32, #tpu.memory_space<vmem>>, vector<1x192xf32>
    %538 = vector.broadcast %537 : vector<1x192xf32> to vector<2x192xf32>
    %539 = arith.mulf %536, %538 : vector<2x192xf32>
    %c1_413 = arith.constant 1 : index
    %c0_414 = arith.constant 0 : index
    %c0_415 = arith.constant 0 : index
    %540 = vector.load %arg22[%c1_413, %c0_414, %c0_415] : memref<9x2x8xbf16, #tpu.memory_space<vmem>>, vector<1x2x8xbf16>
    %541 = vector.shape_cast %540 : vector<1x2x8xbf16> to vector<2x8xbf16>
    %cst_416 = arith.constant dense<0.000000e+00> : vector<2x192xf32>
    %542 = tpu.matmul %541, %533, %cst_416 {dimension_numbers = #tpu.dot_dimension_numbers<[1], [0], [0], [1], [0, 0, 1, 1], [], []>} : vector<2x8xbf16>, vector<8x192xbf16>, vector<2x192xf32> -> vector<2x192xf32>
    %c1_417 = arith.constant 1 : index
    %c1280_418 = arith.constant 1280 : index
    %543 = vector.load %arg2[%c1_417, %c1280_418] : memref<9x4992xf32, #tpu.memory_space<vmem>>, vector<1x192xf32>
    %544 = vector.broadcast %543 : vector<1x192xf32> to vector<2x192xf32>
    %545 = arith.mulf %542, %544 : vector<2x192xf32>
    %546 = arith.addf %539, %545 : vector<2x192xf32>
    %c2_419 = arith.constant 2 : index
    %c0_420 = arith.constant 0 : index
    %c0_421 = arith.constant 0 : index
    %547 = vector.load %arg22[%c2_419, %c0_420, %c0_421] : memref<9x2x8xbf16, #tpu.memory_space<vmem>>, vector<1x2x8xbf16>
    %548 = vector.shape_cast %547 : vector<1x2x8xbf16> to vector<2x8xbf16>
    %cst_422 = arith.constant dense<0.000000e+00> : vector<2x192xf32>
    %549 = tpu.matmul %548, %533, %cst_422 {dimension_numbers = #tpu.dot_dimension_numbers<[1], [0], [0], [1], [0, 0, 1, 1], [], []>} : vector<2x8xbf16>, vector<8x192xbf16>, vector<2x192xf32> -> vector<2x192xf32>
    %c2_423 = arith.constant 2 : index
    %c1280_424 = arith.constant 1280 : index
    %550 = vector.load %arg2[%c2_423, %c1280_424] : memref<9x4992xf32, #tpu.memory_space<vmem>>, vector<1x192xf32>
    %551 = vector.broadcast %550 : vector<1x192xf32> to vector<2x192xf32>
    %552 = arith.mulf %549, %551 : vector<2x192xf32>
    %553 = arith.addf %546, %552 : vector<2x192xf32>
    %c3_425 = arith.constant 3 : index
    %c0_426 = arith.constant 0 : index
    %c0_427 = arith.constant 0 : index
    %554 = vector.load %arg22[%c3_425, %c0_426, %c0_427] : memref<9x2x8xbf16, #tpu.memory_space<vmem>>, vector<1x2x8xbf16>
    %555 = vector.shape_cast %554 : vector<1x2x8xbf16> to vector<2x8xbf16>
    %cst_428 = arith.constant dense<0.000000e+00> : vector<2x192xf32>
    %556 = tpu.matmul %555, %533, %cst_428 {dimension_numbers = #tpu.dot_dimension_numbers<[1], [0], [0], [1], [0, 0, 1, 1], [], []>} : vector<2x8xbf16>, vector<8x192xbf16>, vector<2x192xf32> -> vector<2x192xf32>
    %c3_429 = arith.constant 3 : index
    %c1280_430 = arith.constant 1280 : index
    %557 = vector.load %arg2[%c3_429, %c1280_430] : memref<9x4992xf32, #tpu.memory_space<vmem>>, vector<1x192xf32>
    %558 = vector.broadcast %557 : vector<1x192xf32> to vector<2x192xf32>
    %559 = arith.mulf %556, %558 : vector<2x192xf32>
    %560 = arith.addf %553, %559 : vector<2x192xf32>
    %c4_431 = arith.constant 4 : index
    %c0_432 = arith.constant 0 : index
    %c0_433 = arith.constant 0 : index
    %561 = vector.load %arg22[%c4_431, %c0_432, %c0_433] : memref<9x2x8xbf16, #tpu.memory_space<vmem>>, vector<1x2x8xbf16>
    %562 = vector.shape_cast %561 : vector<1x2x8xbf16> to vector<2x8xbf16>
    %cst_434 = arith.constant dense<0.000000e+00> : vector<2x192xf32>
    %563 = tpu.matmul %562, %533, %cst_434 {dimension_numbers = #tpu.dot_dimension_numbers<[1], [0], [0], [1], [0, 0, 1, 1], [], []>} : vector<2x8xbf16>, vector<8x192xbf16>, vector<2x192xf32> -> vector<2x192xf32>
    %c4_435 = arith.constant 4 : index
    %c1280_436 = arith.constant 1280 : index
    %564 = vector.load %arg2[%c4_435, %c1280_436] : memref<9x4992xf32, #tpu.memory_space<vmem>>, vector<1x192xf32>
    %565 = vector.broadcast %564 : vector<1x192xf32> to vector<2x192xf32>
    %566 = arith.mulf %563, %565 : vector<2x192xf32>
    %567 = arith.addf %560, %566 : vector<2x192xf32>
    %c5_437 = arith.constant 5 : index
    %c0_438 = arith.constant 0 : index
    %c0_439 = arith.constant 0 : index
    %568 = vector.load %arg22[%c5_437, %c0_438, %c0_439] : memref<9x2x8xbf16, #tpu.memory_space<vmem>>, vector<1x2x8xbf16>
    %569 = vector.shape_cast %568 : vector<1x2x8xbf16> to vector<2x8xbf16>
    %cst_440 = arith.constant dense<0.000000e+00> : vector<2x192xf32>
    %570 = tpu.matmul %569, %533, %cst_440 {dimension_numbers = #tpu.dot_dimension_numbers<[1], [0], [0], [1], [0, 0, 1, 1], [], []>} : vector<2x8xbf16>, vector<8x192xbf16>, vector<2x192xf32> -> vector<2x192xf32>
    %c5_441 = arith.constant 5 : index
    %c1280_442 = arith.constant 1280 : index
    %571 = vector.load %arg2[%c5_441, %c1280_442] : memref<9x4992xf32, #tpu.memory_space<vmem>>, vector<1x192xf32>
    %572 = vector.broadcast %571 : vector<1x192xf32> to vector<2x192xf32>
    %573 = arith.mulf %570, %572 : vector<2x192xf32>
    %574 = arith.addf %567, %573 : vector<2x192xf32>
    %c6_443 = arith.constant 6 : index
    %c0_444 = arith.constant 0 : index
    %c0_445 = arith.constant 0 : index
    %575 = vector.load %arg22[%c6_443, %c0_444, %c0_445] : memref<9x2x8xbf16, #tpu.memory_space<vmem>>, vector<1x2x8xbf16>
    %576 = vector.shape_cast %575 : vector<1x2x8xbf16> to vector<2x8xbf16>
    %cst_446 = arith.constant dense<0.000000e+00> : vector<2x192xf32>
    %577 = tpu.matmul %576, %533, %cst_446 {dimension_numbers = #tpu.dot_dimension_numbers<[1], [0], [0], [1], [0, 0, 1, 1], [], []>} : vector<2x8xbf16>, vector<8x192xbf16>, vector<2x192xf32> -> vector<2x192xf32>
    %c6_447 = arith.constant 6 : index
    %c1280_448 = arith.constant 1280 : index
    %578 = vector.load %arg2[%c6_447, %c1280_448] : memref<9x4992xf32, #tpu.memory_space<vmem>>, vector<1x192xf32>
    %579 = vector.broadcast %578 : vector<1x192xf32> to vector<2x192xf32>
    %580 = arith.mulf %577, %579 : vector<2x192xf32>
    %581 = arith.addf %574, %580 : vector<2x192xf32>
    %c7_449 = arith.constant 7 : index
    %c0_450 = arith.constant 0 : index
    %c0_451 = arith.constant 0 : index
    %582 = vector.load %arg22[%c7_449, %c0_450, %c0_451] : memref<9x2x8xbf16, #tpu.memory_space<vmem>>, vector<1x2x8xbf16>
    %583 = vector.shape_cast %582 : vector<1x2x8xbf16> to vector<2x8xbf16>
    %cst_452 = arith.constant dense<0.000000e+00> : vector<2x192xf32>
    %584 = tpu.matmul %583, %533, %cst_452 {dimension_numbers = #tpu.dot_dimension_numbers<[1], [0], [0], [1], [0, 0, 1, 1], [], []>} : vector<2x8xbf16>, vector<8x192xbf16>, vector<2x192xf32> -> vector<2x192xf32>
    %c7_453 = arith.constant 7 : index
    %c1280_454 = arith.constant 1280 : index
    %585 = vector.load %arg2[%c7_453, %c1280_454] : memref<9x4992xf32, #tpu.memory_space<vmem>>, vector<1x192xf32>
    %586 = vector.broadcast %585 : vector<1x192xf32> to vector<2x192xf32>
    %587 = arith.mulf %584, %586 : vector<2x192xf32>
    %588 = arith.addf %581, %587 : vector<2x192xf32>
    %c8_455 = arith.constant 8 : index
    %c0_456 = arith.constant 0 : index
    %c0_457 = arith.constant 0 : index
    %589 = vector.load %arg22[%c8_455, %c0_456, %c0_457] : memref<9x2x8xbf16, #tpu.memory_space<vmem>>, vector<1x2x8xbf16>
    %590 = vector.shape_cast %589 : vector<1x2x8xbf16> to vector<2x8xbf16>
    %cst_458 = arith.constant dense<0.000000e+00> : vector<2x192xf32>
    %591 = tpu.matmul %590, %533, %cst_458 {dimension_numbers = #tpu.dot_dimension_numbers<[1], [0], [0], [1], [0, 0, 1, 1], [], []>} : vector<2x8xbf16>, vector<8x192xbf16>, vector<2x192xf32> -> vector<2x192xf32>
    %c8_459 = arith.constant 8 : index
    %c1280_460 = arith.constant 1280 : index
    %592 = vector.load %arg2[%c8_459, %c1280_460] : memref<9x4992xf32, #tpu.memory_space<vmem>>, vector<1x192xf32>
    %593 = vector.broadcast %592 : vector<1x192xf32> to vector<2x192xf32>
    %594 = arith.mulf %591, %593 : vector<2x192xf32>
    %595 = arith.addf %588, %594 : vector<2x192xf32>
    %c0_461 = arith.constant 0 : index
    %c3584 = arith.constant 3584 : index
    %596 = vector.load %arg1[%c0_461, %c3584] : memref<1x11904xf32, #tpu.memory_space<vmem>>, vector<1x192xf32>
    %597 = vector.broadcast %596 : vector<1x192xf32> to vector<2x192xf32>
    %598 = arith.addf %595, %597 : vector<2x192xf32>
    %cst_462 = arith.constant 0.000000e+00 : f32
    %cst_463 = arith.constant 6.000000e+00 : f32
    %599 = vector.broadcast %cst_462 : f32 to vector<2x192xf32>
    %600 = arith.maximumf %599, %598 : vector<2x192xf32>
    %601 = vector.broadcast %cst_463 : f32 to vector<2x192xf32>
    %602 = arith.minimumf %601, %600 : vector<2x192xf32>
    %603 = arith.truncf %602 : vector<2x192xf32> to vector<2x192xbf16>
    %c0_464 = arith.constant 0 : index
    %c0_465 = arith.constant 0 : index
    %604 = vector.load %arg23[%c0_464, %c0_465] : memref<192x64xbf16, #tpu.memory_space<vmem>>, vector<192x64xbf16>
    %cst_466 = arith.constant dense<0.000000e+00> : vector<2x64xf32>
    %605 = tpu.matmul %603, %604, %cst_466 {dimension_numbers = #tpu.dot_dimension_numbers<[1], [0], [0], [1], [0, 0, 1, 1], [], []>} : vector<2x192xbf16>, vector<192x64xbf16>, vector<2x64xf32> -> vector<2x64xf32>
    %c0_467 = arith.constant 0 : index
    %c3840 = arith.constant 3840 : index
    %606 = vector.load %arg1[%c0_467, %c3840] : memref<1x11904xf32, #tpu.memory_space<vmem>>, vector<1x64xf32>
    %607 = vector.broadcast %606 : vector<1x64xf32> to vector<2x64xf32>
    %608 = arith.addf %605, %607 : vector<2x64xf32>
    %c0_468 = arith.constant 0 : index
    %c0_469 = arith.constant 0 : index
    %609 = vector.load %arg41[%c0_468, %c0_469] : memref<2x64xf32, #tpu.memory_space<vmem>>, vector<2x64xf32>
    tpu.vector_store %arg41[%c0_468, %c0_469], %608 {strides = array<i32>} : memref<2x64xf32, #tpu.memory_space<vmem>>, vector<2x64xf32>,
    %610 = arith.truncf %608 : vector<2x64xf32> to vector<2x64xbf16>
    %c0_470 = arith.constant 0 : index
    %c0_471 = arith.constant 0 : index
    %611 = vector.load %arg24[%c0_470, %c0_471] : memref<64x384xbf16, #tpu.memory_space<vmem>>, vector<64x384xbf16>
    %cst_472 = arith.constant dense<0.000000e+00> : vector<2x384xf32>
    %612 = tpu.matmul %610, %611, %cst_472 {dimension_numbers = #tpu.dot_dimension_numbers<[1], [0], [0], [1], [0, 0, 1, 1], [], []>} : vector<2x64xbf16>, vector<64x384xbf16>, vector<2x384xf32> -> vector<2x384xf32>
    %c0_473 = arith.constant 0 : index
    %c3968 = arith.constant 3968 : index
    %613 = vector.load %arg1[%c0_473, %c3968] : memref<1x11904xf32, #tpu.memory_space<vmem>>, vector<1x384xf32>
    %614 = vector.broadcast %613 : vector<1x384xf32> to vector<2x384xf32>
    %615 = arith.addf %612, %614 : vector<2x384xf32>
    %cst_474 = arith.constant 0.000000e+00 : f32
    %cst_475 = arith.constant 6.000000e+00 : f32
    %616 = vector.broadcast %cst_474 : f32 to vector<2x384xf32>
    %617 = arith.maximumf %616, %615 : vector<2x384xf32>
    %618 = vector.broadcast %cst_475 : f32 to vector<2x384xf32>
    %619 = arith.minimumf %618, %617 : vector<2x384xf32>
    %c4_476 = arith.constant 4 : index
    %c1536 = arith.constant 1536 : index
    %620 = vector.load %arg2[%c4_476, %c1536] : memref<9x4992xf32, #tpu.memory_space<vmem>>, vector<1x384xf32>
    %621 = vector.broadcast %620 : vector<1x384xf32> to vector<2x384xf32>
    %622 = arith.mulf %619, %621 : vector<2x384xf32>
    %c0_477 = arith.constant 0 : index
    %c4352 = arith.constant 4352 : index
    %623 = vector.load %arg1[%c0_477, %c4352] : memref<1x11904xf32, #tpu.memory_space<vmem>>, vector<1x384xf32>
    %624 = vector.broadcast %623 : vector<1x384xf32> to vector<2x384xf32>
    %625 = arith.addf %622, %624 : vector<2x384xf32>
    %cst_478 = arith.constant 0.000000e+00 : f32
    %cst_479 = arith.constant 6.000000e+00 : f32
    %626 = vector.broadcast %cst_478 : f32 to vector<2x384xf32>
    %627 = arith.maximumf %626, %625 : vector<2x384xf32>
    %628 = vector.broadcast %cst_479 : f32 to vector<2x384xf32>
    %629 = arith.minimumf %628, %627 : vector<2x384xf32>
    %630 = arith.truncf %629 : vector<2x384xf32> to vector<2x384xbf16>
    %c0_480 = arith.constant 0 : index
    %c0_481 = arith.constant 0 : index
    %631 = vector.load %arg25[%c0_480, %c0_481] : memref<384x64xbf16, #tpu.memory_space<vmem>>, vector<384x64xbf16>
    %cst_482 = arith.constant dense<0.000000e+00> : vector<2x64xf32>
    %632 = tpu.matmul %630, %631, %cst_482 {dimension_numbers = #tpu.dot_dimension_numbers<[1], [0], [0], [1], [0, 0, 1, 1], [], []>} : vector<2x384xbf16>, vector<384x64xbf16>, vector<2x64xf32> -> vector<2x64xf32>
    %c0_483 = arith.constant 0 : index
    %c4736 = arith.constant 4736 : index
    %633 = vector.load %arg1[%c0_483, %c4736] : memref<1x11904xf32, #tpu.memory_space<vmem>>, vector<1x64xf32>
    %634 = vector.broadcast %633 : vector<1x64xf32> to vector<2x64xf32>
    %635 = arith.addf %632, %634 : vector<2x64xf32>
    %636 = arith.addf %635, %608 : vector<2x64xf32>
    %637 = arith.truncf %636 : vector<2x64xf32> to vector<2x64xbf16>
    %c0_484 = arith.constant 0 : index
    %c0_485 = arith.constant 0 : index
    %638 = vector.load %arg26[%c0_484, %c0_485] : memref<64x384xbf16, #tpu.memory_space<vmem>>, vector<64x384xbf16>
    %cst_486 = arith.constant dense<0.000000e+00> : vector<2x384xf32>
    %639 = tpu.matmul %637, %638, %cst_486 {dimension_numbers = #tpu.dot_dimension_numbers<[1], [0], [0], [1], [0, 0, 1, 1], [], []>} : vector<2x64xbf16>, vector<64x384xbf16>, vector<2x384xf32> -> vector<2x384xf32>
    %c0_487 = arith.constant 0 : index
    %c4864 = arith.constant 4864 : index
    %640 = vector.load %arg1[%c0_487, %c4864] : memref<1x11904xf32, #tpu.memory_space<vmem>>, vector<1x384xf32>
    %641 = vector.broadcast %640 : vector<1x384xf32> to vector<2x384xf32>
    %642 = arith.addf %639, %641 : vector<2x384xf32>
    %cst_488 = arith.constant 0.000000e+00 : f32
    %cst_489 = arith.constant 6.000000e+00 : f32
    %643 = vector.broadcast %cst_488 : f32 to vector<2x384xf32>
    %644 = arith.maximumf %643, %642 : vector<2x384xf32>
    %645 = vector.broadcast %cst_489 : f32 to vector<2x384xf32>
    %646 = arith.minimumf %645, %644 : vector<2x384xf32>
    %c4_490 = arith.constant 4 : index
    %c1920_491 = arith.constant 1920 : index
    %647 = vector.load %arg2[%c4_490, %c1920_491] : memref<9x4992xf32, #tpu.memory_space<vmem>>, vector<1x384xf32>
    %648 = vector.broadcast %647 : vector<1x384xf32> to vector<2x384xf32>
    %649 = arith.mulf %646, %648 : vector<2x384xf32>
    %c0_492 = arith.constant 0 : index
    %c5248 = arith.constant 5248 : index
    %650 = vector.load %arg1[%c0_492, %c5248] : memref<1x11904xf32, #tpu.memory_space<vmem>>, vector<1x384xf32>
    %651 = vector.broadcast %650 : vector<1x384xf32> to vector<2x384xf32>
    %652 = arith.addf %649, %651 : vector<2x384xf32>
    %cst_493 = arith.constant 0.000000e+00 : f32
    %cst_494 = arith.constant 6.000000e+00 : f32
    %653 = vector.broadcast %cst_493 : f32 to vector<2x384xf32>
    %654 = arith.maximumf %653, %652 : vector<2x384xf32>
    %655 = vector.broadcast %cst_494 : f32 to vector<2x384xf32>
    %656 = arith.minimumf %655, %654 : vector<2x384xf32>
    %657 = arith.truncf %656 : vector<2x384xf32> to vector<2x384xbf16>
    %c0_495 = arith.constant 0 : index
    %c0_496 = arith.constant 0 : index
    %658 = vector.load %arg27[%c0_495, %c0_496] : memref<384x64xbf16, #tpu.memory_space<vmem>>, vector<384x64xbf16>
    %cst_497 = arith.constant dense<0.000000e+00> : vector<2x64xf32>
    %659 = tpu.matmul %657, %658, %cst_497 {dimension_numbers = #tpu.dot_dimension_numbers<[1], [0], [0], [1], [0, 0, 1, 1], [], []>} : vector<2x384xbf16>, vector<384x64xbf16>, vector<2x64xf32> -> vector<2x64xf32>
    %c0_498 = arith.constant 0 : index
    %c5632 = arith.constant 5632 : index
    %660 = vector.load %arg1[%c0_498, %c5632] : memref<1x11904xf32, #tpu.memory_space<vmem>>, vector<1x64xf32>
    %661 = vector.broadcast %660 : vector<1x64xf32> to vector<2x64xf32>
    %662 = arith.addf %659, %661 : vector<2x64xf32>
    %663 = arith.addf %662, %636 : vector<2x64xf32>
    %664 = arith.truncf %663 : vector<2x64xf32> to vector<2x64xbf16>
    %c0_499 = arith.constant 0 : index
    %c0_500 = arith.constant 0 : index
    %665 = vector.load %arg28[%c0_499, %c0_500] : memref<64x384xbf16, #tpu.memory_space<vmem>>, vector<64x384xbf16>
    %cst_501 = arith.constant dense<0.000000e+00> : vector<2x384xf32>
    %666 = tpu.matmul %664, %665, %cst_501 {dimension_numbers = #tpu.dot_dimension_numbers<[1], [0], [0], [1], [0, 0, 1, 1], [], []>} : vector<2x64xbf16>, vector<64x384xbf16>, vector<2x384xf32> -> vector<2x384xf32>
    %c0_502 = arith.constant 0 : index
    %c5760 = arith.constant 5760 : index
    %667 = vector.load %arg1[%c0_502, %c5760] : memref<1x11904xf32, #tpu.memory_space<vmem>>, vector<1x384xf32>
    %668 = vector.broadcast %667 : vector<1x384xf32> to vector<2x384xf32>
    %669 = arith.addf %666, %668 : vector<2x384xf32>
    %cst_503 = arith.constant 0.000000e+00 : f32
    %cst_504 = arith.constant 6.000000e+00 : f32
    %670 = vector.broadcast %cst_503 : f32 to vector<2x384xf32>
    %671 = arith.maximumf %670, %669 : vector<2x384xf32>
    %672 = vector.broadcast %cst_504 : f32 to vector<2x384xf32>
    %673 = arith.minimumf %672, %671 : vector<2x384xf32>
    %c4_505 = arith.constant 4 : index
    %c2304_506 = arith.constant 2304 : index
    %674 = vector.load %arg2[%c4_505, %c2304_506] : memref<9x4992xf32, #tpu.memory_space<vmem>>, vector<1x384xf32>
    %675 = vector.broadcast %674 : vector<1x384xf32> to vector<2x384xf32>
    %676 = arith.mulf %673, %675 : vector<2x384xf32>
    %c0_507 = arith.constant 0 : index
    %c6144 = arith.constant 6144 : index
    %677 = vector.load %arg1[%c0_507, %c6144] : memref<1x11904xf32, #tpu.memory_space<vmem>>, vector<1x384xf32>
    %678 = vector.broadcast %677 : vector<1x384xf32> to vector<2x384xf32>
    %679 = arith.addf %676, %678 : vector<2x384xf32>
    %cst_508 = arith.constant 0.000000e+00 : f32
    %cst_509 = arith.constant 6.000000e+00 : f32
    %680 = vector.broadcast %cst_508 : f32 to vector<2x384xf32>
    %681 = arith.maximumf %680, %679 : vector<2x384xf32>
    %682 = vector.broadcast %cst_509 : f32 to vector<2x384xf32>
    %683 = arith.minimumf %682, %681 : vector<2x384xf32>
    %684 = arith.truncf %683 : vector<2x384xf32> to vector<2x384xbf16>
    %c0_510 = arith.constant 0 : index
    %c0_511 = arith.constant 0 : index
    %685 = vector.load %arg29[%c0_510, %c0_511] : memref<384x64xbf16, #tpu.memory_space<vmem>>, vector<384x64xbf16>
    %cst_512 = arith.constant dense<0.000000e+00> : vector<2x64xf32>
    %686 = tpu.matmul %684, %685, %cst_512 {dimension_numbers = #tpu.dot_dimension_numbers<[1], [0], [0], [1], [0, 0, 1, 1], [], []>} : vector<2x384xbf16>, vector<384x64xbf16>, vector<2x64xf32> -> vector<2x64xf32>
    %c0_513 = arith.constant 0 : index
    %c6528 = arith.constant 6528 : index
    %687 = vector.load %arg1[%c0_513, %c6528] : memref<1x11904xf32, #tpu.memory_space<vmem>>, vector<1x64xf32>
    %688 = vector.broadcast %687 : vector<1x64xf32> to vector<2x64xf32>
    %689 = arith.addf %686, %688 : vector<2x64xf32>
    %690 = arith.addf %689, %663 : vector<2x64xf32>
    %691 = arith.truncf %690 : vector<2x64xf32> to vector<2x64xbf16>
    %c0_514 = arith.constant 0 : index
    %c0_515 = arith.constant 0 : index
    %692 = vector.load %arg30[%c0_514, %c0_515] : memref<64x384xbf16, #tpu.memory_space<vmem>>, vector<64x384xbf16>
    %cst_516 = arith.constant dense<0.000000e+00> : vector<2x384xf32>
    %693 = tpu.matmul %691, %692, %cst_516 {dimension_numbers = #tpu.dot_dimension_numbers<[1], [0], [0], [1], [0, 0, 1, 1], [], []>} : vector<2x64xbf16>, vector<64x384xbf16>, vector<2x384xf32> -> vector<2x384xf32>
    %c0_517 = arith.constant 0 : index
    %c6656 = arith.constant 6656 : index
    %694 = vector.load %arg1[%c0_517, %c6656] : memref<1x11904xf32, #tpu.memory_space<vmem>>, vector<1x384xf32>
    %695 = vector.broadcast %694 : vector<1x384xf32> to vector<2x384xf32>
    %696 = arith.addf %693, %695 : vector<2x384xf32>
    %cst_518 = arith.constant 0.000000e+00 : f32
    %cst_519 = arith.constant 6.000000e+00 : f32
    %697 = vector.broadcast %cst_518 : f32 to vector<2x384xf32>
    %698 = arith.maximumf %697, %696 : vector<2x384xf32>
    %699 = vector.broadcast %cst_519 : f32 to vector<2x384xf32>
    %700 = arith.minimumf %699, %698 : vector<2x384xf32>
    %c4_520 = arith.constant 4 : index
    %c2688_521 = arith.constant 2688 : index
    %701 = vector.load %arg2[%c4_520, %c2688_521] : memref<9x4992xf32, #tpu.memory_space<vmem>>, vector<1x384xf32>
    %702 = vector.broadcast %701 : vector<1x384xf32> to vector<2x384xf32>
    %703 = arith.mulf %700, %702 : vector<2x384xf32>
    %c0_522 = arith.constant 0 : index
    %c7040 = arith.constant 7040 : index
    %704 = vector.load %arg1[%c0_522, %c7040] : memref<1x11904xf32, #tpu.memory_space<vmem>>, vector<1x384xf32>
    %705 = vector.broadcast %704 : vector<1x384xf32> to vector<2x384xf32>
    %706 = arith.addf %703, %705 : vector<2x384xf32>
    %cst_523 = arith.constant 0.000000e+00 : f32
    %cst_524 = arith.constant 6.000000e+00 : f32
    %707 = vector.broadcast %cst_523 : f32 to vector<2x384xf32>
    %708 = arith.maximumf %707, %706 : vector<2x384xf32>
    %709 = vector.broadcast %cst_524 : f32 to vector<2x384xf32>
    %710 = arith.minimumf %709, %708 : vector<2x384xf32>
    %711 = arith.truncf %710 : vector<2x384xf32> to vector<2x384xbf16>
    %c0_525 = arith.constant 0 : index
    %c0_526 = arith.constant 0 : index
    %712 = vector.load %arg31[%c0_525, %c0_526] : memref<384x96xbf16, #tpu.memory_space<vmem>>, vector<384x96xbf16>
    %cst_527 = arith.constant dense<0.000000e+00> : vector<2x96xf32>
    %713 = tpu.matmul %711, %712, %cst_527 {dimension_numbers = #tpu.dot_dimension_numbers<[1], [0], [0], [1], [0, 0, 1, 1], [], []>} : vector<2x384xbf16>, vector<384x96xbf16>, vector<2x96xf32> -> vector<2x96xf32>
    %c0_528 = arith.constant 0 : index
    %c7424 = arith.constant 7424 : index
    %714 = vector.load %arg1[%c0_528, %c7424] : memref<1x11904xf32, #tpu.memory_space<vmem>>, vector<1x96xf32>
    %715 = vector.broadcast %714 : vector<1x96xf32> to vector<2x96xf32>
    %716 = arith.addf %713, %715 : vector<2x96xf32>
    %717 = arith.truncf %716 : vector<2x96xf32> to vector<2x96xbf16>
    %c0_529 = arith.constant 0 : index
    %c0_530 = arith.constant 0 : index
    %718 = vector.load %arg32[%c0_529, %c0_530] : memref<96x576xbf16, #tpu.memory_space<vmem>>, vector<96x576xbf16>
    %cst_531 = arith.constant dense<0.000000e+00> : vector<2x576xf32>
    %719 = tpu.matmul %717, %718, %cst_531 {dimension_numbers = #tpu.dot_dimension_numbers<[1], [0], [0], [1], [0, 0, 1, 1], [], []>} : vector<2x96xbf16>, vector<96x576xbf16>, vector<2x576xf32> -> vector<2x576xf32>
    %c0_532 = arith.constant 0 : index
    %c7552 = arith.constant 7552 : index
    %720 = vector.load %arg1[%c0_532, %c7552] : memref<1x11904xf32, #tpu.memory_space<vmem>>, vector<1x576xf32>
    %721 = vector.broadcast %720 : vector<1x576xf32> to vector<2x576xf32>
    %722 = arith.addf %719, %721 : vector<2x576xf32>
    %cst_533 = arith.constant 0.000000e+00 : f32
    %cst_534 = arith.constant 6.000000e+00 : f32
    %723 = vector.broadcast %cst_533 : f32 to vector<2x576xf32>
    %724 = arith.maximumf %723, %722 : vector<2x576xf32>
    %725 = vector.broadcast %cst_534 : f32 to vector<2x576xf32>
    %726 = arith.minimumf %725, %724 : vector<2x576xf32>
    %c4_535 = arith.constant 4 : index
    %c3072 = arith.constant 3072 : index
    %727 = vector.load %arg2[%c4_535, %c3072] : memref<9x4992xf32, #tpu.memory_space<vmem>>, vector<1x576xf32>
    %728 = vector.broadcast %727 : vector<1x576xf32> to vector<2x576xf32>
    %729 = arith.mulf %726, %728 : vector<2x576xf32>
    %c0_536 = arith.constant 0 : index
    %c8192 = arith.constant 8192 : index
    %730 = vector.load %arg1[%c0_536, %c8192] : memref<1x11904xf32, #tpu.memory_space<vmem>>, vector<1x576xf32>
    %731 = vector.broadcast %730 : vector<1x576xf32> to vector<2x576xf32>
    %732 = arith.addf %729, %731 : vector<2x576xf32>
    %cst_537 = arith.constant 0.000000e+00 : f32
    %cst_538 = arith.constant 6.000000e+00 : f32
    %733 = vector.broadcast %cst_537 : f32 to vector<2x576xf32>
    %734 = arith.maximumf %733, %732 : vector<2x576xf32>
    %735 = vector.broadcast %cst_538 : f32 to vector<2x576xf32>
    %736 = arith.minimumf %735, %734 : vector<2x576xf32>
    %737 = arith.truncf %736 : vector<2x576xf32> to vector<2x576xbf16>
    %c0_539 = arith.constant 0 : index
    %c0_540 = arith.constant 0 : index
    %738 = vector.load %arg33[%c0_539, %c0_540] : memref<576x96xbf16, #tpu.memory_space<vmem>>, vector<576x96xbf16>
    %cst_541 = arith.constant dense<0.000000e+00> : vector<2x96xf32>
    %739 = tpu.matmul %737, %738, %cst_541 {dimension_numbers = #tpu.dot_dimension_numbers<[1], [0], [0], [1], [0, 0, 1, 1], [], []>} : vector<2x576xbf16>, vector<576x96xbf16>, vector<2x96xf32> -> vector<2x96xf32>
    %c0_542 = arith.constant 0 : index
    %c8832 = arith.constant 8832 : index
    %740 = vector.load %arg1[%c0_542, %c8832] : memref<1x11904xf32, #tpu.memory_space<vmem>>, vector<1x96xf32>
    %741 = vector.broadcast %740 : vector<1x96xf32> to vector<2x96xf32>
    %742 = arith.addf %739, %741 : vector<2x96xf32>
    %743 = arith.addf %742, %716 : vector<2x96xf32>
    %744 = arith.truncf %743 : vector<2x96xf32> to vector<2x96xbf16>
    %c0_543 = arith.constant 0 : index
    %c0_544 = arith.constant 0 : index
    %745 = vector.load %arg34[%c0_543, %c0_544] : memref<96x576xbf16, #tpu.memory_space<vmem>>, vector<96x576xbf16>
    %cst_545 = arith.constant dense<0.000000e+00> : vector<2x576xf32>
    %746 = tpu.matmul %744, %745, %cst_545 {dimension_numbers = #tpu.dot_dimension_numbers<[1], [0], [0], [1], [0, 0, 1, 1], [], []>} : vector<2x96xbf16>, vector<96x576xbf16>, vector<2x576xf32> -> vector<2x576xf32>
    %c0_546 = arith.constant 0 : index
    %c8960 = arith.constant 8960 : index
    %747 = vector.load %arg1[%c0_546, %c8960] : memref<1x11904xf32, #tpu.memory_space<vmem>>, vector<1x576xf32>
    %748 = vector.broadcast %747 : vector<1x576xf32> to vector<2x576xf32>
    %749 = arith.addf %746, %748 : vector<2x576xf32>
    %cst_547 = arith.constant 0.000000e+00 : f32
    %cst_548 = arith.constant 6.000000e+00 : f32
    %750 = vector.broadcast %cst_547 : f32 to vector<2x576xf32>
    %751 = arith.maximumf %750, %749 : vector<2x576xf32>
    %752 = vector.broadcast %cst_548 : f32 to vector<2x576xf32>
    %753 = arith.minimumf %752, %751 : vector<2x576xf32>
    %c4_549 = arith.constant 4 : index
    %c3712 = arith.constant 3712 : index
    %754 = vector.load %arg2[%c4_549, %c3712] : memref<9x4992xf32, #tpu.memory_space<vmem>>, vector<1x576xf32>
    %755 = vector.broadcast %754 : vector<1x576xf32> to vector<2x576xf32>
    %756 = arith.mulf %753, %755 : vector<2x576xf32>
    %c0_550 = arith.constant 0 : index
    %c9600 = arith.constant 9600 : index
    %757 = vector.load %arg1[%c0_550, %c9600] : memref<1x11904xf32, #tpu.memory_space<vmem>>, vector<1x576xf32>
    %758 = vector.broadcast %757 : vector<1x576xf32> to vector<2x576xf32>
    %759 = arith.addf %756, %758 : vector<2x576xf32>
    %cst_551 = arith.constant 0.000000e+00 : f32
    %cst_552 = arith.constant 6.000000e+00 : f32
    %760 = vector.broadcast %cst_551 : f32 to vector<2x576xf32>
    %761 = arith.maximumf %760, %759 : vector<2x576xf32>
    %762 = vector.broadcast %cst_552 : f32 to vector<2x576xf32>
    %763 = arith.minimumf %762, %761 : vector<2x576xf32>
    %764 = arith.truncf %763 : vector<2x576xf32> to vector<2x576xbf16>
    %c0_553 = arith.constant 0 : index
    %c0_554 = arith.constant 0 : index
    %765 = vector.load %arg35[%c0_553, %c0_554] : memref<576x96xbf16, #tpu.memory_space<vmem>>, vector<576x96xbf16>
    %cst_555 = arith.constant dense<0.000000e+00> : vector<2x96xf32>
    %766 = tpu.matmul %764, %765, %cst_555 {dimension_numbers = #tpu.dot_dimension_numbers<[1], [0], [0], [1], [0, 0, 1, 1], [], []>} : vector<2x576xbf16>, vector<576x96xbf16>, vector<2x96xf32> -> vector<2x96xf32>
    %c0_556 = arith.constant 0 : index
    %c10240 = arith.constant 10240 : index
    %767 = vector.load %arg1[%c0_556, %c10240] : memref<1x11904xf32, #tpu.memory_space<vmem>>, vector<1x96xf32>
    %768 = vector.broadcast %767 : vector<1x96xf32> to vector<2x96xf32>
    %769 = arith.addf %766, %768 : vector<2x96xf32>
    %770 = arith.addf %769, %743 : vector<2x96xf32>
    %771 = arith.truncf %770 : vector<2x96xf32> to vector<2x96xbf16>
    %c0_557 = arith.constant 0 : index
    %c0_558 = arith.constant 0 : index
    %772 = vector.load %arg36[%c0_557, %c0_558] : memref<96x576xbf16, #tpu.memory_space<vmem>>, vector<96x576xbf16>
    %cst_559 = arith.constant dense<0.000000e+00> : vector<2x576xf32>
    %773 = tpu.matmul %771, %772, %cst_559 {dimension_numbers = #tpu.dot_dimension_numbers<[1], [0], [0], [1], [0, 0, 1, 1], [], []>} : vector<2x96xbf16>, vector<96x576xbf16>, vector<2x576xf32> -> vector<2x576xf32>
    %c0_560 = arith.constant 0 : index
    %c10368 = arith.constant 10368 : index
    %774 = vector.load %arg1[%c0_560, %c10368] : memref<1x11904xf32, #tpu.memory_space<vmem>>, vector<1x576xf32>
    %775 = vector.broadcast %774 : vector<1x576xf32> to vector<2x576xf32>
    %776 = arith.addf %773, %775 : vector<2x576xf32>
    %cst_561 = arith.constant 0.000000e+00 : f32
    %cst_562 = arith.constant 6.000000e+00 : f32
    %777 = vector.broadcast %cst_561 : f32 to vector<2x576xf32>
    %778 = arith.maximumf %777, %776 : vector<2x576xf32>
    %779 = vector.broadcast %cst_562 : f32 to vector<2x576xf32>
    %780 = arith.minimumf %779, %778 : vector<2x576xf32>
    %c4_563 = arith.constant 4 : index
    %c4352_564 = arith.constant 4352 : index
    %781 = vector.load %arg2[%c4_563, %c4352_564] : memref<9x4992xf32, #tpu.memory_space<vmem>>, vector<1x576xf32>
    %782 = vector.broadcast %781 : vector<1x576xf32> to vector<2x576xf32>
    %783 = arith.mulf %780, %782 : vector<2x576xf32>
    %c0_565 = arith.constant 0 : index
    %c11008 = arith.constant 11008 : index
    %784 = vector.load %arg1[%c0_565, %c11008] : memref<1x11904xf32, #tpu.memory_space<vmem>>, vector<1x576xf32>
    %785 = vector.broadcast %784 : vector<1x576xf32> to vector<2x576xf32>
    %786 = arith.addf %783, %785 : vector<2x576xf32>
    %cst_566 = arith.constant 0.000000e+00 : f32
    %cst_567 = arith.constant 6.000000e+00 : f32
    %787 = vector.broadcast %cst_566 : f32 to vector<2x576xf32>
    %788 = arith.maximumf %787, %786 : vector<2x576xf32>
    %789 = vector.broadcast %cst_567 : f32 to vector<2x576xf32>
    %790 = arith.minimumf %789, %788 : vector<2x576xf32>
    %791 = arith.truncf %790 : vector<2x576xf32> to vector<2x576xbf16>
    %c0_568 = arith.constant 0 : index
    %c0_569 = arith.constant 0 : index
    %792 = vector.load %arg37[%c0_568, %c0_569] : memref<576x160xbf16, #tpu.memory_space<vmem>>, vector<576x160xbf16>
    %cst_570 = arith.constant dense<0.000000e+00> : vector<2x160xf32>
    %793 = tpu.matmul %791, %792, %cst_570 {dimension_numbers = #tpu.dot_dimension_numbers<[1], [0], [0], [1], [0, 0, 1, 1], [], []>} : vector<2x576xbf16>, vector<576x160xbf16>, vector<2x160xf32> -> vector<2x160xf32>
    %c0_571 = arith.constant 0 : index
    %c11648 = arith.constant 11648 : index
    %794 = vector.load %arg1[%c0_571, %c11648] : memref<1x11904xf32, #tpu.memory_space<vmem>>, vector<1x160xf32>
    %795 = vector.broadcast %794 : vector<1x160xf32> to vector<2x160xf32>
    %796 = arith.addf %793, %795 : vector<2x160xf32>
    %c0_572 = arith.constant 0 : index
    %c0_573 = arith.constant 0 : index
    %797 = vector.load %arg42[%c0_572, %c0_573] : memref<2x160xf32, #tpu.memory_space<vmem>>, vector<2x160xf32>
    tpu.vector_store %arg42[%c0_572, %c0_573], %796 {strides = array<i32>} : memref<2x160xf32, #tpu.memory_space<vmem>>, vector<2x160xf32>,
    return
  }
}

</mosaic_0001>

<bundles_post_ra>
// kernel: mobstyle_forward.1
= control target key start
LH: loop header
LB: loop body
LE: loop exit
PB: predicated region body
PF: predicated region fallthrough
CT: control target
= control target key end

     0   :  { %s14348_s6 = smov 1   ;;  %s14349_s10 = smov 2   ;;  %s16707_s0 = inlined_call_operand.smem [shape: u32[43], index: -1, kind: input, shape index: {}] }
   0x1   :  { %s14438_s5 = sld [smem:[%s16707_s0]]   ;;  %s14350_s14 = smov 3  }
   0x2   :  { %s14443_s9 = sld [smem:[%s16707_s0 + %s14348_s6]]   ;;  %s14351_s18 = smov 4  }
   0x3   :  { %s14448_s13 = sld [smem:[%s16707_s0 + %s14349_s10]]   ;;  %s14352_s22 = smov 5  }
   0x4   :  { %s14453_s17 = sld [smem:[%s16707_s0 + %s14350_s14]]   ;;  %s14353_s26 = smov 6  }
   0x5   :  { %s14458_s21 = sld [smem:[%s16707_s0 + %s14351_s18]]   ;;  %s14354_s30 = smov 7  }
   0x6   :  { %s14463_s25 = sld [smem:[%s16707_s0 + %s14352_s22]]   ;;  %s14355_s4 = smov 8  }
   0x7   :  { %16737 = sst [smem:[#allocation67_spill]] %s14438_s5  ;;  %s14356_s10 = smov 9  }
   0x8   :  { %s14468_s29 = sld [smem:[%s16707_s0 + %s14353_s26]]   ;;  %s14357_s15 = smov 10  }
   0x9   :  { %16738 = sst [smem:[#allocation68_spill]] %s14448_s13  ;;  %s14358_s20 = smov 11  }
   0xa   :  { %s14473_s3 = sld [smem:[%s16707_s0 + %s14354_s30]]   ;;  %s14359_s26 = smov 12  }
   0xb   :  { %16739 = sst [smem:[#allocation69_spill]] %s14458_s21  ;;  %s14360_s1 = smov 13  }
   0xc   :  { %16740 = sst [smem:[#allocation70_spill]] %s14463_s25  ;;  %s14361_s7 = smov 14  }
   0xd   :  { %s14478_s8 = sld [smem:[%s16707_s0 + %s14355_s4]]   ;;  %s14363_s22 = smov 16  }
   0xe   :  { %s14483_s14 = sld [smem:[%s16707_s0 + %s14356_s10]]   ;;  %s14364_s28 = smov 17  }
   0xf   :  { %s14488_s19 = sld [smem:[%s16707_s0 + %s14357_s15]]   ;;  %s14362_s15 = smov 15  }
  0x10   :  { %16741 = sst [smem:[#allocation71_spill]] %s14473_s3 }
  0x11   :  { %s14493_s24 = sld [smem:[%s16707_s0 + %s14358_s20]]  }
  0x12   :  { %s14498_s30 = sld [smem:[%s16707_s0 + %s14359_s26]]  }
  0x13   :  { %s14503_s6 = sld [smem:[%s16707_s0 + %s14360_s1]]  }
  0x14   :  { %16742 = sst [smem:[#allocation72_spill]] %s14483_s14 }
  0x15   :  { %s14508_s12 = sld [smem:[%s16707_s0 + %s14361_s7]]   ;;  %s14365_s7 = smov 18  }
  0x16   :  { %s14513_s20 = sld [smem:[%s16707_s0 + %s14362_s15]]   ;;  %s14366_s15 = smov 19  }
  0x17   :  { %16743 = sst [smem:[#allocation73_spill]] %s14493_s24 }
  0x18   :  { %s14518_s27 = sld [smem:[%s16707_s0 + %s14363_s22]]   ;;  %s14367_s22 = smov 20  }
  0x19   :  { %16744 = sst [smem:[#allocation74_spill]] %s14503_s6 }
  0x1a   :  { %s14523_s4 = sld [smem:[%s16707_s0 + %s14364_s28]]   ;;  %s14368_s28 = smov 21  }
  0x1b   :  { %s14528_s13 = sld [smem:[%s16707_s0 + %s14365_s7]]   ;;  %s14369_s7 = smov 22  }
  0x1c   :  { %16745 = sst [smem:[#allocation75_spill]] %s14513_s20 }
  0x1d   :  { %s14533_s21 = sld [smem:[%s16707_s0 + %s14366_s15]]   ;;  %s14370_s15 = smov 23  }
  0x1e   :  { %s14538_s5 = sld [smem:[%s16707_s0 + %s14367_s22]]   ;;  %s14371_s22 = smov 24  }
  0x1f   :  { %s14548_s20 = sld [smem:[%s16707_s0 + %s14369_s7]]   ;;  %s14373_s7 = smov 26  }
  0x20   :  { %16746 = sst [smem:[#allocation76_spill]] %s14523_s4 }
  0x21   :  { %s14543_s4 = sld [smem:[%s16707_s0 + %s14368_s28]]   ;;  %s14372_s28 = smov 25  }
  0x22   :  { %s14558_s6 = sld [smem:[%s16707_s0 + %s14371_s22]]   ;;  %s14375_s22 = smov 28  }
  0x23   :  { %16747 = sst [smem:[#allocation77_spill]] %s14533_s21 }
  0x24   :  { %s14553_s21 = sld [smem:[%s16707_s0 + %s14370_s15]]   ;;  %s14374_s15 = smov 27  }
  0x25   :  { %s14568_s24 = sld [smem:[%s16707_s0 + %s14373_s7]]   ;;  %s14377_s7 = smov 30  }
  0x26   :  { %s14578_s14 = sld [smem:[%s16707_s0 + %s14375_s22]]   ;;  %s14379_s22 = smov 32  }
  0x27   :  { %16748 = sst [smem:[#allocation78_spill]] %s14543_s4 }
  0x28   :  { %s14563_s4 = sld [smem:[%s16707_s0 + %s14372_s28]]   ;;  %s14376_s28 = smov 29  }
  0x29   :  { %s14598_s3 = sld [smem:[%s16707_s0 + %s14379_s22]]   ;;  %s14383_s22 = smov 36  }
  0x2a   :  { %16749 = sst [smem:[#allocation79_spill]] %s14553_s21 }
  0x2b   :  { %16751 = sst [smem:[#allocation81_spill]] %s14568_s24 }
  0x2c   :  { %s14573_s21 = sld [smem:[%s16707_s0 + %s14374_s15]]   ;;  %s14378_s15 = smov 31  }
  0x2d   :  { %s14588_s24 = sld [smem:[%s16707_s0 + %s14377_s7]]   ;;  %s14381_s7 = smov 34  }
  0x2e   :  { %16750 = sst [smem:[#allocation80_spill]] %s14563_s4 }
  0x2f   :  { %s14583_s4 = sld [smem:[%s16707_s0 + %s14376_s28]]   ;;  %s14380_s28 = smov 33  }
  0x30   :  { %16755 = sst [smem:[#allocation85_spill]] %s14598_s3 }
  0x31   :  { %s14608_s25 = sld [smem:[%s16707_s0 + %s14381_s7]]   ;;  %s14385_s7 = smov 38  }
  0x32   :  { %16752 = sst [smem:[#allocation82_spill]] %s14573_s21 }
  0x33   :  { %s14593_s21 = sld [smem:[%s16707_s0 + %s14378_s15]]   ;;  %s14382_s15 = smov 35  }
  0x34   :  { %s14618_s3 = sld [smem:[%s16707_s0 + %s14383_s22]]   ;;  %s14387_s22 = smov 40  }
  0x35   :  { %16753 = sst [smem:[#allocation83_spill]] %s14583_s4 }
  0x36   :  { %s14603_s4 = sld [smem:[%s16707_s0 + %s14380_s28]]   ;;  %s14384_s28 = smov 37  }
  0x37   :  { %16757 = sst [smem:[#allocation87_spill]] %s14608_s25 }
  0x38   :  { %s14628_s25 = sld [smem:[%s16707_s0 + %s14385_s7]]   ;;  %s14389_s7 = smov 42  }
  0x39   :  { %16754 = sst [smem:[#allocation84_spill]] %s14593_s21 }
  0x3a   :  { %s14613_s21 = sld [smem:[%s16707_s0 + %s14382_s15]]   ;;  %s14386_s15 = smov 39  }
  0x3b   :  { %16759 = sst [smem:[#allocation89_spill]] %s14618_s3 }
  0x3c   :  { %16756 = sst [smem:[#allocation86_spill]] %s14603_s4 }
  0x3d   :  { %s14623_s4 = sld [smem:[%s16707_s0 + %s14384_s28]]   ;;  %s14388_s28 = smov 41  }
  0x3e   :  { %16761 = sst [smem:[#allocation91_spill]] %s14628_s25 }
  0x3f   :  { %s14638_s3 = sld [smem:[%s16707_s0 + %s14387_s22]]  }
  0x40   :  { %16758 = sst [smem:[#allocation88_spill]] %s14613_s21 }
  0x41   :  { %s14633_s21 = sld [smem:[%s16707_s0 + %s14386_s15]]  }
  0x42   :  { %s14648_s25 = sld [smem:[%s16707_s0 + %s14389_s7]]  }
  0x43   :  { %16760 = sst [smem:[#allocation90_spill]] %s14623_s4 }
  0x44   :  { %s14643_s4 = sld [smem:[%s16707_s0 + %s14388_s28]]  }
  0x45   :  { %91 = vsyncpa [#allocation3], 0 }
  0x46   :  { %92 = vsyncpa [#allocation6], 0 }
  0x47   :  { %93 = vsyncpa [#allocation9], 0 }
  0x48   :  { %94 = vsyncpa [#allocation12], 0 }
  0x49   :  { %95 = vsyncpa [#allocation15], 0 }
  0x4a   :  { %96 = vsyncpa [#allocation18], 0 }
  0x4b   :  { %97 = vsyncpa [#allocation21], 0 }
  0x4c   :  { %98 = vsyncpa [#allocation24], 0 }
  0x4d   :  { %99 = vsyncpa [#allocation27], 0 }
  0x4e   :  { %100 = vsyncpa [#allocation30], 0 }
  0x4f   :  { %101 = vsyncpa [#allocation33], 0 }
  0x50   :  { %102 = vsyncpa [#allocation36], 0 }
  0x51   :  { %103 = vsyncpa [#allocation39], 0 }
  0x52   :  { %104 = vsyncpa [#allocation42], 0 }
  0x53   :  { %105 = vsyncpa [#allocation4], 0 }
  0x54   :  { %106 = vsyncpa [#allocation46], 0  ;;  %s127_s15 = sshll.u32 %s14453_s17, 4  ;;  %s128_s15 = int_to_ptr.hbm [resolvable:$true] %s127_s15 }
  0x55   :  { %107 = vsyncpa [#allocation49], 0  ;;  %s14390_s0 = smov [#allocation5]   ;;  %s155_s18 = sshll.u32 %s14468_s29, 4  ;;  %s156_s18 = int_to_ptr.hbm [resolvable:$true] %s155_s18 }
  0x56   :  { %s129_s16 = sshll.u32 %s14390_s0, 4  ;;  %s13570_s22 = sshra.s32 %s128_s15, 4  ;;  %s130_s16 = int_to_ptr.vmem [resolvable:$true] %s129_s16  ;;  %s13571_s22 = int_to_ptr.hbm [resolvable:$true] %s13570_s22 }
  0x57   :  { %s13572_s23 = scalar_lea.hbm %s13571_s22, 16  ;;  %s13574_s26 = scalar_lea.hbm %s14453_s17, 16 }
  0x58   :  { %p13573_p0 = scmp.ne.s32.totalorder %s13571_s22, %s13572_s23  ;;  %p13575_p1 = scmp.lt.s32.totalorder %s13571_s22, %s14453_s17 }
  0x59   :  { %p13576_p2 = scmp.lt.s32.totalorder %s13574_s26, %s13572_s23 }
  0x5b   :  { %p13577_p3 = por %p13576_p2, %p13575_p1 }
  0x5d   :  { %p13578_p4 = pnand %p13577_p3, %p13573_p0 }
  0x5f   :  { %13581 = shalt.err (!%p13578_p4)
}
  0x60   :  { %s14391_s28 = smov 64   ;;  %s14392_s1 = smov 4  }
  0x61   :  { %135 = dma.hbm_to_vmem [thread:$0]  %s128_s15, 256, %s130_s16, [#allocation6], %s14391_s28, %s14391_s28, %s14392_s1  }
  0x62   :  { %s14393_s2 = smov [#allocation8]   ;;  %s181_s10 = sshll.u32 %s14478_s8, 4  ;;  %s14658_s10 = int_to_ptr.hbm [resolvable:$true] %s181_s10 }
  0x63   :  { %s157_s7 = sshll.u32 %s14393_s2, 4  ;;  %s13594_s17 = sshra.s32 %s156_s18, 4  ;;  %s158_s7 = int_to_ptr.vmem [resolvable:$true] %s157_s7  ;;  %s13595_s17 = int_to_ptr.hbm [resolvable:$true] %s13594_s17 }
  0x64   :  { %s13596_s11 = scalar_lea.hbm %s13595_s17, 8  ;;  %s13598_s0 = scalar_lea.hbm %s14468_s29, 8 }
  0x65   :  { %p13597_p5 = scmp.ne.s32.totalorder %s13595_s17, %s13596_s11  ;;  %p13599_p6 = scmp.lt.s32.totalorder %s13595_s17, %s14468_s29 }
  0x66   :  { %p13600_p7 = scmp.lt.s32.totalorder %s13598_s0, %s13596_s11 }
  0x68   :  { %p13601_p8 = por %p13600_p7, %p13599_p6 }
  0x6a   :  { %p13602_p9 = pnand %p13601_p8, %p13597_p5 }
  0x6c   :  { %13605 = shalt.err (!%p13602_p9)
}
  0x6d   :  { %163 = dma.hbm_to_vmem [thread:$0]  %s156_s18, 128, %s158_s7, [#allocation9], %s14391_s28, %s14391_s28, %s14392_s1  }
  0x6e   :  { %s207_s15 = sshll.u32 %s14488_s19, 4  ;;  %s14394_s16 = smov [#allocation11]   ;;  %s14666_s15 = int_to_ptr.hbm [resolvable:$true] %s207_s15 }
  0x6f   :  { %s183_s22 = sshll.u32 %s14394_s16, 4  ;;  %s13618_s23 = sshra.s32 %s14658_s10, 4  ;;  %s184_s22 = int_to_ptr.vmem [resolvable:$true] %s183_s22  ;;  %s13619_s23 = int_to_ptr.hbm [resolvable:$true] %s13618_s23 }
  0x70   :  { %s13620_s29 = scalar_lea.hbm %s13619_s23, 48  ;;  %s13622_s26 = scalar_lea.hbm %s14478_s8, 48 }
  0x71   :  { %p13621_p10 = scmp.ne.s32.totalorder %s13619_s23, %s13620_s29  ;;  %p13623_p11 = scmp.lt.s32.totalorder %s13619_s23, %s14478_s8 }
  0x72   :  { %p13624_p12 = scmp.lt.s32.totalorder %s13622_s26, %s13620_s29 }
  0x74   :  { %p13625_p13 = por %p13624_p12, %p13623_p11 }
  0x76   :  { %p13626_p0 = pnand %p13625_p13, %p13621_p10 }
  0x78   :  { %13629 = shalt.err (!%p13626_p0)
}
  0x79   :  { %189 = dma.hbm_to_vmem [thread:$0]  %s14658_s10, 768, %s184_s22, [#allocation12], %s14391_s28, %s14391_s28, %s14392_s1  }
  0x7a   :  { %s14395_s18 = smov [#allocation14]   ;;  %s13642_s7 = sshra.s32 %s14666_s15, 4  ;;  %s13643_s7 = int_to_ptr.hbm [resolvable:$true] %s13642_s7 }
  0x7b   :  { %s209_s2 = sshll.u32 %s14395_s18, 4  ;;  %s13644_s17 = scalar_lea.hbm %s13643_s7, 144  ;;  %s210_s2 = int_to_ptr.vmem [resolvable:$true] %s209_s2 }
  0x7c   :  { %p13645_p1 = scmp.ne.s32.totalorder %s13643_s7, %s13644_s17  ;;  %s13646_s8 = scalar_lea.hbm %s14488_s19, 144 }
  0x7d   :  { %p13647_p2 = scmp.lt.s32.totalorder %s13643_s7, %s14488_s19  ;;  %p13648_p3 = scmp.lt.s32.totalorder %s13646_s8, %s13644_s17 }
  0x7f   :  { %p13649_p4 = por %p13648_p3, %p13647_p2 }
  0x81   :  { %p13650_p5 = pnand %p13649_p4, %p13645_p1 }
  0x83   :  { %13653 = shalt.err (!%p13650_p5)
}
  0x84   :  { %215 = dma.hbm_to_vmem [thread:$0]  %s14666_s15, 2304, %s210_s2, [#allocation15], %s14391_s28, %s14391_s28, %s14392_s1  }
  0x85   :  { %s233_s10 = sshll.u32 %s14498_s30, 4  ;;  %s14396_s11 = smov [#allocation17]   ;;  %s234_s10 = int_to_ptr.hbm [resolvable:$true] %s233_s10 }
  0x86   :  { %s235_s0 = sshll.u32 %s14396_s11, 4  ;;  %s259_s16 = sshll.u32 %s14508_s12, 4  ;;  %s236_s0 = int_to_ptr.vmem [resolvable:$true] %s235_s0  ;;  %s260_s16 = int_to_ptr.hbm [resolvable:$true] %s259_s16 }
  0x87   :  { %s13666_s19 = sshra.s32 %s234_s10, 4  ;;  %s13670_s23 = scalar_lea.hbm %s14498_s30, 24  ;;  %s13667_s19 = int_to_ptr.hbm [resolvable:$true] %s13666_s19 }
  0x88   :  { %s13668_s22 = scalar_lea.hbm %s13667_s19, 24  ;;  %p13671_p7 = scmp.lt.s32.totalorder %s13667_s19, %s14498_s30 }
  0x89   :  { %p13669_p6 = scmp.ne.s32.totalorder %s13667_s19, %s13668_s22  ;;  %p13672_p8 = scmp.lt.s32.totalorder %s13670_s23, %s13668_s22 }
  0x8b   :  { %p13673_p9 = por %p13672_p8, %p13671_p7 }
  0x8d   :  { %p13674_p10 = pnand %p13673_p9, %p13669_p6 }
  0x8f   :  { %13677 = shalt.err (!%p13674_p10)
}
  0x90   :  { %s14397_s29 = smov 128   ;;  %s14398_s15 = smov 8  }
  0x91   :  { %241 = dma.hbm_to_vmem [thread:$0]  %s234_s10, 384, %s236_s0, [#allocation18], %s14397_s29, %s14397_s29, %s14398_s15  }
  0x92   :  { %s14399_s26 = smov [#allocation20]   ;;  %s285_s2 = sshll.u32 %s14518_s27, 4  ;;  %s14690_s2 = int_to_ptr.hbm [resolvable:$true] %s285_s2 }
  0x93   :  { %s261_s18 = sshll.u32 %s14399_s26, 4  ;;  %s13690_s30 = sshra.s32 %s260_s16, 4  ;;  %s262_s18 = int_to_ptr.vmem [resolvable:$true] %s261_s18  ;;  %s13691_s30 = int_to_ptr.hbm [resolvable:$true] %s13690_s30 }
  0x94   :  { %s13692_s7 = scalar_lea.hbm %s13691_s30, 72  ;;  %s13694_s17 = scalar_lea.hbm %s14508_s12, 72 }
  0x95   :  { %p13693_p11 = scmp.ne.s32.totalorder %s13691_s30, %s13692_s7  ;;  %p13695_p12 = scmp.lt.s32.totalorder %s13691_s30, %s14508_s12 }
  0x96   :  { %p13696_p13 = scmp.lt.s32.totalorder %s13694_s17, %s13692_s7 }
  0x98   :  { %p13697_p0 = por %p13696_p13, %p13695_p12 }
  0x9a   :  { %p13698_p1 = pnand %p13697_p0, %p13693_p11 }
  0x9c   :  { %13701 = shalt.err (!%p13698_p1)
}
  0x9d   :  { %267 = dma.hbm_to_vmem [thread:$0]  %s260_s16, 1152, %s262_s18, [#allocation21], %s14391_s28, %s14391_s28, %s14392_s1  }
  0x9e   :  { %s311_s8 = sshll.u32 %s14528_s13, 4  ;;  %s14400_s10 = smov [#allocation23]   ;;  %s14698_s8 = int_to_ptr.hbm [resolvable:$true] %s311_s8 }
  0x9f   :  { %s287_s11 = sshll.u32 %s14400_s10, 4  ;;  %s13714_s0 = sshra.s32 %s14690_s2, 4  ;;  %s288_s11 = int_to_ptr.vmem [resolvable:$true] %s287_s11  ;;  %s13715_s0 = int_to_ptr.hbm [resolvable:$true] %s13714_s0 }
  0xa0   :  { %s13716_s12 = scalar_lea.hbm %s13715_s0, 36  ;;  %s13718_s19 = scalar_lea.hbm %s14518_s27, 36 }
  0xa1   :  { %p13717_p2 = scmp.ne.s32.totalorder %s13715_s0, %s13716_s12  ;;  %p13719_p3 = scmp.lt.s32.totalorder %s13715_s0, %s14518_s27 }
  0xa2   :  { %p13720_p4 = scmp.lt.s32.totalorder %s13718_s19, %s13716_s12 }
  0xa4   :  { %p13721_p5 = por %p13720_p4, %p13719_p3 }
  0xa6   :  { %p13722_p6 = pnand %p13721_p5, %p13717_p2 }
  0xa8   :  { %13725 = shalt.err (!%p13722_p6)
}
  0xa9   :  { %293 = dma.hbm_to_vmem [thread:$0]  %s14690_s2, 576, %s288_s11, [#allocation24], %s14391_s28, %s14391_s28, %s14392_s1  }
  0xaa   :  { %s14401_s16 = smov [#allocation26]   ;;  %s337_s23 = sshll.u32 %s14538_s5, 4  ;;  %s14708_s23 = int_to_ptr.hbm [resolvable:$true] %s337_s23 }
  0xab   :  { %s313_s22 = sshll.u32 %s14401_s16, 4  ;;  %s13738_s27 = sshra.s32 %s14698_s8, 4  ;;  %s314_s22 = int_to_ptr.vmem [resolvable:$true] %s313_s22  ;;  %s13739_s27 = int_to_ptr.hbm [resolvable:$true] %s13738_s27 }
  0xac   :  { %s13740_s26 = scalar_lea.hbm %s13739_s27, 32  ;;  %s13742_s18 = scalar_lea.hbm %s14528_s13, 32 }
  0xad   :  { %p13741_p7 = scmp.ne.s32.totalorder %s13739_s27, %s13740_s26  ;;  %p13743_p8 = scmp.lt.s32.totalorder %s13739_s27, %s14528_s13 }
  0xae   :  { %p13744_p9 = scmp.lt.s32.totalorder %s13742_s18, %s13740_s26 }
  0xb0   :  { %p13745_p10 = por %p13744_p9, %p13743_p8 }
  0xb2   :  { %p13746_p11 = pnand %p13745_p10, %p13741_p7 }
  0xb4   :  { %13749 = shalt.err (!%p13746_p11)
}
  0xb5   :  { %319 = dma.hbm_to_vmem [thread:$0]  %s14698_s8, 512, %s314_s22, [#allocation27], %s14397_s29, %s14397_s29, %s14398_s15  }
  0xb6   :  { %s363_s2 = sshll.u32 %s14548_s20, 4  ;;  %s14402_s30 = smov [#allocation29]   ;;  %s14718_s2 = int_to_ptr.hbm [resolvable:$true] %s363_s2 }
  0xb7   :  { %s339_s7 = sshll.u32 %s14402_s30, 4  ;;  %s13762_s13 = sshra.s32 %s14708_s23, 4  ;;  %s340_s7 = int_to_ptr.vmem [resolvable:$true] %s339_s7  ;;  %s13763_s13 = int_to_ptr.hbm [resolvable:$true] %s13762_s13 }
  0xb8   :  { %s13764_s17 = scalar_lea.hbm %s13763_s13, 96  ;;  %s13766_s10 = scalar_lea.hbm %s14538_s5, 96 }
  0xb9   :  { %p13765_p12 = scmp.ne.s32.totalorder %s13763_s13, %s13764_s17  ;;  %p13767_p13 = scmp.lt.s32.totalorder %s13763_s13, %s14538_s5 }
  0xba   :  { %p13768_p0 = scmp.lt.s32.totalorder %s13766_s10, %s13764_s17 }
  0xbc   :  { %p13769_p1 = por %p13768_p0, %p13767_p13 }
  0xbe   :  { %p13770_p2 = pnand %p13769_p1, %p13765_p12 }
  0xc0   :  { %13773 = shalt.err (!%p13770_p2)
}
  0xc1   :  { %345 = dma.hbm_to_vmem [thread:$0]  %s14708_s23, 1536, %s340_s7, [#allocation30], %s14391_s28, %s14391_s28, %s14392_s1  }
  0xc2   :  { %s14403_s8 = smov [#allocation32]   ;;  %s13786_s0 = sshra.s32 %s14718_s2, 4  ;;  %s13787_s0 = int_to_ptr.hbm [resolvable:$true] %s13786_s0 }
  0xc3   :  { %s365_s11 = sshll.u32 %s14403_s8, 4  ;;  %s13788_s12 = scalar_lea.hbm %s13787_s0, 9  ;;  %s366_s11 = int_to_ptr.vmem [resolvable:$true] %s365_s11 }
  0xc4   :  { %p13789_p3 = scmp.ne.s32.totalorder %s13787_s0, %s13788_s12  ;;  %s13790_s5 = scalar_lea.hbm %s14548_s20, 9 }
  0xc5   :  { %p13791_p4 = scmp.lt.s32.totalorder %s13787_s0, %s14548_s20  ;;  %p13792_p5 = scmp.lt.s32.totalorder %s13790_s5, %s13788_s12 }
  0xc7   :  { %p13793_p6 = por %p13792_p5, %p13791_p4 }
  0xc9   :  { %p13794_p7 = pnand %p13793_p6, %p13789_p3 }
  0xcb   :  { %13797 = shalt.err (!%p13794_p7)
}
  0xcc   :  { %s14404_s19 = smov 16   ;;  %s14405_s16 = smov 1  }
  0xcd   :  { %371 = dma.hbm_to_vmem [thread:$0]  %s14718_s2, 144, %s366_s11, [#allocation33], %s14404_s19, %s14404_s19, %s14405_s16  }
  0xce   :  { %s389_s22 = sshll.u32 %s14558_s6, 4  ;;  %s14406_s23 = smov [#allocation35]   ;;  %s390_s22 = int_to_ptr.hbm [resolvable:$true] %s389_s22 }
  0xcf   :  { %s391_s27 = sshll.u32 %s14406_s23, 4  ;;  %s419_s26 = sshll.u32 %s14578_s14, 4  ;;  %s392_s27 = int_to_ptr.vmem [resolvable:$true] %s391_s27  ;;  %s420_s26 = int_to_ptr.hbm [resolvable:$true] %s419_s26 }
  0xd0   :  { %s13810_s18 = sshra.s32 %s390_s22, 4  ;;  %s13814_s30 = scalar_lea.hbm %s14558_s6, 96  ;;  %s13811_s18 = int_to_ptr.hbm [resolvable:$true] %s13810_s18 }
  0xd1   :  { %s13812_s20 = scalar_lea.hbm %s13811_s18, 96  ;;  %p13815_p9 = scmp.lt.s32.totalorder %s13811_s18, %s14558_s6 }
  0xd2   :  { %p13813_p8 = scmp.ne.s32.totalorder %s13811_s18, %s13812_s20  ;;  %p13816_p10 = scmp.lt.s32.totalorder %s13814_s30, %s13812_s20 }
  0xd4   :  { %p13817_p11 = por %p13816_p10, %p13815_p9 }
  0xd6   :  { %p13818_p12 = pnand %p13817_p11, %p13813_p8 }
  0xd8   :  { %13821 = shalt.err (!%p13818_p12)
}
  0xd9   :  { %s14407_s7 = smov 192   ;;  %s14408_s2 = smov 12  }
  0xda   :  { %397 = dma.hbm_to_vmem [thread:$0]  %s390_s22, 1536, %s392_s27, [#allocation36], %s14407_s7, %s14407_s7, %s14408_s2  }
  0xdb   :  { %s14409_s13 = smov [#allocation38]   ;;  %s445_s10 = sshll.u32 %s14588_s24, 4  ;;  %s14739_s10 = int_to_ptr.hbm [resolvable:$true] %s445_s10 }
  0xdc   :  { %s421_s17 = sshll.u32 %s14409_s13, 4  ;;  %s13834_s6 = sshra.s32 %s420_s26, 4  ;;  %s422_s17 = int_to_ptr.vmem [resolvable:$true] %s421_s17  ;;  %s13835_s6 = int_to_ptr.hbm [resolvable:$true] %s13834_s6 }
  0xdd   :  { %s13836_s8 = scalar_lea.hbm %s13835_s6, 96  ;;  %s13838_s11 = scalar_lea.hbm %s14578_s14, 96 }
  0xde   :  { %p13837_p13 = scmp.ne.s32.totalorder %s13835_s6, %s13836_s8  ;;  %p13839_p0 = scmp.lt.s32.totalorder %s13835_s6, %s14578_s14 }
  0xdf   :  { %p13840_p1 = scmp.lt.s32.totalorder %s13838_s11, %s13836_s8 }
  0xe1   :  { %p13841_p2 = por %p13840_p1, %p13839_p0 }
  0xe3   :  { %p13842_p3 = pnand %p13841_p2, %p13837_p13 }
  0xe5   :  { %13845 = shalt.err (!%p13842_p3)
}
  0xe6   :  { %427 = dma.hbm_to_vmem [thread:$0]  %s420_s26, 1536, %s422_s17, [#allocation39], %s14407_s7, %s14407_s7, %s14408_s2  }
  0xe7   :  { %s115_s0 = sshll.u32 %s14443_s9, 4  ;;  %s14410_s12 = smov [#allocation41]   ;;  %s116_s0 = int_to_ptr.hbm [resolvable:$true] %s115_s0 }
  0xe8   :  { %s447_s5 = sshll.u32 %s14410_s12, 4  ;;  %s13858_s19 = sshra.s32 %s14739_s10, 4  ;;  %s448_s5 = int_to_ptr.vmem [resolvable:$true] %s447_s5  ;;  %s13859_s19 = int_to_ptr.hbm [resolvable:$true] %s13858_s19 }
  0xe9   :  { %s13860_s14 = scalar_lea.hbm %s13859_s19, 96  ;;  %s13862_s16 = scalar_lea.hbm %s14588_s24, 96 }
  0xea   :  { %p13861_p4 = scmp.ne.s32.totalorder %s13859_s19, %s13860_s14  ;;  %p13863_p5 = scmp.lt.s32.totalorder %s13859_s19, %s14588_s24 }
  0xeb   :  { %p13864_p6 = scmp.lt.s32.totalorder %s13862_s16, %s13860_s14 }
  0xed   :  { %p13865_p7 = por %p13864_p6, %p13863_p5 }
  0xef   :  { %p13866_p8 = pnand %p13865_p7, %p13861_p4 }
  0xf1   :  { %13869 = shalt.err (!%p13866_p8)
}
  0xf2   :  { %s16762_s22 = sld [smem:[#allocation70_spill]]  ;;  %s14411_s23 = smov [#allocation2]  }
  0xf3   :  { %453 = dma.hbm_to_vmem [thread:$0]  %s14739_s10, 1536, %s448_s5, [#allocation42], %s14407_s7, %s14407_s7, %s14408_s2  }
  0xf4   :  { %s117_s27 = sshll.u32 %s14411_s23, 4  ;;  %s13882_s18 = sshra.s32 %s116_s0, 4  ;;  %s118_s27 = int_to_ptr.vmem [resolvable:$true] %s117_s27  ;;  %s13883_s18 = int_to_ptr.hbm [resolvable:$true] %s13882_s18 }
  0xf5   :  { %s13884_s24 = scalar_lea.hbm %s13883_s18, 93  ;;  %s13886_s20 = scalar_lea.hbm %s14443_s9, 93 }
  0xf6   :  { %p13885_p9 = scmp.ne.s32.totalorder %s13883_s18, %s13884_s24  ;;  %p13887_p10 = scmp.lt.s32.totalorder %s13883_s18, %s14443_s9 }
  0xf7   :  { %p13888_p11 = scmp.lt.s32.totalorder %s13886_s20, %s13884_s24 }
  0xf8   :  { %s142_s26 = sshll.u32 %s16762_s22, 4  ;;  %s14755_s26 = int_to_ptr.hbm [resolvable:$true] %s142_s26 }
  0xf9   :  { %p13889_p12 = por %p13888_p11, %p13887_p10 }
  0xfb   :  { %p13890_p13 = pnand %p13889_p12, %p13885_p9 }
  0xfd   :  { %13893 = shalt.err (!%p13890_p13)
}
  0xfe   :  { %120 = dma.hbm_to_vmem [thread:$0]  %s116_s0, 1488, %s118_s27, [#allocation3]  }
  0xff   :  { %s16763_s30 = sld [smem:[#allocation71_spill]]  ;;  %s14412_s17 = smov [#allocation7]  }
 0x100   :  { %s144_s10 = sshll.u32 %s14412_s17, 4  ;;  %s13906_s6 = sshra.s32 %s14755_s26, 4  ;;  %s145_s10 = int_to_ptr.vmem [resolvable:$true] %s144_s10  ;;  %s13907_s6 = int_to_ptr.hbm [resolvable:$true] %s13906_s6 }
 0x101   :  { %s13908_s8 = scalar_lea.hbm %s13907_s6, 16  ;;  %s13910_s9 = scalar_lea.hbm %s16762_s22, 16 }
 0x102   :  { %p13909_p0 = scmp.ne.s32.totalorder %s13907_s6, %s13908_s8  ;;  %p13911_p1 = scmp.lt.s32.totalorder %s13907_s6, %s16762_s22 }
 0x103   :  { %p13912_p2 = scmp.lt.s32.totalorder %s13910_s9, %s13908_s8 }
 0x105   :  { %s168_s13 = sshll.u32 %s16763_s30, 4  ;;  %p13913_p3 = por %p13912_p2, %p13911_p1  ;;  %s14760_s13 = int_to_ptr.hbm [resolvable:$true] %s168_s13 }
 0x107   :  { %p13914_p4 = pnand %p13913_p3, %p13909_p0 }
 0x109   :  { %13917 = shalt.err (!%p13914_p4)
}
 0x10a   :  { %s16764_s11 = sld [smem:[#allocation72_spill]]  ;;  %s14413_s0 = smov [#allocation10]  }
 0x10b   :  { %150 = dma.hbm_to_vmem [thread:$0]  %s14755_s26, 256, %s145_s10, [#allocation6], %s14391_s28, %s14391_s28, %s14392_s1  }
 0x10c   :  { %s170_s12 = sshll.u32 %s14413_s0, 4  ;;  %s13930_s19 = sshra.s32 %s14760_s13, 4  ;;  %s171_s12 = int_to_ptr.vmem [resolvable:$true] %s170_s12  ;;  %s13931_s19 = int_to_ptr.hbm [resolvable:$true] %s13930_s19 }
 0x10d   :  { %s13932_s14 = scalar_lea.hbm %s13931_s19, 144  ;;  %s13934_s16 = scalar_lea.hbm %s16763_s30, 144 }
 0x10e   :  { %p13933_p5 = scmp.ne.s32.totalorder %s13931_s19, %s13932_s14  ;;  %p13935_p6 = scmp.lt.s32.totalorder %s13931_s19, %s16763_s30 }
 0x10f   :  { %p13936_p7 = scmp.lt.s32.totalorder %s13934_s16, %s13932_s14 }
 0x110   :  { %s194_s5 = sshll.u32 %s16764_s11, 4  ;;  %s14770_s5 = int_to_ptr.hbm [resolvable:$true] %s194_s5 }
 0x111   :  { %p13937_p8 = por %p13936_p7, %p13935_p6 }
 0x113   :  { %p13938_p9 = pnand %p13937_p8, %p13933_p5 }
 0x115   :  { %13941 = shalt.err (!%p13938_p9)
}
 0x116   :  { %s16765_s22 = sld [smem:[#allocation73_spill]]  ;;  %s14414_s27 = smov [#allocation13]  }
 0x117   :  { %176 = dma.hbm_to_vmem [thread:$0]  %s14760_s13, 2304, %s171_s12, [#allocation9], %s14391_s28, %s14391_s28, %s14392_s1  }
 0x118   :  { %s196_s26 = sshll.u32 %s14414_s27, 4  ;;  %s13954_s18 = sshra.s32 %s14770_s5, 4  ;;  %s197_s26 = int_to_ptr.vmem [resolvable:$true] %s196_s26  ;;  %s13955_s18 = int_to_ptr.hbm [resolvable:$true] %s13954_s18 }
 0x119   :  { %s13956_s24 = scalar_lea.hbm %s13955_s18, 24  ;;  %s13958_s20 = scalar_lea.hbm %s16764_s11, 24 }
 0x11a   :  { %p13957_p10 = scmp.ne.s32.totalorder %s13955_s18, %s13956_s24  ;;  %p13959_p11 = scmp.lt.s32.totalorder %s13955_s18, %s16764_s11 }
 0x11b   :  { %p13960_p12 = scmp.lt.s32.totalorder %s13958_s20, %s13956_s24 }
 0x11c   :  { %s220_s23 = sshll.u32 %s16765_s22, 4  ;;  %s14780_s23 = int_to_ptr.hbm [resolvable:$true] %s220_s23 }
 0x11d   :  { %p13961_p13 = por %p13960_p12, %p13959_p11 }
 0x11f   :  { %p13962_p0 = pnand %p13961_p13, %p13957_p10 }
 0x121   :  { %13965 = shalt.err (!%p13962_p0)
}
 0x122   :  { %s16766_s30 = sld [smem:[#allocation74_spill]]  ;;  %s14415_s13 = smov [#allocation16]  }
 0x123   :  { %202 = dma.hbm_to_vmem [thread:$0]  %s14770_s5, 384, %s197_s26, [#allocation12], %s14397_s29, %s14397_s29, %s14398_s15  }
 0x124   :  { %s222_s17 = sshll.u32 %s14415_s13, 4  ;;  %s13978_s6 = sshra.s32 %s14780_s23, 4  ;;  %s223_s17 = int_to_ptr.vmem [resolvable:$true] %s222_s17  ;;  %s13979_s6 = int_to_ptr.hbm [resolvable:$true] %s13978_s6 }
 0x125   :  { %s13980_s8 = scalar_lea.hbm %s13979_s6, 72  ;;  %s13982_s9 = scalar_lea.hbm %s16765_s22, 72 }
 0x126   :  { %p13981_p1 = scmp.ne.s32.totalorder %s13979_s6, %s13980_s8  ;;  %p13983_p2 = scmp.lt.s32.totalorder %s13979_s6, %s16765_s22 }
 0x127   :  { %p13984_p3 = scmp.lt.s32.totalorder %s13982_s9, %s13980_s8 }
 0x128   :  { %s246_s10 = sshll.u32 %s16766_s30, 4  ;;  %s14790_s10 = int_to_ptr.hbm [resolvable:$true] %s246_s10 }
 0x129   :  { %p13985_p4 = por %p13984_p3, %p13983_p2 }
 0x12b   :  { %p13986_p5 = pnand %p13985_p4, %p13981_p1 }
 0x12d   :  { %13989 = shalt.err (!%p13986_p5)
}
 0x12e   :  { %s16767_s11 = sld [smem:[#allocation75_spill]]  ;;  %s14416_s12 = smov [#allocation19]  }
 0x12f   :  { %228 = dma.hbm_to_vmem [thread:$0]  %s14780_s23, 1152, %s223_s17, [#allocation15], %s14391_s28, %s14391_s28, %s14392_s1  }
 0x130   :  { %s248_s5 = sshll.u32 %s14416_s12, 4  ;;  %s14002_s19 = sshra.s32 %s14790_s10, 4  ;;  %s249_s5 = int_to_ptr.vmem [resolvable:$true] %s248_s5  ;;  %s14003_s19 = int_to_ptr.hbm [resolvable:$true] %s14002_s19 }
 0x131   :  { %s14004_s14 = scalar_lea.hbm %s14003_s19, 36  ;;  %s14006_s16 = scalar_lea.hbm %s16766_s30, 36 }
 0x132   :  { %p14005_p6 = scmp.ne.s32.totalorder %s14003_s19, %s14004_s14  ;;  %p14007_p7 = scmp.lt.s32.totalorder %s14003_s19, %s16766_s30 }
 0x133   :  { %p14008_p8 = scmp.lt.s32.totalorder %s14006_s16, %s14004_s14 }
 0x134   :  { %s272_s0 = sshll.u32 %s16767_s11, 4  ;;  %s14800_s0 = int_to_ptr.hbm [resolvable:$true] %s272_s0 }
 0x135   :  { %p14009_p9 = por %p14008_p8, %p14007_p7 }
 0x137   :  { %p14010_p10 = pnand %p14009_p9, %p14005_p6 }
 0x139   :  { %14013 = shalt.err (!%p14010_p10)
}
 0x13a   :  { %s16768_s22 = sld [smem:[#allocation76_spill]]  ;;  %s14417_s23 = smov [#allocation22]  }
 0x13b   :  { %254 = dma.hbm_to_vmem [thread:$0]  %s14790_s10, 576, %s249_s5, [#allocation18], %s14391_s28, %s14391_s28, %s14392_s1  }
 0x13c   :  { %s274_s27 = sshll.u32 %s14417_s23, 4  ;;  %s14026_s18 = sshra.s32 %s14800_s0, 4  ;;  %s275_s27 = int_to_ptr.vmem [resolvable:$true] %s274_s27  ;;  %s14027_s18 = int_to_ptr.hbm [resolvable:$true] %s14026_s18 }
 0x13d   :  { %s14028_s24 = scalar_lea.hbm %s14027_s18, 32  ;;  %s14030_s20 = scalar_lea.hbm %s16767_s11, 32 }
 0x13e   :  { %p14029_p11 = scmp.ne.s32.totalorder %s14027_s18, %s14028_s24  ;;  %p14031_p12 = scmp.lt.s32.totalorder %s14027_s18, %s16767_s11 }
 0x13f   :  { %p14032_p13 = scmp.lt.s32.totalorder %s14030_s20, %s14028_s24 }
 0x140   :  { %s298_s26 = sshll.u32 %s16768_s22, 4  ;;  %s14810_s26 = int_to_ptr.hbm [resolvable:$true] %s298_s26 }
 0x141   :  { %p14033_p0 = por %p14032_p13, %p14031_p12 }
 0x143   :  { %p14034_p1 = pnand %p14033_p0, %p14029_p11 }
 0x145   :  { %14037 = shalt.err (!%p14034_p1)
}
 0x146   :  { %s16769_s30 = sld [smem:[#allocation77_spill]]  ;;  %s14418_s17 = smov [#allocation25]  }
 0x147   :  { %280 = dma.hbm_to_vmem [thread:$0]  %s14800_s0, 512, %s275_s27, [#allocation21], %s14397_s29, %s14397_s29, %s14398_s15  }
 0x148   :  { %s300_s10 = sshll.u32 %s14418_s17, 4  ;;  %s14050_s6 = sshra.s32 %s14810_s26, 4  ;;  %s301_s10 = int_to_ptr.vmem [resolvable:$true] %s300_s10  ;;  %s14051_s6 = int_to_ptr.hbm [resolvable:$true] %s14050_s6 }
 0x149   :  { %s14052_s8 = scalar_lea.hbm %s14051_s6, 96  ;;  %s14054_s9 = scalar_lea.hbm %s16768_s22, 96 }
 0x14a   :  { %p14053_p2 = scmp.ne.s32.totalorder %s14051_s6, %s14052_s8  ;;  %p14055_p3 = scmp.lt.s32.totalorder %s14051_s6, %s16768_s22 }
 0x14b   :  { %p14056_p4 = scmp.lt.s32.totalorder %s14054_s9, %s14052_s8 }
 0x14c   :  { %s324_s13 = sshll.u32 %s16769_s30, 4  ;;  %s14820_s13 = int_to_ptr.hbm [resolvable:$true] %s324_s13 }
 0x14d   :  { %p14057_p5 = por %p14056_p4, %p14055_p3 }
 0x14f   :  { %p14058_p6 = pnand %p14057_p5, %p14053_p2 }
 0x151   :  { %14061 = shalt.err (!%p14058_p6)
}
 0x152   :  { %s16770_s11 = sld [smem:[#allocation78_spill]]  ;;  %s14419_s0 = smov [#allocation28]  }
 0x153   :  { %306 = dma.hbm_to_vmem [thread:$0]  %s14810_s26, 1536, %s301_s10, [#allocation24], %s14391_s28, %s14391_s28, %s14392_s1  }
 0x154   :  { %s326_s12 = sshll.u32 %s14419_s0, 4  ;;  %s14074_s19 = sshra.s32 %s14820_s13, 4  ;;  %s327_s12 = int_to_ptr.vmem [resolvable:$true] %s326_s12  ;;  %s14075_s19 = int_to_ptr.hbm [resolvable:$true] %s14074_s19 }
 0x155   :  { %s14076_s14 = scalar_lea.hbm %s14075_s19, 36  ;;  %s14078_s16 = scalar_lea.hbm %s16769_s30, 36 }
 0x156   :  { %p14077_p7 = scmp.ne.s32.totalorder %s14075_s19, %s14076_s14  ;;  %p14079_p8 = scmp.lt.s32.totalorder %s14075_s19, %s16769_s30 }
 0x157   :  { %p14080_p9 = scmp.lt.s32.totalorder %s14078_s16, %s14076_s14 }
 0x158   :  { %s350_s5 = sshll.u32 %s16770_s11, 4  ;;  %s14830_s5 = int_to_ptr.hbm [resolvable:$true] %s350_s5 }
 0x159   :  { %p14081_p10 = por %p14080_p9, %p14079_p8 }
 0x15b   :  { %p14082_p11 = pnand %p14081_p10, %p14077_p7 }
 0x15d   :  { %14085 = shalt.err (!%p14082_p11)
}
 0x15e   :  { %s16771_s22 = sld [smem:[#allocation79_spill]]  ;;  %s14420_s27 = smov [#allocation31]  }
 0x15f   :  { %332 = dma.hbm_to_vmem [thread:$0]  %s14820_s13, 576, %s327_s12, [#allocation27], %s14391_s28, %s14391_s28, %s14392_s1  }
 0x160   :  { %s352_s26 = sshll.u32 %s14420_s27, 4  ;;  %s14098_s18 = sshra.s32 %s14830_s5, 4  ;;  %s353_s26 = int_to_ptr.vmem [resolvable:$true] %s352_s26  ;;  %s14099_s18 = int_to_ptr.hbm [resolvable:$true] %s14098_s18 }
 0x161   :  { %s14100_s24 = scalar_lea.hbm %s14099_s18, 32  ;;  %s14102_s20 = scalar_lea.hbm %s16770_s11, 32 }
 0x162   :  { %p14101_p12 = scmp.ne.s32.totalorder %s14099_s18, %s14100_s24  ;;  %p14103_p13 = scmp.lt.s32.totalorder %s14099_s18, %s16770_s11 }
 0x163   :  { %p14104_p0 = scmp.lt.s32.totalorder %s14102_s20, %s14100_s24 }
 0x164   :  { %s376_s23 = sshll.u32 %s16771_s22, 4  ;;  %s14840_s23 = int_to_ptr.hbm [resolvable:$true] %s376_s23 }
 0x165   :  { %p14105_p1 = por %p14104_p0, %p14103_p13 }
 0x167   :  { %p14106_p2 = pnand %p14105_p1, %p14101_p12 }
 0x169   :  { %14109 = shalt.err (!%p14106_p2)
}
 0x16a   :  { %s16772_s30 = sld [smem:[#allocation81_spill]]  ;;  %s14421_s13 = smov [#allocation34]  }
 0x16b   :  { %358 = dma.hbm_to_vmem [thread:$0]  %s14830_s5, 512, %s353_s26, [#allocation30], %s14397_s29, %s14397_s29, %s14398_s15  }
 0x16c   :  { %s378_s17 = sshll.u32 %s14421_s13, 4  ;;  %s14122_s6 = sshra.s32 %s14840_s23, 4  ;;  %s379_s17 = int_to_ptr.vmem [resolvable:$true] %s378_s17  ;;  %s14123_s6 = int_to_ptr.hbm [resolvable:$true] %s14122_s6 }
 0x16d   :  { %s14124_s8 = scalar_lea.hbm %s14123_s6, 96  ;;  %s14126_s9 = scalar_lea.hbm %s16771_s22, 96 }
 0x16e   :  { %p14125_p3 = scmp.ne.s32.totalorder %s14123_s6, %s14124_s8  ;;  %p14127_p4 = scmp.lt.s32.totalorder %s14123_s6, %s16771_s22 }
 0x16f   :  { %p14128_p5 = scmp.lt.s32.totalorder %s14126_s9, %s14124_s8 }
 0x170   :  { %s404_s10 = sshll.u32 %s16772_s30, 4  ;;  %s14850_s10 = int_to_ptr.hbm [resolvable:$true] %s404_s10 }
 0x171   :  { %p14129_p6 = por %p14128_p5, %p14127_p4 }
 0x173   :  { %p14130_p7 = pnand %p14129_p6, %p14125_p3 }
 0x175   :  { %14133 = shalt.err (!%p14130_p7)
}
 0x176   :  { %s16773_s11 = sld [smem:[#allocation83_spill]]  ;;  %s14422_s12 = smov [#allocation37]  }
 0x177   :  { %384 = dma.hbm_to_vmem [thread:$0]  %s14840_s23, 1536, %s379_s17, [#allocation33], %s14391_s28, %s14391_s28, %s14392_s1  }
 0x178   :  { %s406_s5 = sshll.u32 %s14422_s12, 4  ;;  %s14146_s19 = sshra.s32 %s14850_s10, 4  ;;  %s407_s5 = int_to_ptr.vmem [resolvable:$true] %s406_s5  ;;  %s14147_s19 = int_to_ptr.hbm [resolvable:$true] %s14146_s19 }
 0x179   :  { %s14148_s14 = scalar_lea.hbm %s14147_s19, 96  ;;  %s14150_s16 = scalar_lea.hbm %s16772_s30, 96 }
 0x17a   :  { %p14149_p8 = scmp.ne.s32.totalorder %s14147_s19, %s14148_s14  ;;  %p14151_p9 = scmp.lt.s32.totalorder %s14147_s19, %s16772_s30 }
 0x17b   :  { %p14152_p10 = scmp.lt.s32.totalorder %s14150_s16, %s14148_s14 }
 0x17c   :  { %s432_s0 = sshll.u32 %s16773_s11, 4  ;;  %s14860_s0 = int_to_ptr.hbm [resolvable:$true] %s432_s0 }
 0x17d   :  { %p14153_p11 = por %p14152_p10, %p14151_p9 }
 0x17f   :  { %p14154_p12 = pnand %p14153_p11, %p14149_p8 }
 0x181   :  { %14157 = shalt.err (!%p14154_p12)
}
 0x182   :  { %s16774_s22 = sld [smem:[#allocation84_spill]]  ;;  %s14423_s23 = smov [#allocation40]  }
 0x183   :  { %412 = dma.hbm_to_vmem [thread:$0]  %s14850_s10, 1536, %s407_s5, [#allocation36], %s14407_s7, %s14407_s7, %s14408_s2  }
 0x184   :  { %s434_s27 = sshll.u32 %s14423_s23, 4  ;;  %s14170_s18 = sshra.s32 %s14860_s0, 4  ;;  %s435_s27 = int_to_ptr.vmem [resolvable:$true] %s434_s27  ;;  %s14171_s18 = int_to_ptr.hbm [resolvable:$true] %s14170_s18 }
 0x185   :  { %s14172_s24 = scalar_lea.hbm %s14171_s18, 192  ;;  %s14174_s20 = scalar_lea.hbm %s16773_s11, 192 }
 0x186   :  { %p14173_p13 = scmp.ne.s32.totalorder %s14171_s18, %s14172_s24  ;;  %p14175_p0 = scmp.lt.s32.totalorder %s14171_s18, %s16773_s11 }
 0x187   :  { %p14176_p1 = scmp.lt.s32.totalorder %s14174_s20, %s14172_s24 }
 0x188   :  { %s458_s26 = sshll.u32 %s16774_s22, 4  ;;  %s459_s26 = int_to_ptr.hbm [resolvable:$true] %s458_s26 }
 0x189   :  { %p14177_p2 = por %p14176_p1, %p14175_p0 }
 0x18b   :  { %p14178_p3 = pnand %p14177_p2, %p14173_p13 }
 0x18d   :  { %14181 = shalt.err (!%p14178_p3)
}
 0x18e   :  { %440 = dma.hbm_to_vmem [thread:$0]  %s14860_s0, 3072, %s435_s27, [#allocation39], %s14391_s28, %s14391_s28, %s14392_s1  }
 0x18f   :  { %s14424_s7 = smov [#allocation43]   ;;  %s14194_s30 = sshra.s32 %s459_s26, 4  ;;  %s14195_s30 = int_to_ptr.hbm [resolvable:$true] %s14194_s30 }
 0x190   :  { %s460_s2 = sshll.u32 %s14424_s7, 4  ;;  %s14196_s13 = scalar_lea.hbm %s14195_s30, 192  ;;  %s461_s2 = int_to_ptr.vmem [resolvable:$true] %s460_s2 }
 0x191   :  { %p14197_p4 = scmp.ne.s32.totalorder %s14195_s30, %s14196_s13  ;;  %s14198_s17 = scalar_lea.hbm %s16774_s22, 192 }
 0x192   :  { %p14199_p5 = scmp.lt.s32.totalorder %s14195_s30, %s16774_s22  ;;  %p14200_p6 = scmp.lt.s32.totalorder %s14198_s17, %s14196_s13 }
 0x194   :  { %p14201_p7 = por %p14200_p6, %p14199_p5 }
 0x196   :  { %p14202_p8 = pnand %p14201_p7, %p14197_p4 }
 0x198   :  { %14205 = shalt.err (!%p14202_p8)
}
 0x199   :  { %466 = dma.hbm_to_vmem [thread:$0]  %s459_s26, 3072, %s461_s2, [#allocation42], %s14391_s28, %s14391_s28, %s14392_s1  }
 0x19a   :  { %14314 = dma.done.wait [#allocation3], 1488  }
 0x19b   :  { %14315 = vsyncadd [#allocation3], 4294965808 }
 0x19c   :  { %14316 = dma.done.wait [#allocation6], 512  }
 0x19d   :  { %14317 = vsyncadd [#allocation6], 4294966784 }
 0x19e   :  { %14318 = dma.done.wait [#allocation9], 2432  }
 0x19f   :  { %14319 = vsyncadd [#allocation9], 4294964864 }
 0x1a0   :  { %14320 = dma.done.wait [#allocation12], 1152  }
 0x1a1   :  { %14321 = vsyncadd [#allocation12], 4294966144 }
 0x1a2   :  { %14322 = dma.done.wait [#allocation15], 3456  }
 0x1a3   :  { %14323 = vsyncadd [#allocation15], 4294963840 }
 0x1a4   :  { %14324 = dma.done.wait [#allocation18], 960  }
 0x1a5   :  { %14325 = vsyncadd [#allocation18], 4294966336 }
 0x1a6   :  { %14326 = dma.done.wait [#allocation21], 1664  }
 0x1a7   :  { %14327 = vsyncadd [#allocation21], 4294965632 }
 0x1a8   :  { %14328 = dma.done.wait [#allocation24], 2112  }
 0x1a9   :  { %14329 = vsyncadd [#allocation24], 4294965184 }
 0x1aa   :  { %14330 = dma.done.wait [#allocation27], 1088  }
 0x1ab   :  { %14331 = vsyncadd [#allocation27], 4294966208 }
 0x1ac   :  { %14332 = dma.done.wait [#allocation30], 2048  }
 0x1ad   :  { %14333 = vsyncadd [#allocation30], 4294965248 }
 0x1ae   :  { %14334 = dma.done.wait [#allocation33], 1680  }
 0x1af   :  { %14335 = vsyncadd [#allocation33], 4294965616 }
 0x1b0   :  { %14336 = dma.done.wait [#allocation36], 3072  }
 0x1b1   :  { %14337 = vsyncadd [#allocation36], 4294964224 }
 0x1b2   :  { %14338 = dma.done.wait [#allocation39], 4608  }
 0x1b3   :  { %14339 = vsyncadd [#allocation39], 4294962688 }
 0x1b4   :  { %14340 = dma.done.wait [#allocation42], 4608  }
 0x1b5   :  { %14341 = vsyncadd [#allocation42], 4294962688  ;;  %s16775_s28 = sld [smem:[#allocation67_spill]]  ;;  %vm656_vm0 = vcmask 1044480   ;;  %vm657_vm1 = vcmask 1045504   ;;  %v14425_v0 = vmov 65535  }
 0x1b6   :  { %v658_v1 = vsel %vm656_vm0, 4294967295, %v14425_v0  ;;  %v10273_v2 = vld [vmem:[#allocation5 + $0x8] sm:$0xf]  ;;  %v12904_v3 = vld [vmem:[#allocation5 + $0x8] sm:$0x30]  ;;  %v12903_v7 = vld [vmem:[#allocation5] sm:$0xff] }
 0x1b7   :  { %v659_v4 = vsel %vm657_vm1, %v658_v1, 0  ;;  %v10274_v5 = vor.u32 %v12904_v3, %v10273_v2  ;;  %vm631_vm2 = vcmask 220160   ;;  %v13552_v47 = vld [vmem:[#allocation2] ss:$0 sm:$0xff]  ;;  %s16776_s1 = sld [smem:[#allocation69_spill]]  ;;  %vm2138_vm3 = vcmask 261120  }
 0x1b8   :  { %s16777_s10 = sld [smem:[#allocation68_spill]]  ;;  %vm2212_vm4 = vcmask 130048   ;;  %vm2832_vm5 = vcmask 785408   ;;  %vm2895_vm6 = vcmask 1043456   ;;  %vm2858_vm7 = vcmask 195584   ;;  %s14426_s14 = smov [#allocation45]  }
 0x1b9   :  { %v661_v6 = vand.u32 %v10274_v5, %v659_v4  ;;  %vm4505_vm8 = vcmask 64512   ;;  %vm5000_vm9 = vcmask 523264   ;;  %s16804_s6 = sld [smem:[#allocation80_spill]]  ;;  %vm6212_vm10 = vcmask 517120   ;;  %s10157_s16 = sshll.u32 %s14426_s14, 4  ;;  %s10158_s16 = int_to_ptr.vmem [resolvable:$true] %s10157_s16 }
 0x1ba   :  { %s16805_s8 = sld [smem:[#allocation82_spill]]  ;;  %s10159_s22 = sshll.u32 %s14633_s21, 4  ;;  %s10160_s22 = int_to_ptr.hbm [resolvable:$true] %s10159_s22 }
 0x1bb   :  { %v588_v8 = vld [vmem:[%s16775_s28] sm:$0xff]  ;;  %v589_v9 = vld [vmem:[%s16775_s28 + $0x8] sm:$0xff]  ;;  %669 = vmatpush.bf16.msra.mxu0 %v661_v6  ;;  %v590_v11 = vld [vmem:[%s16775_s28 + $0x10] sm:$0xff]  ;;  %s16806_s9 = sld [smem:[#allocation85_spill]]  ;;  %s14230_s23 = sshra.s32 %s10160_s22, 4  ;;  %s14231_s23 = int_to_ptr.hbm [resolvable:$true] %s14230_s23 }
 0x1bc   :  { %v604_v10 = vpack.c.bf16 %v589_v9, %v588_v8  ;;  %v591_v12 = vld [vmem:[%s16775_s28 + $0x18] sm:$0xff]  ;;  %v592_v14 = vld [vmem:[%s16775_s28 + $0x20] sm:$0xff]  ;;  %v593_v15 = vld [vmem:[%s16775_s28 + $0x28] sm:$0xff]  ;;  %s16807_s11 = sld [smem:[#allocation86_spill]]  ;;  %s14232_s27 = scalar_lea.hbm %s14231_s23, 32 }
 0x1bd   :  { %v605_v13 = vpack.c.bf16 %v591_v12, %v590_v11  ;;  %v606_v16 = vpack.c.bf16 %v593_v15, %v592_v14  ;;  %v594_v17 = vld [vmem:[%s16775_s28 + $0x30] sm:$0xff]  ;;  %v595_v18 = vld [vmem:[%s16775_s28 + $0x38] sm:$0xff]  ;;  %v596_v20 = vld [vmem:[%s16775_s28 + $0x40] sm:$0xff]  ;;  %s16808_s0 = sld [smem:[#allocation87_spill]]  ;;  %p14233_p9 = scmp.ne.s32.totalorder %s14231_s23, %s14232_s27 }
 0x1be   :  { %v607_v19 = vpack.c.bf16 %v595_v18, %v594_v17  ;;  %v597_v21 = vld [vmem:[%s16775_s28 + $0x48] sm:$0xff]  ;;  %v598_v23 = vld [vmem:[%s16775_s28 + $0x50] sm:$0xff]  ;;  %v599_v24 = vld [vmem:[%s16775_s28 + $0x58] sm:$0xff]  ;;  %s16809_s12 = sld [smem:[#allocation88_spill]]  ;;  %s14234_s26 = scalar_lea.hbm %s14633_s21, 32 }
 0x1bf   :  { %670 = vmatpush.bf16.msra.mxu0 %v12903_v7  ;;  %v608_v22 = vpack.c.bf16 %v597_v21, %v596_v20  ;;  %v609_v25 = vpack.c.bf16 %v599_v24, %v598_v23  ;;  %v600_v26 = vld [vmem:[%s16775_s28 + $0x60] sm:$0xff]  ;;  %v601_v27 = vld [vmem:[%s16775_s28 + $0x68] sm:$0xff]  ;;  %v602_v29 = vld [vmem:[%s16775_s28 + $0x70] sm:$0xff]  ;;  %s16810_s5 = sld [smem:[#allocation89_spill]]  ;;  %p14235_p10 = scmp.lt.s32.totalorder %s14231_s23, %s14633_s21 }
 0x1c0   :  { %v610_v28 = vpack.c.bf16 %v601_v27, %v600_v26  ;;  %v603_v30 = vld [vmem:[%s16775_s28 + $0x78] sm:$0xff]  ;;  %s16811_s19 = sld [smem:[#allocation90_spill]]  ;;  %p14236_p11 = scmp.lt.s32.totalorder %s14234_s26, %s14232_s27 }
 0x1c1   :  { %v611_v31 = vpack.c.bf16 %v603_v30, %v602_v29 }
 0x1c2   :  { %10275 = vmatmul.msk.bf16.vlgmr.msra.gmra.mxu0 %vm631_vm2, %v604_v10  ;;  %p14237_p12 = por %p14236_p11, %p14235_p10 }
 0x1c4   :  { %p14238_p13 = pnand %p14237_p12, %p14233_p9 }
 0x1d2   :  { %10276 = vmatmul.msk.bf16.gmra.mxu0 %vm631_vm2, %v605_v13 }
 0x1e2   :  { %10277 = vmatmul.msk.bf16.gmra.mxu0 %vm631_vm2, %v606_v16 }
 0x1f2   :  { %10278 = vmatmul.msk.bf16.gmra.mxu0 %vm631_vm2, %v607_v19 }
 0x202   :  { %10279 = vmatmul.msk.bf16.gmra.mxu0 %vm631_vm2, %v608_v22 }
 0x212   :  { %10280 = vmatmul.msk.bf16.gmra.mxu0 %vm631_vm2, %v609_v25 }
 0x222   :  { %10281 = vmatmul.msk.bf16.gmra.mxu0 %vm631_vm2, %v610_v28 }
 0x232   :  { %10282 = vmatmul.msk.bf16.gmra.mxu0 %vm631_vm2, %v611_v31 }
 0x23f   :  { %v14906_v32 = vpop.f32.mrf.mxu0 }
 0x240   :  { %v673_v29 = vadd.f32 %v13552_v47, %v14906_v32 }
 0x247   :  { %v14908_v33 = vpop.f32.mrf.mxu0 }
 0x248   :  { %v675_v25 = vadd.f32 %v13552_v47, %v14908_v33  ;;  %v712_v33 = vmax.f32 %v673_v29, 0.0 }
 0x24f   :  { %v14910_v34 = vpop.f32.mrf.mxu0 }
 0x250   :  { %v678_v22 = vadd.f32 %v13552_v47, %v14910_v34  ;;  %v713_v34 = vmax.f32 %v675_v25, 0.0 }
 0x252   :  { %v714_v30 = vmax.f32 %v678_v22, 0.0  ;;  %v729_v32 = vmin.f32 %v713_v34, 6.0 }
 0x257   :  { %v679_v35 = vpop.f32.mrf.mxu0 }
 0x258   :  { %v680_v18 = vadd.f32 %v13552_v47, %v679_v35 }
 0x25a   :  { %v715_v26 = vmax.f32 %v680_v18, 0.0 }
 0x25c   :  { %v731_v35 = vmin.f32 %v715_v26, 6.0 }
 0x25f   :  { %v682_v36 = vpop.f32.mrf.mxu0 }
 0x260   :  { %v683_v15 = vadd.f32 %v13552_v47, %v682_v36 }
 0x262   :  { %v716_v23 = vmax.f32 %v683_v15, 0.0  ;;  %v15040_v15 = vld [vmem:[%s16777_s10] ss:$0 sm:$0xff] }
 0x264   :  { %v732_v31 = vmin.f32 %v716_v23, 6.0 }
 0x267   :  { %v684_v37 = vpop.f32.mrf.mxu0 }
 0x268   :  { %v685_v11 = vadd.f32 %v13552_v47, %v684_v37  ;;  %v730_v37 = vmin.f32 %v714_v30, 6.0 }
 0x26a   :  { %v717_v19 = vmax.f32 %v685_v11, 0.0  ;;  %v12937_v11 = vld [vmem:[%s16776_s1 + $0x100] sm:$0xff] }
 0x26c   :  { %v733_v27 = vmin.f32 %v717_v19, 6.0  ;;  %v15049_v19 = vld [vmem:[%s16777_s10 + $0x3] ss:$0 sm:$0xff] }
 0x26e   :  { %v14945_v36 = vpack.c.bf16 %v733_v27, %v732_v31 }
 0x26f   :  { %v687_v38 = vpop.f32.mrf.mxu0 }
 0x270   :  { %v688_v8 = vadd.f32 %v13552_v47, %v687_v38  ;;  %v14951_v38 = vpack.c.bf16 %v731_v35, %v730_v37 }
 0x272   :  { %v718_v16 = vmax.f32 %v688_v8, 0.0  ;;  %v12936_v8 = vld [vmem:[%s16776_s1 + $0xf8] sm:$0xff] }
 0x274   :  { %v734_v24 = vmin.f32 %v718_v16, 6.0  ;;  %v15043_v16 = vld [vmem:[%s16777_s10 + $0x1] ss:$0 sm:$0xff] }
 0x277   :  { %v689_v39 = vpop.f32.mrf.mxu0 }
 0x278   :  { %v690_v4 = vadd.f32 %v13552_v47, %v689_v39  ;;  %v728_v39 = vmin.f32 %v712_v33, 6.0 }
 0x27a   :  { %v719_v12 = vmax.f32 %v690_v4, 0.0  ;;  %v12935_v4 = vld [vmem:[%s16776_s1 + $0xf0] sm:$0xff] }
 0x27c   :  { %v735_v20 = vmin.f32 %v719_v12, 6.0  ;;  %v12953_v12 = vld [vmem:[%s16776_s1 + $0x180] sm:$0xff] }
 0x27e   :  { %v14938_v28 = vpack.c.bf16 %v735_v20, %v734_v24 }
 0x27f   :  { %v692_v40 = vpop.f32.mrf.mxu0 }
 0x280   :  { %v693_v1 = vadd.f32 %v13552_v47, %v692_v40  ;;  %v14957_v40 = vpack.c.bf16 %v729_v32, %v728_v39  ;;  %v12938_v32 = vld [vmem:[%s16776_s1 + $0x108] sm:$0xff] }
 0x282   :  { %v720_v9 = vmax.f32 %v693_v1, 0.0  ;;  %v12919_v1 = vld [vmem:[%s16776_s1 + $0x70] sm:$0xff] }
 0x284   :  { %v736_v17 = vmin.f32 %v720_v9, 6.0  ;;  %v12945_v9 = vld [vmem:[%s16776_s1 + $0x140] sm:$0xff] }
 0x287   :  { %v694_v41 = vpop.f32.mrf.mxu0 }
 0x288   :  { %v695_v61 = vadd.f32 %v13552_v47, %v694_v41  ;;  %v12905_v41 = vld [vmem:[%s16776_s1] sm:$0xff] }
 0x28a   :  { %v721_v5 = vmax.f32 %v695_v61, 0.0  ;;  %v12918_v61 = vld [vmem:[%s16776_s1 + $0x68] sm:$0xff] }
 0x28c   :  { %v737_v13 = vmin.f32 %v721_v5, 6.0  ;;  %v12920_v5 = vld [vmem:[%s16776_s1 + $0x78] sm:$0xff] }
 0x28e   :  { %v14930_v21 = vpack.c.bf16 %v737_v13, %v736_v17  ;;  %v15046_v17 = vld [vmem:[%s16777_s10 + $0x2] ss:$0 sm:$0xff] }
 0x28f   :  { %v697_v42 = vpop.f32.mrf.mxu0 }
 0x290   :  { %v698_v57 = vadd.f32 %v13552_v47, %v697_v42  ;;  %v12913_v42 = vld [vmem:[%s16776_s1 + $0x40] sm:$0xff] }
 0x292   :  { %v722_v2 = vmax.f32 %v698_v57, 0.0  ;;  %v12917_v57 = vld [vmem:[%s16776_s1 + $0x60] sm:$0xff] }
 0x294   :  { %v738_v10 = vmin.f32 %v722_v2, 6.0  ;;  %v12911_v2 = vld [vmem:[%s16776_s1 + $0x30] sm:$0xff] }
 0x297   :  { %v699_v43 = vpop.f32.mrf.mxu0 }
 0x298   :  { %v700_v54 = vadd.f32 %v13552_v47, %v699_v43  ;;  %v12921_v43 = vld [vmem:[%s16776_s1 + $0x80] sm:$0xff] }
 0x29a   :  { %v723_v62 = vmax.f32 %v700_v54, 0.0  ;;  %v12908_v54 = vld [vmem:[%s16776_s1 + $0x18] sm:$0xff] }
 0x29c   :  { %v739_v6 = vmin.f32 %v723_v62, 6.0  ;;  %v12910_v62 = vld [vmem:[%s16776_s1 + $0x28] sm:$0xff] }
 0x29e   :  { %v14924_v14 = vpack.c.bf16 %v739_v6, %v738_v10  ;;  %v12912_v6 = vld [vmem:[%s16776_s1 + $0x38] sm:$0xff] }
 0x29f   :  { %v702_v44 = vpop.f32.mrf.mxu0 }
 0x2a0   :  { %v703_v51 = vadd.f32 %v13552_v47, %v702_v44  ;;  %v12929_v44 = vld [vmem:[%s16776_s1 + $0xc0] sm:$0xff] }
 0x2a2   :  { %v724_v58 = vmax.f32 %v703_v51, 0.0  ;;  %v12923_v51 = vld [vmem:[%s16776_s1 + $0x90] sm:$0xff] }
 0x2a4   :  { %v740_v3 = vmin.f32 %v724_v58, 6.0  ;;  %v12909_v58 = vld [vmem:[%s16776_s1 + $0x20] sm:$0xff] }
 0x2a7   :  { %v704_v45 = vpop.f32.mrf.mxu0 }
 0x2a8   :  { %v705_v49 = vadd.f32 %v13552_v47, %v704_v45  ;;  %v12906_v45 = vld [vmem:[%s16776_s1 + $0x8] sm:$0xff] }
 0x2aa   :  { %v725_v55 = vmax.f32 %v705_v49, 0.0  ;;  %v12915_v49 = vld [vmem:[%s16776_s1 + $0x50] sm:$0xff] }
 0x2ac   :  { %v741_v63 = vmin.f32 %v725_v55, 6.0  ;;  %v12924_v55 = vld [vmem:[%s16776_s1 + $0x98] sm:$0xff] }
 0x2ae   :  { %v14918_v7 = vpack.c.bf16 %v741_v63, %v740_v3  ;;  %v12926_v63 = vld [vmem:[%s16776_s1 + $0xa8] sm:$0xff]  ;;  %v12927_v3 = vld [vmem:[%s16776_s1 + $0xb0] sm:$0xff] }
 0x2af   :  { %v707_v46 = vpop.f32.mrf.mxu0 }
 0x2b0   :  { %v708_v48 = vadd.f32 %v13552_v47, %v707_v46  ;;  %v12914_v46 = vld [vmem:[%s16776_s1 + $0x48] sm:$0xff] }
 0x2b2   :  { %v726_v52 = vmax.f32 %v708_v48, 0.0  ;;  %v12930_v48 = vld [vmem:[%s16776_s1 + $0xc8] sm:$0xff] }
 0x2b4   :  { %v742_v59 = vmin.f32 %v726_v52, 6.0  ;;  %v12931_v52 = vld [vmem:[%s16776_s1 + $0xd0] sm:$0xff] }
 0x2b7   :  { %v709_v50 = vpop.f32.mrf.mxu0 }
 0x2b8   :  { %v710_v53 = vadd.f32 %v13552_v47, %v709_v50  ;;  %v12922_v47 = vld [vmem:[%s16776_s1 + $0x88] sm:$0xff]  ;;  %v12907_v50 = vld [vmem:[%s16776_s1 + $0x10] sm:$0xff] }
 0x2ba   :  { %v727_v56 = vmax.f32 %v710_v53, 0.0  ;;  %v12916_v53 = vld [vmem:[%s16776_s1 + $0x58] sm:$0xff] }
 0x2bc   :  { %v743_v60 = vmin.f32 %v727_v56, 6.0  ;;  %v12932_v56 = vld [vmem:[%s16776_s1 + $0xd8] sm:$0xff] }
 0x2be   :  { %v14912_v0 = vpack.c.bf16 %v743_v60, %v742_v59  ;;  %v12925_v59 = vld [vmem:[%s16776_s1 + $0xa0] sm:$0xff] }
 0x2bf   :  { %v12933_v60 = vld [vmem:[%s16776_s1 + $0xe0] sm:$0xff] }
 0x2c0   :  { %816 = vmatpush.bf16.msra.mxu1 %v14912_v0  ;;  %947 = vmatpush.bf16.msra.mxu2 %v14912_v0 }
 0x2c1   :  { %1094 = vmatpush.bf16.msra.mxu3 %v14912_v0  ;;  %1241 = vmatpush.bf16.msrb.mxu0 %v14912_v0 }
 0x2c4   :  { %817 = vmatpush.bf16.msra.mxu1 %v14918_v7  ;;  %948 = vmatpush.bf16.msra.mxu2 %v14918_v7 }
 0x2c5   :  { %1095 = vmatpush.bf16.msra.mxu3 %v14918_v7  ;;  %1242 = vmatpush.bf16.msrb.mxu0 %v14918_v7 }
 0x2c8   :  { %818 = vmatpush.bf16.msra.mxu1 %v14924_v14  ;;  %949 = vmatpush.bf16.msra.mxu2 %v14924_v14 }
 0x2c9   :  { %1096 = vmatpush.bf16.msra.mxu3 %v14924_v14  ;;  %1243 = vmatpush.bf16.msrb.mxu0 %v14924_v14 }
 0x2cc   :  { %819 = vmatpush.bf16.msra.mxu1 %v14930_v21  ;;  %950 = vmatpush.bf16.msra.mxu2 %v14930_v21 }
 0x2cd   :  { %1097 = vmatpush.bf16.msra.mxu3 %v14930_v21  ;;  %1244 = vmatpush.bf16.msrb.mxu0 %v14930_v21 }
 0x2d0   :  { %820 = vmatpush.bf16.msra.mxu1 %v14938_v28  ;;  %951 = vmatpush.bf16.msra.mxu2 %v14938_v28 }
 0x2d1   :  { %1098 = vmatpush.bf16.msra.mxu3 %v14938_v28  ;;  %1245 = vmatpush.bf16.msrb.mxu0 %v14938_v28 }
 0x2d4   :  { %821 = vmatpush.bf16.msra.mxu1 %v14945_v36  ;;  %952 = vmatpush.bf16.msra.mxu2 %v14945_v36 }
 0x2d5   :  { %1099 = vmatpush.bf16.msra.mxu3 %v14945_v36  ;;  %1246 = vmatpush.bf16.msrb.mxu0 %v14945_v36 }
 0x2d8   :  { %822 = vmatpush.bf16.msra.mxu1 %v14951_v38  ;;  %953 = vmatpush.bf16.msra.mxu2 %v14951_v38 }
 0x2d9   :  { %1100 = vmatpush.bf16.msra.mxu3 %v14951_v38  ;;  %1247 = vmatpush.bf16.msrb.mxu0 %v14951_v38 }
 0x2dc   :  { %823 = vmatpush.bf16.msra.mxu1 %v14957_v40  ;;  %954 = vmatpush.bf16.msra.mxu2 %v14957_v40 }
 0x2dd   :  { %1101 = vmatpush.bf16.msra.mxu3 %v14957_v40  ;;  %1248 = vmatpush.bf16.msrb.mxu0 %v14957_v40 }
 0x2df   :  { %824 = vmatmul.bf16.vlgmr.msra.gmra.mxu1 %v12905_v41  ;;  %955 = vmatmul.bf16.vlgmr.msra.gmra.mxu2 %v12913_v42  ;;  %v12962_v42 = vld [vmem:[%s16776_s1 + $0x1c8] sm:$0xff] }
 0x2e0   :  { %1388 = vmatpush.bf16.msrb.mxu1 %v14912_v0  ;;  %1535 = vmatpush.bf16.msrb.mxu2 %v14912_v0 }
 0x2e1   :  { %1682 = vmatpush.bf16.msrb.mxu3 %v14912_v0  ;;  %1829 = vmatpush.bf16.msra.mxu0 %v14912_v0 }
 0x2e2   :  { %1102 = vmatmul.bf16.vlgmr.msra.gmra.mxu3 %v12921_v43  ;;  %1249 = vmatmul.bf16.vlgmr.msrb.gmra.mxu0 %v12929_v44 }
 0x2e4   :  { %1389 = vmatpush.bf16.msrb.mxu1 %v14918_v7  ;;  %1536 = vmatpush.bf16.msrb.mxu2 %v14918_v7 }
 0x2e5   :  { %1683 = vmatpush.bf16.msrb.mxu3 %v14918_v7  ;;  %1830 = vmatpush.bf16.msra.mxu0 %v14918_v7 }
 0x2e8   :  { %1390 = vmatpush.bf16.msrb.mxu1 %v14924_v14  ;;  %1537 = vmatpush.bf16.msrb.mxu2 %v14924_v14 }
 0x2e9   :  { %1684 = vmatpush.bf16.msrb.mxu3 %v14924_v14  ;;  %1831 = vmatpush.bf16.msra.mxu0 %v14924_v14 }
 0x2ec   :  { %1391 = vmatpush.bf16.msrb.mxu1 %v14930_v21  ;;  %1538 = vmatpush.bf16.msrb.mxu2 %v14930_v21 }
 0x2ed   :  { %1685 = vmatpush.bf16.msrb.mxu3 %v14930_v21  ;;  %1832 = vmatpush.bf16.msra.mxu0 %v14930_v21 }
 0x2ef   :  { %829 = vmatmul.bf16.gmra.mxu1 %v12906_v45  ;;  %960 = vmatmul.bf16.gmra.mxu2 %v12914_v46 }
 0x2f0   :  { %1392 = vmatpush.bf16.msrb.mxu1 %v14938_v28  ;;  %1539 = vmatpush.bf16.msrb.mxu2 %v14938_v28 }
 0x2f1   :  { %1686 = vmatpush.bf16.msrb.mxu3 %v14938_v28  ;;  %1833 = vmatpush.bf16.msra.mxu0 %v14938_v28 }
 0x2f2   :  { %1107 = vmatmul.bf16.gmra.mxu3 %v12922_v47  ;;  %1254 = vmatmul.bf16.gmra.mxu0 %v12930_v48 }
 0x2f4   :  { %1393 = vmatpush.bf16.msrb.mxu1 %v14945_v36  ;;  %1540 = vmatpush.bf16.msrb.mxu2 %v14945_v36 }
 0x2f5   :  { %1687 = vmatpush.bf16.msrb.mxu3 %v14945_v36  ;;  %1834 = vmatpush.bf16.msra.mxu0 %v14945_v36 }
 0x2f8   :  { %1394 = vmatpush.bf16.msrb.mxu1 %v14951_v38  ;;  %1541 = vmatpush.bf16.msrb.mxu2 %v14951_v38 }
 0x2f9   :  { %1688 = vmatpush.bf16.msrb.mxu3 %v14951_v38  ;;  %1835 = vmatpush.bf16.msra.mxu0 %v14951_v38 }
 0x2fc   :  { %1395 = vmatpush.bf16.msrb.mxu1 %v14957_v40  ;;  %1542 = vmatpush.bf16.msrb.mxu2 %v14957_v40 }
 0x2fd   :  { %1689 = vmatpush.bf16.msrb.mxu3 %v14957_v40  ;;  %1836 = vmatpush.bf16.msra.mxu0 %v14957_v40 }
 0x2ff   :  { %965 = vmatmul.bf16.gmra.mxu2 %v12915_v49  ;;  %834 = vmatmul.bf16.gmra.mxu1 %v12907_v50 }
 0x300   :  { %1976 = vmatpush.bf16.msra.mxu1 %v14912_v0  ;;  %v12934_v0 = vld [vmem:[%s16776_s1 + $0xe8] sm:$0xff] }
 0x302   :  { %1112 = vmatmul.bf16.gmra.mxu3 %v12923_v51  ;;  %1259 = vmatmul.bf16.gmra.mxu0 %v12931_v52 }
 0x304   :  { %1977 = vmatpush.bf16.msra.mxu1 %v14918_v7  ;;  %v12928_v7 = vld [vmem:[%s16776_s1 + $0xb8] sm:$0xff] }
 0x308   :  { %1978 = vmatpush.bf16.msra.mxu1 %v14924_v14  ;;  %v12961_v14 = vld [vmem:[%s16776_s1 + $0x1c0] sm:$0xff] }
 0x30c   :  { %1979 = vmatpush.bf16.msra.mxu1 %v14930_v21 }
 0x30f   :  { %970 = vmatmul.bf16.gmra.mxu2 %v12916_v53  ;;  %839 = vmatmul.bf16.gmra.mxu1 %v12908_v54 }
 0x310   :  { %1980 = vmatpush.bf16.msra.mxu1 %v14938_v28 }
 0x312   :  { %1117 = vmatmul.bf16.gmra.mxu3 %v12924_v55  ;;  %1264 = vmatmul.bf16.gmra.mxu0 %v12932_v56 }
 0x314   :  { %1981 = vmatpush.bf16.msra.mxu1 %v14945_v36  ;;  %v12946_v36 = vld [vmem:[%s16776_s1 + $0x148] sm:$0xff] }
 0x318   :  { %1982 = vmatpush.bf16.msra.mxu1 %v14951_v38  ;;  %v12954_v38 = vld [vmem:[%s16776_s1 + $0x188] sm:$0xff] }
 0x31c   :  { %1983 = vmatpush.bf16.msra.mxu1 %v14957_v40 }
 0x31f   :  { %975 = vmatmul.bf16.gmra.mxu2 %v12917_v57  ;;  %844 = vmatmul.bf16.gmra.mxu1 %v12909_v58 }
 0x322   :  { %1122 = vmatmul.bf16.gmra.mxu3 %v12925_v59  ;;  %1269 = vmatmul.bf16.gmra.mxu0 %v12933_v60  ;;  %v12947_v60 = vld [vmem:[%s16776_s1 + $0x150] sm:$0xff] }
 0x32f   :  { %980 = vmatmul.bf16.gmra.mxu2 %v12918_v61  ;;  %849 = vmatmul.bf16.gmra.mxu1 %v12910_v62  ;;  %v12939_v62 = vld [vmem:[%s16776_s1 + $0x110] sm:$0xff] }
 0x332   :  { %1127 = vmatmul.bf16.gmra.mxu3 %v12926_v63  ;;  %1274 = vmatmul.bf16.gmra.mxu0 %v12934_v0  ;;  %v12955_v63 = vld [vmem:[%s16776_s1 + $0x190] sm:$0xff] }
 0x33f   :  { %985 = vmatmul.bf16.gmra.mxu2 %v12919_v1  ;;  %854 = vmatmul.bf16.gmra.mxu1 %v12911_v2 }
 0x342   :  { %1132 = vmatmul.bf16.gmra.mxu3 %v12927_v3  ;;  %1279 = vmatmul.bf16.gmra.mxu0 %v12935_v4  ;;  %v12963_v3 = vld [vmem:[%s16776_s1 + $0x1d0] sm:$0xff] }
 0x34f   :  { %990 = vmatmul.bf16.gmra.mxu2 %v12920_v5  ;;  %859 = vmatmul.bf16.gmra.mxu1 %v12912_v6 }
 0x352   :  { %1137 = vmatmul.bf16.gmra.mxu3 %v12928_v7  ;;  %1284 = vmatmul.bf16.gmra.mxu0 %v12936_v8 }
 0x35c   :  { %v825_v10 = vpop.f32.mrf.mxu1 }
 0x35d   :  { %v866_v20 = vmul.f32 %v15040_v15, %v825_v10 }
 0x35f   :  { %v1250_v13 = vpop.f32.mrf.mxu0  ;;  %1543 = vmatmul.bf16.vlgmr.msrb.gmra.mxu2 %v12945_v9  ;;  %1396 = vmatmul.bf16.vlgmr.msrb.gmra.mxu1 %v12937_v11 }
 0x360   :  { %v1291_v26 = vmul.f32 %v15049_v19, %v1250_v13 }
 0x362   :  { %1690 = vmatmul.bf16.vlgmr.msrb.gmra.mxu3 %v12953_v12  ;;  %1837 = vmatmul.bf16.vlgmr.msra.gmra.mxu0 %v12961_v14  ;;  %v956_v18 = vpop.f32.mrf.mxu2 }
 0x363   :  { %v997_v21 = vmul.f32 %v15043_v16, %v956_v18 }
 0x364   :  { %v827_v23 = vpop.f32.mrf.mxu1 }
 0x365   :  { %v1103_v22 = vpop.f32.mrf.mxu3  ;;  %v1013_v25 = vadd.f32 %v997_v21, %v866_v20  ;;  %v867_v31 = vmul.f32 %v15040_v15, %v827_v23 }
 0x366   :  { %v1144_v24 = vmul.f32 %v15046_v17, %v1103_v22 }
 0x367   :  { %v1252_v27 = vpop.f32.mrf.mxu0 }
 0x368   :  { %v1160_v28 = vadd.f32 %v1144_v24, %v1013_v25  ;;  %v1292_v40 = vmul.f32 %v15049_v19, %v1252_v27 }
 0x36a   :  { %v15055_v29 = vadd.f32 %v1291_v26, %v1160_v28  ;;  %v958_v30 = vpop.f32.mrf.mxu2  ;;  %v12948_v26 = vld [vmem:[%s16776_s1 + $0x158] sm:$0xff] }
 0x36b   :  { %v998_v34 = vmul.f32 %v15043_v16, %v958_v30  ;;  %v12940_v28 = vld [vmem:[%s16776_s1 + $0x118] sm:$0xff] }
 0x36c   :  { %v830_v33 = vpop.f32.mrf.mxu1  ;;  %v12956_v30 = vld [vmem:[%s16776_s1 + $0x198] sm:$0xff] }
 0x36d   :  { %v1105_v35 = vpop.f32.mrf.mxu3  ;;  %v1014_v39 = vadd.f32 %v998_v34, %v867_v31  ;;  %v868_v46 = vmul.f32 %v15040_v15, %v830_v33 }
 0x36e   :  { %v1145_v37 = vmul.f32 %v15046_v17, %v1105_v35 }
 0x36f   :  { %v1255_v41 = vpop.f32.mrf.mxu0  ;;  %1548 = vmatmul.bf16.gmra.mxu2 %v12946_v36  ;;  %1401 = vmatmul.bf16.gmra.mxu1 %v12938_v32  ;;  %v12964_v36 = vld [vmem:[%s16776_s1 + $0x1d8] sm:$0xff] }
 0x370   :  { %v1161_v43 = vadd.f32 %v1145_v37, %v1014_v39  ;;  %v1293_v52 = vmul.f32 %v15049_v19, %v1255_v41 }
 0x372   :  { %1695 = vmatmul.bf16.gmra.mxu3 %v12954_v38  ;;  %v15065_v44 = vadd.f32 %v1292_v40, %v1161_v43  ;;  %1842 = vmatmul.bf16.gmra.mxu0 %v12962_v42  ;;  %v961_v45 = vpop.f32.mrf.mxu2 }
 0x373   :  { %v999_v47 = vmul.f32 %v15043_v16, %v961_v45 }
 0x374   :  { %v832_v49 = vpop.f32.mrf.mxu1 }
 0x375   :  { %v1108_v48 = vpop.f32.mrf.mxu3  ;;  %v1015_v51 = vadd.f32 %v999_v47, %v868_v46  ;;  %v869_v57 = vmul.f32 %v15040_v15, %v832_v49 }
 0x376   :  { %v1146_v50 = vmul.f32 %v15046_v17, %v1108_v48 }
 0x377   :  { %v1257_v53 = vpop.f32.mrf.mxu0 }
 0x378   :  { %v1162_v54 = vadd.f32 %v1146_v50, %v1015_v51  ;;  %v1294_v2 = vmul.f32 %v15049_v19, %v1257_v53 }
 0x37a   :  { %v15071_v55 = vadd.f32 %v1293_v52, %v1162_v54  ;;  %v963_v56 = vpop.f32.mrf.mxu2  ;;  %v12949_v54 = vld [vmem:[%s16776_s1 + $0x160] sm:$0xff] }
 0x37b   :  { %v1000_v58 = vmul.f32 %v15043_v16, %v963_v56 }
 0x37c   :  { %v835_v1 = vpop.f32.mrf.mxu1 }
 0x37d   :  { %v1110_v59 = vpop.f32.mrf.mxu3  ;;  %v1016_v0 = vadd.f32 %v1000_v58, %v869_v57  ;;  %v870_v8 = vmul.f32 %v15040_v15, %v835_v1  ;;  %v12941_v57 = vld [vmem:[%s16776_s1 + $0x120] sm:$0xff] }
 0x37e   :  { %v1147_v61 = vmul.f32 %v15046_v17, %v1110_v59  ;;  %v12957_v58 = vld [vmem:[%s16776_s1 + $0x1a0] sm:$0xff] }
 0x37f   :  { %v1260_v4 = vpop.f32.mrf.mxu0  ;;  %1553 = vmatmul.bf16.gmra.mxu2 %v12947_v60  ;;  %1406 = vmatmul.bf16.gmra.mxu1 %v12939_v62  ;;  %v12965_v62 = vld [vmem:[%s16776_s1 + $0x1e0] sm:$0xff] }
 0x380   :  { %v1163_v5 = vadd.f32 %v1147_v61, %v1016_v0  ;;  %v1295_v14 = vmul.f32 %v15049_v19, %v1260_v4 }
 0x382   :  { %1700 = vmatmul.bf16.gmra.mxu3 %v12955_v63  ;;  %v15081_v6 = vadd.f32 %v1294_v2, %v1163_v5  ;;  %1847 = vmatmul.bf16.gmra.mxu0 %v12963_v3  ;;  %v966_v7 = vpop.f32.mrf.mxu2 }
 0x383   :  { %v1001_v9 = vmul.f32 %v15043_v16, %v966_v7 }
 0x384   :  { %v837_v13 = vpop.f32.mrf.mxu1 }
 0x385   :  { %v1113_v10 = vpop.f32.mrf.mxu3  ;;  %v1017_v12 = vadd.f32 %v1001_v9, %v870_v8  ;;  %v871_v23 = vmul.f32 %v15040_v15, %v837_v13 }
 0x386   :  { %v1148_v11 = vmul.f32 %v15046_v17, %v1113_v10 }
 0x387   :  { %v1262_v18 = vpop.f32.mrf.mxu0 }
 0x388   :  { %v1164_v20 = vadd.f32 %v1148_v11, %v1017_v12  ;;  %v1296_v35 = vmul.f32 %v15049_v19, %v1262_v18 }
 0x38a   :  { %v15087_v21 = vadd.f32 %v1295_v14, %v1164_v20  ;;  %v968_v22 = vpop.f32.mrf.mxu2  ;;  %v12950_v20 = vld [vmem:[%s16776_s1 + $0x168] sm:$0xff] }
 0x38b   :  { %v1002_v24 = vmul.f32 %v15043_v16, %v968_v22  ;;  %v12942_v22 = vld [vmem:[%s16776_s1 + $0x128] sm:$0xff] }
 0x38c   :  { %v840_v34 = vpop.f32.mrf.mxu1 }
 0x38d   :  { %v1115_v25 = vpop.f32.mrf.mxu3  ;;  %v1018_v31 = vadd.f32 %v1002_v24, %v871_v23  ;;  %v872_v39 = vmul.f32 %v15040_v15, %v840_v34  ;;  %v12958_v23 = vld [vmem:[%s16776_s1 + $0x1a8] sm:$0xff] }
 0x38e   :  { %v1149_v27 = vmul.f32 %v15046_v17, %v1115_v25  ;;  %v12966_v25 = vld [vmem:[%s16776_s1 + $0x1e8] sm:$0xff] }
 0x38f   :  { %v1265_v33 = vpop.f32.mrf.mxu0  ;;  %1558 = vmatmul.bf16.gmra.mxu2 %v12948_v26  ;;  %1411 = vmatmul.bf16.gmra.mxu1 %v12940_v28 }
 0x390   :  { %v1165_v37 = vadd.f32 %v1149_v27, %v1018_v31  ;;  %v1297_v46 = vmul.f32 %v15049_v19, %v1265_v33 }
 0x392   :  { %1705 = vmatmul.bf16.gmra.mxu3 %v12956_v30  ;;  %v15097_v32 = vadd.f32 %v1296_v35, %v1165_v37  ;;  %1852 = vmatmul.bf16.gmra.mxu0 %v12964_v36  ;;  %v971_v38 = vpop.f32.mrf.mxu2 }
 0x393   :  { %v1003_v40 = vmul.f32 %v15043_v16, %v971_v38 }
 0x394   :  { %v842_v45 = vpop.f32.mrf.mxu1 }
 0x395   :  { %v1118_v41 = vpop.f32.mrf.mxu3  ;;  %v1019_v43 = vadd.f32 %v1003_v40, %v872_v39  ;;  %v873_v51 = vmul.f32 %v15040_v15, %v842_v45  ;;  %v12959_v45 = vld [vmem:[%s16776_s1 + $0x1b0] sm:$0xff] }
 0x396   :  { %v1150_v42 = vmul.f32 %v15046_v17, %v1118_v41 }
 0x397   :  { %v1267_v47 = vpop.f32.mrf.mxu0 }
 0x398   :  { %v1166_v48 = vadd.f32 %v1150_v42, %v1019_v43  ;;  %v1298_v61 = vmul.f32 %v15049_v19, %v1267_v47  ;;  %v12951_v42 = vld [vmem:[%s16776_s1 + $0x170] sm:$0xff] }
 0x399   :  { %v12943_v43 = vld [vmem:[%s16776_s1 + $0x130] sm:$0xff] }
 0x39a   :  { %v15103_v49 = vadd.f32 %v1297_v46, %v1166_v48  ;;  %v973_v50 = vpop.f32.mrf.mxu2  ;;  %v12967_v47 = vld [vmem:[%s16776_s1 + $0x1f0] sm:$0xff] }
 0x39b   :  { %v1004_v52 = vmul.f32 %v15043_v16, %v973_v50 }
 0x39c   :  { %v845_v60 = vpop.f32.mrf.mxu1 }
 0x39d   :  { %v1120_v53 = vpop.f32.mrf.mxu3  ;;  %v1020_v59 = vadd.f32 %v1004_v52, %v873_v51  ;;  %v874_v3 = vmul.f32 %v15040_v15, %v845_v60 }
 0x39e   :  { %v1151_v56 = vmul.f32 %v15046_v17, %v1120_v53 }
 0x39f   :  { %v1270_v63 = vpop.f32.mrf.mxu0  ;;  %1563 = vmatmul.bf16.gmra.mxu2 %v12949_v54  ;;  %1416 = vmatmul.bf16.gmra.mxu1 %v12941_v57 }
 0x3a0   :  { %v1167_v0 = vadd.f32 %v1151_v56, %v1020_v59  ;;  %v1299_v10 = vmul.f32 %v15049_v19, %v1270_v63 }
 0x3a2   :  { %1710 = vmatmul.bf16.gmra.mxu3 %v12957_v58  ;;  %v15113_v1 = vadd.f32 %v1298_v61, %v1167_v0  ;;  %1857 = vmatmul.bf16.gmra.mxu0 %v12965_v62  ;;  %v976_v2 = vpop.f32.mrf.mxu2  ;;  %v12952_v0 = vld [vmem:[%s16776_s1 + $0x178] sm:$0xff] }
 0x3a3   :  { %v1005_v4 = vmul.f32 %v15043_v16, %v976_v2  ;;  %v12944_v2 = vld [vmem:[%s16776_s1 + $0x138] sm:$0xff] }
 0x3a4   :  { %v15118_v9 = vpop.f32.mrf.mxu1 }
 0x3a5   :  { %v1123_v5 = vpop.f32.mrf.mxu3  ;;  %v1021_v8 = vadd.f32 %v1005_v4, %v874_v3  ;;  %v12960_v3 = vld [vmem:[%s16776_s1 + $0x1b8] sm:$0xff] }
 0x3a6   :  { %v1152_v7 = vmul.f32 %v15046_v17, %v1123_v5  ;;  %v12968_v5 = vld [vmem:[%s16776_s1 + $0x1f8] sm:$0xff] }
 0x3a7   :  { %v15121_v11 = vpop.f32.mrf.mxu0 }
 0x3a8   :  { %v1168_v12 = vadd.f32 %v1152_v7, %v1021_v8 }
 0x3aa   :  { %v15123_v13 = vadd.f32 %v1299_v10, %v1168_v12  ;;  %v15125_v14 = vpop.f32.mrf.mxu2 }
 0x3ac   :  { %v850_v24 = vpop.f32.mrf.mxu1 }
 0x3ad   :  { %v15127_v18 = vpop.f32.mrf.mxu3  ;;  %v876_v28 = vmul.f32 %v15040_v15, %v850_v24 }
 0x3af   :  { %v1275_v26 = vpop.f32.mrf.mxu0  ;;  %1568 = vmatmul.bf16.gmra.mxu2 %v12950_v20  ;;  %1421 = vmatmul.bf16.gmra.mxu1 %v12942_v22 }
 0x3b0   :  { %v1301_v33 = vmul.f32 %v15049_v19, %v1275_v26 }
 0x3b2   :  { %1715 = vmatmul.bf16.gmra.mxu3 %v12958_v23  ;;  %1862 = vmatmul.bf16.gmra.mxu0 %v12966_v25  ;;  %v981_v27 = vpop.f32.mrf.mxu2 }
 0x3b3   :  { %v1007_v30 = vmul.f32 %v15043_v16, %v981_v27 }
 0x3b4   :  { %v15136_v36 = vpop.f32.mrf.mxu1 }
 0x3b5   :  { %v1128_v31 = vpop.f32.mrf.mxu3  ;;  %v1023_v35 = vadd.f32 %v1007_v30, %v876_v28  ;;  %v15178_v28 = vld [vmem:[%s16777_s10 + $0x4] ss:$0 sm:$0xff] }
 0x3b6   :  { %v1154_v34 = vmul.f32 %v15046_v17, %v1128_v31  ;;  %v12969_v30 = vld [vmem:[%s16776_s1 + $0x200] sm:$0xff] }
 0x3b7   :  { %v15139_v37 = vpop.f32.mrf.mxu0 }
 0x3b8   :  { %v1170_v38 = vadd.f32 %v1154_v34, %v1023_v35 }
 0x3ba   :  { %v15141_v39 = vadd.f32 %v1301_v33, %v1170_v38  ;;  %v15143_v40 = vpop.f32.mrf.mxu2 }
 0x3bc   :  { %v855_v46 = vpop.f32.mrf.mxu1 }
 0x3bd   :  { %v15145_v41 = vpop.f32.mrf.mxu3  ;;  %v878_v51 = vmul.f32 %v15040_v15, %v855_v46 }
 0x3bf   :  { %v1280_v48 = vpop.f32.mrf.mxu0  ;;  %1573 = vmatmul.bf16.gmra.mxu2 %v12951_v42  ;;  %1426 = vmatmul.bf16.gmra.mxu1 %v12943_v43  ;;  %v12970_v43 = vld [vmem:[%s16776_s1 + $0x208] sm:$0xff] }
 0x3c0   :  { %v1303_v58 = vmul.f32 %v15049_v19, %v1280_v48 }
 0x3c2   :  { %1720 = vmatmul.bf16.gmra.mxu3 %v12959_v45  ;;  %1867 = vmatmul.bf16.gmra.mxu0 %v12967_v47  ;;  %v986_v50 = vpop.f32.mrf.mxu2 }
 0x3c3   :  { %v1009_v52 = vmul.f32 %v15043_v16, %v986_v50 }
 0x3c4   :  { %v15154_v57 = vpop.f32.mrf.mxu1 }
 0x3c5   :  { %v1133_v53 = vpop.f32.mrf.mxu3  ;;  %v1025_v56 = vadd.f32 %v1009_v52, %v878_v51  ;;  %v12971_v51 = vld [vmem:[%s16776_s1 + $0x210] sm:$0xff] }
 0x3c6   :  { %v1156_v54 = vmul.f32 %v15046_v17, %v1133_v53 }
 0x3c7   :  { %v15157_v60 = vpop.f32.mrf.mxu0 }
 0x3c8   :  { %v1172_v59 = vadd.f32 %v1156_v54, %v1025_v56 }
 0x3ca   :  { %v15159_v61 = vadd.f32 %v1303_v58, %v1172_v59  ;;  %v15161_v62 = vpop.f32.mrf.mxu2  ;;  %v12972_v58 = vld [vmem:[%s16776_s1 + $0x218] sm:$0xff] }
 0x3cc   :  { %v860_v4 = vpop.f32.mrf.mxu1 }
 0x3cd   :  { %v15163_v63 = vpop.f32.mrf.mxu3  ;;  %v880_v10 = vmul.f32 %v15040_v15, %v860_v4  ;;  %v12973_v4 = vld [vmem:[%s16776_s1 + $0x220] sm:$0xff] }
 0x3cf   :  { %1578 = vmatmul.bf16.gmra.mxu2 %v12952_v0  ;;  %1431 = vmatmul.bf16.gmra.mxu1 %v12944_v2  ;;  %v1285_v8 = vpop.f32.mrf.mxu0 }
 0x3d0   :  { %v1305_v25 = vmul.f32 %v15049_v19, %v1285_v8 }
 0x3d2   :  { %1725 = vmatmul.bf16.gmra.mxu3 %v12960_v3  ;;  %1872 = vmatmul.bf16.gmra.mxu0 %v12968_v5  ;;  %v991_v7 = vpop.f32.mrf.mxu2 }
 0x3d3   :  { %v1011_v12 = vmul.f32 %v15043_v16, %v991_v7 }
 0x3d4   :  { %v15172_v24 = vpop.f32.mrf.mxu1 }
 0x3d5   :  { %v1138_v20 = vpop.f32.mrf.mxu3  ;;  %v1027_v23 = vadd.f32 %v1011_v12, %v880_v10  ;;  %v12974_v12 = vld [vmem:[%s16776_s1 + $0x228] sm:$0xff] }
 0x3d6   :  { %v1158_v22 = vmul.f32 %v15046_v17, %v1138_v20 }
 0x3d8   :  { %v1174_v26 = vadd.f32 %v1158_v22, %v1027_v23  ;;  %v15229_v22 = vpop.f32.mrf.mxu0 }
 0x3d9   :  { %16779 = vst [vmem:[#allocation93_spill] sm:$0xff] %v15229_v22 }
 0x3da   :  { %v15175_v27 = vadd.f32 %v1305_v25, %v1174_v26 }
 0x3dc   :  { %v1397_v31 = vpop.f32.mrf.mxu1 }
 0x3dd   :  { %v1438_v34 = vmul.f32 %v15178_v28, %v1397_v31  ;;  %v15225_v10 = vpop.f32.mrf.mxu3 }
 0x3de   :  { %16778 = vst [vmem:[#allocation92_spill] sm:$0xff] %v15225_v10 }
 0x3df   :  { %v15183_v35 = vadd.f32 %v1438_v34, %v15055_v29  ;;  %1984 = vmatmul.bf16.vlgmr.msra.gmra.mxu1 %v12969_v30  ;;  %v12978_v30 = vld [vmem:[#allocation7 + $0x8] sm:$0xff] }
 0x3e0   :  { %2169 = vmatpush.bf16.msra.mxu2 %v12978_v30  ;;  %v1838_v31 = vpop.f32.mrf.mxu0 }
 0x3e4   :  { %v1399_v33 = vpop.f32.mrf.mxu1 }
 0x3e5   :  { %v1439_v38 = vmul.f32 %v15178_v28, %v1399_v33  ;;  %v1691_v25 = vpop.f32.mrf.mxu3  ;;  %v12975_v33 = vld [vmem:[%s16776_s1 + $0x230] sm:$0xff] }
 0x3e7   :  { %v15187_v42 = vadd.f32 %v1439_v38, %v15065_v44 }
 0x3ec   :  { %v1402_v45 = vpop.f32.mrf.mxu1 }
 0x3ed   :  { %v1440_v46 = vmul.f32 %v15178_v28, %v1402_v45 }
 0x3ef   :  { %v15192_v47 = vadd.f32 %v1440_v46, %v15071_v55  ;;  %1989 = vmatmul.bf16.gmra.mxu1 %v12970_v43  ;;  %v1693_v43 = vpop.f32.mrf.mxu3 }
 0x3f4   :  { %v1404_v48 = vpop.f32.mrf.mxu1 }
 0x3f5   :  { %v1441_v29 = vmul.f32 %v15178_v28, %v1404_v48 }
 0x3f7   :  { %v15196_v50 = vadd.f32 %v1441_v29, %v15081_v6 }
 0x3fc   :  { %v1407_v52 = vpop.f32.mrf.mxu1 }
 0x3fd   :  { %v1442_v44 = vmul.f32 %v15178_v28, %v1407_v52  ;;  %v12976_v52 = vld [vmem:[%s16776_s1 + $0x238] sm:$0xff] }
 0x3ff   :  { %v15201_v53 = vadd.f32 %v1442_v44, %v15087_v21  ;;  %1994 = vmatmul.bf16.gmra.mxu1 %v12971_v51  ;;  %v1696_v51 = vpop.f32.mrf.mxu3 }
 0x404   :  { %v1409_v54 = vpop.f32.mrf.mxu1 }
 0x405   :  { %v1443_v55 = vmul.f32 %v15178_v28, %v1409_v54 }
 0x407   :  { %v15205_v56 = vadd.f32 %v1443_v55, %v15097_v32  ;;  %v12977_v55 = vld [vmem:[#allocation7] sm:$0xff] }
 0x408   :  { %2170 = vmatpush.bf16.msra.mxu2 %v12977_v55 }
 0x40c   :  { %v1412_v59 = vpop.f32.mrf.mxu1 }
 0x40d   :  { %v1444_v6 = vmul.f32 %v15178_v28, %v1412_v59 }
 0x40f   :  { %v15210_v0 = vadd.f32 %v1444_v6, %v15103_v49  ;;  %1999 = vmatmul.bf16.gmra.mxu1 %v12972_v58  ;;  %v15223_v49 = vpop.f32.mrf.mxu2  ;;  %v15249_v6 = vld [vmem:[%s16777_s10 + $0x5] ss:$0 sm:$0xff] }
 0x414   :  { %v1414_v2 = vpop.f32.mrf.mxu1 }
 0x415   :  { %v1445_v21 = vmul.f32 %v15178_v28, %v1414_v2  ;;  %v1698_v2 = vpop.f32.mrf.mxu3 }
 0x417   :  { %v15214_v3 = vadd.f32 %v1445_v21, %v15113_v1 }
 0x41c   :  { %v1417_v5 = vpop.f32.mrf.mxu1 }
 0x41d   :  { %v1446_v32 = vmul.f32 %v15178_v28, %v1417_v5 }
 0x41f   :  { %v15219_v7 = vadd.f32 %v1446_v32, %v15123_v13  ;;  %2004 = vmatmul.bf16.gmra.mxu1 %v12973_v4  ;;  %v1544_v13 = vpop.f32.mrf.mxu2  ;;  %v15253_v4 = vld [vmem:[%s16777_s10 + $0x6] ss:$0 sm:$0xff] }
 0x420   :  { %v1585_v21 = vmul.f32 %v15249_v6, %v1544_v13  ;;  %v1701_v13 = vpop.f32.mrf.mxu3  ;;  %v1733_v55 = vmul.f32 %v15253_v4, %v1693_v43 }
 0x424   :  { %v15221_v8 = vpop.f32.mrf.mxu1 }
 0x427   :  { %v1546_v34 = vpop.f32.mrf.mxu2 }
 0x428   :  { %v1703_v10 = vpop.f32.mrf.mxu3 }
 0x42c   :  { %v1422_v20 = vpop.f32.mrf.mxu1 }
 0x42d   :  { %v1448_v1 = vmul.f32 %v15178_v28, %v1422_v20  ;;  %v1732_v20 = vmul.f32 %v15253_v4, %v1691_v25 }
 0x42f   :  { %v15232_v23 = vadd.f32 %v1448_v1, %v15141_v39  ;;  %2009 = vmatmul.bf16.gmra.mxu1 %v12974_v12  ;;  %v1840_v39 = vpop.f32.mrf.mxu0  ;;  %v1549_v48 = vpop.f32.mrf.mxu2  ;;  %v1601_v12 = vadd.f32 %v1585_v21, %v15183_v35  ;;  %v15260_v1 = vld [vmem:[%s16777_s10 + $0x7] ss:$0 sm:$0xff] }
 0x434   :  { %v15234_v26 = vpop.f32.mrf.mxu1 }
 0x437   :  { %v1843_v44 = vpop.f32.mrf.mxu0  ;;  %v1551_v59 = vpop.f32.mrf.mxu2 }
 0x43c   :  { %v1427_v38 = vpop.f32.mrf.mxu1 }
 0x43d   :  { %v1450_v45 = vmul.f32 %v15178_v28, %v1427_v38  ;;  %v1748_v38 = vadd.f32 %v1732_v20, %v1601_v12  ;;  %v1587_v12 = vmul.f32 %v15249_v6, %v1549_v48  ;;  %v1881_v48 = vmul.f32 %v15260_v1, %v1843_v44 }
 0x43f   :  { %v15239_v46 = vadd.f32 %v1450_v45, %v15159_v61  ;;  %2014 = vmatmul.bf16.gmra.mxu1 %v12975_v33  ;;  %v1845_v32 = vpop.f32.mrf.mxu0  ;;  %v1554_v30 = vpop.f32.mrf.mxu2  ;;  %v15264_v33 = vld [vmem:[%s16777_s10 + $0x138] ss:$0 sm:$0xff]  ;;  %v1879_v45 = vmul.f32 %v15260_v1, %v1838_v31 }
 0x440   :  { %v1589_v44 = vmul.f32 %v15249_v6, %v1554_v30 }
 0x444   :  { %v15241_v29 = vpop.f32.mrf.mxu1 }
 0x447   :  { %v1848_v25 = vpop.f32.mrf.mxu0  ;;  %v1556_v22 = vpop.f32.mrf.mxu2 }
 0x44c   :  { %v1432_v54 = vpop.f32.mrf.mxu1 }
 0x44d   :  { %v1452_v58 = vmul.f32 %v15178_v28, %v1432_v54 }
 0x44f   :  { %v15246_v61 = vadd.f32 %v1452_v58, %v15175_v27  ;;  %2019 = vmatmul.bf16.gmra.mxu1 %v12976_v52  ;;  %v1586_v27 = vmul.f32 %v15249_v6, %v1546_v34  ;;  %v1895_v58 = vadd.f32 %v1879_v45, %v1748_v38  ;;  %v15271_v34 = vld [vmem:[#allocation2 + $0x1] ss:$0 sm:$0xff]  ;;  %v1734_v38 = vmul.f32 %v15253_v4, %v1696_v51 }
 0x451   :  { %16780 = vst [vmem:[#allocation94_spill] sm:$0xff] %v15246_v61  ;;  %v1602_v54 = vadd.f32 %v1586_v27, %v15187_v42  ;;  %v1603_v27 = vadd.f32 %v1587_v12, %v15192_v47 }
 0x453   :  { %v1749_v21 = vadd.f32 %v1733_v55, %v1602_v54  ;;  %v1850_v55 = vpop.f32.mrf.mxu0 }
 0x454   :  { %v15255_v5 = vpop.f32.mrf.mxu1 }
 0x455   :  { %16781 = vst [vmem:[#allocation95_spill] sm:$0xff] %v15255_v5  ;;  %v1880_v5 = vmul.f32 %v15260_v1, %v1840_v39  ;;  %v1588_v39 = vmul.f32 %v15249_v6, %v1551_v59 }
 0x457   :  { %v1896_v20 = vadd.f32 %v1880_v5, %v1749_v21 }
 0x45c   :  { %v1985_v52 = vpop.f32.mrf.mxu1 }
 0x45d   :  { %v2026_v35 = vmul.f32 %v15264_v33, %v1985_v52 }
 0x45f   :  { %v2042_v61 = vadd.f32 %v2026_v35, %v1895_v58  ;;  %v1750_v35 = vadd.f32 %v1734_v38, %v1603_v27  ;;  %v1735_v58 = vmul.f32 %v15253_v4, %v1698_v2  ;;  %v1882_v27 = vmul.f32 %v15260_v1, %v1845_v32  ;;  %v1853_v2 = vpop.f32.mrf.mxu0 }
 0x460   :  { %v1590_v32 = vmul.f32 %v15249_v6, %v1556_v22 }
 0x461   :  { %v2062_v42 = vadd.f32 %v15271_v34, %v2042_v61  ;;  %v1559_v61 = vpop.f32.mrf.mxu2  ;;  %v1897_v59 = vadd.f32 %v1881_v48, %v1750_v35  ;;  %v1605_v35 = vadd.f32 %v1589_v44, %v15201_v53  ;;  %v1736_v48 = vmul.f32 %v15253_v4, %v1701_v13 }
 0x463   :  { %v2078_v52 = vmax.f32 %v2062_v42, 0.0  ;;  %v1752_v30 = vadd.f32 %v1736_v48, %v1605_v35 }
 0x464   :  { %v1987_v31 = vpop.f32.mrf.mxu1 }
 0x465   :  { %v2027_v43 = vmul.f32 %v15264_v33, %v1987_v31  ;;  %v1604_v31 = vadd.f32 %v1588_v39, %v15196_v50  ;;  %v2094_v47 = vmin.f32 %v2078_v52, 6.0 }
 0x467   :  { %v2043_v45 = vadd.f32 %v2027_v43, %v1896_v20  ;;  %v1706_v20 = vpop.f32.mrf.mxu3  ;;  %v1751_v43 = vadd.f32 %v1735_v58, %v1604_v31 }
 0x469   :  { %v2063_v54 = vadd.f32 %v15271_v34, %v2043_v45  ;;  %v1561_v52 = vpop.f32.mrf.mxu2 }
 0x46b   :  { %v2079_v5 = vmax.f32 %v2063_v54, 0.0  ;;  %v1898_v54 = vadd.f32 %v1882_v27, %v1751_v43  ;;  %v1855_v27 = vpop.f32.mrf.mxu0 }
 0x46c   :  { %v1990_v21 = vpop.f32.mrf.mxu1 }
 0x46d   :  { %v2095_v12 = vmin.f32 %v2079_v5, 6.0  ;;  %v2028_v51 = vmul.f32 %v15264_v33, %v1990_v21 }
 0x46f   :  { %v2110_v42 = vpack.c.bf16 %v2095_v12, %v2094_v47  ;;  %v2044_v38 = vadd.f32 %v2028_v51, %v1897_v59  ;;  %v1708_v58 = vpop.f32.mrf.mxu3  ;;  %v1883_v47 = vmul.f32 %v15260_v1, %v1848_v25  ;;  %v1737_v51 = vmul.f32 %v15253_v4, %v1703_v10 }
 0x470   :  { %v1591_v25 = vmul.f32 %v15249_v6, %v1559_v61 }
 0x471   :  { %10707 = vmatmul.msk.bf16.vlgmr.msra.gmra.mxu2 %vm2138_vm3, %v2110_v42  ;;  %v2064_v50 = vadd.f32 %v15271_v34, %v2044_v38  ;;  %v1606_v42 = vadd.f32 %v1590_v32, %v15205_v56  ;;  %v1899_v38 = vadd.f32 %v1883_v47, %v1752_v30  ;;  %v1564_v44 = vpop.f32.mrf.mxu2  ;;  %v1738_v32 = vmul.f32 %v15253_v4, %v1706_v20 }
 0x473   :  { %v2080_v21 = vmax.f32 %v2064_v50, 0.0 }
 0x474   :  { %v1992_v45 = vpop.f32.mrf.mxu1 }
 0x475   :  { %v2029_v39 = vmul.f32 %v15264_v33, %v1992_v45  ;;  %v2096_v43 = vmin.f32 %v2080_v21, 6.0  ;;  %v1753_v45 = vadd.f32 %v1737_v51, %v1606_v42  ;;  %v1885_v51 = vmul.f32 %v15260_v1, %v1853_v2 }
 0x476   :  { %v1006_v42 = vmul.f32 %v15043_v16, %v15125_v14  ;;  %v1153_v2 = vmul.f32 %v15046_v17, %v15127_v18 }
 0x477   :  { %v2045_v5 = vadd.f32 %v2029_v39, %v1898_v54  ;;  %v1884_v54 = vmul.f32 %v15260_v1, %v1850_v55  ;;  %v1711_v10 = vpop.f32.mrf.mxu3  ;;  %v1592_v55 = vmul.f32 %v15249_v6, %v1561_v52 }
 0x479   :  { %v2065_v31 = vadd.f32 %v15271_v34, %v2045_v5  ;;  %v1900_v35 = vadd.f32 %v1884_v54, %v1753_v45  ;;  %v1607_v5 = vadd.f32 %v1591_v25, %v15210_v0  ;;  %v1608_v20 = vadd.f32 %v1592_v55, %v15214_v3 }
 0x47a   :  { %v1740_v55 = vmul.f32 %v15253_v4, %v1711_v10 }
 0x47b   :  { %v2081_v12 = vmax.f32 %v2065_v31, 0.0  ;;  %v1858_v31 = vpop.f32.mrf.mxu0  ;;  %v1754_v61 = vadd.f32 %v1738_v32, %v1607_v5 }
 0x47c   :  { %v1995_v59 = vpop.f32.mrf.mxu1 }
 0x47d   :  { %v2097_v53 = vmin.f32 %v2081_v12, 6.0  ;;  %v2030_v13 = vmul.f32 %v15264_v33, %v1995_v59  ;;  %v1566_v12 = vpop.f32.mrf.mxu2  ;;  %v1901_v45 = vadd.f32 %v1885_v51, %v1754_v61 }
 0x47f   :  { %v2111_v22 = vpack.c.bf16 %v2097_v53, %v2096_v43  ;;  %v2046_v50 = vadd.f32 %v2030_v13, %v1899_v38  ;;  %v1739_v43 = vmul.f32 %v15253_v4, %v1708_v58  ;;  %v1713_v53 = vpop.f32.mrf.mxu3  ;;  %v1886_v58 = vmul.f32 %v15260_v1, %v1855_v27 }
 0x480   :  { %v1447_v27 = vmul.f32 %v15178_v28, %v15221_v8  ;;  %v1741_v8 = vmul.f32 %v15253_v4, %v1713_v53 }
 0x481   :  { %10708 = vmatmul.msk.bf16.gmra.mxu2 %vm2138_vm3, %v2111_v22  ;;  %v2066_v56 = vadd.f32 %v15271_v34, %v2046_v50  ;;  %v875_v22 = vmul.f32 %v15040_v15, %v15118_v9  ;;  %v1755_v14 = vadd.f32 %v1739_v43, %v1608_v20  ;;  %v1887_v43 = vmul.f32 %v15260_v1, %v1858_v31 }
 0x482   :  { %v1155_v31 = vmul.f32 %v15046_v17, %v15145_v41 }
 0x483   :  { %v2082_v30 = vmax.f32 %v2066_v56, 0.0  ;;  %v1022_v50 = vadd.f32 %v1006_v42, %v875_v22  ;;  %v1860_v3 = vpop.f32.mrf.mxu0  ;;  %v1902_v5 = vadd.f32 %v1886_v58, %v1755_v14 }
 0x484   :  { %v1997_v39 = vpop.f32.mrf.mxu1  ;;  %v1888_v53 = vmul.f32 %v15260_v1, %v1860_v3  ;;  %v1449_v3 = vmul.f32 %v15178_v28, %v15234_v26 }
 0x485   :  { %v2031_v48 = vmul.f32 %v15264_v33, %v1997_v39  ;;  %v2098_v13 = vmin.f32 %v2082_v30, 6.0  ;;  %v1593_v39 = vmul.f32 %v15249_v6, %v1564_v44  ;;  %v1569_v56 = vpop.f32.mrf.mxu2 }
 0x487   :  { %v2047_v21 = vadd.f32 %v2031_v48, %v1900_v35  ;;  %v1300_v35 = vmul.f32 %v15049_v19, %v15121_v11  ;;  %v1169_v48 = vadd.f32 %v1153_v2, %v1022_v50  ;;  %v1716_v30 = vpop.f32.mrf.mxu3  ;;  %v1594_v11 = vmul.f32 %v15249_v6, %v1566_v12 }
 0x489   :  { %v2067_v47 = vadd.f32 %v15271_v34, %v2047_v21  ;;  %v1609_v21 = vadd.f32 %v1593_v39, %v15219_v7  ;;  %v1008_v7 = vmul.f32 %v15043_v16, %v15143_v40  ;;  %v1302_v39 = vmul.f32 %v15049_v19, %v15139_v37 }
 0x48b   :  { %v2083_v59 = vmax.f32 %v2067_v47, 0.0  ;;  %v1316_v47 = vadd.f32 %v1300_v35, %v1169_v48  ;;  %v1756_v42 = vadd.f32 %v1740_v55, %v1609_v21  ;;  %v1863_v20 = vpop.f32.mrf.mxu0 }
 0x48c   :  { %v2000_v0 = vpop.f32.mrf.mxu1 }
 0x48d   :  { %v2099_v38 = vmin.f32 %v2083_v59, 6.0  ;;  %v2032_v52 = vmul.f32 %v15264_v33, %v2000_v0  ;;  %v1463_v59 = vadd.f32 %v1447_v27, %v1316_v47  ;;  %v1571_v22 = vpop.f32.mrf.mxu2 }
 0x48e   :  { %v1596_v37 = vmul.f32 %v15249_v6, %v1571_v22 }
 0x48f   :  { %v2112_v54 = vpack.c.bf16 %v2099_v38, %v2098_v13  ;;  %v2048_v25 = vadd.f32 %v2032_v52, %v1901_v45  ;;  %v1610_v13 = vadd.f32 %v1594_v11, %v1463_v59  ;;  %v877_v45 = vmul.f32 %v15040_v15, %v15136_v36  ;;  %v1718_v14 = vpop.f32.mrf.mxu3 }
 0x490   :  { %v1743_v26 = vmul.f32 %v15253_v4, %v1718_v14 }
 0x491   :  { %10709 = vmatmul.msk.bf16.gmra.mxu2 %vm2138_vm3, %v2112_v54  ;;  %v2068_v32 = vadd.f32 %v15271_v34, %v2048_v25  ;;  %v1903_v54 = vadd.f32 %v1887_v43, %v1756_v42  ;;  %v1024_v50 = vadd.f32 %v1008_v7, %v877_v45  ;;  %v1757_v40 = vadd.f32 %v1741_v8, %v1610_v13 }
 0x492   :  { %v1595_v25 = vmul.f32 %v15249_v6, %v1569_v56  ;;  %v879_v8 = vmul.f32 %v15040_v15, %v15154_v57 }
 0x493   :  { %v2084_v61 = vmax.f32 %v2068_v32, 0.0  ;;  %v1171_v36 = vadd.f32 %v1155_v31, %v1024_v50 }
 0x494   :  { %v2002_v9 = vpop.f32.mrf.mxu1  ;;  %v1611_v32 = vadd.f32 %v1595_v25, %v15232_v23  ;;  %v1010_v23 = vmul.f32 %v15043_v16, %v15161_v62 }
 0x495   :  { %v2033_v18 = vmul.f32 %v15264_v33, %v2002_v9  ;;  %v2100_v38 = vmin.f32 %v2084_v61, 6.0  ;;  %v1904_v9 = vadd.f32 %v1888_v53, %v1757_v40  ;;  %v1574_v56 = vpop.f32.mrf.mxu2  ;;  %v1318_v27 = vadd.f32 %v1302_v39, %v1171_v36 }
 0x496   :  { %v1889_v61 = vmul.f32 %v15260_v1, %v1863_v20  ;;  %v1157_v20 = vmul.f32 %v15046_v17, %v15163_v63 }
 0x497   :  { %v2049_v44 = vadd.f32 %v2033_v18, %v1902_v5  ;;  %v1865_v5 = vpop.f32.mrf.mxu0  ;;  %v1742_v18 = vmul.f32 %v15253_v4, %v1716_v30  ;;  %v1465_v47 = vadd.f32 %v1449_v3, %v1318_v27 }
 0x498   :  { %v1890_v62 = vmul.f32 %v15260_v1, %v1865_v5 }
 0x499   :  { %v2069_v51 = vadd.f32 %v15271_v34, %v2049_v44  ;;  %v1758_v11 = vadd.f32 %v1742_v18, %v1611_v32  ;;  %v1612_v42 = vadd.f32 %v1596_v37, %v1465_v47 }
 0x49b   :  { %v2085_v0 = vmax.f32 %v2069_v51, 0.0  ;;  %v1721_v51 = vpop.f32.mrf.mxu3 }
 0x49c   :  { %v2005_v10 = vpop.f32.mrf.mxu1  ;;  %v1744_v25 = vmul.f32 %v15253_v4, %v1721_v51 }
 0x49d   :  { %v2101_v52 = vmin.f32 %v2085_v0, 6.0  ;;  %v2034_v12 = vmul.f32 %v15264_v33, %v2005_v10  ;;  %v1905_v10 = vadd.f32 %v1889_v61, %v1758_v11  ;;  %v1576_v45 = vpop.f32.mrf.mxu2  ;;  %v16782_v61 = vld [vmem:[#allocation92_spill] sm:$0xff] }
 0x49e   :  { %v1598_v36 = vmul.f32 %v15249_v6, %v1576_v45  ;;  %v1159_v51 = vmul.f32 %v15046_v17, %v16782_v61 }
 0x49f   :  { %v2113_v2 = vpack.c.bf16 %v2101_v52, %v2100_v38  ;;  %v2050_v58 = vadd.f32 %v2034_v12, %v1903_v54  ;;  %v1868_v38 = vpop.f32.mrf.mxu0  ;;  %v1026_v52 = vadd.f32 %v1010_v23, %v879_v8  ;;  %v1759_v12 = vadd.f32 %v1743_v26, %v1612_v42  ;;  %v12979_v26 = vld [vmem:[#allocation8] sm:$0xff] }
 0x4a0   :  { %v1597_v54 = vmul.f32 %v15249_v6, %v1574_v56  ;;  %v1891_v5 = vmul.f32 %v15260_v1, %v1868_v38  ;;  %2280 = vmatpush.bf16.msra.mxu3 %v12979_v26  ;;  %v13569_v42 = vld [vmem:[%s16777_s10 + $0x3] ss:$0 sm:$0xff] }
 0x4a1   :  { %10710 = vmatmul.msk.bf16.gmra.mxu2 %vm2138_vm3, %v2113_v2  ;;  %v2070_v48 = vadd.f32 %v15271_v34, %v2050_v58  ;;  %v1304_v2 = vmul.f32 %v15049_v19, %v15157_v60  ;;  %v1173_v31 = vadd.f32 %v1157_v20, %v1026_v52  ;;  %v1906_v50 = vadd.f32 %v1890_v62, %v1759_v12  ;;  %v16784_v20 = vld [vmem:[#allocation94_spill] sm:$0xff]  ;;  %v16785_v52 = vld [vmem:[#allocation95_spill] sm:$0xff] }
 0x4a2   :  { %v1613_v14 = vadd.f32 %v1597_v54, %v15239_v46  ;;  %v1451_v58 = vmul.f32 %v15178_v28, %v15241_v29  ;;  %v1012_v46 = vmul.f32 %v15043_v16, %v15223_v49  ;;  %v1453_v12 = vmul.f32 %v15178_v28, %v16785_v52 }
 0x4a3   :  { %v2086_v55 = vmax.f32 %v2070_v48, 0.0  ;;  %v1723_v40 = vpop.f32.mrf.mxu3 }
 0x4a4   :  { %v2007_v35 = vpop.f32.mrf.mxu1  ;;  %v1745_v29 = vmul.f32 %v15253_v4, %v1723_v40 }
 0x4a5   :  { %v2035_v41 = vmul.f32 %v15264_v33, %v2007_v35  ;;  %v2102_v43 = vmin.f32 %v2086_v55, 6.0  ;;  %v1320_v35 = vadd.f32 %v1304_v2, %v1173_v31  ;;  %v1579_v3 = vpop.f32.mrf.mxu2  ;;  %v881_v55 = vmul.f32 %v15040_v15, %v15172_v24 }
 0x4a7   :  { %v2051_v21 = vadd.f32 %v2035_v41, %v1904_v9  ;;  %v1870_v9 = vpop.f32.mrf.mxu0  ;;  %v1467_v48 = vadd.f32 %v1451_v58, %v1320_v35  ;;  %v1760_v41 = vadd.f32 %v1744_v25, %v1613_v14  ;;  %v1028_v16 = vadd.f32 %v1012_v46, %v881_v55 }
 0x4a9   :  { %v2071_v44 = vadd.f32 %v15271_v34, %v2051_v21  ;;  %v1614_v21 = vadd.f32 %v1598_v36, %v1467_v48 }
 0x4ab   :  { %v2087_v59 = vmax.f32 %v2071_v44, 0.0  ;;  %v1907_v44 = vadd.f32 %v1891_v5, %v1760_v41  ;;  %v1726_v47 = vpop.f32.mrf.mxu3  ;;  %v1761_v49 = vadd.f32 %v1745_v29, %v1614_v21 }
 0x4ac   :  { %v2010_v30 = vpop.f32.mrf.mxu1  ;;  %v1746_v62 = vmul.f32 %v15253_v4, %v1726_v47 }
 0x4ad   :  { %v2103_v0 = vmin.f32 %v2087_v59, 6.0  ;;  %v2036_v7 = vmul.f32 %v15264_v33, %v2010_v30  ;;  %v1892_v59 = vmul.f32 %v15260_v1, %v1870_v9  ;;  %v1599_v30 = vmul.f32 %v15249_v6, %v1579_v3 }
 0x4af   :  { %v2114_v13 = vpack.c.bf16 %v2103_v0, %v2102_v43  ;;  %v2052_v22 = vadd.f32 %v2036_v7, %v1905_v10  ;;  %v16783_v43 = vld [vmem:[#allocation93_spill] sm:$0xff]  ;;  %v1873_v24 = vpop.f32.mrf.mxu0  ;;  %v1175_v7 = vadd.f32 %v1159_v51, %v1028_v16  ;;  %v1908_v8 = vadd.f32 %v1892_v59, %v1761_v49 }
 0x4b0   :  { %v1306_v15 = vmul.f32 %v13569_v42, %v16783_v43  ;;  %v1615_v38 = vadd.f32 %v1599_v30, %v16784_v20 }
 0x4b1   :  { %10711 = vmatmul.msk.bf16.gmra.mxu2 %vm2138_vm3, %v2114_v13  ;;  %v2072_v63 = vadd.f32 %v15271_v34, %v2052_v22  ;;  %v1581_v13 = vpop.f32.mrf.mxu2 }
 0x4b2   :  { %v1322_v45 = vadd.f32 %v1306_v15, %v1175_v7  ;;  %v1600_v54 = vmul.f32 %v15249_v6, %v1581_v13  ;;  %v1762_v40 = vadd.f32 %v1746_v62, %v1615_v38 }
 0x4b3   :  { %v2088_v19 = vmax.f32 %v2072_v63, 0.0  ;;  %v1728_v2 = vpop.f32.mrf.mxu3  ;;  %v1893_v63 = vmul.f32 %v15260_v1, %v1873_v24 }
 0x4b4   :  { %v2012_v57 = vpop.f32.mrf.mxu1  ;;  %v1747_v14 = vmul.f32 %v15253_v4, %v1728_v2 }
 0x4b5   :  { %v2037_v53 = vmul.f32 %v15264_v33, %v2012_v57  ;;  %v2104_v56 = vmin.f32 %v2088_v19, 6.0  ;;  %v1909_v19 = vadd.f32 %v1893_v63, %v1762_v40 }
 0x4b7   :  { %v2053_v39 = vadd.f32 %v2037_v53, %v1906_v50  ;;  %v1469_v50 = vadd.f32 %v1453_v12, %v1322_v45  ;;  %v1875_v36 = vpop.f32.mrf.mxu0 }
 0x4b8   :  { %v1894_v9 = vmul.f32 %v15260_v1, %v1875_v36  ;;  %v13554_v1 = vld [vmem:[#allocation2 + $0x2] ss:$0 sm:$0xff] }
 0x4b9   :  { %v2073_v60 = vadd.f32 %v15271_v34, %v2053_v39  ;;  %v1616_v25 = vadd.f32 %v1600_v54, %v1469_v50 }
 0x4bb   :  { %v2089_v32 = vmax.f32 %v2073_v60, 0.0  ;;  %v1763_v60 = vadd.f32 %v1747_v14, %v1616_v25 }
 0x4bc   :  { %v2015_v18 = vpop.f32.mrf.mxu1 }
 0x4bd   :  { %v2105_v27 = vmin.f32 %v2089_v32, 6.0  ;;  %v2038_v37 = vmul.f32 %v15264_v33, %v2015_v18  ;;  %v1910_v5 = vadd.f32 %v1894_v9, %v1763_v60 }
 0x4bf   :  { %v2115_v11 = vpack.c.bf16 %v2105_v27, %v2104_v56  ;;  %v2054_v23 = vadd.f32 %v2038_v37, %v1907_v44 }
 0x4c1   :  { %10712 = vmatmul.msk.bf16.gmra.mxu2 %vm2138_vm3, %v2115_v11  ;;  %v2074_v17 = vadd.f32 %v15271_v34, %v2054_v23 }
 0x4c3   :  { %v2090_v57 = vmax.f32 %v2074_v17, 0.0 }
 0x4c4   :  { %v2017_v0 = vpop.f32.mrf.mxu1 }
 0x4c5   :  { %v2039_v10 = vmul.f32 %v15264_v33, %v2017_v0  ;;  %v2106_v28 = vmin.f32 %v2090_v57, 6.0 }
 0x4c7   :  { %v2055_v22 = vadd.f32 %v2039_v10, %v1908_v8 }
 0x4c9   :  { %v2075_v31 = vadd.f32 %v15271_v34, %v2055_v22 }
 0x4cb   :  { %v2091_v53 = vmax.f32 %v2075_v31, 0.0 }
 0x4cc   :  { %v2020_v58 = vpop.f32.mrf.mxu1 }
 0x4cd   :  { %v2107_v39 = vmin.f32 %v2091_v53, 6.0  ;;  %v2040_v35 = vmul.f32 %v15264_v33, %v2020_v58 }
 0x4cf   :  { %v2116_v6 = vpack.c.bf16 %v2107_v39, %v2106_v28  ;;  %v2056_v48 = vadd.f32 %v2040_v35, %v1909_v19 }
 0x4d1   :  { %10713 = vmatmul.msk.bf16.gmra.mxu2 %vm2138_vm3, %v2116_v6  ;;  %v2076_v32 = vadd.f32 %v15271_v34, %v2056_v48 }
 0x4d3   :  { %v2092_v29 = vmax.f32 %v2076_v32, 0.0 }
 0x4d4   :  { %v2022_v41 = vpop.f32.mrf.mxu1 }
 0x4d5   :  { %v2041_v4 = vmul.f32 %v15264_v33, %v2022_v41  ;;  %v2108_v21 = vmin.f32 %v2092_v29, 6.0 }
 0x4d7   :  { %v2057_v46 = vadd.f32 %v2041_v4, %v1910_v5  ;;  %v13555_v4 = vld [vmem:[#allocation2 + $0x3] ss:$0 sm:$0xff] }
 0x4d9   :  { %v2077_v3 = vadd.f32 %v15271_v34, %v2057_v46 }
 0x4db   :  { %v2093_v18 = vmax.f32 %v2077_v3, 0.0 }
 0x4dd   :  { %v2109_v56 = vmin.f32 %v2093_v18, 6.0 }
 0x4df   :  { %v2117_v27 = vpack.c.bf16 %v2109_v56, %v2108_v21 }
 0x4e1   :  { %10714 = vmatmul.msk.bf16.gmra.mxu2 %vm2138_vm3, %v2117_v27 }
 0x4f4   :  { %v2172_v37 = vpop.f32.mrf.mxu2 }
 0x4f5   :  { %v2173_v55 = vadd.f32 %v13554_v1, %v2172_v37 }
 0x4f7   :  { %2213 = vst.msk [vmem:[#allocation44] sm:$0xff] %vm2212_vm4, %v2173_v55 }
 0x4fc   :  { %v2174_v44 = vpop.f32.mrf.mxu2 }
 0x4fd   :  { %v2175_v47 = vadd.f32 %v13554_v1, %v2174_v44 }
 0x4ff   :  { %2214 = vst.msk [vmem:[#allocation44 + $0x8] sm:$0xff] %vm2212_vm4, %v2175_v47  ;;  %v2229_v33 = vpack.c.bf16 %v2175_v47, %v2173_v55 }
 0x501   :  { %10719 = vmatmul.msk.bf16.vlgmr.msra.gmra.mxu3 %vm2212_vm4, %v2229_v33 }
 0x504   :  { %v2177_v34 = vpop.f32.mrf.mxu2 }
 0x505   :  { %v2178_v11 = vadd.f32 %v13554_v1, %v2177_v34 }
 0x507   :  { %2215 = vst.msk [vmem:[#allocation44 + $0x10] sm:$0xff] %vm2212_vm4, %v2178_v11 }
 0x50c   :  { %v2179_v61 = vpop.f32.mrf.mxu2 }
 0x50d   :  { %v2180_v51 = vadd.f32 %v13554_v1, %v2179_v61 }
 0x50f   :  { %2216 = vst.msk [vmem:[#allocation44 + $0x18] sm:$0xff] %vm2212_vm4, %v2180_v51  ;;  %v2230_v16 = vpack.c.bf16 %v2180_v51, %v2178_v11 }
 0x511   :  { %10720 = vmatmul.msk.bf16.gmra.mxu3 %vm2212_vm4, %v2230_v16 }
 0x514   :  { %v2182_v49 = vpop.f32.mrf.mxu2 }
 0x515   :  { %v2183_v59 = vadd.f32 %v13554_v1, %v2182_v49 }
 0x517   :  { %2217 = vst.msk [vmem:[#allocation44 + $0x20] sm:$0xff] %vm2212_vm4, %v2183_v59 }
 0x51c   :  { %v2184_v23 = vpop.f32.mrf.mxu2 }
 0x51d   :  { %v2185_v26 = vadd.f32 %v13554_v1, %v2184_v23 }
 0x51f   :  { %2218 = vst.msk [vmem:[#allocation44 + $0x28] sm:$0xff] %vm2212_vm4, %v2185_v26  ;;  %v2231_v30 = vpack.c.bf16 %v2185_v26, %v2183_v59 }
 0x521   :  { %10721 = vmatmul.msk.bf16.gmra.mxu3 %vm2212_vm4, %v2231_v30 }
 0x524   :  { %v2187_v42 = vpop.f32.mrf.mxu2 }
 0x525   :  { %v2188_v43 = vadd.f32 %v13554_v1, %v2187_v42 }
 0x527   :  { %2219 = vst.msk [vmem:[#allocation44 + $0x30] sm:$0xff] %vm2212_vm4, %v2188_v43 }
 0x52c   :  { %v2189_v15 = vpop.f32.mrf.mxu2 }
 0x52d   :  { %v2190_v24 = vadd.f32 %v13554_v1, %v2189_v15 }
 0x52f   :  { %2220 = vst.msk [vmem:[#allocation44 + $0x38] sm:$0xff] %vm2212_vm4, %v2190_v24  ;;  %v2232_v0 = vpack.c.bf16 %v2190_v24, %v2188_v43 }
 0x531   :  { %10722 = vmatmul.msk.bf16.gmra.mxu3 %vm2212_vm4, %v2232_v0 }
 0x534   :  { %v2192_v7 = vpop.f32.mrf.mxu2 }
 0x535   :  { %v2193_v8 = vadd.f32 %v13554_v1, %v2192_v7 }
 0x537   :  { %2221 = vst.msk [vmem:[#allocation44 + $0x40] sm:$0xff] %vm2212_vm4, %v2193_v8 }
 0x53c   :  { %v2194_v17 = vpop.f32.mrf.mxu2 }
 0x53d   :  { %v2195_v10 = vadd.f32 %v13554_v1, %v2194_v17 }
 0x53f   :  { %2222 = vst.msk [vmem:[#allocation44 + $0x48] sm:$0xff] %vm2212_vm4, %v2195_v10  ;;  %v2233_v13 = vpack.c.bf16 %v2195_v10, %v2193_v8 }
 0x541   :  { %10723 = vmatmul.msk.bf16.gmra.mxu3 %vm2212_vm4, %v2233_v13 }
 0x544   :  { %v2197_v20 = vpop.f32.mrf.mxu2 }
 0x545   :  { %v2198_v38 = vadd.f32 %v13554_v1, %v2197_v20 }
 0x547   :  { %2223 = vst.msk [vmem:[#allocation44 + $0x50] sm:$0xff] %vm2212_vm4, %v2198_v38 }
 0x54c   :  { %v2199_v52 = vpop.f32.mrf.mxu2 }
 0x54d   :  { %v2200_v12 = vadd.f32 %v13554_v1, %v2199_v52 }
 0x54f   :  { %2224 = vst.msk [vmem:[#allocation44 + $0x58] sm:$0xff] %vm2212_vm4, %v2200_v12  ;;  %v2234_v62 = vpack.c.bf16 %v2200_v12, %v2198_v38 }
 0x551   :  { %10724 = vmatmul.msk.bf16.gmra.mxu3 %vm2212_vm4, %v2234_v62 }
 0x554   :  { %v2202_v22 = vpop.f32.mrf.mxu2 }
 0x555   :  { %v2203_v45 = vadd.f32 %v13554_v1, %v2202_v22 }
 0x557   :  { %2225 = vst.msk [vmem:[#allocation44 + $0x60] sm:$0xff] %vm2212_vm4, %v2203_v45 }
 0x55c   :  { %v2204_v54 = vpop.f32.mrf.mxu2 }
 0x55d   :  { %v2205_v2 = vadd.f32 %v13554_v1, %v2204_v54 }
 0x55f   :  { %2226 = vst.msk [vmem:[#allocation44 + $0x68] sm:$0xff] %vm2212_vm4, %v2205_v2  ;;  %v2235_v57 = vpack.c.bf16 %v2205_v2, %v2203_v45 }
 0x561   :  { %10725 = vmatmul.msk.bf16.gmra.mxu3 %vm2212_vm4, %v2235_v57 }
 0x564   :  { %v2207_v31 = vpop.f32.mrf.mxu2 }
 0x565   :  { %v2208_v50 = vadd.f32 %v13554_v1, %v2207_v31 }
 0x567   :  { %2227 = vst.msk [vmem:[#allocation44 + $0x70] sm:$0xff] %vm2212_vm4, %v2208_v50 }
 0x56c   :  { %v2209_v40 = vpop.f32.mrf.mxu2 }
 0x56d   :  { %v2210_v63 = vadd.f32 %v13554_v1, %v2209_v40 }
 0x56f   :  { %2228 = vst.msk [vmem:[#allocation44 + $0x78] sm:$0xff] %vm2212_vm4, %v2210_v63  ;;  %v2236_v53 = vpack.c.bf16 %v2210_v63, %v2208_v50 }
 0x571   :  { %10726 = vmatmul.msk.bf16.gmra.mxu3 %vm2212_vm4, %v2236_v53 }
 0x584   :  { %v15428_v14 = vpop.f32.mrf.mxu3 }
 0x585   :  { %v2283_v40 = vadd.f32 %v13555_v4, %v15428_v14 }
 0x58c   :  { %v15430_v58 = vpop.f32.mrf.mxu3 }
 0x58d   :  { %v2285_v2 = vadd.f32 %v13555_v4, %v15430_v58  ;;  %v2322_v58 = vmax.f32 %v2283_v40, 0.0 }
 0x594   :  { %v15432_v25 = vpop.f32.mrf.mxu3 }
 0x595   :  { %v2288_v22 = vadd.f32 %v13555_v4, %v15432_v25  ;;  %v2323_v25 = vmax.f32 %v2285_v2, 0.0  ;;  %v2528_v2 = vld [vmem:[%s16777_s10 + $0xb] ss:$0 sm:$0xff] }
 0x597   :  { %v2324_v63 = vmax.f32 %v2288_v22, 0.0  ;;  %v2339_v14 = vmin.f32 %v2323_v25, 6.0 }
 0x59c   :  { %v2289_v28 = vpop.f32.mrf.mxu3 }
 0x59d   :  { %v2290_v38 = vadd.f32 %v13555_v4, %v2289_v28 }
 0x59f   :  { %v2325_v57 = vmax.f32 %v2290_v38, 0.0 }
 0x5a1   :  { %v2341_v28 = vmin.f32 %v2325_v57, 6.0 }
 0x5a4   :  { %v2292_v39 = vpop.f32.mrf.mxu3 }
 0x5a5   :  { %v2293_v10 = vadd.f32 %v13555_v4, %v2292_v39 }
 0x5a7   :  { %v2326_v45 = vmax.f32 %v2293_v10, 0.0  ;;  %v13000_v10 = vld [vmem:[#allocation11 + $0x10] sm:$0xff] }
 0x5a9   :  { %v2342_v53 = vmin.f32 %v2326_v45, 6.0 }
 0x5ac   :  { %v2294_v35 = vpop.f32.mrf.mxu3 }
 0x5ad   :  { %v2295_v0 = vadd.f32 %v13555_v4, %v2294_v35  ;;  %v2340_v35 = vmin.f32 %v2324_v63, 6.0 }
 0x5af   :  { %v2327_v52 = vmax.f32 %v2295_v0, 0.0  ;;  %v13001_v0 = vld [vmem:[#allocation11 + $0x18] sm:$0xff] }
 0x5b1   :  { %v2343_v31 = vmin.f32 %v2327_v52, 6.0  ;;  %v2483_v52 = vld [vmem:[%s16777_s10 + $0xa] ss:$0 sm:$0xff] }
 0x5b3   :  { %v15467_v39 = vpack.c.bf16 %v2343_v31, %v2342_v53  ;;  %v2573_v53 = vld [vmem:[%s16777_s10 + $0xc] ss:$0 sm:$0xff] }
 0x5b4   :  { %v2297_v36 = vpop.f32.mrf.mxu3 }
 0x5b5   :  { %v2298_v43 = vadd.f32 %v13555_v4, %v2297_v36  ;;  %v15473_v36 = vpack.c.bf16 %v2341_v28, %v2340_v35 }
 0x5b7   :  { %v2328_v13 = vmax.f32 %v2298_v43, 0.0 }
 0x5b9   :  { %v2344_v54 = vmin.f32 %v2328_v13, 6.0  ;;  %v2397_v13 = vld [vmem:[%s16777_s10 + $0x8] ss:$0 sm:$0xff] }
 0x5bc   :  { %v2299_v19 = vpop.f32.mrf.mxu3 }
 0x5bd   :  { %v2300_v23 = vadd.f32 %v13555_v4, %v2299_v19  ;;  %v2338_v19 = vmin.f32 %v2322_v58, 6.0 }
 0x5bf   :  { %v2329_v7 = vmax.f32 %v2300_v23, 0.0 }
 0x5c1   :  { %v2345_v12 = vmin.f32 %v2329_v7, 6.0 }
 0x5c3   :  { %v15460_v50 = vpack.c.bf16 %v2345_v12, %v2344_v54  ;;  %v12999_v12 = vld [vmem:[#allocation11 + $0x8] sm:$0xff] }
 0x5c4   :  { %v2302_v6 = vpop.f32.mrf.mxu3 }
 0x5c5   :  { %v2303_v16 = vadd.f32 %v13555_v4, %v2302_v6  ;;  %v15479_v6 = vpack.c.bf16 %v2339_v14, %v2338_v19  ;;  %v15539_v19 = vld [vmem:[%s16777_s10 + $0xd] ss:$0 sm:$0xff] }
 0x5c7   :  { %v2330_v15 = vmax.f32 %v2303_v16, 0.0 }
 0x5c9   :  { %v2346_v20 = vmin.f32 %v2330_v15, 6.0 }
 0x5cc   :  { %v2304_v60 = vpop.f32.mrf.mxu3 }
 0x5cd   :  { %v2305_v34 = vadd.f32 %v13555_v4, %v2304_v60  ;;  %v12980_v60 = vld [vmem:[#allocation10] sm:$0xff] }
 0x5cf   :  { %v2331_v26 = vmax.f32 %v2305_v34, 0.0 }
 0x5d1   :  { %v2347_v8 = vmin.f32 %v2331_v26, 6.0  ;;  %v13003_v26 = vld [vmem:[#allocation11 + $0x28] sm:$0xff] }
 0x5d3   :  { %v15452_v62 = vpack.c.bf16 %v2347_v8, %v2346_v20  ;;  %v2438_v20 = vld [vmem:[%s16777_s10 + $0x9] ss:$0 sm:$0xff] }
 0x5d4   :  { %v2307_v9 = vpop.f32.mrf.mxu3 }
 0x5d5   :  { %v2308_v55 = vadd.f32 %v13555_v4, %v2307_v9  ;;  %v12984_v9 = vld [vmem:[#allocation10 + $0x20] sm:$0xff] }
 0x5d7   :  { %v2332_v49 = vmax.f32 %v2308_v55, 0.0  ;;  %v12996_v55 = vld [vmem:[#allocation10 + $0x80] sm:$0xff] }
 0x5d9   :  { %v2348_v24 = vmin.f32 %v2332_v49, 6.0 }
 0x5dc   :  { %v2309_v48 = vpop.f32.mrf.mxu3 }
 0x5dd   :  { %v2310_v27 = vadd.f32 %v13555_v4, %v2309_v48  ;;  %v12986_v48 = vld [vmem:[#allocation10 + $0x30] sm:$0xff] }
 0x5df   :  { %v2333_v11 = vmax.f32 %v2310_v27, 0.0  ;;  %v12989_v27 = vld [vmem:[#allocation10 + $0x48] sm:$0xff] }
 0x5e1   :  { %v2349_v30 = vmin.f32 %v2333_v11, 6.0 }
 0x5e3   :  { %v15446_v17 = vpack.c.bf16 %v2349_v30, %v2348_v24  ;;  %v13002_v24 = vld [vmem:[#allocation11 + $0x20] sm:$0xff] }
 0x5e4   :  { %v2312_v41 = vpop.f32.mrf.mxu3 }
 0x5e5   :  { %v2313_v18 = vadd.f32 %v13555_v4, %v2312_v41  ;;  %v12982_v41 = vld [vmem:[#allocation10 + $0x10] sm:$0xff] }
 0x5e7   :  { %v2334_v44 = vmax.f32 %v2313_v18, 0.0  ;;  %v12994_v18 = vld [vmem:[#allocation10 + $0x70] sm:$0xff] }
 0x5e9   :  { %v2350_v59 = vmin.f32 %v2334_v44, 6.0  ;;  %v12997_v44 = vld [vmem:[#allocation10 + $0x88] sm:$0xff] }
 0x5ec   :  { %v2314_v5 = vpop.f32.mrf.mxu3 }
 0x5ed   :  { %v2315_v29 = vadd.f32 %v13555_v4, %v2314_v5  ;;  %v12981_v5 = vld [vmem:[#allocation10 + $0x8] sm:$0xff] }
 0x5ef   :  { %v2335_v1 = vmax.f32 %v2315_v29, 0.0  ;;  %v12992_v29 = vld [vmem:[#allocation10 + $0x60] sm:$0xff] }
 0x5f1   :  { %v2351_v61 = vmin.f32 %v2335_v1, 6.0  ;;  %v12995_v1 = vld [vmem:[#allocation10 + $0x78] sm:$0xff] }
 0x5f3   :  { %v15440_v42 = vpack.c.bf16 %v2351_v61, %v2350_v59 }
 0x5f4   :  { %v2317_v32 = vpop.f32.mrf.mxu3 }
 0x5f5   :  { %v2318_v46 = vadd.f32 %v13555_v4, %v2317_v32  ;;  %v12985_v32 = vld [vmem:[#allocation10 + $0x28] sm:$0xff] }
 0x5f7   :  { %v2336_v21 = vmax.f32 %v2318_v46, 0.0  ;;  %v12983_v46 = vld [vmem:[#allocation10 + $0x18] sm:$0xff] }
 0x5f9   :  { %v2352_v47 = vmin.f32 %v2336_v21, 6.0  ;;  %v12990_v21 = vld [vmem:[#allocation10 + $0x50] sm:$0xff] }
 0x5fc   :  { %v2319_v3 = vpop.f32.mrf.mxu3 }
 0x5fd   :  { %v2320_v56 = vadd.f32 %v13555_v4, %v2319_v3  ;;  %v12987_v4 = vld [vmem:[#allocation10 + $0x38] sm:$0xff]  ;;  %v12988_v3 = vld [vmem:[#allocation10 + $0x40] sm:$0xff] }
 0x5ff   :  { %v2337_v37 = vmax.f32 %v2320_v56, 0.0  ;;  %v12993_v56 = vld [vmem:[#allocation10 + $0x68] sm:$0xff] }
 0x601   :  { %v2353_v33 = vmin.f32 %v2337_v37, 6.0  ;;  %v12991_v37 = vld [vmem:[#allocation10 + $0x58] sm:$0xff] }
 0x603   :  { %v15434_v51 = vpack.c.bf16 %v2353_v33, %v2352_v47 }
 0x605   :  { %2378 = vmatpush.bf16.msrb.mxu0 %v15434_v51  ;;  %2419 = vmatpush.bf16.msrb.mxu1 %v15434_v51 }
 0x606   :  { %2464 = vmatpush.bf16.msrb.mxu2 %v15434_v51  ;;  %2509 = vmatpush.bf16.msrb.mxu3 %v15434_v51 }
 0x609   :  { %2379 = vmatpush.bf16.msrb.mxu0 %v15440_v42  ;;  %2420 = vmatpush.bf16.msrb.mxu1 %v15440_v42 }
 0x60a   :  { %2465 = vmatpush.bf16.msrb.mxu2 %v15440_v42  ;;  %2510 = vmatpush.bf16.msrb.mxu3 %v15440_v42 }
 0x60d   :  { %2380 = vmatpush.bf16.msrb.mxu0 %v15446_v17  ;;  %2421 = vmatpush.bf16.msrb.mxu1 %v15446_v17 }
 0x60e   :  { %2466 = vmatpush.bf16.msrb.mxu2 %v15446_v17  ;;  %2511 = vmatpush.bf16.msrb.mxu3 %v15446_v17 }
 0x611   :  { %2381 = vmatpush.bf16.msrb.mxu0 %v15452_v62  ;;  %2422 = vmatpush.bf16.msrb.mxu1 %v15452_v62 }
 0x612   :  { %2467 = vmatpush.bf16.msrb.mxu2 %v15452_v62  ;;  %2512 = vmatpush.bf16.msrb.mxu3 %v15452_v62 }
 0x615   :  { %2382 = vmatpush.bf16.msrb.mxu0 %v15460_v50  ;;  %2423 = vmatpush.bf16.msrb.mxu1 %v15460_v50 }
 0x616   :  { %2468 = vmatpush.bf16.msrb.mxu2 %v15460_v50  ;;  %2513 = vmatpush.bf16.msrb.mxu3 %v15460_v50 }
 0x619   :  { %2383 = vmatpush.bf16.msrb.mxu0 %v15467_v39  ;;  %2424 = vmatpush.bf16.msrb.mxu1 %v15467_v39 }
 0x61a   :  { %2469 = vmatpush.bf16.msrb.mxu2 %v15467_v39  ;;  %2514 = vmatpush.bf16.msrb.mxu3 %v15467_v39 }
 0x61d   :  { %2384 = vmatpush.bf16.msrb.mxu0 %v15473_v36  ;;  %2425 = vmatpush.bf16.msrb.mxu1 %v15473_v36 }
 0x61e   :  { %2470 = vmatpush.bf16.msrb.mxu2 %v15473_v36  ;;  %2515 = vmatpush.bf16.msrb.mxu3 %v15473_v36 }
 0x621   :  { %2385 = vmatpush.bf16.msrb.mxu0 %v15479_v6  ;;  %2426 = vmatpush.bf16.msrb.mxu1 %v15479_v6 }
 0x622   :  { %2471 = vmatpush.bf16.msrb.mxu2 %v15479_v6  ;;  %2516 = vmatpush.bf16.msrb.mxu3 %v15479_v6 }
 0x624   :  { %2386 = vmatmul.bf16.vlgmr.msrb.gmra.mxu0 %v12980_v60  ;;  %2427 = vmatmul.bf16.vlgmr.msrb.gmra.mxu1 %v12982_v41  ;;  %v15542_v41 = vld [vmem:[%s16777_s10 + $0xe] ss:$0 sm:$0xff] }
 0x625   :  { %2554 = vmatpush.bf16.msra.mxu0 %v15434_v51  ;;  %2599 = vmatpush.bf16.msra.mxu1 %v15434_v51 }
 0x626   :  { %2644 = vmatpush.bf16.msra.mxu2 %v15434_v51  ;;  %2689 = vmatpush.bf16.msra.mxu3 %v15434_v51 }
 0x627   :  { %2472 = vmatmul.bf16.vlgmr.msrb.gmra.mxu2 %v12984_v9  ;;  %2517 = vmatmul.bf16.vlgmr.msrb.gmra.mxu3 %v12986_v48 }
 0x629   :  { %2555 = vmatpush.bf16.msra.mxu0 %v15440_v42  ;;  %2600 = vmatpush.bf16.msra.mxu1 %v15440_v42 }
 0x62a   :  { %2645 = vmatpush.bf16.msra.mxu2 %v15440_v42  ;;  %2690 = vmatpush.bf16.msra.mxu3 %v15440_v42 }
 0x62d   :  { %2556 = vmatpush.bf16.msra.mxu0 %v15446_v17  ;;  %2601 = vmatpush.bf16.msra.mxu1 %v15446_v17 }
 0x62e   :  { %2646 = vmatpush.bf16.msra.mxu2 %v15446_v17  ;;  %2691 = vmatpush.bf16.msra.mxu3 %v15446_v17 }
 0x631   :  { %2557 = vmatpush.bf16.msra.mxu0 %v15452_v62  ;;  %2602 = vmatpush.bf16.msra.mxu1 %v15452_v62 }
 0x632   :  { %2647 = vmatpush.bf16.msra.mxu2 %v15452_v62  ;;  %2692 = vmatpush.bf16.msra.mxu3 %v15452_v62 }
 0x634   :  { %2391 = vmatmul.bf16.gmra.mxu0 %v12981_v5  ;;  %2432 = vmatmul.bf16.gmra.mxu1 %v12983_v46 }
 0x635   :  { %2558 = vmatpush.bf16.msra.mxu0 %v15460_v50  ;;  %2603 = vmatpush.bf16.msra.mxu1 %v15460_v50 }
 0x636   :  { %2648 = vmatpush.bf16.msra.mxu2 %v15460_v50  ;;  %2693 = vmatpush.bf16.msra.mxu3 %v15460_v50 }
 0x637   :  { %2477 = vmatmul.bf16.gmra.mxu2 %v12985_v32  ;;  %2522 = vmatmul.bf16.gmra.mxu3 %v12987_v4 }
 0x639   :  { %2559 = vmatpush.bf16.msra.mxu0 %v15467_v39  ;;  %2604 = vmatpush.bf16.msra.mxu1 %v15467_v39 }
 0x63a   :  { %2649 = vmatpush.bf16.msra.mxu2 %v15467_v39  ;;  %2694 = vmatpush.bf16.msra.mxu3 %v15467_v39 }
 0x63d   :  { %2560 = vmatpush.bf16.msra.mxu0 %v15473_v36  ;;  %2605 = vmatpush.bf16.msra.mxu1 %v15473_v36 }
 0x63e   :  { %2650 = vmatpush.bf16.msra.mxu2 %v15473_v36  ;;  %2695 = vmatpush.bf16.msra.mxu3 %v15473_v36 }
 0x641   :  { %2561 = vmatpush.bf16.msra.mxu0 %v15479_v6  ;;  %2606 = vmatpush.bf16.msra.mxu1 %v15479_v6 }
 0x642   :  { %2651 = vmatpush.bf16.msra.mxu2 %v15479_v6  ;;  %2696 = vmatpush.bf16.msra.mxu3 %v15479_v6 }
 0x644   :  { %2562 = vmatmul.bf16.vlgmr.msra.gmra.mxu0 %v12988_v3  ;;  %2607 = vmatmul.bf16.vlgmr.msra.gmra.mxu1 %v12990_v21  ;;  %v15547_v21 = vld [vmem:[%s16777_s10 + $0xf] ss:$0 sm:$0xff] }
 0x645   :  { %2734 = vmatpush.bf16.msrb.mxu0 %v15434_v51  ;;  %2841 = vmatpush.bf16.msrb.mxu1 %v13003_v26 }
 0x647   :  { %2652 = vmatmul.bf16.vlgmr.msra.gmra.mxu2 %v12992_v29  ;;  %2697 = vmatmul.bf16.vlgmr.msra.gmra.mxu3 %v12994_v18 }
 0x649   :  { %2735 = vmatpush.bf16.msrb.mxu0 %v15440_v42  ;;  %2842 = vmatpush.bf16.msrb.mxu1 %v13002_v24 }
 0x64d   :  { %2736 = vmatpush.bf16.msrb.mxu0 %v15446_v17  ;;  %2843 = vmatpush.bf16.msrb.mxu1 %v13001_v0 }
 0x651   :  { %2737 = vmatpush.bf16.msrb.mxu0 %v15452_v62  ;;  %2844 = vmatpush.bf16.msrb.mxu1 %v13000_v10 }
 0x654   :  { %2567 = vmatmul.bf16.gmra.mxu0 %v12989_v27  ;;  %2612 = vmatmul.bf16.gmra.mxu1 %v12991_v37 }
 0x655   :  { %2738 = vmatpush.bf16.msrb.mxu0 %v15460_v50  ;;  %2845 = vmatpush.bf16.msrb.mxu1 %v12999_v12  ;;  %v12998_v50 = vld [vmem:[#allocation11] sm:$0xff] }
 0x657   :  { %2657 = vmatmul.bf16.gmra.mxu2 %v12993_v56  ;;  %2702 = vmatmul.bf16.gmra.mxu3 %v12995_v1 }
 0x659   :  { %2739 = vmatpush.bf16.msrb.mxu0 %v15467_v39  ;;  %2846 = vmatpush.bf16.msrb.mxu1 %v12998_v50 }
 0x65d   :  { %2740 = vmatpush.bf16.msrb.mxu0 %v15473_v36 }
 0x661   :  { %2741 = vmatpush.bf16.msrb.mxu0 %v15479_v6 }
 0x664   :  { %2742 = vmatmul.bf16.vlgmr.msrb.gmra.mxu0 %v12996_v55  ;;  %v15550_v55 = vld [vmem:[%s16777_s10 + $0x140] ss:$0 sm:$0xff] }
 0x674   :  { %2747 = vmatmul.bf16.gmra.mxu0 %v12997_v44 }
 0x6a1   :  { %v2387_v47 = vpop.f32.mrf.mxu0  ;;  %v2428_v34 = vpop.f32.mrf.mxu1 }
 0x6a2   :  { %v2398_v62 = vmul.f32 %v2397_v13, %v2387_v47  ;;  %v2439_v22 = vmul.f32 %v2438_v20, %v2428_v34 }
 0x6a4   :  { %v2443_v40 = vadd.f32 %v2439_v22, %v2398_v62 }
 0x6a9   :  { %v2389_v33 = vpop.f32.mrf.mxu0  ;;  %v2430_v16 = vpop.f32.mrf.mxu1 }
 0x6aa   :  { %v2473_v11 = vpop.f32.mrf.mxu2  ;;  %v2518_v61 = vpop.f32.mrf.mxu3  ;;  %v2399_v63 = vmul.f32 %v2397_v13, %v2389_v33  ;;  %v2440_v25 = vmul.f32 %v2438_v20, %v2430_v16 }
 0x6ab   :  { %v2484_v54 = vmul.f32 %v2483_v52, %v2473_v11  ;;  %v2529_v39 = vmul.f32 %v2528_v2, %v2518_v61 }
 0x6ac   :  { %v2444_v36 = vadd.f32 %v2440_v25, %v2399_v63 }
 0x6ad   :  { %v2488_v28 = vadd.f32 %v2484_v54, %v2443_v40  ;;  %v13556_v54 = vld [vmem:[#allocation2 + $0x4] ss:$0 sm:$0xff] }
 0x6af   :  { %v2533_v6 = vadd.f32 %v2529_v39, %v2488_v28 }
 0x6b1   :  { %v2392_v51 = vpop.f32.mrf.mxu0  ;;  %v2433_v30 = vpop.f32.mrf.mxu1 }
 0x6b2   :  { %v2475_v49 = vpop.f32.mrf.mxu2  ;;  %v2520_v59 = vpop.f32.mrf.mxu3  ;;  %v2400_v56 = vmul.f32 %v2397_v13, %v2392_v51  ;;  %v2441_v27 = vmul.f32 %v2438_v20, %v2433_v30 }
 0x6b3   :  { %v2485_v58 = vmul.f32 %v2483_v52, %v2475_v49  ;;  %v2530_v9 = vmul.f32 %v2528_v2, %v2520_v59 }
 0x6b4   :  { %v2445_v49 = vadd.f32 %v2441_v27, %v2400_v56 }
 0x6b5   :  { %v2489_v60 = vadd.f32 %v2485_v58, %v2444_v36 }
 0x6b7   :  { %v2534_v18 = vadd.f32 %v2530_v9, %v2489_v60 }
 0x6b9   :  { %v15525_v23 = vpop.f32.mrf.mxu0  ;;  %v2435_v7 = vpop.f32.mrf.mxu1 }
 0x6ba   :  { %v2478_v42 = vpop.f32.mrf.mxu2  ;;  %v15527_v15 = vpop.f32.mrf.mxu3  ;;  %v2401_v51 = vmul.f32 %v2397_v13, %v15525_v23  ;;  %v2442_v26 = vmul.f32 %v2438_v20, %v2435_v7 }
 0x6bb   :  { %v2486_v33 = vmul.f32 %v2483_v52, %v2478_v42  ;;  %v2531_v0 = vmul.f32 %v2528_v2, %v15527_v15 }
 0x6bd   :  { %v2490_v24 = vadd.f32 %v2486_v33, %v2445_v49 }
 0x6bf   :  { %v2535_v50 = vadd.f32 %v2531_v0, %v2490_v24 }
 0x6c1   :  { %v2563_v43 = vpop.f32.mrf.mxu0  ;;  %v2608_v45 = vpop.f32.mrf.mxu1 }
 0x6c2   :  { %v15529_v8 = vpop.f32.mrf.mxu2  ;;  %v15533_v38 = vpop.f32.mrf.mxu3  ;;  %v2574_v14 = vmul.f32 %v2573_v53, %v2563_v43  ;;  %v2619_v4 = vmul.f32 %v15539_v19, %v2608_v45 }
 0x6c3   :  { %v2487_v42 = vmul.f32 %v2483_v52, %v15529_v8  ;;  %v2532_v23 = vmul.f32 %v2528_v2, %v15533_v38 }
 0x6c4   :  { %v2578_v32 = vadd.f32 %v2574_v14, %v2533_v6 }
 0x6c6   :  { %v2623_v1 = vadd.f32 %v2619_v4, %v2578_v32 }
 0x6c9   :  { %v2565_v17 = vpop.f32.mrf.mxu0  ;;  %v2610_v5 = vpop.f32.mrf.mxu1 }
 0x6ca   :  { %v2653_v31 = vpop.f32.mrf.mxu2  ;;  %v2698_v35 = vpop.f32.mrf.mxu3  ;;  %v2575_v46 = vmul.f32 %v2573_v53, %v2565_v17  ;;  %v2620_v44 = vmul.f32 %v15539_v19, %v2610_v5 }
 0x6cb   :  { %v2664_v3 = vmul.f32 %v15542_v41, %v2653_v31  ;;  %v2709_v11 = vmul.f32 %v15547_v21, %v2698_v35  ;;  %v2446_v31 = vadd.f32 %v2442_v26, %v2401_v51  ;;  %v2867_v51 = vld [vmem:[#allocation13 + $0x10] sm:$0xff] }
 0x6cc   :  { %v2579_v37 = vadd.f32 %v2575_v46, %v2534_v18  ;;  %v2881_v26 = vunpack.c.l.b16 %v2867_v51 }
 0x6cd   :  { %v2668_v34 = vadd.f32 %v2664_v3, %v2623_v1  ;;  %v2491_v40 = vadd.f32 %v2487_v42, %v2446_v31  ;;  %v13004_v42 = vld [vmem:[#allocation13 + $0x4] sm:$0xf] }
 0x6ce   :  { %v2624_v30 = vadd.f32 %v2620_v44, %v2579_v37 }
 0x6cf   :  { %v2713_v17 = vadd.f32 %v2709_v11, %v2668_v34  ;;  %v2536_v58 = vadd.f32 %v2532_v23, %v2491_v40 }
 0x6d1   :  { %v2568_v57 = vpop.f32.mrf.mxu0  ;;  %v2613_v43 = vpop.f32.mrf.mxu1 }
 0x6d2   :  { %v2655_v29 = vpop.f32.mrf.mxu2  ;;  %v2700_v47 = vpop.f32.mrf.mxu3  ;;  %v2576_v22 = vmul.f32 %v2573_v53, %v2568_v57  ;;  %v2621_v8 = vmul.f32 %v15539_v19, %v2613_v43  ;;  %v2885_v43 = vpack.c.b16 %v2881_v26, %v2881_v26  ;;  %v13007_v26 = vld [vmem:[#allocation14 + $0x8] sm:$0xff] }
 0x6d3   :  { %v2665_v16 = vmul.f32 %v15542_v41, %v2655_v29  ;;  %v2710_v12 = vmul.f32 %v15547_v21, %v2700_v47 }
 0x6d4   :  { %v2580_v63 = vadd.f32 %v2576_v22, %v2535_v50  ;;  %v2897_v24 = vsel %vm2895_vm6, %v2885_v43, 0  ;;  %v13557_v22 = vld [vmem:[#allocation2 + $0x5] ss:$0 sm:$0xff] }
 0x6d5   :  { %v2669_v10 = vadd.f32 %v2665_v16, %v2624_v30  ;;  %v2882_v30 = vunpack.c.h.b16 %v2867_v51  ;;  %2908 = vmatpush.bf16.msrb.mxu2 %v2897_v24  ;;  %v13008_v51 = vld [vmem:[#allocation14 + $0x10] sm:$0xff]  ;;  %v13010_v43 = vld [vmem:[#allocation14 + $0x20] sm:$0xff]  ;;  %v13011_v24 = vld [vmem:[#allocation14 + $0x28] sm:$0xff] }
 0x6d6   :  { %v2625_v36 = vadd.f32 %v2621_v8, %v2580_v63 }
 0x6d7   :  { %v2714_v7 = vadd.f32 %v2710_v12, %v2669_v10  ;;  %v10829_v12 = vld [vmem:[#allocation13 + $0x8] sm:$0xf0] }
 0x6d9   :  { %v2570_v48 = vpop.f32.mrf.mxu0  ;;  %v2615_v39 = vpop.f32.mrf.mxu1 }
 0x6da   :  { %v2658_v62 = vpop.f32.mrf.mxu2  ;;  %v2703_v20 = vpop.f32.mrf.mxu3  ;;  %v2577_v52 = vmul.f32 %v2573_v53, %v2570_v48  ;;  %v2622_v5 = vmul.f32 %v15539_v19, %v2615_v39 }
 0x6db   :  { %v2666_v57 = vmul.f32 %v15542_v41, %v2658_v62  ;;  %v2711_v38 = vmul.f32 %v15547_v21, %v2703_v20  ;;  %v10832_v62 = vor.u32 %v13004_v42, %v10829_v12  ;;  %v13015_v42 = vld [vmem:[#allocation14 + $0x48] sm:$0xff]  ;;  %v13018_v12 = vld [vmem:[#allocation14 + $0x60] sm:$0xff] }
 0x6dc   :  { %v2581_v6 = vadd.f32 %v2577_v52, %v2536_v58 }
 0x6dd   :  { %v2670_v9 = vadd.f32 %v2666_v57, %v2625_v36 }
 0x6de   :  { %v2626_v56 = vadd.f32 %v2622_v5, %v2581_v6 }
 0x6df   :  { %v2715_v18 = vadd.f32 %v2711_v38, %v2670_v9 }
 0x6e1   :  { %v2743_v61 = vpop.f32.mrf.mxu0 }
 0x6e2   :  { %v2754_v59 = vmul.f32 %v15550_v55, %v2743_v61  ;;  %v2660_v2 = vpop.f32.mrf.mxu2  ;;  %v2705_v29 = vpop.f32.mrf.mxu3 }
 0x6e3   :  { %v2667_v48 = vmul.f32 %v15542_v41, %v2660_v2  ;;  %v2712_v37 = vmul.f32 %v15547_v21, %v2705_v29  ;;  %v2886_v21 = vpack.c.b16 %v2882_v30, %v2882_v30  ;;  %v13009_v30 = vld [vmem:[#allocation14 + $0x18] sm:$0xff] }
 0x6e4   :  { %v2758_v45 = vadd.f32 %v2754_v59, %v2713_v17  ;;  %v13005_v17 = vld [vmem:[#allocation13 + $0x4] sm:$0xf0] }
 0x6e5   :  { %v2671_v1 = vadd.f32 %v2667_v48, %v2626_v56  ;;  %v2900_v0 = vsel %vm2895_vm6, %v2886_v21, 0  ;;  %v13012_v21 = vld [vmem:[#allocation14 + $0x30] sm:$0xff] }
 0x6e6   :  { %v2766_v15 = vadd.f32 %v13556_v54, %v2758_v45  ;;  %2927 = vmatpush.bf16.msrb.mxu3 %v2900_v0  ;;  %v13013_v0 = vld [vmem:[#allocation14 + $0x38] sm:$0xff] }
 0x6e7   :  { %v2716_v47 = vadd.f32 %v2712_v37, %v2671_v1 }
 0x6e8   :  { %v2770_v35 = vmax.f32 %v2766_v15, 0.0 }
 0x6e9   :  { %v2745_v13 = vpop.f32.mrf.mxu0 }
 0x6ea   :  { %v2755_v25 = vmul.f32 %v15550_v55, %v2745_v13  ;;  %v2774_v4 = vmin.f32 %v2770_v35, 6.0  ;;  %2928 = vmatpush.bf16.msrb.mxu3 %v10832_v62  ;;  %v13020_v62 = vld [vmem:[#allocation14 + $0x70] sm:$0xff] }
 0x6ec   :  { %v2759_v28 = vadd.f32 %v2755_v25, %v2714_v7 }
 0x6ee   :  { %v2767_v14 = vadd.f32 %v13556_v54, %v2759_v28  ;;  %v2868_v28 = vld [vmem:[#allocation2 + $0x6] sm:$0x3] }
 0x6ef   :  { %v2870_v58 = vperm.slane %v2868_v28, 0  ;;  %v2871_v35 = vperm.slane %v2868_v28, 1 }
 0x6f0   :  { %v2771_v60 = vmax.f32 %v2767_v14, 0.0 }
 0x6f1   :  { %v2748_v32 = vpop.f32.mrf.mxu0 }
 0x6f2   :  { %v2775_v46 = vmin.f32 %v2771_v60, 6.0  ;;  %v2756_v53 = vmul.f32 %v15550_v55, %v2748_v32 }
 0x6f4   :  { %v2778_v3 = vpack.c.bf16 %v2775_v46, %v2774_v4  ;;  %v2760_v27 = vadd.f32 %v2756_v53, %v2715_v18 }
 0x6f6   :  { %10823 = vmatmul.msk.bf16.vlgmr.msrb.gmra.mxu1 %vm2832_vm5, %v2778_v3  ;;  %v2768_v19 = vadd.f32 %v13556_v54, %v2760_v27 }
 0x6f8   :  { %v2772_v11 = vmax.f32 %v2768_v19, 0.0 }
 0x6f9   :  { %v2750_v44 = vpop.f32.mrf.mxu0 }
 0x6fa   :  { %v2757_v33 = vmul.f32 %v15550_v55, %v2750_v44  ;;  %v2776_v16 = vmin.f32 %v2772_v11, 6.0  ;;  %v10827_v55 = vld [vmem:[#allocation13] sm:$0xf] }
 0x6fb   :  { %v10828_v10 = vor.u32 %v13005_v17, %v10827_v55  ;;  %v13014_v55 = vld [vmem:[#allocation14 + $0x40] sm:$0xff]  ;;  %v13016_v17 = vld [vmem:[#allocation14 + $0x50] sm:$0xff] }
 0x6fc   :  { %v2761_v34 = vadd.f32 %v2757_v33, %v2716_v47 }
 0x6fd   :  { %2909 = vmatpush.bf16.msrb.mxu2 %v10828_v10  ;;  %v13017_v10 = vld [vmem:[#allocation14 + $0x58] sm:$0xff] }
 0x6fe   :  { %v2769_v61 = vadd.f32 %v13556_v54, %v2761_v34 }
 0x700   :  { %v2773_v41 = vmax.f32 %v2769_v61, 0.0 }
 0x702   :  { %v2777_v49 = vmin.f32 %v2773_v41, 6.0 }
 0x704   :  { %v2779_v59 = vpack.c.bf16 %v2777_v49, %v2776_v16 }
 0x706   :  { %10824 = vmatmul.msk.bf16.gmra.mxu1 %vm2832_vm5, %v2779_v59  ;;  %v13006_v59 = vld [vmem:[#allocation14] sm:$0xff] }
 0x773   :  { %v2848_v45 = vpop.f32.mrf.mxu1 }
 0x774   :  { %v15574_v54 = vadd.f32 %v13557_v22, %v2848_v45  ;;  %v13021_v45 = vld [vmem:[#allocation14 + $0x78] sm:$0xff] }
 0x776   :  { %16786 = vst [vmem:[#allocation92_spill] sm:$0xff] %v15574_v54 }
 0x777   :  { %2859 = vst.msk [vmem:[#allocation45] sm:$0xff] %vm2858_vm7, %v15574_v54 }
 0x77b   :  { %v2850_v31 = vpop.f32.mrf.mxu1 }
 0x77c   :  { %v15578_v50 = vadd.f32 %v13557_v22, %v2850_v31  ;;  %v13022_v31 = vld [vmem:[#allocation14 + $0x80] sm:$0xff] }
 0x77e   :  { %16787 = vst [vmem:[#allocation93_spill] sm:$0xff] %v15578_v50  ;;  %v2863_v40 = vpack.c.bf16 %v15578_v50, %v15574_v54 }
 0x77f   :  { %2860 = vst.msk [vmem:[#allocation45 + $0x8] sm:$0xff] %vm2858_vm7, %v15578_v50 }
 0x780   :  { %10833 = vmatmul.msk.bf16.vlgmr.msrb.gmra.mxu2 %vm2858_vm7, %v2863_v40  ;;  %10835 = vmatmul.msk.bf16.vlgmr.msrb.gmra.mxu3 %vm2858_vm7, %v2863_v40 }
 0x783   :  { %v2853_v23 = vpop.f32.mrf.mxu1 }
 0x784   :  { %v15586_v7 = vadd.f32 %v13557_v22, %v2853_v23 }
 0x786   :  { %16788 = vst [vmem:[#allocation94_spill] sm:$0xff] %v15586_v7 }
 0x787   :  { %2861 = vst.msk [vmem:[#allocation45 + $0x10] sm:$0xff] %vm2858_vm7, %v15586_v7 }
 0x78b   :  { %v2855_v13 = vpop.f32.mrf.mxu1 }
 0x78c   :  { %v15590_v20 = vadd.f32 %v13557_v22, %v2855_v13  ;;  %v13019_v22 = vld [vmem:[#allocation14 + $0x68] sm:$0xff]  ;;  %v10849_v13 = vld [vmem:[%s16777_s10 + $0x10] ss:$8 sm:$0x3] }
 0x78e   :  { %16789 = vst [vmem:[#allocation95_spill] sm:$0xff] %v15590_v20  ;;  %v2864_v63 = vpack.c.bf16 %v15590_v20, %v15586_v7 }
 0x78f   :  { %2862 = vst.msk [vmem:[#allocation45 + $0x18] sm:$0xff] %vm2858_vm7, %v15590_v20 }
 0x790   :  { %10834 = vmatmul.msk.bf16.gmra.mxu2 %vm2858_vm7, %v2864_v63  ;;  %10836 = vmatmul.msk.bf16.gmra.mxu3 %vm2858_vm7, %v2864_v63  ;;  %v10862_v63 = vld [vmem:[%s16777_s10 + $0x11] ss:$8 sm:$0x3] }
 0x803   :  { %v2911_v15 = vpop.f32.mrf.mxu2  ;;  %v2930_v25 = vpop.f32.mrf.mxu3 }
 0x804   :  { %v2912_v6 = vadd.f32 %v2911_v15, %v2870_v58  ;;  %v2931_v60 = vadd.f32 %v2930_v25, %v2871_v35  ;;  %v15656_v15 = vperm.slane %v10849_v13, 0  ;;  %v15658_v25 = vperm.slane %v10849_v13, 1 }
 0x806   :  { %v2940_v56 = vmax.f32 %v2912_v6, 0.0  ;;  %v2941_v27 = vmax.f32 %v2931_v60, 0.0 }
 0x808   :  { %v2948_v61 = vmin.f32 %v2940_v56, 6.0  ;;  %v2949_v41 = vmin.f32 %v2941_v27, 6.0 }
 0x80b   :  { %v2913_v8 = vpop.f32.mrf.mxu2  ;;  %v2932_v52 = vpop.f32.mrf.mxu3 }
 0x80c   :  { %v2914_v38 = vadd.f32 %v2913_v8, %v2870_v58  ;;  %v2933_v2 = vadd.f32 %v2932_v52, %v2871_v35  ;;  %v15660_v8 = vperm.slane %v10862_v63, 0  ;;  %v15662_v52 = vperm.slane %v10862_v63, 1 }
 0x80e   :  { %v2942_v48 = vmax.f32 %v2914_v38, 0.0  ;;  %v2943_v29 = vmax.f32 %v2933_v2, 0.0 }
 0x810   :  { %v2950_v47 = vmin.f32 %v2942_v48, 6.0  ;;  %v2951_v33 = vmin.f32 %v2943_v29, 6.0 }
 0x812   :  { %v2956_v16 = vpack.c.bf16 %v2950_v47, %v2948_v61  ;;  %v2957_v49 = vpack.c.bf16 %v2951_v33, %v2949_v41 }
 0x813   :  { %v2916_v57 = vpop.f32.mrf.mxu2  ;;  %v2935_v39 = vpop.f32.mrf.mxu3 }
 0x814   :  { %v2917_v14 = vadd.f32 %v2916_v57, %v2870_v58  ;;  %v2936_v36 = vadd.f32 %v2935_v39, %v2871_v35 }
 0x816   :  { %v2944_v32 = vmax.f32 %v2917_v14, 0.0  ;;  %v2945_v4 = vmax.f32 %v2936_v36, 0.0 }
 0x818   :  { %v2952_v1 = vmin.f32 %v2944_v32, 6.0  ;;  %v2953_v37 = vmin.f32 %v2945_v4, 6.0 }
 0x81b   :  { %v2918_v9 = vpop.f32.mrf.mxu2  ;;  %v2937_v5 = vpop.f32.mrf.mxu3 }
 0x81c   :  { %v2919_v46 = vadd.f32 %v2918_v9, %v2870_v58  ;;  %v2938_v53 = vadd.f32 %v2937_v5, %v2871_v35  ;;  %v13023_v5 = vld [vmem:[#allocation14 + $0x88] sm:$0xff] }
 0x81e   :  { %v2946_v3 = vmax.f32 %v2919_v46, 0.0  ;;  %v2947_v18 = vmax.f32 %v2938_v53, 0.0 }
 0x820   :  { %v2954_v44 = vmin.f32 %v2946_v3, 6.0  ;;  %v2955_v19 = vmin.f32 %v2947_v18, 6.0 }
 0x822   :  { %v15598_v34 = vpack.c.bf16 %v2954_v44, %v2952_v1  ;;  %v15600_v11 = vpack.c.bf16 %v2955_v19, %v2953_v37  ;;  %v10875_v44 = vld [vmem:[%s16777_s10 + $0x12] ss:$8 sm:$0x3] }
 0x823   :  { %v15687_v19 = vperm.slane %v10875_v44, 0  ;;  %v15689_v47 = vperm.slane %v10875_v44, 1 }
 0x824   :  { %2986 = vmatpush.bf16.msra.mxu0 %v15598_v34  ;;  %3005 = vmatpush.bf16.msra.mxu1 %v15600_v11 }
 0x825   :  { %3060 = vmatpush.bf16.msra.mxu2 %v15598_v34  ;;  %3079 = vmatpush.bf16.msra.mxu3 %v15600_v11 }
 0x828   :  { %2987 = vmatpush.bf16.msra.mxu0 %v2956_v16  ;;  %3006 = vmatpush.bf16.msra.mxu1 %v2957_v49 }
 0x829   :  { %3061 = vmatpush.bf16.msra.mxu2 %v2956_v16  ;;  %3080 = vmatpush.bf16.msra.mxu3 %v2957_v49 }
 0x82b   :  { %10845 = vmatmul.msk.bf16.vlgmr.msra.gmra.mxu0 %vm2138_vm3, %v13006_v59  ;;  %10847 = vmatmul.msk.bf16.vlgmr.msra.gmra.mxu1 %vm2138_vm3, %v13006_v59 }
 0x82c   :  { %3142 = vmatpush.bf16.msrb.mxu0 %v15598_v34  ;;  %3161 = vmatpush.bf16.msrb.mxu1 %v15600_v11 }
 0x82d   :  { %3224 = vmatpush.bf16.msrb.mxu2 %v15598_v34  ;;  %3243 = vmatpush.bf16.msrb.mxu3 %v15600_v11 }
 0x82e   :  { %10858 = vmatmul.msk.bf16.vlgmr.msra.gmra.mxu2 %vm2138_vm3, %v13008_v51  ;;  %10860 = vmatmul.msk.bf16.vlgmr.msra.gmra.mxu3 %vm2138_vm3, %v13008_v51 }
 0x830   :  { %3143 = vmatpush.bf16.msrb.mxu0 %v2956_v16  ;;  %3162 = vmatpush.bf16.msrb.mxu1 %v2957_v49 }
 0x831   :  { %3225 = vmatpush.bf16.msrb.mxu2 %v2956_v16  ;;  %3244 = vmatpush.bf16.msrb.mxu3 %v2957_v49 }
 0x834   :  { %3306 = vmatpush.bf16.msra.mxu0 %v15598_v34  ;;  %3325 = vmatpush.bf16.msra.mxu1 %v15600_v11 }
 0x835   :  { %3388 = vmatpush.bf16.msra.mxu2 %v15598_v34  ;;  %3407 = vmatpush.bf16.msra.mxu3 %v15600_v11 }
 0x838   :  { %3307 = vmatpush.bf16.msra.mxu0 %v2956_v16  ;;  %3326 = vmatpush.bf16.msra.mxu1 %v2957_v49 }
 0x839   :  { %3389 = vmatpush.bf16.msra.mxu2 %v2956_v16  ;;  %3408 = vmatpush.bf16.msra.mxu3 %v2957_v49 }
 0x83b   :  { %10846 = vmatmul.msk.bf16.gmra.mxu0 %vm2138_vm3, %v13007_v26  ;;  %10848 = vmatmul.msk.bf16.gmra.mxu1 %vm2138_vm3, %v13007_v26 }
 0x83e   :  { %10859 = vmatmul.msk.bf16.gmra.mxu2 %vm2138_vm3, %v13009_v30  ;;  %10861 = vmatmul.msk.bf16.gmra.mxu3 %vm2138_vm3, %v13009_v30 }
 0x84b   :  { %10871 = vmatmul.msk.bf16.vlgmr.msrb.gmra.mxu0 %vm2138_vm3, %v13010_v43  ;;  %10873 = vmatmul.msk.bf16.vlgmr.msrb.gmra.mxu1 %vm2138_vm3, %v13010_v43 }
 0x84c   :  { %3470 = vmatpush.bf16.msrb.mxu0 %v15598_v34  ;;  %3489 = vmatpush.bf16.msrb.mxu1 %v15600_v11 }
 0x84e   :  { %10884 = vmatmul.msk.bf16.vlgmr.msrb.gmra.mxu2 %vm2138_vm3, %v13012_v21  ;;  %10886 = vmatmul.msk.bf16.vlgmr.msrb.gmra.mxu3 %vm2138_vm3, %v13012_v21 }
 0x84f   :  { %3552 = vmatpush.bf16.msrb.mxu2 %v15598_v34  ;;  %3571 = vmatpush.bf16.msrb.mxu3 %v15600_v11 }
 0x850   :  { %3471 = vmatpush.bf16.msrb.mxu0 %v2956_v16  ;;  %3490 = vmatpush.bf16.msrb.mxu1 %v2957_v49 }
 0x853   :  { %3553 = vmatpush.bf16.msrb.mxu2 %v2956_v16  ;;  %3572 = vmatpush.bf16.msrb.mxu3 %v2957_v49 }
 0x85b   :  { %10872 = vmatmul.msk.bf16.gmra.mxu0 %vm2138_vm3, %v13011_v24  ;;  %10874 = vmatmul.msk.bf16.gmra.mxu1 %vm2138_vm3, %v13011_v24 }
 0x85e   :  { %10885 = vmatmul.msk.bf16.gmra.mxu2 %vm2138_vm3, %v13013_v0  ;;  %10887 = vmatmul.msk.bf16.gmra.mxu3 %vm2138_vm3, %v13013_v0 }
 0x86b   :  { %10897 = vmatmul.msk.bf16.vlgmr.msra.gmra.mxu0 %vm2138_vm3, %v13014_v55  ;;  %10899 = vmatmul.msk.bf16.vlgmr.msra.gmra.mxu1 %vm2138_vm3, %v13014_v55 }
 0x86c   :  { %3634 = vmatpush.bf16.msra.mxu0 %v15598_v34  ;;  %3653 = vmatpush.bf16.msra.mxu1 %v15600_v11 }
 0x86e   :  { %10910 = vmatmul.msk.bf16.vlgmr.msra.gmra.mxu2 %vm2138_vm3, %v13016_v17  ;;  %10912 = vmatmul.msk.bf16.vlgmr.msra.gmra.mxu3 %vm2138_vm3, %v13016_v17 }
 0x870   :  { %3635 = vmatpush.bf16.msra.mxu0 %v2956_v16  ;;  %3654 = vmatpush.bf16.msra.mxu1 %v2957_v49  ;;  %v10888_v49 = vld [vmem:[%s16777_s10 + $0x13] ss:$8 sm:$0x3] }
 0x871   :  { %v15698_v26 = vperm.slane %v10888_v49, 0  ;;  %v15700_v30 = vperm.slane %v10888_v49, 1 }
 0x87b   :  { %10898 = vmatmul.msk.bf16.gmra.mxu0 %vm2138_vm3, %v13015_v42  ;;  %10900 = vmatmul.msk.bf16.gmra.mxu1 %vm2138_vm3, %v13015_v42 }
 0x87e   :  { %10911 = vmatmul.msk.bf16.gmra.mxu2 %vm2138_vm3, %v13017_v10  ;;  %10913 = vmatmul.msk.bf16.gmra.mxu3 %vm2138_vm3, %v13017_v10 }
 0x88b   :  { %10923 = vmatmul.msk.bf16.vlgmr.msrb.gmra.mxu0 %vm2138_vm3, %v13018_v12  ;;  %10925 = vmatmul.msk.bf16.vlgmr.msrb.gmra.mxu1 %vm2138_vm3, %v13018_v12 }
 0x88e   :  { %10936 = vmatmul.msk.bf16.vlgmr.msrb.gmra.mxu2 %vm2138_vm3, %v13020_v62  ;;  %10938 = vmatmul.msk.bf16.vlgmr.msrb.gmra.mxu3 %vm2138_vm3, %v13020_v62 }
 0x89b   :  { %10924 = vmatmul.msk.bf16.gmra.mxu0 %vm2138_vm3, %v13019_v22  ;;  %10926 = vmatmul.msk.bf16.gmra.mxu1 %vm2138_vm3, %v13019_v22 }
 0x89e   :  { %10937 = vmatmul.msk.bf16.gmra.mxu2 %vm2138_vm3, %v13021_v45  ;;  %10939 = vmatmul.msk.bf16.gmra.mxu3 %vm2138_vm3, %v13021_v45 }
 0x8a8   :  { %v2989_v40 = vpop.f32.mrf.mxu0  ;;  %v3008_v23 = vpop.f32.mrf.mxu1 }
 0x8a9   :  { %v3025_v39 = vmul.f32 %v15656_v15, %v2989_v40  ;;  %v3026_v58 = vmul.f32 %v15658_v25, %v3008_v23 }
 0x8ab   :  { %10949 = vmatmul.msk.bf16.vlgmr.msra.gmra.mxu0 %vm2138_vm3, %v13022_v31  ;;  %10951 = vmatmul.msk.bf16.vlgmr.msra.gmra.mxu1 %vm2138_vm3, %v13022_v31 }
 0x8b0   :  { %v15668_v36 = vpop.f32.mrf.mxu0  ;;  %v15670_v38 = vpop.f32.mrf.mxu1 }
 0x8b1   :  { %v3063_v28 = vpop.f32.mrf.mxu2  ;;  %v3082_v57 = vpop.f32.mrf.mxu3 }
 0x8b2   :  { %v3099_v35 = vmul.f32 %v15660_v8, %v3063_v28  ;;  %v3100_v14 = vmul.f32 %v15662_v52, %v3082_v57 }
 0x8b4   :  { %v3107_v2 = vadd.f32 %v3099_v35, %v3025_v39  ;;  %v3108_v6 = vadd.f32 %v3100_v14, %v3026_v58 }
 0x8b8   :  { %v2994_v32 = vpop.f32.mrf.mxu0  ;;  %v3013_v4 = vpop.f32.mrf.mxu1 }
 0x8b9   :  { %v15672_v60 = vpop.f32.mrf.mxu2  ;;  %v15674_v9 = vpop.f32.mrf.mxu3  ;;  %v3029_v48 = vmul.f32 %v15656_v15, %v2994_v32  ;;  %v3030_v29 = vmul.f32 %v15658_v25, %v3013_v4 }
 0x8bb   :  { %10950 = vmatmul.msk.bf16.gmra.mxu0 %vm2138_vm3, %v13023_v5  ;;  %10952 = vmatmul.msk.bf16.gmra.mxu1 %vm2138_vm3, %v13023_v5 }
 0x8c0   :  { %v15682_v56 = vpop.f32.mrf.mxu0  ;;  %v15684_v27 = vpop.f32.mrf.mxu1 }
 0x8c1   :  { %v3068_v46 = vpop.f32.mrf.mxu2  ;;  %v3087_v53 = vpop.f32.mrf.mxu3 }
 0x8c2   :  { %v3103_v3 = vmul.f32 %v15660_v8, %v3068_v46  ;;  %v3104_v18 = vmul.f32 %v15662_v52, %v3087_v53 }
 0x8c4   :  { %v3111_v1 = vadd.f32 %v3103_v3, %v3029_v48  ;;  %v3112_v37 = vadd.f32 %v3104_v18, %v3030_v29 }
 0x8c8   :  { %v3145_v11 = vpop.f32.mrf.mxu0  ;;  %v3164_v61 = vpop.f32.mrf.mxu1 }
 0x8c9   :  { %v15691_v33 = vpop.f32.mrf.mxu2  ;;  %v15693_v34 = vpop.f32.mrf.mxu3  ;;  %v3181_v41 = vmul.f32 %v15687_v19, %v3145_v11  ;;  %v3182_v16 = vmul.f32 %v15689_v47, %v3164_v61 }
 0x8cb   :  { %v3189_v59 = vadd.f32 %v3181_v41, %v3107_v2  ;;  %v3190_v51 = vadd.f32 %v3182_v16, %v3108_v6  ;;  %v10901_v6 = vld [vmem:[%s16777_s10 + $0x14] ss:$8 sm:$0x3] }
 0x8cc   :  { %v15721_v5 = vperm.slane %v10901_v6, 0  ;;  %v15723_v32 = vperm.slane %v10901_v6, 1  ;;  %v13026_v6 = vld [vmem:[#allocation16 + $0x10] sm:$0xff] }
 0x8d0   :  { %v15704_v55 = vpop.f32.mrf.mxu0  ;;  %v15706_v17 = vpop.f32.mrf.mxu1 }
 0x8d1   :  { %v3227_v43 = vpop.f32.mrf.mxu2  ;;  %v3246_v21 = vpop.f32.mrf.mxu3 }
 0x8d2   :  { %v3263_v24 = vmul.f32 %v15698_v26, %v3227_v43  ;;  %v3264_v0 = vmul.f32 %v15700_v30, %v3246_v21 }
 0x8d4   :  { %v3271_v42 = vadd.f32 %v3263_v24, %v3189_v59  ;;  %v3272_v10 = vadd.f32 %v3264_v0, %v3190_v51  ;;  %v13031_v0 = vld [vmem:[#allocation16 + $0x38] sm:$0xff] }
 0x8d5   :  { %3805 = vmatpush.bf16.msra.mxu2 %v13031_v0  ;;  %v10927_v0 = vld [vmem:[%s16777_s10 + $0x16] ss:$8 sm:$0x3] }
 0x8d6   :  { %v15782_v20 = vperm.slane %v10927_v0, 1 }
 0x8d8   :  { %v3150_v22 = vpop.f32.mrf.mxu0  ;;  %v3169_v45 = vpop.f32.mrf.mxu1 }
 0x8d9   :  { %v15708_v12 = vpop.f32.mrf.mxu2  ;;  %v15710_v62 = vpop.f32.mrf.mxu3  ;;  %v3185_v31 = vmul.f32 %v15687_v19, %v3150_v22  ;;  %v3186_v40 = vmul.f32 %v15689_v47, %v3169_v45  ;;  %v13030_v22 = vld [vmem:[#allocation16 + $0x30] sm:$0xff] }
 0x8da   :  { %3806 = vmatpush.bf16.msra.mxu2 %v13030_v22 }
 0x8db   :  { %v3193_v23 = vadd.f32 %v3185_v31, %v3111_v1  ;;  %v3194_v13 = vadd.f32 %v3186_v40, %v3112_v37  ;;  %v13029_v40 = vld [vmem:[#allocation16 + $0x28] sm:$0xff] }
 0x8de   :  { %3807 = vmatpush.bf16.msra.mxu2 %v13029_v40 }
 0x8e0   :  { %v15716_v58 = vpop.f32.mrf.mxu0  ;;  %v15718_v35 = vpop.f32.mrf.mxu1 }
 0x8e1   :  { %v3232_v63 = vpop.f32.mrf.mxu2  ;;  %v3251_v28 = vpop.f32.mrf.mxu3 }
 0x8e2   :  { %v3267_v57 = vmul.f32 %v15698_v26, %v3232_v63  ;;  %v3268_v39 = vmul.f32 %v15700_v30, %v3251_v28  ;;  %v13028_v63 = vld [vmem:[#allocation16 + $0x20] sm:$0xff]  ;;  %v13027_v28 = vld [vmem:[#allocation16 + $0x18] sm:$0xff] }
 0x8e3   :  { %3808 = vmatpush.bf16.msra.mxu2 %v13028_v63  ;;  %v3101_v63 = vmul.f32 %v15660_v8, %v15672_v60  ;;  %v3183_v60 = vmul.f32 %v15687_v19, %v15704_v55  ;;  %v3032_v55 = vmul.f32 %v15658_v25, %v15684_v27 }
 0x8e4   :  { %v3275_v14 = vadd.f32 %v3267_v57, %v3193_v23  ;;  %v3276_v2 = vadd.f32 %v3268_v39, %v3194_v13 }
 0x8e7   :  { %3809 = vmatpush.bf16.msra.mxu2 %v13027_v28  ;;  %v3102_v28 = vmul.f32 %v15662_v52, %v15674_v9  ;;  %v3184_v9 = vmul.f32 %v15689_v47, %v15706_v17  ;;  %v3265_v17 = vmul.f32 %v15698_v26, %v15708_v12 }
 0x8e8   :  { %v3309_v4 = vpop.f32.mrf.mxu0  ;;  %v3328_v46 = vpop.f32.mrf.mxu1 }
 0x8e9   :  { %v15725_v53 = vpop.f32.mrf.mxu2  ;;  %v15727_v48 = vpop.f32.mrf.mxu3  ;;  %v3345_v29 = vmul.f32 %v15721_v5, %v3309_v4  ;;  %v3346_v3 = vmul.f32 %v15723_v32, %v3328_v46  ;;  %v13025_v4 = vld [vmem:[#allocation16 + $0x8] sm:$0xff] }
 0x8eb   :  { %v15731_v18 = vadd.f32 %v3345_v29, %v3271_v42  ;;  %v15733_v1 = vadd.f32 %v3346_v3, %v3272_v10  ;;  %3810 = vmatpush.bf16.msra.mxu2 %v13026_v6  ;;  %v10914_v3 = vld [vmem:[%s16777_s10 + $0x15] ss:$8 sm:$0x3]  ;;  %v10940_v6 = vld [vmem:[%s16777_s10 + $0x17] ss:$8 sm:$0x3] }
 0x8ec   :  { %v15771_v22 = vperm.slane %v10914_v3, 0  ;;  %v15773_v40 = vperm.slane %v10914_v3, 1  ;;  %v3027_v3 = vmul.f32 %v15656_v15, %v15668_v36  ;;  %v15798_v54 = vperm.slane %v10940_v6, 0 }
 0x8ef   :  { %3811 = vmatpush.bf16.msra.mxu2 %v13025_v4  ;;  %v15780_v4 = vperm.slane %v10927_v0, 0 }
 0x8f0   :  { %v15735_v37 = vpop.f32.mrf.mxu0  ;;  %v15737_v44 = vpop.f32.mrf.mxu1 }
 0x8f1   :  { %v3391_v11 = vpop.f32.mrf.mxu2  ;;  %v3410_v61 = vpop.f32.mrf.mxu3 }
 0x8f2   :  { %v3427_v50 = vmul.f32 %v15771_v22, %v3391_v11  ;;  %v3428_v0 = vmul.f32 %v15773_v40, %v3410_v61  ;;  %v3266_v11 = vmul.f32 %v15700_v30, %v15710_v62  ;;  %v3105_v62 = vmul.f32 %v15660_v8, %v15691_v33  ;;  %v3689_v33 = vld [vmem:[#allocation2 + $0x8] sm:$0x3] }
 0x8f8   :  { %v3314_v41 = vpop.f32.mrf.mxu0  ;;  %v3333_v16 = vpop.f32.mrf.mxu1 }
 0x8f9   :  { %v3349_v49 = vmul.f32 %v15721_v5, %v3314_v41  ;;  %v3350_v59 = vmul.f32 %v15723_v32, %v3333_v16  ;;  %v15745_v21 = vpop.f32.mrf.mxu2  ;;  %v15747_v24 = vpop.f32.mrf.mxu3 }
 0x8fa   :  { %v3430_v8 = vmul.f32 %v15773_v40, %v15747_v24 }
 0x8fb   :  { %v15741_v51 = vadd.f32 %v3349_v49, %v3275_v14  ;;  %v15743_v43 = vadd.f32 %v3350_v59, %v3276_v2  ;;  %v13024_v49 = vld [vmem:[#allocation16] sm:$0xff] }
 0x8fc   :  { %v13032_v59 = vld [vmem:[#allocation16 + $0x40] sm:$0xff]  ;;  %3812 = vmatpush.bf16.msra.mxu2 %v13024_v49 }
 0x8fd   :  { %16790 = vst [vmem:[#allocation96_spill] sm:$0xff] %v15743_v43  ;;  %3831 = vmatpush.bf16.msra.mxu3 %v13032_v59  ;;  %v3028_v59 = vmul.f32 %v15658_v25, %v15670_v38  ;;  %v3031_v38 = vmul.f32 %v15656_v15, %v15682_v56  ;;  %v3435_v25 = vadd.f32 %v3427_v50, %v15731_v18 }
 0x8fe   :  { %v3436_v56 = vadd.f32 %v3428_v0, %v15733_v1 }
 0x8ff   :  { %v3110_v36 = vadd.f32 %v3102_v28, %v3028_v59 }
 0x900   :  { %v15749_v42 = vpop.f32.mrf.mxu0  ;;  %v15751_v10 = vpop.f32.mrf.mxu1 }
 0x901   :  { %v15753_v45 = vpop.f32.mrf.mxu2  ;;  %v15755_v31 = vpop.f32.mrf.mxu3  ;;  %v3192_v43 = vadd.f32 %v3184_v9, %v3110_v36  ;;  %v15843_v36 = vperm.slane %v3689_v33, 0 }
 0x903   :  { %v3274_v50 = vadd.f32 %v3266_v11, %v3192_v43  ;;  %v15845_v11 = vperm.slane %v3689_v33, 1 }
 0x908   :  { %v3473_v23 = vpop.f32.mrf.mxu0  ;;  %v3492_v13 = vpop.f32.mrf.mxu1 }
 0x909   :  { %v15761_v14 = vpop.f32.mrf.mxu2  ;;  %v15763_v2 = vpop.f32.mrf.mxu3  ;;  %v3509_v61 = vmul.f32 %v15780_v4, %v3473_v23  ;;  %v3106_v23 = vmul.f32 %v15662_v52, %v15693_v34 }
 0x90a   :  { %16791 = vst [vmem:[#allocation97_spill] sm:$0xff] %v15761_v14 }
 0x90b   :  { %16792 = vst [vmem:[#allocation98_spill] sm:$0xff] %v15763_v2  ;;  %v3109_v2 = vadd.f32 %v3101_v63, %v3027_v3  ;;  %v3517_v18 = vadd.f32 %v3509_v61, %v3435_v25  ;;  %v3113_v61 = vadd.f32 %v3105_v62, %v3031_v38 }
 0x90d   :  { %v3191_v14 = vadd.f32 %v3183_v60, %v3109_v2  ;;  %v3348_v2 = vmul.f32 %v15723_v32, %v15737_v44  ;;  %v3188_v44 = vmul.f32 %v15689_v47, %v15718_v35 }
 0x90f   :  { %v3356_v9 = vadd.f32 %v3348_v2, %v3274_v50 }
 0x910   :  { %v15757_v57 = vpop.f32.mrf.mxu0  ;;  %v15759_v39 = vpop.f32.mrf.mxu1 }
 0x911   :  { %v3555_v41 = vpop.f32.mrf.mxu2  ;;  %v3574_v16 = vpop.f32.mrf.mxu3  ;;  %v3512_v24 = vmul.f32 %v15782_v20, %v15759_v39  ;;  %v3270_v39 = vmul.f32 %v15700_v30, %v15727_v48  ;;  %v3431_v30 = vmul.f32 %v15771_v22, %v15753_v45  ;;  %v3352_v45 = vmul.f32 %v15723_v32, %v15751_v10 }
 0x912   :  { %v3591_v27 = vmul.f32 %v15798_v54, %v3555_v41 }
 0x914   :  { %v3599_v43 = vadd.f32 %v3591_v27, %v3517_v18 }
 0x918   :  { %v15765_v46 = vpop.f32.mrf.mxu0  ;;  %v15767_v29 = vpop.f32.mrf.mxu1 }
 0x919   :  { %v3557_v63 = vpop.f32.mrf.mxu2  ;;  %v3576_v28 = vpop.f32.mrf.mxu3 }
 0x91a   :  { %v3593_v47 = vmul.f32 %v15798_v54, %v3557_v63 }
 0x920   :  { %v15784_v7 = vpop.f32.mrf.mxu0  ;;  %v15786_v49 = vpop.f32.mrf.mxu1 }
 0x921   :  { %16793 = vst [vmem:[#allocation99_spill] sm:$0xff] %v15784_v7  ;;  %v15800_v7 = vperm.slane %v10940_v6, 1  ;;  %v3510_v6 = vmul.f32 %v15782_v20, %v3492_v13  ;;  %v3347_v13 = vmul.f32 %v15721_v5, %v15735_v37  ;;  %v3187_v37 = vmul.f32 %v15687_v19, %v15716_v58  ;;  %v3560_v27 = vpop.f32.mrf.mxu2 }
 0x922   :  { %16794 = vst [vmem:[#allocation100_spill] sm:$0xff] %v15786_v49  ;;  %v10953_v49 = vld [vmem:[%s16777_s10 + $0x148] ss:$8 sm:$0x3]  ;;  %v3438_v58 = vadd.f32 %v3430_v8, %v3356_v9 }
 0x923   :  { %v15813_v3 = vperm.slane %v10953_v49, 0  ;;  %v15815_v15 = vperm.slane %v10953_v49, 1  ;;  %v3592_v12 = vmul.f32 %v15800_v7, %v3574_v16  ;;  %v3273_v49 = vadd.f32 %v3265_v17, %v3191_v14 }
 0x924   :  { %v3518_v1 = vadd.f32 %v3510_v6, %v3436_v56  ;;  %v3429_v16 = vmul.f32 %v15771_v22, %v15745_v21  ;;  %v3511_v21 = vmul.f32 %v15780_v4, %v15757_v57  ;;  %v3594_v35 = vmul.f32 %v15800_v7, %v3576_v28 }
 0x925   :  { %v3355_v60 = vadd.f32 %v3347_v13, %v3273_v49  ;;  %v3114_v6 = vadd.f32 %v3106_v23, %v3032_v55  ;;  %v3269_v57 = vmul.f32 %v15698_v26, %v15725_v53  ;;  %v3520_v56 = vadd.f32 %v3512_v24, %v3438_v58 }
 0x926   :  { %v3600_v14 = vadd.f32 %v3592_v12, %v3518_v1  ;;  %v3579_v12 = vpop.f32.mrf.mxu3  ;;  %v3195_v13 = vadd.f32 %v3187_v37, %v3113_v61  ;;  %v3432_v53 = vmul.f32 %v15773_v40, %v15755_v31  ;;  %v16795_v37 = vld [vmem:[#allocation96_spill] sm:$0xff] }
 0x927   :  { %v3437_v19 = vadd.f32 %v3429_v16, %v3355_v60  ;;  %v3196_v2 = vadd.f32 %v3188_v44, %v3114_v6  ;;  %v3602_v55 = vadd.f32 %v3594_v35, %v3520_v56  ;;  %v3595_v60 = vmul.f32 %v15798_v54, %v3560_v27 }
 0x928   :  { %v3637_v59 = vpop.f32.mrf.mxu0  ;;  %v3656_v41 = vpop.f32.mrf.mxu1  ;;  %v3277_v48 = vadd.f32 %v3269_v57, %v3195_v13  ;;  %v3440_v44 = vadd.f32 %v3432_v53, %v16795_v37  ;;  %v16798_v6 = vld [vmem:[#allocation99_spill] sm:$0xff] }
 0x929   :  { %v3673_v52 = vmul.f32 %v15813_v3, %v3637_v59  ;;  %v3674_v34 = vmul.f32 %v15815_v15, %v3656_v41  ;;  %v3519_v25 = vadd.f32 %v3511_v21, %v3437_v19  ;;  %v3278_v23 = vadd.f32 %v3270_v39, %v3196_v2  ;;  %v16799_v39 = vld [vmem:[#allocation100_spill] sm:$0xff] }
 0x92a   :  { %v3513_v59 = vmul.f32 %v15780_v4, %v15765_v46  ;;  %v3514_v41 = vmul.f32 %v15782_v20, %v15767_v29  ;;  %v16796_v46 = vld [vmem:[#allocation97_spill] sm:$0xff]  ;;  %v16797_v29 = vld [vmem:[#allocation98_spill] sm:$0xff]  ;;  %v3515_v57 = vmul.f32 %v15780_v4, %v16798_v6 }
 0x92b   :  { %v3681_v0 = vadd.f32 %v3673_v52, %v3599_v43  ;;  %v3682_v17 = vadd.f32 %v3674_v34, %v3600_v14  ;;  %v3601_v38 = vadd.f32 %v3593_v47, %v3519_v25  ;;  %v3351_v52 = vmul.f32 %v15721_v5, %v15749_v42 }
 0x92c   :  { %v3439_v34 = vadd.f32 %v3431_v30, %v15741_v51  ;;  %v3433_v43 = vmul.f32 %v15771_v22, %v16796_v46  ;;  %v3434_v14 = vmul.f32 %v15773_v40, %v16797_v29  ;;  %v3596_v5 = vmul.f32 %v15800_v7, %v3579_v12 }
 0x92d   :  { %v3695_v49 = vadd.f32 %v15843_v36, %v3681_v0  ;;  %v3696_v63 = vadd.f32 %v15845_v11, %v3682_v17  ;;  %v3522_v9 = vadd.f32 %v3514_v41, %v3440_v44  ;;  %v3562_v17 = vpop.f32.mrf.mxu2  ;;  %v3359_v35 = vadd.f32 %v3351_v52, %v3277_v48 }
 0x92e   :  { %v3521_v10 = vadd.f32 %v3513_v59, %v3439_v34  ;;  %v3581_v19 = vpop.f32.mrf.mxu3  ;;  %v3360_v61 = vadd.f32 %v3352_v45, %v3278_v23  ;;  %v3516_v25 = vmul.f32 %v15782_v20, %v16799_v39 }
 0x92f   :  { %v3703_v16 = vmax.f32 %v3695_v49, 0.0  ;;  %v3704_v8 = vmax.f32 %v3696_v63, 0.0  ;;  %v3604_v27 = vadd.f32 %v3596_v5, %v3522_v9  ;;  %v3441_v2 = vadd.f32 %v3433_v43, %v3359_v35  ;;  %v13033_v5 = vld [vmem:[#allocation17 + $0x4] sm:$0xf]  ;;  %v16801_v35 = vld [vmem:[#allocation93_spill] sm:$0xff] }
 0x930   :  { %v3639_v50 = vpop.f32.mrf.mxu0  ;;  %v3658_v28 = vpop.f32.mrf.mxu1  ;;  %v3603_v56 = vadd.f32 %v3595_v60, %v3521_v10  ;;  %v3442_v49 = vadd.f32 %v3434_v14, %v3360_v61  ;;  %v3597_v63 = vmul.f32 %v15798_v54, %v3562_v17  ;;  %v10994_v14 = vld [vmem:[#allocation17] sm:$0xf]  ;;  %v13034_v60 = vld [vmem:[#allocation17 + $0x4] sm:$0xf0] }
 0x931   :  { %v3675_v62 = vmul.f32 %v15813_v3, %v3639_v50  ;;  %v3676_v26 = vmul.f32 %v15815_v15, %v3658_v28  ;;  %v3711_v21 = vmin.f32 %v3703_v16, 6.0  ;;  %v3712_v24 = vmin.f32 %v3704_v8, 6.0 }
 0x932   :  { %v3598_v50 = vmul.f32 %v15800_v7, %v3581_v19  ;;  %v3524_v4 = vadd.f32 %v3516_v25, %v3442_v49  ;;  %v16802_v49 = vld [vmem:[#allocation94_spill] sm:$0xff] }
 0x933   :  { %v3683_v18 = vadd.f32 %v3675_v62, %v3601_v38  ;;  %v3684_v1 = vadd.f32 %v3676_v26, %v3602_v55  ;;  %v3523_v55 = vadd.f32 %v3515_v57, %v3441_v2 }
 0x934   :  { %v3606_v26 = vadd.f32 %v3598_v50, %v3524_v4  ;;  %v16803_v50 = vld [vmem:[#allocation95_spill] sm:$0xff] }
 0x935   :  { %v3697_v31 = vadd.f32 %v15843_v36, %v3683_v18  ;;  %v3698_v33 = vadd.f32 %v15845_v11, %v3684_v1  ;;  %v3605_v62 = vadd.f32 %v3597_v63, %v3523_v55 }
 0x937   :  { %v3705_v42 = vmax.f32 %v3697_v31, 0.0  ;;  %v3706_v32 = vmax.f32 %v3698_v33, 0.0 }
 0x938   :  { %v3642_v0 = vpop.f32.mrf.mxu0  ;;  %v3661_v51 = vpop.f32.mrf.mxu1 }
 0x939   :  { %v3713_v58 = vmin.f32 %v3705_v42, 6.0  ;;  %v3714_v47 = vmin.f32 %v3706_v32, 6.0  ;;  %v3677_v22 = vmul.f32 %v15813_v3, %v3642_v0  ;;  %v3678_v40 = vmul.f32 %v15815_v15, %v3661_v51  ;;  %v10996_v32 = vld [vmem:[#allocation17 + $0x8] sm:$0xf0] }
 0x93a   :  { %v10995_v42 = vor.u32 %v13034_v60, %v10994_v14  ;;  %v10999_v10 = vor.u32 %v13033_v5, %v10996_v32 }
 0x93b   :  { %v3719_v12 = vpack.c.bf16 %v3713_v58, %v3711_v21  ;;  %v3720_v13 = vpack.c.bf16 %v3714_v47, %v3712_v24  ;;  %v3685_v28 = vadd.f32 %v3677_v22, %v3603_v56  ;;  %v3686_v38 = vadd.f32 %v3678_v40, %v3604_v27  ;;  %v13558_v24 = vld [vmem:[#allocation2 + $0xa] ss:$0 sm:$0xff]  ;;  %v16800_v22 = vld [vmem:[#allocation92_spill] sm:$0xff] }
 0x93d   :  { %3813 = vmatmul.bf16.vlgmr.msra.gmra.mxu2 %v3719_v12  ;;  %10990 = vmatmul.msk.bf16.vlgmr.msra.gmra.mxu3 %vm2212_vm4, %v3720_v13  ;;  %v3699_v53 = vadd.f32 %v15843_v36, %v3685_v28  ;;  %v3700_v48 = vadd.f32 %v15845_v11, %v3686_v38 }
 0x93f   :  { %v3707_v1 = vmax.f32 %v3699_v53, 0.0  ;;  %v3708_v59 = vmax.f32 %v3700_v48, 0.0 }
 0x940   :  { %v3644_v20 = vpop.f32.mrf.mxu0  ;;  %v3663_v30 = vpop.f32.mrf.mxu1 }
 0x941   :  { %v3679_v23 = vmul.f32 %v15813_v3, %v3644_v20  ;;  %v3680_v54 = vmul.f32 %v15815_v15, %v3663_v30  ;;  %v3715_v45 = vmin.f32 %v3707_v1, 6.0  ;;  %v3716_v31 = vmin.f32 %v3708_v59, 6.0  ;;  %v3851_v3 = vld [vmem:[#allocation17 + $0x10] sm:$0xff] }
 0x942   :  { %v3865_v15 = vunpack.c.l.b16 %v3851_v3  ;;  %v3866_v46 = vunpack.c.h.b16 %v3851_v3  ;;  %v3852_v20 = vld [vmem:[#allocation2 + $0xb] sm:$0x3] }
 0x943   :  { %v3687_v7 = vadd.f32 %v3679_v23, %v3605_v62  ;;  %v3688_v18 = vadd.f32 %v3680_v54, %v3606_v26  ;;  %v3854_v48 = vperm.slane %v3852_v20, 0  ;;  %v3855_v23 = vperm.slane %v3852_v20, 1 }
 0x944   :  { %v3869_v43 = vpack.c.b16 %v3865_v15, %v3865_v15  ;;  %v3870_v29 = vpack.c.b16 %v3866_v46, %v3866_v46 }
 0x945   :  { %v3701_v41 = vadd.f32 %v15843_v36, %v3687_v7  ;;  %v3702_v16 = vadd.f32 %v15845_v11, %v3688_v18 }
 0x946   :  { %v3880_v36 = vsel %vm2895_vm6, %v3869_v43, 0  ;;  %v3883_v11 = vsel %vm2895_vm6, %v3870_v29, 0 }
 0x947   :  { %v3709_v8 = vmax.f32 %v3701_v41, 0.0  ;;  %v3710_v52 = vmax.f32 %v3702_v16, 0.0  ;;  %3891 = vmatpush.bf16.msrb.mxu0 %v3880_v36  ;;  %3910 = vmatpush.bf16.msrb.mxu1 %v3883_v11 }
 0x949   :  { %v3718_v33 = vmin.f32 %v3710_v52, 6.0  ;;  %v3717_v34 = vmin.f32 %v3709_v8, 6.0 }
 0x94b   :  { %v3721_v37 = vpack.c.bf16 %v3717_v34, %v3715_v45  ;;  %v3722_v44 = vpack.c.bf16 %v3718_v33, %v3716_v31  ;;  %3892 = vmatpush.bf16.msrb.mxu0 %v10995_v42  ;;  %3911 = vmatpush.bf16.msrb.mxu1 %v10999_v10 }
 0x94d   :  { %3818 = vmatmul.bf16.gmra.mxu2 %v3721_v37  ;;  %10991 = vmatmul.msk.bf16.gmra.mxu3 %vm2212_vm4, %v3722_v44 }
 0x9c0   :  { %v3814_v9 = vpop.f32.mrf.mxu2  ;;  %v3833_v21 = vpop.f32.mrf.mxu3 }
 0x9c1   :  { %v3815_v0 = vadd.f32 %v13558_v24, %v3814_v9 }
 0x9c3   :  { %v3834_v19 = vadd.f32 %v3833_v21, %v3815_v0  ;;  %v3983_v0 = vld [vmem:[#allocation19 + $0x4] sm:$0xf] }
 0x9c5   :  { %v3843_v40 = vadd.f32 %v3834_v19, %v16800_v22  ;;  %v4151_v19 = vld [vmem:[#allocation19 + $0x14] sm:$0xf]  ;;  %v4193_v22 = vld [vmem:[#allocation19 + $0x18] sm:$0xf] }
 0x9c8   :  { %v3816_v51 = vpop.f32.mrf.mxu2  ;;  %v3835_v17 = vpop.f32.mrf.mxu3 }
 0x9c9   :  { %v3817_v58 = vadd.f32 %v13558_v24, %v3816_v51  ;;  %v4067_v51 = vld [vmem:[#allocation19 + $0xc] sm:$0xf] }
 0x9cb   :  { %v3836_v47 = vadd.f32 %v3835_v17, %v3817_v58  ;;  %v4025_v17 = vld [vmem:[#allocation19 + $0x8] sm:$0xf]  ;;  %v4109_v58 = vld [vmem:[#allocation19 + $0x10] sm:$0xf] }
 0x9cd   :  { %v3844_v61 = vadd.f32 %v3836_v47, %v16801_v35  ;;  %v4235_v47 = vld [vmem:[#allocation19 + $0x1c] sm:$0xf] }
 0x9cf   :  { %v3847_v6 = vpack.c.bf16 %v3844_v61, %v3843_v40  ;;  %v4277_v40 = vld [vmem:[#allocation19 + $0x20] sm:$0xf] }
 0x9d0   :  { %v3819_v57 = vpop.f32.mrf.mxu2  ;;  %v3838_v39 = vpop.f32.mrf.mxu3 }
 0x9d1   :  { %11000 = vmatmul.msk.bf16.vlgmr.msrb.gmra.mxu0 %vm2858_vm7, %v3847_v6  ;;  %11002 = vmatmul.msk.bf16.vlgmr.msrb.gmra.mxu1 %vm2858_vm7, %v3847_v6  ;;  %v3820_v25 = vadd.f32 %v13558_v24, %v3819_v57 }
 0x9d3   :  { %v3839_v27 = vadd.f32 %v3838_v39, %v3820_v25 }
 0x9d5   :  { %v3845_v63 = vadd.f32 %v3839_v27, %v16802_v49 }
 0x9d8   :  { %v3821_v56 = vpop.f32.mrf.mxu2  ;;  %v3840_v13 = vpop.f32.mrf.mxu3 }
 0x9d9   :  { %v3822_v12 = vadd.f32 %v13558_v24, %v3821_v56  ;;  %v3943_v24 = vld [vmem:[#allocation19] sm:$0xf] }
 0x9db   :  { %v3841_v2 = vadd.f32 %v3840_v13, %v3822_v12 }
 0x9dd   :  { %v3846_v28 = vadd.f32 %v3841_v2, %v16803_v50  ;;  %v13042_v2 = vld [vmem:[#allocation20 + $0x38] sm:$0xff]  ;;  %v13041_v50 = vld [vmem:[#allocation20 + $0x30] sm:$0xff] }
 0x9df   :  { %v3848_v38 = vpack.c.bf16 %v3846_v28, %v3845_v63 }
 0x9e1   :  { %11001 = vmatmul.msk.bf16.gmra.mxu0 %vm2858_vm7, %v3848_v38  ;;  %11003 = vmatmul.msk.bf16.gmra.mxu1 %vm2858_vm7, %v3848_v38 }
 0xa4e   :  { %v3894_v55 = vpop.f32.mrf.mxu0  ;;  %v3913_v4 = vpop.f32.mrf.mxu1 }
 0xa4f   :  { %v3895_v59 = vadd.f32 %v3894_v55, %v3854_v48  ;;  %v3914_v41 = vadd.f32 %v3913_v4, %v3855_v23  ;;  %v13040_v55 = vld [vmem:[#allocation20 + $0x28] sm:$0xff] }
 0xa51   :  { %v3923_v15 = vmax.f32 %v3895_v59, 0.0  ;;  %v3924_v46 = vmax.f32 %v3914_v41, 0.0  ;;  %v11012_v41 = vld [vmem:[%s16777_s10 + $0x22] ss:$8 sm:$0x3] }
 0xa53   :  { %v3931_v32 = vmin.f32 %v3923_v15, 6.0  ;;  %v3932_v10 = vmin.f32 %v3924_v46, 6.0 }
 0xa56   :  { %v3896_v62 = vpop.f32.mrf.mxu0  ;;  %v3915_v26 = vpop.f32.mrf.mxu1 }
 0xa57   :  { %v3897_v18 = vadd.f32 %v3896_v62, %v3854_v48  ;;  %v3916_v1 = vadd.f32 %v3915_v26, %v3855_v23  ;;  %v13039_v26 = vld [vmem:[#allocation20 + $0x20] sm:$0xff] }
 0xa59   :  { %v3925_v34 = vmax.f32 %v3897_v18, 0.0  ;;  %v3926_v37 = vmax.f32 %v3916_v1, 0.0  ;;  %v11006_v18 = vld [vmem:[%s16777_s10 + $0x20] ss:$8 sm:$0x3] }
 0xa5a   :  { %v11009_v1 = vld [vmem:[%s16777_s10 + $0x21] ss:$8 sm:$0x3] }
 0xa5b   :  { %v3933_v14 = vmin.f32 %v3925_v34, 6.0  ;;  %v3934_v60 = vmin.f32 %v3926_v37, 6.0  ;;  %v4058_v34 = vperm.slane %v11012_v41, 0  ;;  %v3977_v37 = vperm.slane %v11006_v18, 1 }
 0xa5d   :  { %v3939_v9 = vpack.c.bf16 %v3933_v14, %v3931_v32  ;;  %v3940_v21 = vpack.c.bf16 %v3934_v60, %v3932_v10  ;;  %v13043_v14 = vld [vmem:[#allocation20 + $0x40] sm:$0xff] }
 0xa5e   :  { %v3899_v30 = vpop.f32.mrf.mxu0  ;;  %v3918_v53 = vpop.f32.mrf.mxu1 }
 0xa5f   :  { %v3900_v54 = vadd.f32 %v3899_v30, %v3854_v48  ;;  %v3919_v7 = vadd.f32 %v3918_v53, %v3855_v23  ;;  %v13038_v53 = vld [vmem:[#allocation20 + $0x18] sm:$0xff] }
 0xa61   :  { %v3927_v52 = vmax.f32 %v3900_v54, 0.0  ;;  %v3928_v45 = vmax.f32 %v3919_v7, 0.0  ;;  %v13037_v54 = vld [vmem:[#allocation20 + $0x10] sm:$0xff] }
 0xa63   :  { %v3935_v43 = vmin.f32 %v3927_v52, 6.0  ;;  %v3936_v29 = vmin.f32 %v3928_v45, 6.0  ;;  %v4016_v52 = vperm.slane %v11009_v1, 0  ;;  %v4017_v45 = vperm.slane %v11009_v1, 1 }
 0xa66   :  { %v3901_v16 = vpop.f32.mrf.mxu0  ;;  %v3920_v8 = vpop.f32.mrf.mxu1 }
 0xa67   :  { %v3902_v31 = vadd.f32 %v3901_v16, %v3854_v48  ;;  %v3921_v33 = vadd.f32 %v3920_v8, %v3855_v23  ;;  %v13036_v16 = vld [vmem:[#allocation20 + $0x8] sm:$0xff]  ;;  %v3976_v8 = vperm.slane %v11006_v18, 0 }
 0xa69   :  { %v3929_v44 = vmax.f32 %v3902_v31, 0.0  ;;  %v3930_v3 = vmax.f32 %v3921_v33, 0.0 }
 0xa6b   :  { %v3937_v36 = vmin.f32 %v3929_v44, 6.0  ;;  %v3938_v11 = vmin.f32 %v3930_v3, 6.0  ;;  %v11015_v44 = vld [vmem:[%s16777_s10 + $0x23] ss:$8 sm:$0x3]  ;;  %v13035_v3 = vld [vmem:[#allocation20] sm:$0xff] }
 0xa6c   :  { %v4101_v32 = vperm.slane %v11015_v44, 1 }
 0xa6d   :  { %v3941_v5 = vpack.c.bf16 %v3937_v36, %v3935_v43  ;;  %v3942_v42 = vpack.c.bf16 %v3938_v11, %v3936_v29  ;;  %v4059_v36 = vperm.slane %v11012_v41, 1  ;;  %v11018_v11 = vld [vmem:[%s16777_s10 + $0x24] ss:$8 sm:$0x3]  ;;  %v4318_v41 = vld [vmem:[#allocation2 + $0xd] sm:$0x3] }
 0xa6f   :  { %3953 = vmatpush.bf16.msrb.mxu2 %v3941_v5  ;;  %3966 = vmatpush.bf16.msrb.mxu3 %v3942_v42 }
 0xa70   :  { %3993 = vmatpush.bf16.msra.mxu0 %v3941_v5  ;;  %4077 = vmatpush.bf16.msra.mxu1 %v3941_v5 }
 0xa73   :  { %3954 = vmatpush.bf16.msrb.mxu2 %v3939_v9  ;;  %3967 = vmatpush.bf16.msrb.mxu3 %v3940_v21 }
 0xa74   :  { %3994 = vmatpush.bf16.msra.mxu0 %v3939_v9  ;;  %4078 = vmatpush.bf16.msra.mxu1 %v3939_v9 }
 0xa76   :  { %11004 = vmatmul.msk.bf16.vlgmr.msrb.gmra.mxu2 %vm2138_vm3, %v3943_v24  ;;  %11005 = vmatmul.msk.bf16.vlgmr.msrb.gmra.mxu3 %vm2138_vm3, %v3943_v24 }
 0xa77   :  { %4006 = vmatpush.bf16.msra.mxu2 %v3942_v42  ;;  %4035 = vmatpush.bf16.msra.mxu3 %v3941_v5 }
 0xa78   :  { %4048 = vmatpush.bf16.msrb.mxu0 %v3942_v42  ;;  %4161 = vmatpush.bf16.msrb.mxu1 %v3941_v5 }
 0xa79   :  { %11007 = vmatmul.msk.bf16.vlgmr.msra.gmra.mxu0 %vm2138_vm3, %v3983_v0  ;;  %11013 = vmatmul.msk.bf16.vlgmr.msra.gmra.mxu1 %vm2138_vm3, %v4067_v51 }
 0xa7b   :  { %4007 = vmatpush.bf16.msra.mxu2 %v3940_v21  ;;  %4036 = vmatpush.bf16.msra.mxu3 %v3939_v9 }
 0xa7c   :  { %4049 = vmatpush.bf16.msrb.mxu0 %v3940_v21  ;;  %4162 = vmatpush.bf16.msrb.mxu1 %v3939_v9 }
 0xa7f   :  { %4090 = vmatpush.bf16.msrb.mxu2 %v3942_v42  ;;  %4119 = vmatpush.bf16.msrb.mxu3 %v3941_v5 }
 0xa80   :  { %4132 = vmatpush.bf16.msra.mxu0 %v3942_v42  ;;  %4245 = vmatpush.bf16.msra.mxu1 %v3941_v5 }
 0xa83   :  { %4091 = vmatpush.bf16.msrb.mxu2 %v3940_v21  ;;  %4120 = vmatpush.bf16.msrb.mxu3 %v3939_v9 }
 0xa84   :  { %4133 = vmatpush.bf16.msra.mxu0 %v3940_v21  ;;  %4246 = vmatpush.bf16.msra.mxu1 %v3939_v9 }
 0xa86   :  { %11008 = vmatmul.msk.bf16.vlgmr.msra.gmra.mxu2 %vm2138_vm3, %v3983_v0  ;;  %11010 = vmatmul.msk.bf16.vlgmr.msra.gmra.mxu3 %vm2138_vm3, %v4025_v17 }
 0xa87   :  { %4174 = vmatpush.bf16.msra.mxu2 %v3942_v42  ;;  %4203 = vmatpush.bf16.msra.mxu3 %v3941_v5 }
 0xa89   :  { %11011 = vmatmul.msk.bf16.vlgmr.msrb.gmra.mxu0 %vm2138_vm3, %v4025_v17  ;;  %11019 = vmatmul.msk.bf16.vlgmr.msrb.gmra.mxu1 %vm2138_vm3, %v4151_v19 }
 0xa8a   :  { %4216 = vmatpush.bf16.msrb.mxu0 %v3942_v42  ;;  %4411 = vmatpush.bf16.msrb.mxu1 %v13042_v2  ;;  %v11027_v2 = vld [vmem:[%s16777_s10 + $0x27] ss:$8 sm:$0x3] }
 0xa8b   :  { %4175 = vmatpush.bf16.msra.mxu2 %v3940_v21  ;;  %4204 = vmatpush.bf16.msra.mxu3 %v3939_v9 }
 0xa8e   :  { %4217 = vmatpush.bf16.msrb.mxu0 %v3940_v21  ;;  %4412 = vmatpush.bf16.msrb.mxu1 %v13041_v50 }
 0xa92   :  { %4413 = vmatpush.bf16.msrb.mxu1 %v13040_v55 }
 0xa96   :  { %11014 = vmatmul.msk.bf16.vlgmr.msrb.gmra.mxu2 %vm2138_vm3, %v4067_v51  ;;  %11016 = vmatmul.msk.bf16.vlgmr.msrb.gmra.mxu3 %vm2138_vm3, %v4109_v58  ;;  %v11021_v51 = vld [vmem:[%s16777_s10 + $0x25] ss:$8 sm:$0x3] }
 0xa97   :  { %4258 = vmatpush.bf16.msrb.mxu2 %v3942_v42  ;;  %4287 = vmatpush.bf16.msrb.mxu3 %v3941_v5  ;;  %v4100_v5 = vperm.slane %v11015_v44, 0 }
 0xa98   :  { %4414 = vmatpush.bf16.msrb.mxu1 %v13039_v26 }
 0xa99   :  { %11017 = vmatmul.msk.bf16.vlgmr.msra.gmra.mxu0 %vm2138_vm3, %v4109_v58  ;;  %11025 = vmatmul.msk.bf16.vlgmr.msra.gmra.mxu1 %vm2138_vm3, %v4235_v47 }
 0xa9a   :  { %4300 = vmatpush.bf16.msra.mxu0 %v3942_v42 }
 0xa9b   :  { %4259 = vmatpush.bf16.msrb.mxu2 %v3940_v21  ;;  %4288 = vmatpush.bf16.msrb.mxu3 %v3939_v9  ;;  %v4142_v9 = vperm.slane %v11018_v11, 0 }
 0xa9c   :  { %4415 = vmatpush.bf16.msrb.mxu1 %v13038_v53  ;;  %v11030_v53 = vld [vmem:[%s16777_s10 + $0x158] ss:$8 sm:$0x3] }
 0xa9e   :  { %4301 = vmatpush.bf16.msra.mxu0 %v3940_v21 }
 0xaa0   :  { %4416 = vmatpush.bf16.msrb.mxu1 %v13037_v54 }
 0xaa4   :  { %4417 = vmatpush.bf16.msrb.mxu1 %v13036_v16  ;;  %v4310_v16 = vperm.slane %v11030_v53, 0 }
 0xaa6   :  { %11020 = vmatmul.msk.bf16.vlgmr.msra.gmra.mxu2 %vm2138_vm3, %v4151_v19  ;;  %11022 = vmatmul.msk.bf16.vlgmr.msra.gmra.mxu3 %vm2138_vm3, %v4193_v22 }
 0xaa7   :  { %4431 = vmatpush.bf16.msra.mxu2 %v13043_v14 }
 0xaa8   :  { %4418 = vmatpush.bf16.msrb.mxu1 %v13035_v3  ;;  %v4321_v3 = vperm.slane %v4318_v41, 1 }
 0xaa9   :  { %11023 = vmatmul.msk.bf16.vlgmr.msrb.gmra.mxu0 %vm2138_vm3, %v4193_v22  ;;  %v4143_v22 = vperm.slane %v11018_v11, 1 }
 0xab6   :  { %11026 = vmatmul.msk.bf16.vlgmr.msrb.gmra.mxu2 %vm2138_vm3, %v4235_v47  ;;  %11028 = vmatmul.msk.bf16.vlgmr.msrb.gmra.mxu3 %vm2138_vm3, %v4277_v40 }
 0xab9   :  { %11029 = vmatmul.msk.bf16.vlgmr.msra.gmra.mxu0 %vm2138_vm3, %v4277_v40  ;;  %v11024_v40 = vld [vmem:[%s16777_s10 + $0x26] ss:$8 sm:$0x3] }
 0xaf6   :  { %v3996_v35 = vpop.f32.mrf.mxu0  ;;  %v15923_v61 = vpop.f32.mrf.mxu1 }
 0xaf7   :  { %v4020_v46 = vmul.f32 %v4016_v52, %v3996_v35  ;;  %v4104_v58 = vmul.f32 %v4100_v5, %v15923_v61 }
 0xaf9   :  { %v3956_v6 = vpop.f32.mrf.mxu2  ;;  %v3969_v57 = vpop.f32.mrf.mxu3 }
 0xafa   :  { %v3980_v15 = vmul.f32 %v3976_v8, %v3956_v6  ;;  %v3981_v42 = vmul.f32 %v3977_v37, %v3969_v57  ;;  %v4184_v6 = vperm.slane %v11021_v51, 0 }
 0xafc   :  { %v4022_v10 = vadd.f32 %v4020_v46, %v3980_v15 }
 0xafe   :  { %v3998_v39 = vpop.f32.mrf.mxu0  ;;  %v4082_v25 = vpop.f32.mrf.mxu1 }
 0xaff   :  { %v4185_v25 = vperm.slane %v11021_v51, 1  ;;  %v11080_v51 = vld [vmem:[#allocation22 + $0x18] sm:$0xf0] }
 0xb01   :  { %v3958_v56 = vpop.f32.mrf.mxu2  ;;  %v3971_v27 = vpop.f32.mrf.mxu3 }
 0xb02   :  { %v4226_v27 = vperm.slane %v11024_v40, 0 }
 0xb06   :  { %v4051_v12 = vpop.f32.mrf.mxu0  ;;  %v15925_v13 = vpop.f32.mrf.mxu1 }
 0xb07   :  { %v4063_v24 = vmul.f32 %v4059_v36, %v4051_v12  ;;  %v4188_v50 = vmul.f32 %v4184_v6, %v15925_v13 }
 0xb09   :  { %v4009_v49 = vpop.f32.mrf.mxu2  ;;  %v4038_v63 = vpop.f32.mrf.mxu3 }
 0xb0a   :  { %v4021_v29 = vmul.f32 %v4017_v45, %v4009_v49  ;;  %v4062_v60 = vmul.f32 %v4058_v34, %v4038_v63  ;;  %v4320_v45 = vperm.slane %v4318_v41, 0  ;;  %v4593_v41 = vld [vmem:[#allocation23 + $0x8] sm:$0xf] }
 0xb0c   :  { %v4023_v21 = vadd.f32 %v4021_v29, %v3981_v42  ;;  %v4064_v19 = vadd.f32 %v4062_v60, %v4022_v10 }
 0xb0e   :  { %v4053_v28 = vpop.f32.mrf.mxu0  ;;  %v4166_v38 = vpop.f32.mrf.mxu1  ;;  %v4065_v57 = vadd.f32 %v4063_v24, %v4023_v21  ;;  %v4106_v56 = vadd.f32 %v4104_v58, %v4064_v19  ;;  %v13047_v21 = vld [vmem:[#allocation22 + $0x14] sm:$0xf0]  ;;  %v13046_v24 = vld [vmem:[#allocation22 + $0x14] sm:$0xf]  ;;  %v11070_v19 = vld [vmem:[#allocation22] sm:$0xf] }
 0xb0f   :  { %v4227_v38 = vperm.slane %v11024_v40, 1  ;;  %v13045_v58 = vld [vmem:[#allocation22 + $0x4] sm:$0xf0]  ;;  %v11072_v40 = vld [vmem:[#allocation22 + $0x8] sm:$0xf0] }
 0xb11   :  { %v4011_v4 = vpop.f32.mrf.mxu2  ;;  %v4040_v62 = vpop.f32.mrf.mxu3 }
 0xb12   :  { %v4268_v4 = vperm.slane %v11027_v2, 0 }
 0xb16   :  { %v4135_v20 = vpop.f32.mrf.mxu0  ;;  %v15927_v30 = vpop.f32.mrf.mxu1 }
 0xb17   :  { %v4147_v49 = vmul.f32 %v4143_v22, %v4135_v20  ;;  %v4272_v18 = vmul.f32 %v4268_v4, %v15927_v30  ;;  %v4311_v20 = vperm.slane %v11030_v53, 1  ;;  %v11071_v22 = vor.u32 %v13045_v58, %v11070_v19  ;;  %v13051_v58 = vld [vmem:[#allocation25 + $0x18] sm:$0xff] }
 0xb19   :  { %v4093_v48 = vpop.f32.mrf.mxu2  ;;  %v4122_v23 = vpop.f32.mrf.mxu3 }
 0xb1a   :  { %v4105_v47 = vmul.f32 %v4101_v32, %v4093_v48  ;;  %v4146_v35 = vmul.f32 %v4142_v9, %v4122_v23  ;;  %v11078_v9 = vld [vmem:[#allocation22 + $0x10] sm:$0xf] }
 0xb1c   :  { %v4107_v12 = vadd.f32 %v4105_v47, %v4065_v57  ;;  %v4148_v63 = vadd.f32 %v4146_v35, %v4106_v56  ;;  %v13044_v47 = vld [vmem:[#allocation22 + $0x4] sm:$0xf] }
 0xb1d   :  { %v11075_v35 = vor.u32 %v13044_v47, %v11072_v40  ;;  %v13058_v47 = vld [vmem:[#allocation25 + $0x50] sm:$0xff] }
 0xb1e   :  { %v4137_v7 = vpop.f32.mrf.mxu0  ;;  %v4250_v59 = vpop.f32.mrf.mxu1  ;;  %v4149_v26 = vadd.f32 %v4147_v49, %v4107_v12  ;;  %v4190_v48 = vadd.f32 %v4188_v50, %v4148_v63  ;;  %v4443_v49 = vld [vmem:[#allocation2 + $0x10] sm:$0x3] }
 0xb1f   :  { %v4269_v59 = vperm.slane %v11027_v2, 1  ;;  %v4446_v63 = vperm.slane %v4443_v49, 1  ;;  %v11091_v40 = vld [vmem:[%s16777_s10 + $0x31] ss:$8 sm:$0x3] }
 0xb21   :  { %v4095_v31 = vpop.f32.mrf.mxu2  ;;  %v4124_v33 = vpop.f32.mrf.mxu3 }
 0xb26   :  { %v4219_v43 = vpop.f32.mrf.mxu0 }
 0xb27   :  { %v4231_v7 = vmul.f32 %v4227_v38, %v4219_v43 }
 0xb29   :  { %v4177_v0 = vpop.f32.mrf.mxu2  ;;  %v4206_v17 = vpop.f32.mrf.mxu3 }
 0xb2a   :  { %v4189_v28 = vmul.f32 %v4185_v25, %v4177_v0  ;;  %v4230_v62 = vmul.f32 %v4226_v27, %v4206_v17  ;;  %v11079_v0 = vor.u32 %v13047_v21, %v11078_v9  ;;  %v11083_v17 = vor.u32 %v13046_v24, %v11080_v51  ;;  %v13053_v9 = vld [vmem:[#allocation25 + $0x28] sm:$0xff]  ;;  %v13052_v24 = vld [vmem:[#allocation25 + $0x20] sm:$0xff] }
 0xb2c   :  { %v4191_v54 = vadd.f32 %v4189_v28, %v4149_v26  ;;  %v4232_v1 = vadd.f32 %v4230_v62, %v4190_v48  ;;  %4478 = vmatpush.bf16.msra.mxu3 %v11079_v0  ;;  %4491 = vmatpush.bf16.msrb.mxu0 %v11083_v17  ;;  %v13059_v0 = vld [vmem:[#allocation25 + $0x58] sm:$0xff] }
 0xb2e   :  { %v4221_v39 = vpop.f32.mrf.mxu0  ;;  %v4233_v13 = vadd.f32 %v4231_v7, %v4191_v54  ;;  %v4274_v34 = vadd.f32 %v4272_v18, %v4232_v1  ;;  %v4504_v54 = vld [vmem:[#allocation23] sm:$0xf]  ;;  %v4551_v7 = vld [vmem:[#allocation23 + $0x4] sm:$0xf] }
 0xb2f   :  { %v13559_v39 = vld [vmem:[#allocation2 + $0xf] ss:$0 sm:$0xff] }
 0xb30   :  { %4479 = vmatpush.bf16.msra.mxu3 %v11071_v22  ;;  %4492 = vmatpush.bf16.msrb.mxu0 %v11075_v35  ;;  %v11088_v22 = vld [vmem:[%s16777_s10 + $0x30] ss:$8 sm:$0x3]  ;;  %v11094_v35 = vld [vmem:[%s16777_s10 + $0x32] ss:$8 sm:$0x3] }
 0xb31   :  { %v4179_v61 = vpop.f32.mrf.mxu2  ;;  %v4208_v55 = vpop.f32.mrf.mxu3 }
 0xb32   :  { %v4445_v61 = vperm.slane %v4443_v49, 0  ;;  %v4627_v49 = vperm.slane %v11094_v35, 1 }
 0xb36   :  { %v4303_v23 = vpop.f32.mrf.mxu0 }
 0xb37   :  { %v4315_v33 = vmul.f32 %v4311_v20, %v4303_v23 }
 0xb39   :  { %v4261_v8 = vpop.f32.mrf.mxu2  ;;  %v4290_v52 = vpop.f32.mrf.mxu3 }
 0xb3a   :  { %v4273_v31 = vmul.f32 %v4269_v59, %v4261_v8  ;;  %v4314_v37 = vmul.f32 %v4310_v16, %v4290_v52  ;;  %v4635_v16 = vld [vmem:[#allocation23 + $0xc] sm:$0xf]  ;;  %v4719_v8 = vld [vmem:[#allocation23 + $0x14] sm:$0xf]  ;;  %v4761_v52 = vld [vmem:[#allocation23 + $0x18] sm:$0xf] }
 0xb3c   :  { %v4275_v44 = vadd.f32 %v4273_v31, %v4233_v13  ;;  %v4316_v15 = vadd.f32 %v4314_v37, %v4274_v34  ;;  %v4677_v13 = vld [vmem:[#allocation23 + $0x10] sm:$0xf]  ;;  %v4845_v31 = vld [vmem:[#allocation23 + $0x20] sm:$0xf] }
 0xb3e   :  { %v4305_v46 = vpop.f32.mrf.mxu0  ;;  %v4317_v43 = vadd.f32 %v4315_v33, %v4275_v44  ;;  %v4324_v29 = vadd.f32 %v4320_v45, %v4316_v15  ;;  %v4803_v45 = vld [vmem:[#allocation23 + $0x1c] sm:$0xf] }
 0xb40   :  { %v4325_v30 = vadd.f32 %v4321_v3, %v4317_v43  ;;  %v4326_v36 = vmax.f32 %v4324_v29, 0.0 }
 0xb41   :  { %v4263_v11 = vpop.f32.mrf.mxu2  ;;  %v4292_v14 = vpop.f32.mrf.mxu3 }
 0xb42   :  { %v4327_v60 = vmax.f32 %v4325_v30, 0.0  ;;  %v4328_v5 = vmin.f32 %v4326_v36, 6.0  ;;  %v13055_v30 = vld [vmem:[#allocation25 + $0x38] sm:$0xff] }
 0xb44   :  { %v4329_v42 = vmin.f32 %v4327_v60, 6.0  ;;  %v4330_v32 = vpack.c.bf16 %v4328_v5, %v4328_v5 }
 0xb46   :  { %v4331_v10 = vpack.c.bf16 %v4329_v42, %v4329_v42  ;;  %4419 = vmatmul.bf16.vlgmr.msrb.gmra.mxu1 %v4330_v32  ;;  %v13054_v32 = vld [vmem:[#allocation25 + $0x30] sm:$0xff] }
 0xb48   :  { %11067 = vmatmul.msk.bf16.vlgmr.msra.gmra.mxu2 %vm2212_vm4, %v4331_v10 }
 0xbc3   :  { %v4420_v6 = vpop.f32.mrf.mxu1 }
 0xbc4   :  { %v4421_v57 = vadd.f32 %v13559_v39, %v4420_v6  ;;  %v13057_v39 = vld [vmem:[#allocation25 + $0x48] sm:$0xff] }
 0xbcb   :  { %v4433_v25 = vpop.f32.mrf.mxu2  ;;  %v4422_v56 = vpop.f32.mrf.mxu1 }
 0xbcc   :  { %v15942_v27 = vadd.f32 %v4433_v25, %v4421_v57  ;;  %v4545_v57 = vperm.slane %v11088_v22, 1  ;;  %v4585_v25 = vperm.slane %v11091_v40, 1 }
 0xbce   :  { %4437 = vst.msk [vmem:[#allocation47] sm:$0xff] %vm2138_vm3, %v15942_v27  ;;  %v4438_v2 = vpack.c.bf16 %v15942_v27, %v15942_v27 }
 0xbd0   :  { %11084 = vmatmul.msk.bf16.vlgmr.msra.gmra.mxu3 %vm2138_vm3, %v4438_v2  ;;  %11085 = vmatmul.msk.bf16.vlgmr.msrb.gmra.mxu0 %vm2138_vm3, %v4438_v2 }
 0xbd3   :  { %v4435_v12 = vpop.f32.mrf.mxu2 }
 0xbd4   :  { %v13050_v12 = vld [vmem:[#allocation25 + $0x10] sm:$0xff] }
 0xc4d   :  { %v4494_v50 = vpop.f32.mrf.mxu0 }
 0xc4e   :  { %v4495_v28 = vadd.f32 %v4494_v50, %v4446_v63  ;;  %v11097_v63 = vld [vmem:[%s16777_s10 + $0x33] ss:$8 sm:$0x3] }
 0xc50   :  { %v4499_v38 = vmax.f32 %v4495_v28, 0.0  ;;  %v13056_v28 = vld [vmem:[#allocation25 + $0x40] sm:$0xff] }
 0xc52   :  { %v4501_v55 = vmin.f32 %v4499_v38, 6.0 }
 0xc53   :  { %v4481_v4 = vpop.f32.mrf.mxu3 }
 0xc54   :  { %v4503_v62 = vpack.c.bf16 %v4501_v55, %v4501_v55  ;;  %v4482_v26 = vadd.f32 %v4481_v4, %v4445_v61  ;;  %v11100_v55 = vld [vmem:[%s16777_s10 + $0x34] ss:$8 sm:$0x3]  ;;  %v13049_v4 = vld [vmem:[#allocation25 + $0x8] sm:$0xff] }
 0xc55   :  { %v4496_v53 = vpop.f32.mrf.mxu0 }
 0xc56   :  { %v4513_v48 = vsel %vm2895_vm6, %v4503_v62, 0  ;;  %v4498_v23 = vmax.f32 %v4482_v26, 0.0  ;;  %v4544_v62 = vperm.slane %v11088_v22, 0  ;;  %v4584_v26 = vperm.slane %v11091_v40, 0 }
 0xc57   :  { %4535 = vmatpush.bf16.msrb.mxu3 %v4513_v48  ;;  %4575 = vmatpush.bf16.msra.mxu1 %v4513_v48 }
 0xc58   :  { %v4500_v18 = vmin.f32 %v4498_v23, 6.0 }
 0xc5a   :  { %v4502_v1 = vpack.c.bf16 %v4500_v18, %v4500_v18  ;;  %11087 = vmatmul.msk.bf16.vlgmr.msrb.gmra.mxu3 %vm4505_vm8, %v4504_v54  ;;  %11090 = vmatmul.msk.bf16.vlgmr.msra.gmra.mxu1 %vm4505_vm8, %v4551_v7  ;;  %v4711_v18 = vperm.slane %v11100_v55, 1 }
 0xc5b   :  { %4617 = vmatpush.bf16.msra.mxu3 %v4513_v48  ;;  %4659 = vmatpush.bf16.msrb.mxu1 %v4513_v48  ;;  %v4483_v59 = vpop.f32.mrf.mxu3 }
 0xc5c   :  { %v4510_v20 = vsel %vm2895_vm6, %v4502_v1, 0  ;;  %v11103_v1 = vld [vmem:[%s16777_s10 + $0x35] ss:$8 sm:$0x3] }
 0xc5d   :  { %4522 = vmatpush.bf16.msrb.mxu2 %v4510_v20  ;;  %4562 = vmatpush.bf16.msra.mxu0 %v4510_v20 }
 0xc5f   :  { %4701 = vmatpush.bf16.msrb.mxu3 %v4513_v48  ;;  %4743 = vmatpush.bf16.msra.mxu1 %v4513_v48 }
 0xc60   :  { %11086 = vmatmul.msk.bf16.vlgmr.msrb.gmra.mxu2 %vm4505_vm8, %v4504_v54  ;;  %11089 = vmatmul.msk.bf16.vlgmr.msra.gmra.mxu0 %vm4505_vm8, %v4551_v7  ;;  %v4626_v7 = vperm.slane %v11094_v35, 0 }
 0xc61   :  { %4604 = vmatpush.bf16.msra.mxu2 %v4510_v20  ;;  %4646 = vmatpush.bf16.msrb.mxu0 %v4510_v20 }
 0xc65   :  { %4688 = vmatpush.bf16.msrb.mxu2 %v4510_v20  ;;  %4730 = vmatpush.bf16.msra.mxu0 %v4510_v20 }
 0xc6a   :  { %11093 = vmatmul.msk.bf16.vlgmr.msra.gmra.mxu3 %vm4505_vm8, %v4593_v41  ;;  %11096 = vmatmul.msk.bf16.vlgmr.msrb.gmra.mxu1 %vm4505_vm8, %v4635_v16 }
 0xc6b   :  { %4785 = vmatpush.bf16.msra.mxu3 %v4513_v48  ;;  %4827 = vmatpush.bf16.msrb.mxu1 %v4513_v48 }
 0xc70   :  { %11092 = vmatmul.msk.bf16.vlgmr.msra.gmra.mxu2 %vm4505_vm8, %v4593_v41  ;;  %11095 = vmatmul.msk.bf16.vlgmr.msrb.gmra.mxu0 %vm4505_vm8, %v4635_v16  ;;  %v13048_v41 = vld [vmem:[#allocation25] sm:$0xff] }
 0xc71   :  { %4772 = vmatpush.bf16.msra.mxu2 %v4510_v20  ;;  %4814 = vmatpush.bf16.msrb.mxu0 %v4510_v20 }
 0xc7a   :  { %11099 = vmatmul.msk.bf16.vlgmr.msrb.gmra.mxu3 %vm4505_vm8, %v4677_v13  ;;  %11102 = vmatmul.msk.bf16.vlgmr.msra.gmra.mxu1 %vm4505_vm8, %v4719_v8 }
 0xc7b   :  { %4869 = vmatpush.bf16.msrb.mxu3 %v4513_v48  ;;  %5021 = vmatpush.bf16.msra.mxu1 %v13059_v0  ;;  %v4669_v48 = vperm.slane %v11097_v63, 1 }
 0xc7f   :  { %5022 = vmatpush.bf16.msra.mxu1 %v13058_v47 }
 0xc80   :  { %11098 = vmatmul.msk.bf16.vlgmr.msrb.gmra.mxu2 %vm4505_vm8, %v4677_v13  ;;  %11101 = vmatmul.msk.bf16.vlgmr.msra.gmra.mxu0 %vm4505_vm8, %v4719_v8 }
 0xc81   :  { %4856 = vmatpush.bf16.msrb.mxu2 %v4510_v20  ;;  %5004 = vmatpush.bf16.msra.mxu0 %v13055_v30  ;;  %v4710_v30 = vperm.slane %v11100_v55, 0 }
 0xc83   :  { %5023 = vmatpush.bf16.msra.mxu1 %v13057_v39 }
 0xc85   :  { %5005 = vmatpush.bf16.msra.mxu0 %v13054_v32  ;;  %v4752_v32 = vperm.slane %v11103_v1, 0 }
 0xc87   :  { %5024 = vmatpush.bf16.msra.mxu1 %v13056_v28 }
 0xc89   :  { %5006 = vmatpush.bf16.msra.mxu0 %v13053_v9 }
 0xc8a   :  { %11105 = vmatmul.msk.bf16.vlgmr.msra.gmra.mxu3 %vm4505_vm8, %v4761_v52  ;;  %11108 = vmatmul.msk.bf16.vlgmr.msrb.gmra.mxu1 %vm4505_vm8, %v4803_v45 }
 0xc8d   :  { %5007 = vmatpush.bf16.msra.mxu0 %v13052_v24 }
 0xc90   :  { %11104 = vmatmul.msk.bf16.vlgmr.msra.gmra.mxu2 %vm4505_vm8, %v4761_v52  ;;  %11107 = vmatmul.msk.bf16.vlgmr.msrb.gmra.mxu0 %vm4505_vm8, %v4803_v45  ;;  %v11106_v45 = vld [vmem:[%s16777_s10 + $0x36] ss:$8 sm:$0x3] }
 0xc91   :  { %5008 = vmatpush.bf16.msra.mxu0 %v13051_v58  ;;  %v4794_v47 = vperm.slane %v11106_v45, 0 }
 0xc95   :  { %5009 = vmatpush.bf16.msra.mxu0 %v13050_v12 }
 0xc99   :  { %5010 = vmatpush.bf16.msra.mxu0 %v13049_v4 }
 0xc9a   :  { %11111 = vmatmul.msk.bf16.vlgmr.msrb.gmra.mxu3 %vm4505_vm8, %v4845_v31 }
 0xc9d   :  { %5011 = vmatpush.bf16.msra.mxu0 %v13048_v41 }
 0xca0   :  { %11110 = vmatmul.msk.bf16.vlgmr.msrb.gmra.mxu2 %vm4505_vm8, %v4845_v31 }
 0xcd7   :  { %v4577_v33 = vpop.f32.mrf.mxu1 }
 0xcd8   :  { %v4589_v61 = vmul.f32 %v4585_v25, %v4577_v33  ;;  %v4886_v25 = vld [vmem:[#allocation2 + $0x12] sm:$0x3] }
 0xcdd   :  { %v4537_v34 = vpop.f32.mrf.mxu3  ;;  %v15970_v37 = vpop.f32.mrf.mxu0 }
 0xcde   :  { %v4549_v38 = vmul.f32 %v4545_v57, %v4537_v34  ;;  %v4588_v13 = vmul.f32 %v4584_v26, %v15970_v37  ;;  %v4668_v34 = vperm.slane %v11097_v63, 0  ;;  %v4889_v63 = vperm.slane %v4886_v25, 1 }
 0xcdf   :  { %v4579_v44 = vpop.f32.mrf.mxu1 }
 0xce0   :  { %v4591_v54 = vadd.f32 %v4589_v61, %v4549_v38 }
 0xce3   :  { %v15972_v3 = vpop.f32.mrf.mxu2 }
 0xce4   :  { %v4548_v16 = vmul.f32 %v4544_v62, %v15972_v3  ;;  %v11109_v3 = vld [vmem:[%s16777_s10 + $0x37] ss:$8 sm:$0x3] }
 0xce5   :  { %v4539_v15 = vpop.f32.mrf.mxu3  ;;  %v4566_v46 = vpop.f32.mrf.mxu0  ;;  %v4837_v0 = vperm.slane %v11109_v3, 1 }
 0xce6   :  { %v4753_v15 = vperm.slane %v11103_v1, 1  ;;  %v4590_v46 = vadd.f32 %v4588_v13, %v4548_v16  ;;  %v11172_v16 = vld [vmem:[#allocation26 + $0x10] sm:$0xf]  ;;  %v13063_v13 = vld [vmem:[#allocation26 + $0x14] sm:$0xf0] }
 0xce7   :  { %v15974_v43 = vpop.f32.mrf.mxu1 }
 0xce8   :  { %v4673_v52 = vmul.f32 %v4669_v48, %v15974_v43 }
 0xceb   :  { %v4526_v29 = vpop.f32.mrf.mxu2 }
 0xced   :  { %v4619_v36 = vpop.f32.mrf.mxu3  ;;  %v15976_v11 = vpop.f32.mrf.mxu0 }
 0xcee   :  { %v4631_v53 = vmul.f32 %v4627_v49, %v4619_v36  ;;  %v4795_v36 = vperm.slane %v11106_v45, 1  ;;  %v4672_v37 = vmul.f32 %v4668_v34, %v15976_v11  ;;  %v11174_v45 = vld [vmem:[#allocation26 + $0x18] sm:$0xf0]  ;;  %v13061_v34 = vld [vmem:[#allocation26 + $0x4] sm:$0xf0] }
 0xcef   :  { %v4663_v14 = vpop.f32.mrf.mxu1 }
 0xcf0   :  { %v4633_v8 = vadd.f32 %v4631_v53, %v4591_v54  ;;  %v4888_v53 = vperm.slane %v4886_v25, 0 }
 0xcf2   :  { %v4675_v29 = vadd.f32 %v4673_v52, %v4633_v8  ;;  %v13062_v8 = vld [vmem:[#allocation26 + $0x14] sm:$0xf]  ;;  %v11173_v52 = vor.u32 %v13063_v13, %v11172_v16  ;;  %v13068_v16 = vld [vmem:[#allocation29 + $0x20] sm:$0xff]  ;;  %v13067_v13 = vld [vmem:[#allocation29 + $0x18] sm:$0xff] }
 0xcf3   :  { %v4606_v60 = vpop.f32.mrf.mxu2 }
 0xcf4   :  { %v4630_v33 = vmul.f32 %v4626_v7, %v4606_v60  ;;  %5071 = vmatpush.bf16.msra.mxu2 %v11173_v52 }
 0xcf5   :  { %v4621_v5 = vpop.f32.mrf.mxu3  ;;  %v4650_v42 = vpop.f32.mrf.mxu0 }
 0xcf6   :  { %v4632_v5 = vadd.f32 %v4630_v33, %v4590_v46  ;;  %v11164_v33 = vld [vmem:[#allocation26] sm:$0xf]  ;;  %v11166_v46 = vld [vmem:[#allocation26 + $0x8] sm:$0xf0] }
 0xcf7   :  { %v15978_v10 = vpop.f32.mrf.mxu1 }
 0xcf8   :  { %v4757_v43 = vmul.f32 %v4753_v15, %v15978_v10  ;;  %v4836_v10 = vperm.slane %v11109_v3, 0  ;;  %v11165_v15 = vor.u32 %v13061_v34, %v11164_v33  ;;  %v13066_v33 = vld [vmem:[#allocation29 + $0x10] sm:$0xff]  ;;  %v13075_v34 = vld [vmem:[#allocation29 + $0x58] sm:$0xff] }
 0xcfa   :  { %5072 = vmatpush.bf16.msra.mxu2 %v11165_v15  ;;  %v13065_v15 = vld [vmem:[#allocation29 + $0x8] sm:$0xff] }
 0xcfb   :  { %v4608_v21 = vpop.f32.mrf.mxu2 }
 0xcfd   :  { %v4703_v51 = vpop.f32.mrf.mxu3  ;;  %v15980_v17 = vpop.f32.mrf.mxu0 }
 0xcfe   :  { %v4715_v44 = vmul.f32 %v4711_v18, %v4703_v51  ;;  %v11112_v51 = vld [vmem:[%s16777_s10 + $0x168] ss:$8 sm:$0x3]  ;;  %v4756_v22 = vmul.f32 %v4752_v32, %v15980_v17 }
 0xcff   :  { %v4747_v19 = vpop.f32.mrf.mxu1  ;;  %v4879_v57 = vperm.slane %v11112_v51, 1  ;;  %v4878_v61 = vperm.slane %v11112_v51, 0 }
 0xd00   :  { %v4717_v42 = vadd.f32 %v4715_v44, %v4675_v29  ;;  %v4674_v19 = vadd.f32 %v4672_v37, %v4632_v5  ;;  %v13060_v44 = vld [vmem:[#allocation26 + $0x4] sm:$0xf] }
 0xd01   :  { %v11169_v29 = vor.u32 %v13060_v44, %v11166_v46 }
 0xd02   :  { %v4759_v58 = vadd.f32 %v4757_v43, %v4717_v42 }
 0xd03   :  { %v4690_v6 = vpop.f32.mrf.mxu2 }
 0xd04   :  { %v4714_v60 = vmul.f32 %v4710_v30, %v4690_v6 }
 0xd05   :  { %v4705_v56 = vpop.f32.mrf.mxu3  ;;  %v4734_v2 = vpop.f32.mrf.mxu0 }
 0xd06   :  { %v4716_v40 = vadd.f32 %v4714_v60, %v4674_v19 }
 0xd07   :  { %v4829_v50 = vpop.f32.mrf.mxu1 }
 0xd08   :  { %v4841_v39 = vmul.f32 %v4837_v0, %v4829_v50  ;;  %v4758_v12 = vadd.f32 %v4756_v22, %v4716_v40 }
 0xd0b   :  { %v4692_v23 = vpop.f32.mrf.mxu2 }
 0xd0d   :  { %v4787_v59 = vpop.f32.mrf.mxu3  ;;  %v4816_v20 = vpop.f32.mrf.mxu0 }
 0xd0e   :  { %v4799_v24 = vmul.f32 %v4795_v36, %v4787_v59  ;;  %v4840_v38 = vmul.f32 %v4836_v10, %v4816_v20  ;;  %v13560_v36 = vld [vmem:[#allocation2 + $0x14] ss:$0 sm:$0xff]  ;;  %v5143_v10 = vld [vmem:[#allocation28 + $0x4] sm:$0xf] }
 0xd0f   :  { %v4831_v31 = vpop.f32.mrf.mxu1 }
 0xd10   :  { %v4801_v35 = vadd.f32 %v4799_v24, %v4759_v58  ;;  %v11177_v31 = vor.u32 %v13062_v8, %v11174_v45 }
 0xd12   :  { %v4843_v49 = vadd.f32 %v4841_v39, %v4801_v35  ;;  %5084 = vmatpush.bf16.msra.mxu3 %v11177_v31 }
 0xd13   :  { %v4774_v14 = vpop.f32.mrf.mxu2 }
 0xd14   :  { %v4798_v56 = vmul.f32 %v4794_v47, %v4774_v14 }
 0xd15   :  { %v4789_v9 = vpop.f32.mrf.mxu3  ;;  %v4818_v21 = vpop.f32.mrf.mxu0 }
 0xd16   :  { %v4800_v28 = vadd.f32 %v4798_v56, %v4758_v12  ;;  %5085 = vmatpush.bf16.msra.mxu3 %v11169_v29  ;;  %v5036_v9 = vld [vmem:[#allocation2 + $0x15] sm:$0x3]  ;;  %v5097_v56 = vld [vmem:[#allocation28] sm:$0xf]  ;;  %v5227_v12 = vld [vmem:[#allocation28 + $0xc] sm:$0xf] }
 0xd17   :  { %v5038_v21 = vperm.slane %v5036_v9, 0  ;;  %v5039_v60 = vperm.slane %v5036_v9, 1 }
 0xd18   :  { %v4842_v17 = vadd.f32 %v4840_v38, %v4800_v28  ;;  %v5395_v28 = vld [vmem:[#allocation28 + $0x1c] sm:$0xf]  ;;  %v5437_v38 = vld [vmem:[#allocation28 + $0x20] sm:$0xf] }
 0xd1b   :  { %v4776_v11 = vpop.f32.mrf.mxu2 }
 0xd1d   :  { %v4871_v2 = vpop.f32.mrf.mxu3 }
 0xd1e   :  { %v4883_v6 = vmul.f32 %v4879_v57, %v4871_v2  ;;  %v5185_v2 = vld [vmem:[#allocation28 + $0x8] sm:$0xf] }
 0xd20   :  { %v4885_v55 = vadd.f32 %v4883_v6, %v4843_v49  ;;  %v5269_v49 = vld [vmem:[#allocation28 + $0x10] sm:$0xf]  ;;  %v5311_v6 = vld [vmem:[#allocation28 + $0x14] sm:$0xf] }
 0xd22   :  { %v4893_v4 = vadd.f32 %v4889_v63, %v4885_v55  ;;  %v5353_v63 = vld [vmem:[#allocation28 + $0x18] sm:$0xf] }
 0xd23   :  { %v4858_v62 = vpop.f32.mrf.mxu2 }
 0xd24   :  { %v4882_v26 = vmul.f32 %v4878_v61, %v4858_v62  ;;  %v4895_v50 = vmax.f32 %v4893_v4, 0.0 }
 0xd25   :  { %v4873_v48 = vpop.f32.mrf.mxu3 }
 0xd26   :  { %v4884_v23 = vadd.f32 %v4882_v26, %v4842_v17  ;;  %v4897_v54 = vmin.f32 %v4895_v50, 6.0 }
 0xd28   :  { %v4892_v7 = vadd.f32 %v4888_v53, %v4884_v23  ;;  %v4899_v18 = vpack.c.bf16 %v4897_v54, %v4897_v54  ;;  %v13071_v53 = vld [vmem:[#allocation29 + $0x38] sm:$0xff] }
 0xd2a   :  { %v4894_v1 = vmax.f32 %v4892_v7, 0.0  ;;  %11161 = vmatmul.msk.bf16.vlgmr.msra.gmra.mxu1 %vm5000_vm9, %v4899_v18  ;;  %v13070_v7 = vld [vmem:[#allocation29 + $0x30] sm:$0xff]  ;;  %v13069_v18 = vld [vmem:[#allocation29 + $0x28] sm:$0xff] }
 0xd2b   :  { %v4860_v59 = vpop.f32.mrf.mxu2 }
 0xd2c   :  { %v4896_v41 = vmin.f32 %v4894_v1, 6.0 }
 0xd2e   :  { %v4898_v20 = vpack.c.bf16 %v4896_v41, %v4896_v41 }
 0xd30   :  { %5012 = vmatmul.bf16.vlgmr.msra.gmra.mxu0 %v4898_v20 }
 0xda7   :  { %v5026_v30 = vpop.f32.mrf.mxu1 }
 0xdad   :  { %v5013_v14 = vpop.f32.mrf.mxu0 }
 0xdae   :  { %v5014_v3 = vadd.f32 %v13560_v36, %v5013_v14  ;;  %v11185_v36 = vld [vmem:[%s16777_s10 + $0x41] ss:$8 sm:$0x3] }
 0xdaf   :  { %v5028_v5 = vpop.f32.mrf.mxu1  ;;  %v5177_v9 = vperm.slane %v11185_v36, 1 }
 0xdb0   :  { %v5027_v37 = vadd.f32 %v5026_v30, %v5014_v3  ;;  %v13074_v30 = vld [vmem:[#allocation29 + $0x50] sm:$0xff]  ;;  %v13064_v3 = vld [vmem:[#allocation29] sm:$0xff] }
 0xdb1   :  { %v11182_v5 = vld [vmem:[%s16777_s10 + $0x40] ss:$8 sm:$0x3] }
 0xdb2   :  { %v15999_v42 = vadd.f32 %v5027_v37, %v15942_v27  ;;  %v11188_v37 = vld [vmem:[%s16777_s10 + $0x42] ss:$8 sm:$0x3] }
 0xdb4   :  { %v5031_v43 = vpack.c.bf16 %v15999_v42, %v15999_v42 }
 0xdb5   :  { %v5015_v32 = vpop.f32.mrf.mxu0 }
 0xdb6   :  { %11178 = vmatmul.msk.bf16.vlgmr.msra.gmra.mxu2 %vm2138_vm3, %v5031_v43  ;;  %11179 = vmatmul.msk.bf16.vlgmr.msra.gmra.mxu3 %vm2138_vm3, %v5031_v43  ;;  %v5137_v43 = vperm.slane %v11182_v5, 1  ;;  %v5176_v32 = vperm.slane %v11185_v36, 0 }
 0xe39   :  { %v5074_v24 = vpop.f32.mrf.mxu2  ;;  %v5087_v0 = vpop.f32.mrf.mxu3 }
 0xe3a   :  { %v5075_v51 = vadd.f32 %v5074_v24, %v5038_v21  ;;  %v5088_v19 = vadd.f32 %v5087_v0, %v5039_v60  ;;  %v13073_v21 = vld [vmem:[#allocation29 + $0x48] sm:$0xff]  ;;  %v5136_v0 = vperm.slane %v11182_v5, 0 }
 0xe3b   :  { %v11191_v60 = vld [vmem:[%s16777_s10 + $0x43] ss:$8 sm:$0x3] }
 0xe3c   :  { %v5091_v58 = vmax.f32 %v5075_v51, 0.0  ;;  %v5092_v47 = vmax.f32 %v5088_v19, 0.0  ;;  %v5218_v51 = vperm.slane %v11188_v37, 0  ;;  %v5219_v19 = vperm.slane %v11188_v37, 1 }
 0xe3e   :  { %v5093_v22 = vmin.f32 %v5091_v58, 6.0  ;;  %v5094_v27 = vmin.f32 %v5092_v47, 6.0  ;;  %v11194_v58 = vld [vmem:[%s16777_s10 + $0x44] ss:$8 sm:$0x3] }
 0xe40   :  { %v5095_v40 = vpack.c.bf16 %v5093_v22, %v5093_v22  ;;  %v5096_v35 = vpack.c.bf16 %v5094_v27, %v5094_v27 }
 0xe41   :  { %v5076_v39 = vpop.f32.mrf.mxu2  ;;  %v5089_v57 = vpop.f32.mrf.mxu3 }
 0xe42   :  { %v5102_v11 = vsel %vm2895_vm6, %v5095_v40, 0  ;;  %v5105_v25 = vsel %vm2895_vm6, %v5096_v35, 0  ;;  %v5260_v39 = vperm.slane %v11191_v60, 0  ;;  %v13072_v57 = vld [vmem:[#allocation29 + $0x40] sm:$0xff] }
 0xe43   :  { %5114 = vmatpush.bf16.msrb.mxu1 %v5102_v11  ;;  %5127 = vmatpush.bf16.msrb.mxu2 %v5105_v25 }
 0xe44   :  { %5154 = vmatpush.bf16.msrb.mxu3 %v5102_v11  ;;  %5167 = vmatpush.bf16.msrb.mxu0 %v5105_v25 }
 0xe46   :  { %11180 = vmatmul.msk.bf16.vlgmr.msrb.gmra.mxu1 %vm4505_vm8, %v5097_v56  ;;  %11181 = vmatmul.msk.bf16.vlgmr.msrb.gmra.mxu2 %vm4505_vm8, %v5097_v56 }
 0xe47   :  { %5196 = vmatpush.bf16.msra.mxu1 %v5102_v11  ;;  %5209 = vmatpush.bf16.msra.mxu2 %v5105_v25 }
 0xe48   :  { %5238 = vmatpush.bf16.msra.mxu3 %v5102_v11  ;;  %5251 = vmatpush.bf16.msra.mxu0 %v5105_v25 }
 0xe49   :  { %11183 = vmatmul.msk.bf16.vlgmr.msrb.gmra.mxu3 %vm4505_vm8, %v5143_v10  ;;  %11184 = vmatmul.msk.bf16.vlgmr.msrb.gmra.mxu0 %vm4505_vm8, %v5143_v10 }
 0xe4b   :  { %5280 = vmatpush.bf16.msrb.mxu1 %v5102_v11  ;;  %5293 = vmatpush.bf16.msrb.mxu2 %v5105_v25 }
 0xe4c   :  { %5322 = vmatpush.bf16.msrb.mxu3 %v5102_v11  ;;  %5335 = vmatpush.bf16.msrb.mxu0 %v5105_v25 }
 0xe56   :  { %11186 = vmatmul.msk.bf16.vlgmr.msra.gmra.mxu1 %vm4505_vm8, %v5185_v2  ;;  %11187 = vmatmul.msk.bf16.vlgmr.msra.gmra.mxu2 %vm4505_vm8, %v5185_v2 }
 0xe57   :  { %5364 = vmatpush.bf16.msra.mxu1 %v5102_v11  ;;  %5377 = vmatpush.bf16.msra.mxu2 %v5105_v25 }
 0xe59   :  { %11189 = vmatmul.msk.bf16.vlgmr.msra.gmra.mxu3 %vm4505_vm8, %v5227_v12  ;;  %11190 = vmatmul.msk.bf16.vlgmr.msra.gmra.mxu0 %vm4505_vm8, %v5227_v12 }
 0xe5a   :  { %5406 = vmatpush.bf16.msra.mxu3 %v5102_v11  ;;  %5419 = vmatpush.bf16.msra.mxu0 %v5105_v25 }
 0xe66   :  { %11192 = vmatmul.msk.bf16.vlgmr.msrb.gmra.mxu1 %vm4505_vm8, %v5269_v49  ;;  %11193 = vmatmul.msk.bf16.vlgmr.msrb.gmra.mxu2 %vm4505_vm8, %v5269_v49  ;;  %v5302_v49 = vperm.slane %v11194_v58, 0 }
 0xe67   :  { %5448 = vmatpush.bf16.msrb.mxu1 %v5102_v11  ;;  %5461 = vmatpush.bf16.msrb.mxu2 %v5105_v25  ;;  %v5261_v11 = vperm.slane %v11191_v60, 1  ;;  %v11197_v25 = vld [vmem:[%s16777_s10 + $0x45] ss:$8 sm:$0x3] }
 0xe69   :  { %11195 = vmatmul.msk.bf16.vlgmr.msrb.gmra.mxu3 %vm4505_vm8, %v5311_v6  ;;  %11196 = vmatmul.msk.bf16.vlgmr.msrb.gmra.mxu0 %vm4505_vm8, %v5311_v6  ;;  %v11200_v6 = vld [vmem:[%s16777_s10 + $0x46] ss:$8 sm:$0x3] }
 0xe6a   :  { %5595 = vmatpush.bf16.msrb.mxu3 %v13071_v53  ;;  %5612 = vmatpush.bf16.msrb.mxu0 %v13075_v34  ;;  %v5387_v34 = vperm.slane %v11200_v6, 1 }
 0xe6e   :  { %5596 = vmatpush.bf16.msrb.mxu3 %v13070_v7  ;;  %5613 = vmatpush.bf16.msrb.mxu0 %v13074_v30 }
 0xe72   :  { %5597 = vmatpush.bf16.msrb.mxu3 %v13069_v18  ;;  %5614 = vmatpush.bf16.msrb.mxu0 %v13073_v21 }
 0xe76   :  { %11198 = vmatmul.msk.bf16.vlgmr.msra.gmra.mxu1 %vm4505_vm8, %v5353_v63  ;;  %11199 = vmatmul.msk.bf16.vlgmr.msra.gmra.mxu2 %vm4505_vm8, %v5353_v63  ;;  %v5303_v63 = vperm.slane %v11194_v58, 1 }
 0xe77   :  { %5598 = vmatpush.bf16.msrb.mxu3 %v13068_v16  ;;  %5615 = vmatpush.bf16.msrb.mxu0 %v13072_v57 }
 0xe79   :  { %11201 = vmatmul.msk.bf16.vlgmr.msra.gmra.mxu3 %vm4505_vm8, %v5395_v28  ;;  %11202 = vmatmul.msk.bf16.vlgmr.msra.gmra.mxu0 %vm4505_vm8, %v5395_v28 }
 0xe7b   :  { %5599 = vmatpush.bf16.msrb.mxu3 %v13067_v13  ;;  %v11206_v13 = vld [vmem:[%s16777_s10 + $0x178] ss:$8 sm:$0x3] }
 0xe7f   :  { %5600 = vmatpush.bf16.msrb.mxu3 %v13066_v33 }
 0xe83   :  { %5601 = vmatpush.bf16.msrb.mxu3 %v13065_v15  ;;  %v5470_v15 = vperm.slane %v11206_v13, 0 }
 0xe86   :  { %11204 = vmatmul.msk.bf16.vlgmr.msrb.gmra.mxu1 %vm4505_vm8, %v5437_v38  ;;  %11205 = vmatmul.msk.bf16.vlgmr.msrb.gmra.mxu2 %vm4505_vm8, %v5437_v38 }
 0xe87   :  { %5602 = vmatpush.bf16.msrb.mxu3 %v13064_v3 }
 0xec3   :  { %v16025_v61 = vpop.f32.mrf.mxu1 }
 0xec4   :  { %v5140_v10 = vmul.f32 %v5136_v0, %v16025_v61  ;;  %v5345_v61 = vperm.slane %v11197_v25, 1 }
 0xec6   :  { %v5169_v55 = vpop.f32.mrf.mxu0 }
 0xec7   :  { %v5181_v35 = vmul.f32 %v5177_v9, %v5169_v55  ;;  %v5386_v55 = vperm.slane %v11200_v6, 0  ;;  %v13078_v6 = vld [vmem:[#allocation31 + $0x14] sm:$0xf] }
 0xec9   :  { %v5129_v4 = vpop.f32.mrf.mxu2 }
 0xeca   :  { %v5141_v27 = vmul.f32 %v5137_v43, %v5129_v4  ;;  %v5344_v4 = vperm.slane %v11197_v25, 0 }
 0xecb   :  { %v5118_v17 = vpop.f32.mrf.mxu1 }
 0xecc   :  { %v5156_v62 = vpop.f32.mrf.mxu3  ;;  %v5183_v38 = vadd.f32 %v5181_v35, %v5141_v27 }
 0xecd   :  { %v5180_v40 = vmul.f32 %v5176_v32, %v5156_v62 }
 0xece   :  { %v5171_v26 = vpop.f32.mrf.mxu0 }
 0xecf   :  { %v5182_v28 = vadd.f32 %v5180_v40, %v5140_v10  ;;  %v11203_v26 = vld [vmem:[%s16777_s10 + $0x47] ss:$8 sm:$0x3] }
 0xed0   :  { %v5428_v16 = vperm.slane %v11203_v26, 0  ;;  %v5429_v37 = vperm.slane %v11203_v26, 1  ;;  %v11260_v26 = vld [vmem:[#allocation31 + $0x8] sm:$0xf0] }
 0xed1   :  { %v5131_v50 = vpop.f32.mrf.mxu2 }
 0xed3   :  { %v5198_v23 = vpop.f32.mrf.mxu1 }
 0xed4   :  { %v5158_v48 = vpop.f32.mrf.mxu3  ;;  %v5222_v2 = vmul.f32 %v5218_v51, %v5198_v23  ;;  %v5471_v51 = vperm.slane %v11206_v13, 1 }
 0xed6   :  { %v16027_v54 = vpop.f32.mrf.mxu0  ;;  %v5224_v53 = vadd.f32 %v5222_v2, %v5182_v28  ;;  %v11268_v28 = vld [vmem:[#allocation31 + $0x18] sm:$0xf0] }
 0xed7   :  { %v5265_v7 = vmul.f32 %v5261_v11, %v16027_v54 }
 0xed9   :  { %v5211_v1 = vpop.f32.mrf.mxu2 }
 0xeda   :  { %v5223_v12 = vmul.f32 %v5219_v19, %v5211_v1 }
 0xedb   :  { %v5200_v41 = vpop.f32.mrf.mxu1 }
 0xedc   :  { %v5240_v59 = vpop.f32.mrf.mxu3  ;;  %v5225_v50 = vadd.f32 %v5223_v12, %v5183_v38  ;;  %v11271_v38 = vor.u32 %v13078_v6, %v11268_v28  ;;  %v13083_v6 = vld [vmem:[#allocation34 + $0x18] sm:$0xff]  ;;  %v13082_v28 = vld [vmem:[#allocation34 + $0x10] sm:$0xff] }
 0xedd   :  { %v5264_v17 = vmul.f32 %v5260_v39, %v5240_v59 }
 0xede   :  { %v5255_v20 = vpop.f32.mrf.mxu0  ;;  %5675 = vmatpush.bf16.msra.mxu2 %v11271_v38 }
 0xedf   :  { %v5266_v1 = vadd.f32 %v5264_v17, %v5224_v53  ;;  %v11258_v17 = vld [vmem:[#allocation31] sm:$0xf] }
 0xee1   :  { %v5213_v8 = vpop.f32.mrf.mxu2 }
 0xee3   :  { %v5282_v45 = vpop.f32.mrf.mxu1 }
 0xee4   :  { %v5242_v52 = vpop.f32.mrf.mxu3  ;;  %v5306_v48 = vmul.f32 %v5302_v49, %v5282_v45  ;;  %v13079_v49 = vld [vmem:[#allocation31 + $0x14] sm:$0xf0] }
 0xee5   :  { %v5267_v52 = vadd.f32 %v5265_v7, %v5225_v50  ;;  %v13561_v50 = vld [vmem:[#allocation2 + $0x19] ss:$0 sm:$0xff] }
 0xee6   :  { %v16029_v31 = vpop.f32.mrf.mxu0  ;;  %v5308_v59 = vadd.f32 %v5306_v48, %v5266_v1 }
 0xee7   :  { %v5349_v45 = vmul.f32 %v5345_v61, %v16029_v31 }
 0xee9   :  { %v5295_v44 = vpop.f32.mrf.mxu2 }
 0xeea   :  { %v5307_v41 = vmul.f32 %v5303_v63, %v5295_v44 }
 0xeeb   :  { %v5284_v46 = vpop.f32.mrf.mxu1 }
 0xeec   :  { %v5324_v29 = vpop.f32.mrf.mxu3  ;;  %v5309_v46 = vadd.f32 %v5307_v41, %v5267_v52 }
 0xeed   :  { %v5348_v20 = vmul.f32 %v5344_v4, %v5324_v29  ;;  %v13077_v4 = vld [vmem:[#allocation31 + $0x4] sm:$0xf0] }
 0xeee   :  { %v5339_v14 = vpop.f32.mrf.mxu0  ;;  %v5351_v43 = vadd.f32 %v5349_v45, %v5309_v46 }
 0xeef   :  { %v5350_v30 = vadd.f32 %v5348_v20, %v5308_v59  ;;  %v5478_v14 = vld [vmem:[#allocation2 + $0x17] sm:$0x3] }
 0xef0   :  { %v5480_v21 = vperm.slane %v5478_v14, 0  ;;  %v5481_v27 = vperm.slane %v5478_v14, 1  ;;  %v5734_v14 = vld [vmem:[#allocation32 + $0x1] sm:$0x1] }
 0xef1   :  { %v5297_v24 = vpop.f32.mrf.mxu2 }
 0xef3   :  { %v5366_v47 = vpop.f32.mrf.mxu1 }
 0xef4   :  { %v5326_v22 = vpop.f32.mrf.mxu3  ;;  %v5390_v33 = vmul.f32 %v5386_v55, %v5366_v47  ;;  %v13076_v55 = vld [vmem:[#allocation31 + $0x4] sm:$0xf] }
 0xef5   :  { %v11263_v53 = vor.u32 %v13076_v55, %v11260_v26 }
 0xef6   :  { %v5421_v56 = vpop.f32.mrf.mxu0  ;;  %v5392_v3 = vadd.f32 %v5390_v33, %v5350_v30 }
 0xef7   :  { %v5433_v0 = vmul.f32 %v5429_v37, %v5421_v56  ;;  %v11266_v56 = vld [vmem:[#allocation31 + $0x10] sm:$0xf]  ;;  %5676 = vmatpush.bf16.msra.mxu2 %v11263_v53  ;;  %v13090_v53 = vld [vmem:[#allocation34 + $0x50] sm:$0xff] }
 0xef8   :  { %v11267_v63 = vor.u32 %v13079_v49, %v11266_v56 }
 0xef9   :  { %v5379_v62 = vpop.f32.mrf.mxu2 }
 0xefa   :  { %v5391_v5 = vmul.f32 %v5387_v34, %v5379_v62  ;;  %5662 = vmatpush.bf16.msra.mxu1 %v11267_v63  ;;  %v11259_v62 = vor.u32 %v13077_v4, %v11258_v17  ;;  %v13091_v17 = vld [vmem:[#allocation34 + $0x58] sm:$0xff] }
 0xefb   :  { %v5368_v23 = vpop.f32.mrf.mxu1 }
 0xefc   :  { %v5408_v18 = vpop.f32.mrf.mxu3  ;;  %v5393_v60 = vadd.f32 %v5391_v5, %v5351_v43  ;;  %v5818_v43 = vld [vmem:[#allocation32 + $0x3] sm:$0x1] }
 0xefd   :  { %v5432_v36 = vmul.f32 %v5428_v16, %v5408_v18  ;;  %v5627_v16 = vld [vmem:[#allocation2 + $0x1a] sm:$0x3] }
 0xefe   :  { %v5423_v8 = vpop.f32.mrf.mxu0  ;;  %v5435_v31 = vadd.f32 %v5433_v0, %v5393_v60  ;;  %5663 = vmatpush.bf16.msra.mxu1 %v11259_v62  ;;  %v5629_v13 = vperm.slane %v5627_v16, 0  ;;  %v5630_v33 = vperm.slane %v5627_v16, 1  ;;  %v5986_v60 = vld [vmem:[#allocation32 + $0x7] sm:$0x1]  ;;  %v13081_v62 = vld [vmem:[#allocation34 + $0x8] sm:$0xff] }
 0xeff   :  { %v5434_v32 = vadd.f32 %v5432_v36, %v5392_v3 }
 0xf01   :  { %v5381_v54 = vpop.f32.mrf.mxu2 }
 0xf02   :  { %v5688_v54 = vld [vmem:[#allocation32] sm:$0x1] }
 0xf03   :  { %v5450_v44 = vpop.f32.mrf.mxu1 }
 0xf04   :  { %v5410_v29 = vpop.f32.mrf.mxu3  ;;  %v5474_v9 = vmul.f32 %v5470_v15, %v5450_v44 }
 0xf05   :  { %v5776_v29 = vld [vmem:[#allocation32 + $0x2] sm:$0x1] }
 0xf06   :  { %v5476_v24 = vadd.f32 %v5474_v9, %v5434_v32  ;;  %v5860_v32 = vld [vmem:[#allocation32 + $0x4] sm:$0x1]  ;;  %v5902_v9 = vld [vmem:[#allocation32 + $0x5] sm:$0x1] }
 0xf08   :  { %v5484_v19 = vadd.f32 %v5480_v21, %v5476_v24  ;;  %v5944_v21 = vld [vmem:[#allocation32 + $0x6] sm:$0x1]  ;;  %v6028_v24 = vld [vmem:[#allocation32 + $0x8] sm:$0x1] }
 0xf09   :  { %v5463_v58 = vpop.f32.mrf.mxu2 }
 0xf0a   :  { %v5486_v47 = vmax.f32 %v5484_v19, 0.0  ;;  %v5475_v22 = vmul.f32 %v5471_v51, %v5463_v58 }
 0xf0b   :  { %v5452_v40 = vpop.f32.mrf.mxu1 }
 0xf0c   :  { %v5488_v35 = vmin.f32 %v5486_v47, 6.0  ;;  %v5477_v39 = vadd.f32 %v5475_v22, %v5435_v31 }
 0xf0e   :  { %v5490_v57 = vpack.c.bf16 %v5488_v35, %v5488_v35  ;;  %v5485_v11 = vadd.f32 %v5481_v27, %v5477_v39  ;;  %v13087_v27 = vld [vmem:[#allocation34 + $0x38] sm:$0xff]  ;;  %v13086_v35 = vld [vmem:[#allocation34 + $0x30] sm:$0xff] }
 0xf10   :  { %v5487_v25 = vmax.f32 %v5485_v11, 0.0  ;;  %5603 = vmatmul.bf16.vlgmr.msrb.gmra.mxu3 %v5490_v57 }
 0xf11   :  { %v5465_v10 = vpop.f32.mrf.mxu2 }
 0xf12   :  { %v5489_v2 = vmin.f32 %v5487_v25, 6.0  ;;  %v13085_v25 = vld [vmem:[#allocation34 + $0x28] sm:$0xff] }
 0xf14   :  { %v5491_v12 = vpack.c.bf16 %v5489_v2, %v5489_v2  ;;  %v13084_v2 = vld [vmem:[#allocation34 + $0x20] sm:$0xff] }
 0xf16   :  { %11255 = vmatmul.msk.bf16.vlgmr.msrb.gmra.mxu0 %vm5000_vm9, %v5491_v12 }
 0xf93   :  { %v5604_v48 = vpop.f32.mrf.mxu3  ;;  %v5617_v7 = vpop.f32.mrf.mxu0 }
 0xf94   :  { %v5605_v61 = vadd.f32 %v13561_v50, %v5604_v48  ;;  %v11279_v50 = vld [vmem:[%s16777_s10 + $0x51] ss:$8 sm:$0x3] }
 0xf95   :  { %v13080_v48 = vld [vmem:[#allocation34] sm:$0xff] }
 0xf96   :  { %v5618_v23 = vadd.f32 %v5617_v7, %v5605_v61  ;;  %v11276_v7 = vld [vmem:[%s16777_s10 + $0x50] ss:$8 sm:$0x3]  ;;  %v11282_v61 = vld [vmem:[%s16777_s10 + $0x52] ss:$8 sm:$0x3] }
 0xf98   :  { %v5621_v18 = vadd.f32 %v5618_v23, %v15999_v42 }
 0xf9a   :  { %v5622_v1 = vpack.c.bf16 %v5621_v18, %v5621_v18  ;;  %v5767_v18 = vperm.slane %v11279_v50, 0 }
 0xf9b   :  { %v5606_v41 = vpop.f32.mrf.mxu3  ;;  %v5619_v20 = vpop.f32.mrf.mxu0 }
 0xf9c   :  { %11272 = vmatmul.msk.bf16.vlgmr.msra.gmra.mxu1 %vm2138_vm3, %v5622_v1  ;;  %11273 = vmatmul.msk.bf16.vlgmr.msra.gmra.mxu2 %vm2138_vm3, %v5622_v1  ;;  %v13089_v1 = vld [vmem:[#allocation34 + $0x48] sm:$0xff] }
 0xf9d   :  { %v11285_v41 = vld [vmem:[%s16777_s10 + $0x53] ss:$8 sm:$0x3] }
0x1019   :  { %v5665_v8 = vpop.f32.mrf.mxu1 }
0x101a   :  { %v5666_v59 = vadd.f32 %v5665_v8, %v5629_v13  ;;  %v5727_v13 = vperm.slane %v11276_v7, 0  ;;  %v5809_v8 = vperm.slane %v11282_v61, 0 }
0x101c   :  { %v5682_v52 = vmax.f32 %v5666_v59, 0.0  ;;  %v11288_v59 = vld [vmem:[%s16777_s10 + $0x54] ss:$8 sm:$0x3] }
0x101e   :  { %v5684_v34 = vmin.f32 %v5682_v52, 6.0 }
0x101f   :  { %v5678_v15 = vpop.f32.mrf.mxu2 }
0x1020   :  { %v5686_v46 = vpack.c.bf16 %v5684_v34, %v5684_v34  ;;  %v5679_v30 = vadd.f32 %v5678_v15, %v5630_v33  ;;  %v5851_v34 = vperm.slane %v11285_v41, 0  ;;  %v13088_v15 = vld [vmem:[#allocation34 + $0x40] sm:$0xff] }
0x1021   :  { %v5667_v45 = vpop.f32.mrf.mxu1 }
0x1022   :  { %v5693_v42 = vsel %vm2895_vm6, %v5686_v46, 0  ;;  %v5683_v36 = vmax.f32 %v5679_v30, 0.0  ;;  %v5728_v46 = vperm.slane %v11276_v7, 1  ;;  %v5768_v30 = vperm.slane %v11279_v50, 1  ;;  %v6069_v7 = vld [vmem:[#allocation2 + $0x1c] sm:$0x3] }
0x1023   :  { %5705 = vmatpush.bf16.msra.mxu0 %v5693_v42  ;;  %5745 = vmatpush.bf16.msrb.mxu2 %v5693_v42  ;;  %v5893_v45 = vperm.slane %v11288_v59, 0 }
0x1024   :  { %v5685_v3 = vmin.f32 %v5683_v36, 6.0 }
0x1026   :  { %v5687_v5 = vpack.c.bf16 %v5685_v3, %v5685_v3  ;;  %11274 = vmatmul.msk.bf16.vlgmr.msra.gmra.mxu0 %vm4505_vm8, %v5688_v54  ;;  %11277 = vmatmul.msk.bf16.vlgmr.msrb.gmra.mxu2 %vm4505_vm8, %v5734_v14  ;;  %v13103_v3 = vld [vmem:[#allocation35 + $0x58] sm:$0xf0] }
0x1027   :  { %5787 = vmatpush.bf16.msrb.mxu0 %v5693_v42  ;;  %5829 = vmatpush.bf16.msra.mxu2 %v5693_v42  ;;  %v5680_v37 = vpop.f32.mrf.mxu2 }
0x1028   :  { %v5696_v44 = vsel %vm2895_vm6, %v5687_v5, 0  ;;  %v11384_v5 = vld [vmem:[#allocation35 + $0x38] sm:$0xf]  ;;  %v5810_v37 = vperm.slane %v11282_v61, 1 }
0x1029   :  { %5718 = vmatpush.bf16.msrb.mxu1 %v5696_v44  ;;  %5758 = vmatpush.bf16.msra.mxu3 %v5696_v44 }
0x102b   :  { %5871 = vmatpush.bf16.msra.mxu0 %v5693_v42  ;;  %5913 = vmatpush.bf16.msrb.mxu2 %v5693_v42 }
0x102c   :  { %11275 = vmatmul.msk.bf16.vlgmr.msrb.gmra.mxu1 %vm4505_vm8, %v5688_v54  ;;  %11278 = vmatmul.msk.bf16.vlgmr.msra.gmra.mxu3 %vm4505_vm8, %v5734_v14  ;;  %v11396_v14 = vld [vmem:[#allocation35 + $0x50] sm:$0xf] }
0x102d   :  { %5800 = vmatpush.bf16.msra.mxu1 %v5696_v44  ;;  %5842 = vmatpush.bf16.msrb.mxu3 %v5696_v44 }
0x1031   :  { %5884 = vmatpush.bf16.msrb.mxu1 %v5696_v44  ;;  %5926 = vmatpush.bf16.msra.mxu3 %v5696_v44 }
0x1036   :  { %11280 = vmatmul.msk.bf16.vlgmr.msrb.gmra.mxu0 %vm4505_vm8, %v5776_v29  ;;  %11283 = vmatmul.msk.bf16.vlgmr.msra.gmra.mxu2 %vm4505_vm8, %v5818_v43 }
0x1037   :  { %5955 = vmatpush.bf16.msrb.mxu0 %v5693_v42  ;;  %5997 = vmatpush.bf16.msra.mxu2 %v5693_v42 }
0x103c   :  { %11281 = vmatmul.msk.bf16.vlgmr.msra.gmra.mxu1 %vm4505_vm8, %v5776_v29  ;;  %11284 = vmatmul.msk.bf16.vlgmr.msrb.gmra.mxu3 %vm4505_vm8, %v5818_v43  ;;  %v11397_v43 = vor.u32 %v13103_v3, %v11396_v14 }
0x103d   :  { %5968 = vmatpush.bf16.msra.mxu1 %v5696_v44  ;;  %6010 = vmatpush.bf16.msrb.mxu3 %v5696_v44 }
0x1046   :  { %11286 = vmatmul.msk.bf16.vlgmr.msra.gmra.mxu0 %vm4505_vm8, %v5860_v32  ;;  %11289 = vmatmul.msk.bf16.vlgmr.msrb.gmra.mxu2 %vm4505_vm8, %v5902_v9 }
0x1047   :  { %6039 = vmatpush.bf16.msra.mxu0 %v5693_v42  ;;  %6186 = vmatpush.bf16.msrb.mxu2 %v13087_v27  ;;  %v11291_v42 = vld [vmem:[%s16777_s10 + $0x55] ss:$8 sm:$0x3]  ;;  %v5852_v27 = vperm.slane %v11285_v41, 1 }
0x104b   :  { %6187 = vmatpush.bf16.msrb.mxu2 %v13086_v35 }
0x104c   :  { %11287 = vmatmul.msk.bf16.vlgmr.msrb.gmra.mxu1 %vm4505_vm8, %v5860_v32  ;;  %11290 = vmatmul.msk.bf16.vlgmr.msra.gmra.mxu3 %vm4505_vm8, %v5902_v9  ;;  %v13100_v32 = vld [vmem:[#allocation35 + $0x40] sm:$0xf0] }
0x104d   :  { %6052 = vmatpush.bf16.msrb.mxu1 %v5696_v44  ;;  %6203 = vmatpush.bf16.msra.mxu3 %v13091_v17  ;;  %v11294_v44 = vld [vmem:[%s16777_s10 + $0x56] ss:$8 sm:$0x3]  ;;  %v5936_v17 = vperm.slane %v11291_v42, 1 }
0x104e   :  { %v5977_v35 = vperm.slane %v11294_v44, 0 }
0x104f   :  { %6188 = vmatpush.bf16.msrb.mxu2 %v13085_v25 }
0x1051   :  { %6204 = vmatpush.bf16.msra.mxu3 %v13090_v53 }
0x1053   :  { %6189 = vmatpush.bf16.msrb.mxu2 %v13084_v2 }
0x1055   :  { %6205 = vmatpush.bf16.msra.mxu3 %v13089_v1 }
0x1056   :  { %11292 = vmatmul.msk.bf16.vlgmr.msrb.gmra.mxu0 %vm4505_vm8, %v5944_v21  ;;  %11295 = vmatmul.msk.bf16.vlgmr.msra.gmra.mxu2 %vm4505_vm8, %v5986_v60 }
0x1057   :  { %6190 = vmatpush.bf16.msrb.mxu2 %v13083_v6  ;;  %v11300_v6 = vld [vmem:[%s16777_s10 + $0x188] ss:$8 sm:$0x3] }
0x1059   :  { %6206 = vmatpush.bf16.msra.mxu3 %v13088_v15  ;;  %v6062_v15 = vperm.slane %v11300_v6, 1 }
0x105b   :  { %6191 = vmatpush.bf16.msrb.mxu2 %v13082_v28 }
0x105c   :  { %11293 = vmatmul.msk.bf16.vlgmr.msra.gmra.mxu1 %vm4505_vm8, %v5944_v21  ;;  %11296 = vmatmul.msk.bf16.vlgmr.msrb.gmra.mxu3 %vm4505_vm8, %v5986_v60  ;;  %v5935_v60 = vperm.slane %v11291_v42, 0 }
0x105d   :  { %6336 = vmatpush.bf16.msrb.mxu3 %v11397_v43 }
0x105f   :  { %6192 = vmatpush.bf16.msrb.mxu2 %v13081_v62 }
0x1063   :  { %6193 = vmatpush.bf16.msrb.mxu2 %v13080_v48  ;;  %v6061_v48 = vperm.slane %v11300_v6, 0 }
0x1066   :  { %11298 = vmatmul.msk.bf16.vlgmr.msra.gmra.mxu0 %vm4505_vm8, %v6028_v24 }
0x106c   :  { %11299 = vmatmul.msk.bf16.vlgmr.msrb.gmra.mxu1 %vm4505_vm8, %v6028_v24 }
0x10a3   :  { %v5707_v0 = vpop.f32.mrf.mxu0 }
0x10a4   :  { %v5731_v36 = vmul.f32 %v5727_v13, %v5707_v0  ;;  %v11297_v0 = vld [vmem:[%s16777_s10 + $0x57] ss:$8 sm:$0x3] }
0x10a9   :  { %v16067_v51 = vpop.f32.mrf.mxu1  ;;  %v5747_v19 = vpop.f32.mrf.mxu2 }
0x10aa   :  { %v5771_v33 = vmul.f32 %v5767_v18, %v5747_v19 }
0x10ab   :  { %v5709_v58 = vpop.f32.mrf.mxu0 }
0x10ac   :  { %v5773_v9 = vadd.f32 %v5771_v33, %v5731_v36 }
0x10af   :  { %v16069_v47 = vpop.f32.mrf.mxu3 }
0x10b0   :  { %v5772_v24 = vmul.f32 %v5768_v30, %v16069_v47 }
0x10b1   :  { %v5722_v31 = vpop.f32.mrf.mxu1  ;;  %v5749_v22 = vpop.f32.mrf.mxu2 }
0x10b2   :  { %v11385_v31 = vor.u32 %v13100_v32, %v11384_v5 }
0x10b3   :  { %v5789_v40 = vpop.f32.mrf.mxu0 }
0x10b4   :  { %v5813_v54 = vmul.f32 %v5809_v8, %v5789_v40  ;;  %6337 = vmatpush.bf16.msrb.mxu3 %v11385_v31 }
0x10b6   :  { %v5815_v22 = vadd.f32 %v5813_v54, %v5773_v9 }
0x10b7   :  { %v5762_v39 = vpop.f32.mrf.mxu3 }
0x10b8   :  { %v5732_v39 = vmul.f32 %v5728_v46, %v16067_v51 }
0x10b9   :  { %v16071_v57 = vpop.f32.mrf.mxu1  ;;  %v5831_v11 = vpop.f32.mrf.mxu2 }
0x10ba   :  { %v5855_v21 = vmul.f32 %v5851_v34, %v5831_v11  ;;  %v5814_v25 = vmul.f32 %v5810_v37, %v16071_v57  ;;  %v5894_v11 = vperm.slane %v11288_v59, 1  ;;  %v5774_v47 = vadd.f32 %v5772_v24, %v5732_v39  ;;  %v13102_v24 = vld [vmem:[#allocation35 + $0x50] sm:$0xf0]  ;;  %v13097_v39 = vld [vmem:[#allocation35 + $0x28] sm:$0xf0] }
0x10bb   :  { %v5791_v10 = vpop.f32.mrf.mxu0 }
0x10bc   :  { %v5857_v2 = vadd.f32 %v5855_v21, %v5815_v22  ;;  %v11376_v22 = vld [vmem:[#allocation35 + $0x30] sm:$0xf] }
0x10bf   :  { %v16073_v12 = vpop.f32.mrf.mxu3 }
0x10c0   :  { %v5856_v28 = vmul.f32 %v5852_v27, %v16073_v12  ;;  %v13099_v27 = vld [vmem:[#allocation35 + $0x38] sm:$0xf0] }
0x10c1   :  { %v5804_v56 = vpop.f32.mrf.mxu1  ;;  %v5833_v49 = vpop.f32.mrf.mxu2 }
0x10c2   :  { %v6019_v49 = vperm.slane %v11297_v0, 0 }
0x10c3   :  { %v5873_v63 = vpop.f32.mrf.mxu0 }
0x10c4   :  { %v5897_v40 = vmul.f32 %v5893_v45, %v5873_v63  ;;  %v5978_v63 = vperm.slane %v11294_v44, 1 }
0x10c7   :  { %v5846_v38 = vpop.f32.mrf.mxu3 }
0x10c8   :  { %v5899_v38 = vadd.f32 %v5897_v40, %v5857_v2  ;;  %v13098_v40 = vld [vmem:[#allocation35 + $0x34] sm:$0xf] }
0x10c9   :  { %v16075_v4 = vpop.f32.mrf.mxu1  ;;  %v5915_v55 = vpop.f32.mrf.mxu2 }
0x10ca   :  { %v5939_v56 = vmul.f32 %v5935_v60, %v5915_v55  ;;  %v5898_v51 = vmul.f32 %v5894_v11, %v16075_v4  ;;  %v11388_v60 = vld [vmem:[#allocation35 + $0x48] sm:$0xf] }
0x10cb   :  { %v5875_v26 = vpop.f32.mrf.mxu0 }
0x10cc   :  { %v5816_v26 = vadd.f32 %v5814_v25, %v5774_v47  ;;  %v5941_v50 = vadd.f32 %v5939_v56, %v5899_v38  ;;  %v11377_v25 = vor.u32 %v13099_v27, %v11376_v22  ;;  %v11364_v56 = vld [vmem:[#allocation35 + $0x18] sm:$0xf]  ;;  %v13095_v47 = vld [vmem:[#allocation35 + $0x1c] sm:$0xf] }
0x10cd   :  { %v11401_v27 = vld [vmem:[%s16777_s10 + $0x64] ss:$8 sm:$0x7] }
0x10ce   :  { %v5858_v18 = vadd.f32 %v5856_v28, %v5816_v26  ;;  %v11366_v28 = vld [vmem:[#allocation35 + $0x24] sm:$0xf0]  ;;  %v11352_v26 = vld [vmem:[#allocation35] sm:$0xf] }
0x10cf   :  { %v16080_v23 = vpop.f32.mrf.mxu3  ;;  %v11369_v38 = vor.u32 %v13095_v47, %v11366_v28  ;;  %v6355_v47 = vperm.slane %v11401_v27, 1 }
0x10d0   :  { %v5940_v1 = vmul.f32 %v5936_v17, %v16080_v23  ;;  %v5900_v13 = vadd.f32 %v5898_v51, %v5858_v18  ;;  %v6072_v23 = vperm.slane %v6069_v7, 1  ;;  %v11360_v17 = vld [vmem:[#allocation35 + $0x8] sm:$0xf]  ;;  %v13092_v51 = vld [vmem:[#allocation35 + $0x4] sm:$0xf] }
0x10d1   :  { %v5888_v20 = vpop.f32.mrf.mxu1  ;;  %v5917_v16 = vpop.f32.mrf.mxu2  ;;  %v13126_v18 = vld [vmem:[%s16804_s6 + $0xb0] sm:$0xff] }
0x10d2   :  { %v6020_v20 = vperm.slane %v11297_v0, 1  ;;  %v6071_v16 = vperm.slane %v6069_v7, 0  ;;  %v5942_v33 = vadd.f32 %v5940_v1, %v5900_v13  ;;  %v11390_v0 = vld [vmem:[#allocation35 + $0x54] sm:$0xf0]  ;;  %v13127_v7 = vld [vmem:[%s16804_s6 + $0xb8] sm:$0xff]  ;;  %v13110_v1 = vld [vmem:[%s16804_s6 + $0x30] sm:$0xff] }
0x10d3   :  { %v5957_v52 = vpop.f32.mrf.mxu0  ;;  %6605 = vmatpush.bf16.msra.mxu2 %v13127_v7  ;;  %v13124_v13 = vld [vmem:[%s16804_s6 + $0xa0] sm:$0xff] }
0x10d4   :  { %v5981_v62 = vmul.f32 %v5977_v35, %v5957_v52  ;;  %v11372_v35 = vld [vmem:[#allocation35 + $0x20] sm:$0xf] }
0x10d5   :  { %v11373_v2 = vor.u32 %v13097_v39, %v11372_v35 }
0x10d6   :  { %v5983_v41 = vadd.f32 %v5981_v62, %v5941_v50  ;;  %v13094_v62 = vld [vmem:[#allocation35 + $0x10] sm:$0xf0]  ;;  %v11354_v50 = vld [vmem:[#allocation35 + $0xc] sm:$0xf0] }
0x10d7   :  { %v5930_v29 = vpop.f32.mrf.mxu3  ;;  %6338 = vmatpush.bf16.msrb.mxu3 %v11373_v2  ;;  %6606 = vmatpush.bf16.msra.mxu2 %v13126_v18 }
0x10d9   :  { %v5970_v19 = vpop.f32.mrf.mxu1  ;;  %v5999_v58 = vpop.f32.mrf.mxu2 }
0x10da   :  { %v6023_v57 = vmul.f32 %v6019_v49, %v5999_v58  ;;  %v5982_v8 = vmul.f32 %v5978_v63, %v5970_v19  ;;  %v13101_v19 = vld [vmem:[#allocation35 + $0x4c] sm:$0xf]  ;;  %v11389_v58 = vor.u32 %v13102_v24, %v11388_v60  ;;  %v13096_v49 = vld [vmem:[#allocation35 + $0x20] sm:$0xf0]  ;;  %v11361_v63 = vor.u32 %v13094_v62, %v11360_v17  ;;  %v11544_v60 = vld [vmem:[#allocation37 + $0x50] sm:$0xf] }
0x10db   :  { %v5959_v10 = vpop.f32.mrf.mxu0  ;;  %v11393_v31 = vor.u32 %v13101_v19, %v11390_v0  ;;  %v11365_v6 = vor.u32 %v13096_v49, %v11364_v56  ;;  %v13139_v19 = vld [vmem:[#allocation37 + $0x58] sm:$0xf0]  ;;  %v6231_v0 = vld [vmem:[#allocation2 + $0x1f] sm:$0x7]  ;;  %v6354_v56 = vperm.slane %v11401_v27, 0 }
0x10dc   :  { %v6025_v59 = vadd.f32 %v6023_v57, %v5983_v41  ;;  %v5984_v30 = vadd.f32 %v5982_v8, %v5942_v33  ;;  %6310 = vmatpush.bf16.msrb.mxu0 %v11389_v58  ;;  %v11378_v10 = vld [vmem:[#allocation35 + $0x3c] sm:$0xf0]  ;;  %6339 = vmatpush.bf16.msrb.mxu3 %v11361_v63  ;;  %v13118_v41 = vld [vmem:[%s16804_s6 + $0x70] sm:$0xff]  ;;  %v11545_v58 = vor.u32 %v13139_v19, %v11544_v60  ;;  %v6234_v22 = vperm.slane %v6231_v0, 1  ;;  %v11538_v19 = vld [vmem:[#allocation37 + $0x54] sm:$0xf0] }
0x10dd   :  { %6323 = vmatpush.bf16.msra.mxu1 %v11393_v31  ;;  %v11381_v11 = vor.u32 %v13098_v40, %v11378_v10  ;;  %v6233_v31 = vperm.slane %v6231_v0, 0  ;;  %v6235_v2 = vperm.slane %v6231_v0, 2 }
0x10df   :  { %v6012_v53 = vpop.f32.mrf.mxu3 }
0x10e0   :  { %v6024_v34 = vmul.f32 %v6020_v20, %v6012_v53  ;;  %6311 = vmatpush.bf16.msrb.mxu0 %v11377_v25  ;;  %v13093_v53 = vld [vmem:[#allocation35 + $0x8] sm:$0xf0]  ;;  %v13125_v20 = vld [vmem:[%s16804_s6 + $0xa8] sm:$0xff]  ;;  %v6363_v25 = vld [vmem:[#allocation2 + $0x22] sm:$0x7] }
0x10e1   :  { %v5972_v61 = vpop.f32.mrf.mxu1  ;;  %v6001_v55 = vpop.f32.mrf.mxu2  ;;  %6324 = vmatpush.bf16.msra.mxu1 %v11381_v11  ;;  %v11353_v57 = vor.u32 %v13093_v53, %v11352_v26  ;;  %6607 = vmatpush.bf16.msra.mxu2 %v13125_v20  ;;  %v6365_v28 = vperm.slane %v6363_v25, 0  ;;  %v6366_v62 = vperm.slane %v6363_v25, 1  ;;  %v6367_v18 = vperm.slane %v6363_v25, 2  ;;  %v11502_v25 = vld [vmem:[#allocation37 + $0xc] sm:$0xf0] }
0x10e2   :  { %v6026_v36 = vadd.f32 %v6024_v34, %v5984_v30  ;;  %v13111_v61 = vld [vmem:[%s16804_s6 + $0x38] sm:$0xff]  ;;  %v13108_v30 = vld [vmem:[%s16804_s6 + $0x20] sm:$0xff] }
0x10e3   :  { %v6041_v12 = vpop.f32.mrf.mxu0  ;;  %v13119_v55 = vld [vmem:[%s16804_s6 + $0x78] sm:$0xff] }
0x10e4   :  { %v6065_v52 = vmul.f32 %v6061_v48, %v6041_v12  ;;  %6312 = vmatpush.bf16.msrb.mxu0 %v11365_v6  ;;  %v11357_v48 = vor.u32 %v13092_v51, %v11354_v50  ;;  %v13109_v12 = vld [vmem:[%s16804_s6 + $0x28] sm:$0xff] }
0x10e5   :  { %6325 = vmatpush.bf16.msra.mxu1 %v11369_v38  ;;  %6608 = vmatpush.bf16.msra.mxu2 %v13124_v13 }
0x10e6   :  { %v6067_v4 = vadd.f32 %v6065_v52, %v6025_v59  ;;  %v13562_v59 = vld [vmem:[#allocation2 + $0x1e] ss:$0 sm:$0xff] }
0x10e7   :  { %v6014_v46 = vpop.f32.mrf.mxu3 }
0x10e8   :  { %v6075_v45 = vadd.f32 %v6071_v16, %v6067_v4  ;;  %6313 = vmatpush.bf16.msrb.mxu0 %v11353_v57  ;;  %v13117_v16 = vld [vmem:[%s16804_s6 + $0x68] sm:$0xff]  ;;  %v6356_v57 = vperm.slane %v11401_v27, 2 }
0x10e9   :  { %v6054_v42 = vpop.f32.mrf.mxu1  ;;  %6326 = vmatpush.bf16.msra.mxu1 %v11357_v48  ;;  %v13131_v27 = vld [vmem:[#allocation37 + $0x1c] sm:$0xf] }
0x10ea   :  { %v6077_v54 = vmax.f32 %v6075_v45, 0.0  ;;  %v6066_v14 = vmul.f32 %v6062_v15, %v6054_v42  ;;  %v13116_v45 = vld [vmem:[%s16804_s6 + $0x60] sm:$0xff]  ;;  %v13107_v42 = vld [vmem:[%s16804_s6 + $0x18] sm:$0xff] }
0x10eb   :  { %v6043_v3 = vpop.f32.mrf.mxu0 }
0x10ec   :  { %v6079_v5 = vmin.f32 %v6077_v54, 6.0  ;;  %v6068_v37 = vadd.f32 %v6066_v14, %v6026_v36  ;;  %6579 = vmatpush.bf16.msra.mxu0 %v13111_v61  ;;  %v13115_v36 = vld [vmem:[%s16804_s6 + $0x58] sm:$0xff]  ;;  %v13106_v54 = vld [vmem:[%s16804_s6 + $0x10] sm:$0xff]  ;;  %v13105_v3 = vld [vmem:[%s16804_s6 + $0x8] sm:$0xff] }
0x10ed   :  { %6592 = vmatpush.bf16.msrb.mxu1 %v13119_v55  ;;  %v13114_v14 = vld [vmem:[%s16804_s6 + $0x50] sm:$0xff] }
0x10ee   :  { %v6081_v44 = vpack.c.bf16 %v6079_v5, %v6079_v5  ;;  %v6076_v29 = vadd.f32 %v6072_v23, %v6068_v37  ;;  %v13123_v23 = vld [vmem:[%s16804_s6 + $0x98] sm:$0xff]  ;;  %v13113_v5 = vld [vmem:[%s16804_s6 + $0x48] sm:$0xff]  ;;  %v13122_v37 = vld [vmem:[%s16804_s6 + $0x90] sm:$0xff] }
0x10ef   :  { %6609 = vmatpush.bf16.msra.mxu2 %v13123_v23  ;;  %v13132_v23 = vld [vmem:[#allocation37 + $0x20] sm:$0xf0] }
0x10f0   :  { %v6078_v43 = vmax.f32 %v6076_v29, 0.0  ;;  %6194 = vmatmul.bf16.vlgmr.msrb.gmra.mxu2 %v6081_v44  ;;  %6580 = vmatpush.bf16.msra.mxu0 %v13110_v1  ;;  %v13104_v44 = vld [vmem:[%s16804_s6] sm:$0xff] }
0x10f1   :  { %v6056_v32 = vpop.f32.mrf.mxu1  ;;  %6593 = vmatpush.bf16.msrb.mxu1 %v13118_v41  ;;  %v13112_v29 = vld [vmem:[%s16804_s6 + $0x40] sm:$0xff] }
0x10f2   :  { %v6080_v9 = vmin.f32 %v6078_v43, 6.0  ;;  %v13121_v43 = vld [vmem:[%s16804_s6 + $0x88] sm:$0xff]  ;;  %v13120_v32 = vld [vmem:[%s16804_s6 + $0x80] sm:$0xff] }
0x10f3   :  { %6610 = vmatpush.bf16.msra.mxu2 %v13122_v37  ;;  %v13133_v37 = vld [vmem:[#allocation37 + $0x28] sm:$0xf0] }
0x10f4   :  { %v6082_v21 = vpack.c.bf16 %v6080_v9, %v6080_v9  ;;  %6581 = vmatpush.bf16.msra.mxu0 %v13109_v12  ;;  %v11536_v9 = vld [vmem:[#allocation37 + $0x48] sm:$0xf] }
0x10f5   :  { %6594 = vmatpush.bf16.msrb.mxu1 %v13117_v16 }
0x10f6   :  { %11349 = vmatmul.msk.bf16.vlgmr.msra.gmra.mxu3 %vm5000_vm9, %v6082_v21  ;;  %v13138_v21 = vld [vmem:[#allocation37 + $0x50] sm:$0xf0] }
0x10f7   :  { %6611 = vmatpush.bf16.msra.mxu2 %v13121_v43  ;;  %v11537_v24 = vor.u32 %v13138_v21, %v11536_v9  ;;  %v13129_v43 = vld [vmem:[#allocation37 + $0x8] sm:$0xf0]  ;;  %v13130_v21 = vld [vmem:[#allocation37 + $0x10] sm:$0xf0] }
0x10f8   :  { %6582 = vmatpush.bf16.msra.mxu0 %v13108_v30  ;;  %v13135_v30 = vld [vmem:[#allocation37 + $0x38] sm:$0xf0] }
0x10f9   :  { %6595 = vmatpush.bf16.msrb.mxu1 %v13116_v45  ;;  %6715 = vmatpush.bf16.msra.mxu3 %v11537_v24  ;;  %v11532_v45 = vld [vmem:[#allocation37 + $0x38] sm:$0xf]  ;;  %v13137_v24 = vld [vmem:[#allocation37 + $0x4c] sm:$0xf] }
0x10fa   :  { %v11541_v0 = vor.u32 %v13137_v24, %v11538_v19 }
0x10fb   :  { %6612 = vmatpush.bf16.msra.mxu2 %v13120_v32  ;;  %v11508_v32 = vld [vmem:[#allocation37 + $0x8] sm:$0xf] }
0x10fc   :  { %6583 = vmatpush.bf16.msra.mxu0 %v13107_v42  ;;  %v11509_v60 = vor.u32 %v13130_v21, %v11508_v32 }
0x10fd   :  { %6596 = vmatpush.bf16.msrb.mxu1 %v13115_v36  ;;  %v13136_v36 = vld [vmem:[#allocation37 + $0x40] sm:$0xf0] }
0x1100   :  { %6584 = vmatpush.bf16.msra.mxu0 %v13106_v54  ;;  %v11533_v54 = vor.u32 %v13136_v36, %v11532_v45 }
0x1101   :  { %6597 = vmatpush.bf16.msrb.mxu1 %v13114_v14  ;;  %v11512_v14 = vld [vmem:[#allocation37 + $0x18] sm:$0xf] }
0x1104   :  { %6585 = vmatpush.bf16.msra.mxu0 %v13105_v3  ;;  %v11520_v3 = vld [vmem:[#allocation37 + $0x20] sm:$0xf] }
0x1105   :  { %6598 = vmatpush.bf16.msrb.mxu1 %v13113_v5  ;;  %v11513_v5 = vor.u32 %v13132_v23, %v11512_v14  ;;  %v6768_v14 = vld [vmem:[#allocation2 + $0x29] sm:$0x7] }
0x1108   :  { %6586 = vmatpush.bf16.msra.mxu0 %v13104_v44  ;;  %v11521_v44 = vor.u32 %v13133_v37, %v11520_v3 }
0x1109   :  { %6599 = vmatpush.bf16.msrb.mxu1 %v13112_v29  ;;  %v11500_v29 = vld [vmem:[#allocation37] sm:$0xf] }
0x110a   :  { %v11501_v9 = vor.u32 %v13129_v43, %v11500_v29  ;;  %v13148_v29 = vld [vmem:[%s16805_s8 + $0x40] sm:$0xff] }
0x1173   :  { %v6195_v8 = vpop.f32.mrf.mxu2 }
0x1174   :  { %v6196_v52 = vadd.f32 %v13562_v59, %v6195_v8 }
0x1179   :  { %v6208_v33 = vpop.f32.mrf.mxu3 }
0x117a   :  { %v16105_v34 = vadd.f32 %v6208_v33, %v6196_v52 }
0x117b   :  { %v6197_v4 = vpop.f32.mrf.mxu2 }
0x117c   :  { %v6214_v15 = vpack.c.bf16 %v16105_v34, %v16105_v34  ;;  %6213 = vst.msk [vmem:[#allocation48] sm:$0x3] %vm6212_vm10, %v16105_v34 }
0x117e   :  { %11400 = vmatmul.msk.bf16.vlgmr.msrb.gmra.mxu3 %vm5000_vm9, %v6214_v15  ;;  %11398 = vmatmul.msk.bf16.vlgmr.msrb.gmra.mxu0 %vm5000_vm9, %v6214_v15 }
0x117f   :  { %11399 = vmatmul.msk.bf16.vlgmr.msra.gmra.mxu1 %vm5000_vm9, %v6214_v15  ;;  %6741 = vmatpush.bf16.msrb.mxu0 %v11545_v58  ;;  %v13134_v58 = vld [vmem:[#allocation37 + $0x34] sm:$0xf] }
0x1181   :  { %v6210_v46 = vpop.f32.mrf.mxu3 }
0x1182   :  { %v11524_v46 = vld [vmem:[#allocation37 + $0x30] sm:$0xf] }
0x1183   :  { %v11525_v42 = vor.u32 %v13135_v30, %v11524_v46  ;;  %6742 = vmatpush.bf16.msrb.mxu0 %v11533_v54  ;;  %v13150_v30 = vld [vmem:[%s16805_s8 + $0x50] sm:$0xff]  ;;  %v13149_v54 = vld [vmem:[%s16805_s8 + $0x48] sm:$0xff] }
0x1185   :  { %6716 = vmatpush.bf16.msra.mxu3 %v11525_v42  ;;  %v11549_v42 = vld [vmem:[%s16777_s10 + $0x7c] ss:$8 sm:$0x7] }
0x1186   :  { %v6761_v3 = vperm.slane %v11549_v42, 2  ;;  %v6759_v19 = vperm.slane %v11549_v42, 0 }
0x1187   :  { %6743 = vmatpush.bf16.msrb.mxu0 %v11521_v44  ;;  %v6772_v44 = vperm.slane %v6768_v14, 2 }
0x1189   :  { %6717 = vmatpush.bf16.msra.mxu3 %v11513_v5 }
0x118b   :  { %6744 = vmatpush.bf16.msrb.mxu0 %v11509_v60 }
0x118d   :  { %6718 = vmatpush.bf16.msra.mxu3 %v11501_v9 }
0x1191   :  { %6728 = vmatpush.bf16.msrb.mxu3 %v11541_v0 }
0x11fb   :  { %v6315_v40 = vpop.f32.mrf.mxu0 }
0x11fc   :  { %v6316_v35 = vadd.f32 %v6315_v40, %v6233_v31  ;;  %v6328_v39 = vpop.f32.mrf.mxu1  ;;  %v11526_v31 = vld [vmem:[#allocation37 + $0x3c] sm:$0xf0]  ;;  %v11514_v40 = vld [vmem:[#allocation37 + $0x24] sm:$0xf0] }
0x11fd   :  { %v6329_v10 = vadd.f32 %v6328_v39, %v6234_v22  ;;  %v11529_v22 = vor.u32 %v13134_v58, %v11526_v31  ;;  %v13128_v39 = vld [vmem:[#allocation37 + $0x4] sm:$0xf]  ;;  %v6770_v31 = vperm.slane %v6768_v14, 0 }
0x11fe   :  { %v6345_v11 = vmax.f32 %v6316_v35, 0.0  ;;  %v11517_v35 = vor.u32 %v13131_v27, %v11514_v40 }
0x11ff   :  { %v6346_v49 = vmax.f32 %v6329_v10, 0.0  ;;  %6729 = vmatpush.bf16.msrb.mxu3 %v11529_v22  ;;  %v11505_v10 = vor.u32 %v13128_v39, %v11502_v25 }
0x1200   :  { %v6348_v6 = vmin.f32 %v6345_v11, 6.0 }
0x1201   :  { %v6341_v38 = vpop.f32.mrf.mxu3  ;;  %v6349_v17 = vmin.f32 %v6346_v49, 6.0  ;;  %v13147_v49 = vld [vmem:[%s16805_s8 + $0x38] sm:$0xff] }
0x1202   :  { %v6342_v26 = vadd.f32 %v6341_v38, %v6235_v2  ;;  %v6360_v63 = vmul.f32 %v6354_v56, %v6348_v6  ;;  %v13563_v56 = vld [vmem:[#allocation2 + $0x25] ss:$0 sm:$0xff]  ;;  %6984 = vmatpush.bf16.msra.mxu1 %v13147_v49 }
0x1203   :  { %v6361_v53 = vmul.f32 %v6355_v47, %v6349_v17  ;;  %v6317_v51 = vpop.f32.mrf.mxu0  ;;  %6730 = vmatpush.bf16.msrb.mxu3 %v11517_v35  ;;  %v13146_v47 = vld [vmem:[%s16805_s8 + $0x30] sm:$0xff] }
0x1204   :  { %v6347_v50 = vmax.f32 %v6342_v26, 0.0  ;;  %v6371_v48 = vadd.f32 %v6365_v28, %v6360_v63  ;;  %v6330_v7 = vpop.f32.mrf.mxu1 }
0x1205   :  { %v6372_v61 = vadd.f32 %v6366_v62, %v6361_v53  ;;  %v13163_v53 = vld [vmem:[%s16805_s8 + $0xb8] sm:$0xff]  ;;  %v13145_v7 = vld [vmem:[%s16805_s8 + $0x28] sm:$0xff] }
0x1206   :  { %v6350_v55 = vmin.f32 %v6347_v50, 6.0  ;;  %v6374_v1 = vmax.f32 %v6371_v48, 0.0  ;;  %6985 = vmatpush.bf16.msra.mxu1 %v13146_v47  ;;  %v13161_v48 = vld [vmem:[%s16805_s8 + $0xa8] sm:$0xff] }
0x1207   :  { %v6375_v41 = vmax.f32 %v6372_v61, 0.0  ;;  %6731 = vmatpush.bf16.msrb.mxu3 %v11505_v10  ;;  %v13159_v61 = vld [vmem:[%s16805_s8 + $0x98] sm:$0xff] }
0x1208   :  { %v6362_v20 = vmul.f32 %v6356_v57, %v6350_v55  ;;  %v6377_v12 = vmin.f32 %v6374_v1, 6.0  ;;  %v13162_v57 = vld [vmem:[%s16805_s8 + $0xb0] sm:$0xff]  ;;  %v13144_v55 = vld [vmem:[%s16805_s8 + $0x20] sm:$0xff]  ;;  %v13143_v1 = vld [vmem:[%s16805_s8 + $0x18] sm:$0xff] }
0x1209   :  { %v6378_v16 = vmin.f32 %v6375_v41, 6.0  ;;  %v6343_v13 = vpop.f32.mrf.mxu3  ;;  %v13155_v41 = vld [vmem:[%s16805_s8 + $0x78] sm:$0xff] }
0x120a   :  { %v6373_v8 = vadd.f32 %v6367_v18, %v6362_v20  ;;  %v6380_v59 = vpack.c.bf16 %v6377_v12, %v6377_v12  ;;  %6986 = vmatpush.bf16.msra.mxu1 %v13145_v7  ;;  %v13158_v18 = vld [vmem:[%s16805_s8 + $0x90] sm:$0xff]  ;;  %6997 = vmatpush.bf16.msrb.mxu2 %v13155_v41  ;;  %v13157_v20 = vld [vmem:[%s16805_s8 + $0x88] sm:$0xff]  ;;  %v13156_v13 = vld [vmem:[%s16805_s8 + $0x80] sm:$0xff] }
0x120b   :  { %v6381_v52 = vpack.c.bf16 %v6378_v16, %v6378_v16  ;;  %v13142_v12 = vld [vmem:[%s16805_s8 + $0x10] sm:$0xff]  ;;  %v11680_v41 = vld [vmem:[#allocation38 + $0x38] sm:$0xf] }
0x120c   :  { %v6376_v33 = vmax.f32 %v6373_v8, 0.0  ;;  %6587 = vmatmul.bf16.vlgmr.msra.gmra.mxu0 %v6380_v59  ;;  %v13154_v16 = vld [vmem:[%s16805_s8 + $0x70] sm:$0xff]  ;;  %v13141_v8 = vld [vmem:[%s16805_s8 + $0x8] sm:$0xff] }
0x120d   :  { %6600 = vmatmul.bf16.vlgmr.msrb.gmra.mxu1 %v6381_v52  ;;  %v13153_v59 = vld [vmem:[%s16805_s8 + $0x68] sm:$0xff]  ;;  %v13140_v52 = vld [vmem:[%s16805_s8] sm:$0xff] }
0x120e   :  { %v6379_v4 = vmin.f32 %v6376_v33, 6.0  ;;  %6987 = vmatpush.bf16.msra.mxu1 %v13144_v55  ;;  %6998 = vmatpush.bf16.msrb.mxu2 %v13154_v16  ;;  %v13152_v33 = vld [vmem:[%s16805_s8 + $0x60] sm:$0xff]  ;;  %v11672_v55 = vld [vmem:[#allocation38 + $0x30] sm:$0xf] }
0x1210   :  { %v6382_v15 = vpack.c.bf16 %v6379_v4, %v6379_v4  ;;  %v13151_v4 = vld [vmem:[%s16805_s8 + $0x58] sm:$0xff] }
0x1212   :  { %6613 = vmatmul.bf16.vlgmr.msra.gmra.mxu2 %v6382_v15  ;;  %6988 = vmatpush.bf16.msra.mxu1 %v13143_v1  ;;  %v6636_v15 = vld [vmem:[#allocation2 + $0x26] sm:$0x7] }
0x1213   :  { %6999 = vmatpush.bf16.msrb.mxu2 %v13153_v59  ;;  %v6640_v46 = vperm.slane %v6636_v15, 2  ;;  %v6638_v5 = vperm.slane %v6636_v15, 0  ;;  %v11668_v59 = vld [vmem:[#allocation38 + $0x20] sm:$0xf] }
0x1216   :  { %6989 = vmatpush.bf16.msra.mxu1 %v13142_v12 }
0x1217   :  { %7000 = vmatpush.bf16.msrb.mxu2 %v13152_v33  ;;  %v13169_v33 = vld [vmem:[#allocation38 + $0x28] sm:$0xf0] }
0x121a   :  { %6990 = vmatpush.bf16.msra.mxu1 %v13141_v8  ;;  %v13168_v8 = vld [vmem:[#allocation38 + $0x20] sm:$0xf0] }
0x121b   :  { %7001 = vmatpush.bf16.msrb.mxu2 %v13151_v4  ;;  %v11669_v4 = vor.u32 %v13169_v33, %v11668_v59  ;;  %v7173_v33 = vld [vmem:[#allocation2 + $0x30] sm:$0x7] }
0x121e   :  { %6991 = vmatpush.bf16.msra.mxu1 %v13140_v52 }
0x121f   :  { %7002 = vmatpush.bf16.msrb.mxu2 %v13150_v30  ;;  %v11656_v30 = vld [vmem:[#allocation38 + $0x8] sm:$0xf] }
0x1223   :  { %7003 = vmatpush.bf16.msrb.mxu2 %v13149_v54  ;;  %v13173_v54 = vld [vmem:[#allocation38 + $0x4c] sm:$0xf] }
0x1227   :  { %7004 = vmatpush.bf16.msrb.mxu2 %v13148_v29 }
0x1289   :  { %v6588_v2 = vpop.f32.mrf.mxu0 }
0x128a   :  { %v6601_v11 = vpop.f32.mrf.mxu1  ;;  %v6589_v6 = vadd.f32 %v13563_v56, %v6588_v2  ;;  %v6639_v2 = vperm.slane %v6636_v15, 1  ;;  %v11648_v15 = vld [vmem:[#allocation38] sm:$0xf] }
0x128c   :  { %v6602_v17 = vadd.f32 %v6601_v11, %v6589_v6  ;;  %v6760_v6 = vperm.slane %v11549_v42, 1  ;;  %v13166_v42 = vld [vmem:[#allocation38 + $0x10] sm:$0xf0] }
0x1291   :  { %v6590_v28 = vpop.f32.mrf.mxu0 }
0x1292   :  { %v6603_v38 = vpop.f32.mrf.mxu1 }
0x1293   :  { %v6771_v38 = vperm.slane %v6768_v14, 1  ;;  %v11686_v14 = vld [vmem:[#allocation38 + $0x54] sm:$0xf0] }
0x1295   :  { %v6614_v62 = vpop.f32.mrf.mxu2 }
0x1296   :  { %v6615_v26 = vadd.f32 %v6614_v62, %v6602_v17 }
0x1298   :  { %v16131_v63 = vadd.f32 %v6615_v26, %v16105_v34  ;;  %v13160_v34 = vld [vmem:[%s16805_s8 + $0xa0] sm:$0xff] }
0x129a   :  { %v6619_v51 = vpack.c.bf16 %v16131_v63, %v16131_v63 }
0x129c   :  { %11546 = vmatmul.msk.bf16.vlgmr.msra.gmra.mxu3 %vm5000_vm9, %v6619_v51  ;;  %11548 = vmatmul.msk.bf16.vlgmr.msrb.gmra.mxu0 %vm5000_vm9, %v6619_v51 }
0x129d   :  { %v6616_v50 = vpop.f32.mrf.mxu2  ;;  %7010 = vmatpush.bf16.msra.mxu3 %v13163_v53 }
0x12a1   :  { %7011 = vmatpush.bf16.msra.mxu3 %v13162_v57  ;;  %v11684_v57 = vld [vmem:[#allocation38 + $0x48] sm:$0xf] }
0x12a5   :  { %7012 = vmatpush.bf16.msra.mxu3 %v13161_v48  ;;  %v13174_v48 = vld [vmem:[#allocation38 + $0x50] sm:$0xf0] }
0x12a6   :  { %v11685_v7 = vor.u32 %v13174_v48, %v11684_v57  ;;  %v13193_v57 = vld [vmem:[#allocation40 + $0x88] sm:$0xff]  ;;  %v13176_v48 = vld [vmem:[#allocation40] sm:$0xff] }
0x12a8   :  { %7120 = vmatpush.bf16.msra.mxu0 %v11685_v7  ;;  %v13192_v7 = vld [vmem:[#allocation40 + $0x80] sm:$0xff] }
0x12a9   :  { %7013 = vmatpush.bf16.msra.mxu3 %v13160_v34  ;;  %v11692_v34 = vld [vmem:[#allocation38 + $0x50] sm:$0xf] }
0x12ac   :  { %11547 = vmatmul.msk.bf16.vlgmr.msrb.gmra.mxu3 %vm5000_vm9, %v6619_v51 }
0x12ad   :  { %7014 = vmatpush.bf16.msra.mxu3 %v13159_v61  ;;  %v13175_v61 = vld [vmem:[#allocation38 + $0x58] sm:$0xf0] }
0x12ae   :  { %v11693_v1 = vor.u32 %v13175_v61, %v11692_v34  ;;  %v13188_v34 = vld [vmem:[#allocation40 + $0x60] sm:$0xff]  ;;  %v13187_v61 = vld [vmem:[#allocation40 + $0x58] sm:$0xff] }
0x12b0   :  { %7146 = vmatpush.bf16.msrb.mxu1 %v11693_v1  ;;  %v13185_v1 = vld [vmem:[#allocation40 + $0x48] sm:$0xff] }
0x12b1   :  { %7015 = vmatpush.bf16.msra.mxu3 %v13158_v18  ;;  %v13171_v18 = vld [vmem:[#allocation38 + $0x38] sm:$0xf0] }
0x12b2   :  { %v11673_v12 = vor.u32 %v13171_v18, %v11672_v55  ;;  %v13186_v55 = vld [vmem:[#allocation40 + $0x50] sm:$0xff]  ;;  %v7041_v18 = vld [vmem:[#allocation2 + $0x2d] sm:$0x7] }
0x12b4   :  { %7121 = vmatpush.bf16.msra.mxu0 %v11673_v12  ;;  %v13184_v12 = vld [vmem:[#allocation40 + $0x40] sm:$0xff] }
0x12b5   :  { %7016 = vmatpush.bf16.msra.mxu3 %v13157_v20  ;;  %v13172_v20 = vld [vmem:[#allocation38 + $0x40] sm:$0xf0] }
0x12b6   :  { %v11681_v16 = vor.u32 %v13172_v20, %v11680_v41  ;;  %v7043_v41 = vperm.slane %v7041_v18, 0  ;;  %v7045_v20 = vperm.slane %v7041_v18, 2 }
0x12b8   :  { %7147 = vmatpush.bf16.msrb.mxu1 %v11681_v16 }
0x12b9   :  { %7017 = vmatpush.bf16.msra.mxu3 %v13156_v13  ;;  %v11660_v13 = vld [vmem:[#allocation38 + $0x18] sm:$0xf] }
0x12ba   :  { %v11661_v52 = vor.u32 %v13168_v8, %v11660_v13  ;;  %v11697_v13 = vld [vmem:[%s16777_s10 + $0x94] ss:$8 sm:$0x7] }
0x12bc   :  { %7122 = vmatpush.bf16.msra.mxu0 %v11661_v52  ;;  %7148 = vmatpush.bf16.msrb.mxu1 %v11669_v4 }
0x1319   :  { %v6746_v45 = vpop.f32.mrf.mxu0 }
0x131a   :  { %v6747_v36 = vadd.f32 %v6746_v45, %v6640_v46  ;;  %v13165_v46 = vld [vmem:[#allocation38 + $0x8] sm:$0xf0] }
0x131b   :  { %v11649_v45 = vor.u32 %v13165_v46, %v11648_v15  ;;  %v7164_v15 = vperm.slane %v11697_v13, 0 }
0x131c   :  { %v6752_v23 = vmax.f32 %v6747_v36, 0.0  ;;  %v11657_v36 = vor.u32 %v13166_v42, %v11656_v30  ;;  %v7166_v30 = vperm.slane %v11697_v13, 2  ;;  %v7175_v42 = vperm.slane %v7173_v33, 0 }
0x131d   :  { %7123 = vmatpush.bf16.msra.mxu0 %v11649_v45 }
0x131e   :  { %v6755_v37 = vmin.f32 %v6752_v23, 6.0  ;;  %v13170_v23 = vld [vmem:[#allocation38 + $0x34] sm:$0xf]  ;;  %7149 = vmatpush.bf16.msrb.mxu1 %v11657_v36 }
0x131f   :  { %v6720_v43 = vpop.f32.mrf.mxu3 }
0x1320   :  { %v6767_v32 = vmul.f32 %v6761_v3, %v6755_v37  ;;  %v6721_v9 = vadd.f32 %v6720_v43, %v6638_v5  ;;  %v11689_v37 = vor.u32 %v13173_v54, %v11686_v14  ;;  %v13167_v43 = vld [vmem:[#allocation38 + $0x1c] sm:$0xf]  ;;  %v7177_v54 = vperm.slane %v7173_v33, 2 }
0x1321   :  { %v6748_v21 = vpop.f32.mrf.mxu0 }
0x1322   :  { %v6778_v60 = vadd.f32 %v6772_v44, %v6767_v32  ;;  %v6750_v24 = vmax.f32 %v6721_v9, 0.0  ;;  %v11674_v44 = vld [vmem:[#allocation38 + $0x3c] sm:$0xf0]  ;;  %7133 = vmatpush.bf16.msrb.mxu0 %v11689_v37  ;;  %v11662_v32 = vld [vmem:[#allocation38 + $0x24] sm:$0xf0] }
0x1323   :  { %v11677_v29 = vor.u32 %v13170_v23, %v11674_v44  ;;  %v11665_v9 = vor.u32 %v13167_v43, %v11662_v32  ;;  %v13164_v21 = vld [vmem:[#allocation38 + $0x4] sm:$0xf] }
0x1324   :  { %v6781_v58 = vmax.f32 %v6778_v60, 0.0  ;;  %v6753_v0 = vmin.f32 %v6750_v24, 6.0  ;;  %v11650_v60 = vld [vmem:[#allocation38 + $0xc] sm:$0xf0] }
0x1326   :  { %v6784_v22 = vmin.f32 %v6781_v58, 6.0  ;;  %v6765_v27 = vmul.f32 %v6759_v19, %v6753_v0  ;;  %7134 = vmatpush.bf16.msrb.mxu0 %v11677_v29  ;;  %v11653_v58 = vor.u32 %v13164_v21, %v11650_v60  ;;  %v13183_v0 = vld [vmem:[#allocation40 + $0x38] sm:$0xff]  ;;  %v7044_v21 = vperm.slane %v7041_v18, 1  ;;  %v13201_v18 = vld [vmem:[#allocation41 + $0x8] sm:$0xf0] }
0x1327   :  { %v6722_v40 = vpop.f32.mrf.mxu3  ;;  %7389 = vmatpush.bf16.msra.mxu2 %v13183_v0 }
0x1328   :  { %v6787_v35 = vpack.c.bf16 %v6784_v22, %v6784_v22  ;;  %v6776_v39 = vadd.f32 %v6770_v31, %v6765_v27  ;;  %v13564_v31 = vld [vmem:[#allocation2 + $0x2c] ss:$0 sm:$0xff]  ;;  %v13182_v22 = vld [vmem:[#allocation40 + $0x30] sm:$0xff]  ;;  %v13181_v40 = vld [vmem:[#allocation40 + $0x28] sm:$0xff] }
0x132a   :  { %v6779_v25 = vmax.f32 %v6776_v39, 0.0  ;;  %7018 = vmatmul.bf16.vlgmr.msra.gmra.mxu3 %v6787_v35  ;;  %7135 = vmatpush.bf16.msrb.mxu0 %v11665_v9 }
0x132b   :  { %7390 = vmatpush.bf16.msra.mxu2 %v13182_v22 }
0x132c   :  { %v6782_v10 = vmin.f32 %v6779_v25, 6.0 }
0x132e   :  { %v6785_v11 = vpack.c.bf16 %v6782_v10, %v6782_v10  ;;  %7136 = vmatpush.bf16.msrb.mxu0 %v11653_v58  ;;  %v13180_v10 = vld [vmem:[#allocation40 + $0x20] sm:$0xff] }
0x132f   :  { %v6733_v56 = vpop.f32.mrf.mxu3  ;;  %7391 = vmatpush.bf16.msra.mxu2 %v13181_v40 }
0x1330   :  { %v6734_v49 = vadd.f32 %v6733_v56, %v6639_v2  ;;  %6992 = vmatmul.bf16.vlgmr.msra.gmra.mxu1 %v6785_v11  ;;  %v13199_v11 = vld [vmem:[#allocation40 + $0xb8] sm:$0xff] }
0x1332   :  { %v6751_v47 = vmax.f32 %v6734_v49, 0.0 }
0x1333   :  { %7392 = vmatpush.bf16.msra.mxu2 %v13180_v10 }
0x1334   :  { %v6754_v28 = vmin.f32 %v6751_v47, 6.0  ;;  %v13198_v47 = vld [vmem:[#allocation40 + $0xb0] sm:$0xff] }
0x1336   :  { %v6766_v17 = vmul.f32 %v6760_v6, %v6754_v28  ;;  %v13197_v6 = vld [vmem:[#allocation40 + $0xa8] sm:$0xff]  ;;  %v13196_v28 = vld [vmem:[#allocation40 + $0xa0] sm:$0xff] }
0x1337   :  { %v6735_v62 = vpop.f32.mrf.mxu3 }
0x1338   :  { %v6777_v26 = vadd.f32 %v6771_v38, %v6766_v17  ;;  %v13191_v38 = vld [vmem:[#allocation40 + $0x78] sm:$0xff]  ;;  %v13178_v62 = vld [vmem:[#allocation40 + $0x10] sm:$0xff] }
0x1339   :  { %v13195_v17 = vld [vmem:[#allocation40 + $0x98] sm:$0xff]  ;;  %7402 = vmatpush.bf16.msrb.mxu3 %v13191_v38 }
0x133a   :  { %v6780_v53 = vmax.f32 %v6777_v26, 0.0  ;;  %v13190_v26 = vld [vmem:[#allocation40 + $0x70] sm:$0xff]  ;;  %v13207_v38 = vld [vmem:[#allocation41 + $0x38] sm:$0xf0] }
0x133c   :  { %v6783_v51 = vmin.f32 %v6780_v53, 6.0  ;;  %v13194_v53 = vld [vmem:[#allocation40 + $0x90] sm:$0xff] }
0x133d   :  { %7403 = vmatpush.bf16.msrb.mxu3 %v13190_v26  ;;  %v13208_v26 = vld [vmem:[#allocation41 + $0x40] sm:$0xf0] }
0x133e   :  { %v6786_v50 = vpack.c.bf16 %v6783_v51, %v6783_v51  ;;  %v13177_v51 = vld [vmem:[#allocation40 + $0x8] sm:$0xff] }
0x1340   :  { %7005 = vmatmul.bf16.vlgmr.msrb.gmra.mxu2 %v6786_v50  ;;  %v13189_v50 = vld [vmem:[#allocation40 + $0x68] sm:$0xff] }
0x1341   :  { %7404 = vmatpush.bf16.msrb.mxu3 %v13189_v50  ;;  %v11808_v50 = vld [vmem:[#allocation41 + $0x18] sm:$0xf] }
0x1345   :  { %7405 = vmatpush.bf16.msrb.mxu3 %v13188_v34 }
0x1349   :  { %7406 = vmatpush.bf16.msrb.mxu3 %v13187_v61 }
0x134d   :  { %7407 = vmatpush.bf16.msrb.mxu3 %v13186_v55  ;;  %v11796_v55 = vld [vmem:[#allocation41] sm:$0xf] }
0x1351   :  { %7408 = vmatpush.bf16.msrb.mxu3 %v13185_v1  ;;  %v11804_v1 = vld [vmem:[#allocation41 + $0x8] sm:$0xf] }
0x1355   :  { %7409 = vmatpush.bf16.msrb.mxu3 %v13184_v12 }
0x13ad   :  { %v6993_v3 = vpop.f32.mrf.mxu1  ;;  %v7019_v5 = vpop.f32.mrf.mxu3 }
0x13ae   :  { %v6994_v27 = vadd.f32 %v13564_v31, %v6993_v3  ;;  %v7165_v31 = vperm.slane %v11697_v13, 1  ;;  %v11834_v13 = vld [vmem:[#allocation41 + $0x54] sm:$0xf0] }
0x13b5   :  { %v6995_v24 = vpop.f32.mrf.mxu1  ;;  %v7021_v19 = vpop.f32.mrf.mxu3 }
0x13c3   :  { %v7006_v35 = vpop.f32.mrf.mxu2 }
0x13c4   :  { %v7007_v39 = vadd.f32 %v7006_v35, %v6994_v27  ;;  %v7176_v27 = vperm.slane %v7173_v33, 1  ;;  %v11822_v33 = vld [vmem:[#allocation41 + $0x3c] sm:$0xf0] }
0x13c6   :  { %v7020_v25 = vadd.f32 %v7019_v5, %v7007_v39 }
0x13c8   :  { %v16162_v2 = vadd.f32 %v7020_v25, %v16131_v63  ;;  %v13179_v63 = vld [vmem:[#allocation40 + $0x18] sm:$0xff] }
0x13c9   :  { %7393 = vmatpush.bf16.msra.mxu2 %v13179_v63  ;;  %v11820_v63 = vld [vmem:[#allocation41 + $0x30] sm:$0xf] }
0x13ca   :  { %v7024_v56 = vpack.c.bf16 %v16162_v2, %v16162_v2 }
0x13cb   :  { %v7008_v49 = vpop.f32.mrf.mxu2 }
0x13cc   :  { %11694 = vmatmul.msk.bf16.vlgmr.msra.gmra.mxu0 %vm5000_vm9, %v7024_v56  ;;  %11696 = vmatmul.msk.bf16.vlgmr.msrb.gmra.mxu1 %vm5000_vm9, %v7024_v56  ;;  %v13210_v49 = vld [vmem:[#allocation41 + $0x50] sm:$0xf0] }
0x13cd   :  { %7415 = vmatpush.bf16.msra.mxu0 %v13199_v11  ;;  %7394 = vmatpush.bf16.msra.mxu2 %v13178_v62  ;;  %v11828_v62 = vld [vmem:[#allocation41 + $0x38] sm:$0xf] }
0x13d1   :  { %7416 = vmatpush.bf16.msra.mxu0 %v13198_v47  ;;  %7395 = vmatpush.bf16.msra.mxu2 %v13177_v51  ;;  %v11840_v47 = vld [vmem:[#allocation41 + $0x50] sm:$0xf]  ;;  %v11829_v51 = vor.u32 %v13208_v26, %v11828_v62 }
0x13d2   :  { %v16178_v26 = vld [vmem:[%s16777_s10 + $0xac] ss:$8 sm:$0x7] }
0x13d5   :  { %7417 = vmatpush.bf16.msra.mxu0 %v13197_v6  ;;  %7396 = vmatpush.bf16.msra.mxu2 %v13176_v48  ;;  %v11816_v48 = vld [vmem:[#allocation41 + $0x20] sm:$0xf] }
0x13d9   :  { %7418 = vmatpush.bf16.msra.mxu0 %v13196_v28  ;;  %v13211_v28 = vld [vmem:[#allocation41 + $0x58] sm:$0xf0] }
0x13dc   :  { %11695 = vmatmul.msk.bf16.vlgmr.msrb.gmra.mxu0 %vm5000_vm9, %v7024_v56  ;;  %v11832_v56 = vld [vmem:[#allocation41 + $0x48] sm:$0xf] }
0x13dd   :  { %7419 = vmatpush.bf16.msra.mxu0 %v13195_v17  ;;  %v11833_v6 = vor.u32 %v13210_v49, %v11832_v56  ;;  %v11841_v17 = vor.u32 %v13211_v28, %v11840_v47  ;;  %v13212_v56 = vld [vmem:[#allocation43] sm:$0xff]  ;;  %v13229_v47 = vld [vmem:[#allocation43 + $0x88] sm:$0xff] }
0x13de   :  { %v13224_v49 = vld [vmem:[#allocation43 + $0x60] sm:$0xff] }
0x13df   :  { %7525 = vmatpush.bf16.msra.mxu1 %v11833_v6  ;;  %7551 = vmatpush.bf16.msrb.mxu2 %v11841_v17  ;;  %v13223_v6 = vld [vmem:[#allocation43 + $0x58] sm:$0xff]  ;;  %v13228_v28 = vld [vmem:[#allocation43 + $0x80] sm:$0xff]  ;;  %v13221_v17 = vld [vmem:[#allocation43 + $0x48] sm:$0xff] }
0x13e1   :  { %7420 = vmatpush.bf16.msra.mxu0 %v13194_v53  ;;  %v11821_v53 = vor.u32 %v13207_v38, %v11820_v63  ;;  %v13222_v63 = vld [vmem:[#allocation43 + $0x50] sm:$0xff]  ;;  %v16174_v38 = vld [vmem:[#allocation2 + $0x34] sm:$0x7] }
0x13e2   :  { %v7448_v62 = vperm.slane %v16174_v38, 0 }
0x13e3   :  { %7526 = vmatpush.bf16.msra.mxu1 %v11821_v53  ;;  %7552 = vmatpush.bf16.msrb.mxu2 %v11829_v51  ;;  %v13220_v53 = vld [vmem:[#allocation43 + $0x40] sm:$0xff] }
0x13e5   :  { %7421 = vmatpush.bf16.msra.mxu0 %v13193_v57  ;;  %v13204_v57 = vld [vmem:[#allocation41 + $0x20] sm:$0xf0] }
0x13e6   :  { %v11809_v34 = vor.u32 %v13204_v57, %v11808_v50  ;;  %v7569_v50 = vperm.slane %v16178_v26, 0  ;;  %v16181_v57 = vld [vmem:[#allocation2 + $0x37] sm:$0x7] }
0x13e8   :  { %7527 = vmatpush.bf16.msra.mxu1 %v11809_v34  ;;  %v12044_v34 = vld [vmem:[%s16806_s9 + $0xc8] sm:$0xf] }
0x13e9   :  { %7422 = vmatpush.bf16.msra.mxu0 %v13192_v7  ;;  %v13205_v7 = vld [vmem:[#allocation41 + $0x28] sm:$0xf0] }
0x13ea   :  { %v11817_v61 = vor.u32 %v13205_v7, %v11816_v48  ;;  %v13263_v7 = vld [vmem:[%s16806_s9 + $0xd8] sm:$0xf0] }
0x13ec   :  { %7553 = vmatpush.bf16.msrb.mxu2 %v11817_v61  ;;  %v12024_v61 = vld [vmem:[%s16806_s9 + $0xa0] sm:$0xf] }
0x1449   :  { %v7125_v16 = vpop.f32.mrf.mxu0  ;;  %v7151_v8 = vpop.f32.mrf.mxu1 }
0x144a   :  { %v7126_v59 = vadd.f32 %v7125_v16, %v7043_v41  ;;  %v7152_v52 = vadd.f32 %v7151_v8, %v7045_v20  ;;  %v11797_v41 = vor.u32 %v13201_v18, %v11796_v55  ;;  %v13202_v20 = vld [vmem:[#allocation41 + $0x10] sm:$0xf0]  ;;  %v13209_v16 = vld [vmem:[#allocation41 + $0x4c] sm:$0xf]  ;;  %v12045_v55 = vor.u32 %v13263_v7, %v12044_v34  ;;  %v13258_v18 = vld [vmem:[%s16806_s9 + $0xb0] sm:$0xf0] }
0x144b   :  { %v11805_v12 = vor.u32 %v13202_v20, %v11804_v1  ;;  %v13206_v8 = vld [vmem:[#allocation41 + $0x34] sm:$0xf]  ;;  %v13261_v1 = vld [vmem:[%s16806_s9 + $0xcc] sm:$0xf]  ;;  %v13248_v34 = vld [vmem:[%s16806_s9 + $0x60] sm:$0xf0] }
0x144c   :  { %v7155_v4 = vmax.f32 %v7126_v59, 0.0  ;;  %v7157_v46 = vmax.f32 %v7152_v52, 0.0  ;;  %7528 = vmatpush.bf16.msra.mxu1 %v11797_v41  ;;  %v11837_v52 = vor.u32 %v13209_v16, %v11834_v13  ;;  %v12046_v41 = vld [vmem:[%s16806_s9 + $0xdc] sm:$0xf0]  ;;  %v12052_v13 = vld [vmem:[%s16806_s9 + $0xd0] sm:$0xf] }
0x144d   :  { %7554 = vmatpush.bf16.msrb.mxu2 %v11805_v12  ;;  %v7450_v12 = vperm.slane %v16174_v38, 2  ;;  %v12049_v16 = vor.u32 %v13261_v1, %v12046_v41  ;;  %v13251_v7 = vld [vmem:[%s16806_s9 + $0x7c] sm:$0xf] }
0x144e   :  { %v7158_v45 = vmin.f32 %v7155_v4, 6.0  ;;  %v7160_v36 = vmin.f32 %v7157_v46, 6.0  ;;  %v11825_v4 = vor.u32 %v13206_v8, %v11822_v33  ;;  %v11810_v46 = vld [vmem:[#allocation41 + $0x24] sm:$0xf0]  ;;  %v13264_v8 = vld [vmem:[%s16806_s9 + $0xe0] sm:$0xf0] }
0x144f   :  { %v12060_v33 = vld [vmem:[%s16806_s9 + $0xd8] sm:$0xf] }
0x1450   :  { %v7170_v14 = vmul.f32 %v7164_v15, %v7158_v45  ;;  %v7172_v23 = vmul.f32 %v7166_v30, %v7160_v36  ;;  %7538 = vmatpush.bf16.msrb.mxu1 %v11837_v52  ;;  %v13203_v15 = vld [vmem:[#allocation41 + $0x1c] sm:$0xf]  ;;  %v11798_v36 = vld [vmem:[#allocation41 + $0xc] sm:$0xf0]  ;;  %v12053_v52 = vor.u32 %v13264_v8, %v12052_v13 }
0x1451   :  { %v7127_v3 = vpop.f32.mrf.mxu0  ;;  %v7153_v5 = vpop.f32.mrf.mxu1  ;;  %v11813_v45 = vor.u32 %v13203_v15, %v11810_v46  ;;  %v12004_v15 = vld [vmem:[%s16806_s9 + $0x78] sm:$0xf]  ;;  %v13243_v8 = vld [vmem:[%s16806_s9 + $0x38] sm:$0xf0] }
0x1452   :  { %v7181_v37 = vadd.f32 %v7175_v42, %v7170_v14  ;;  %v7183_v44 = vadd.f32 %v7177_v54, %v7172_v23  ;;  %v13200_v42 = vld [vmem:[#allocation41 + $0x4] sm:$0xf]  ;;  %v13219_v3 = vld [vmem:[#allocation43 + $0x38] sm:$0xff] }
0x1453   :  { %v11801_v14 = vor.u32 %v13200_v42, %v11798_v36  ;;  %v13565_v5 = vld [vmem:[#allocation2 + $0x33] ss:$0 sm:$0xff]  ;;  %7794 = vmatpush.bf16.msra.mxu3 %v13219_v3  ;;  %v13253_v42 = vld [vmem:[%s16806_s9 + $0x88] sm:$0xf0]  ;;  %v13256_v36 = vld [vmem:[%s16806_s9 + $0xa4] sm:$0xf] }
0x1454   :  { %v7184_v29 = vmax.f32 %v7181_v37, 0.0  ;;  %v7186_v43 = vmax.f32 %v7183_v44, 0.0  ;;  %7539 = vmatpush.bf16.msrb.mxu1 %v11825_v4  ;;  %v13218_v37 = vld [vmem:[#allocation43 + $0x30] sm:$0xff]  ;;  %v13265_v4 = vld [vmem:[%s16806_s9 + $0xe8] sm:$0xf0] }
0x1455   :  { %v13259_v3 = vld [vmem:[%s16806_s9 + $0xb8] sm:$0xf0] }
0x1456   :  { %v7187_v32 = vmin.f32 %v7184_v29, 6.0  ;;  %v7189_v9 = vmin.f32 %v7186_v43, 6.0  ;;  %v13217_v29 = vld [vmem:[#allocation43 + $0x28] sm:$0xff] }
0x1457   :  { %7795 = vmatpush.bf16.msra.mxu3 %v13218_v37 }
0x1458   :  { %v7190_v60 = vpack.c.bf16 %v7187_v32, %v7187_v32  ;;  %v7192_v24 = vpack.c.bf16 %v7189_v9, %v7189_v9  ;;  %7540 = vmatpush.bf16.msrb.mxu1 %v11813_v45  ;;  %v12061_v45 = vor.u32 %v13265_v4, %v12060_v33 }
0x1459   :  { %v7138_v19 = vpop.f32.mrf.mxu0 }
0x145a   :  { %v7139_v58 = vadd.f32 %v7138_v19, %v7044_v21  ;;  %7397 = vmatmul.bf16.vlgmr.msra.gmra.mxu2 %v7190_v60  ;;  %7423 = vmatmul.bf16.vlgmr.msra.gmra.mxu0 %v7192_v24  ;;  %v13216_v21 = vld [vmem:[#allocation43 + $0x20] sm:$0xff]  ;;  %v13235_v24 = vld [vmem:[#allocation43 + $0xb8] sm:$0xff] }
0x145b   :  { %7796 = vmatpush.bf16.msra.mxu3 %v13217_v29  ;;  %8043 = vmatpush.bf16.msra.mxu2 %v12045_v55  ;;  %v12006_v55 = vld [vmem:[%s16806_s9 + $0x8c] sm:$0xf0] }
0x145c   :  { %v7156_v0 = vmax.f32 %v7139_v58, 0.0  ;;  %7541 = vmatpush.bf16.msrb.mxu1 %v11801_v14  ;;  %v12026_v14 = vld [vmem:[%s16806_s9 + $0xb4] sm:$0xf0]  ;;  %v12009_v1 = vor.u32 %v13251_v7, %v12006_v55  ;;  %v13280_v55 = vld [vmem:[%s16807_s11 + $0x70] sm:$0xff] }
0x145d   :  { %v13281_v7 = vld [vmem:[%s16807_s11 + $0x78] sm:$0xff] }
0x145e   :  { %v7159_v22 = vmin.f32 %v7156_v0, 6.0  ;;  %v13234_v0 = vld [vmem:[#allocation43 + $0xb0] sm:$0xff] }
0x145f   :  { %7797 = vmatpush.bf16.msra.mxu3 %v13216_v21  ;;  %v12005_v21 = vor.u32 %v13253_v42, %v12004_v15  ;;  %v11992_v15 = vld [vmem:[%s16806_s9 + $0x58] sm:$0xf]  ;;  %v13250_v42 = vld [vmem:[%s16806_s9 + $0x70] sm:$0xf0] }
0x1460   :  { %v7171_v40 = vmul.f32 %v7165_v31, %v7159_v22  ;;  %v13233_v31 = vld [vmem:[#allocation43 + $0xa8] sm:$0xff]  ;;  %v13215_v22 = vld [vmem:[#allocation43 + $0x18] sm:$0xff] }
0x1461   :  { %v7140_v35 = vpop.f32.mrf.mxu0 }
0x1462   :  { %v7182_v39 = vadd.f32 %v7176_v27, %v7171_v40  ;;  %v13227_v27 = vld [vmem:[#allocation43 + $0x78] sm:$0xff]  ;;  %v13214_v40 = vld [vmem:[#allocation43 + $0x10] sm:$0xff] }
0x1463   :  { %7798 = vmatpush.bf16.msra.mxu3 %v13215_v22  ;;  %7807 = vmatpush.bf16.msrb.mxu0 %v13227_v27  ;;  %v13226_v35 = vld [vmem:[#allocation43 + $0x70] sm:$0xff]  ;;  %v7582_v22 = vperm.slane %v16181_v57, 2 }
0x1464   :  { %v7185_v25 = vmax.f32 %v7182_v39, 0.0  ;;  %v13231_v39 = vld [vmem:[#allocation43 + $0x98] sm:$0xff] }
0x1466   :  { %v7188_v10 = vmin.f32 %v7185_v25, 6.0  ;;  %v13213_v25 = vld [vmem:[#allocation43 + $0x8] sm:$0xff] }
0x1467   :  { %7799 = vmatpush.bf16.msra.mxu3 %v13214_v40  ;;  %7808 = vmatpush.bf16.msrb.mxu0 %v13226_v35  ;;  %v7449_v40 = vperm.slane %v16174_v38, 1  ;;  %v7581_v38 = vperm.slane %v16181_v57, 1 }
0x1468   :  { %v7191_v11 = vpack.c.bf16 %v7188_v10, %v7188_v10  ;;  %v13225_v10 = vld [vmem:[#allocation43 + $0x68] sm:$0xff] }
0x146a   :  { %7410 = vmatmul.bf16.vlgmr.msrb.gmra.mxu3 %v7191_v11  ;;  %v13230_v11 = vld [vmem:[#allocation43 + $0x90] sm:$0xff] }
0x146b   :  { %7800 = vmatpush.bf16.msra.mxu3 %v13213_v25  ;;  %7809 = vmatpush.bf16.msrb.mxu0 %v13225_v10 }
0x146f   :  { %7801 = vmatpush.bf16.msra.mxu3 %v13212_v56  ;;  %7810 = vmatpush.bf16.msrb.mxu0 %v13224_v49 }
0x1473   :  { %7811 = vmatpush.bf16.msrb.mxu0 %v13223_v6  ;;  %8056 = vmatpush.bf16.msrb.mxu3 %v12049_v16  ;;  %v7570_v6 = vperm.slane %v16178_v26, 1  ;;  %v11964_v16 = vld [vmem:[%s16806_s9 + $0x28] sm:$0xf] }
0x1474   :  { %v11965_v33 = vor.u32 %v13243_v8, %v11964_v16  ;;  %v13289_v8 = vld [vmem:[%s16807_s11 + $0xb8] sm:$0xff] }
0x1477   :  { %7812 = vmatpush.bf16.msrb.mxu0 %v13222_v63 }
0x147b   :  { %7813 = vmatpush.bf16.msrb.mxu0 %v13221_v17 }
0x147f   :  { %7814 = vmatpush.bf16.msrb.mxu0 %v13220_v53 }
0x1483   :  { %8069 = vmatpush.bf16.msra.mxu0 %v12053_v52  ;;  %v11986_v52 = vld [vmem:[%s16806_s9 + $0x64] sm:$0xf0] }
0x14d7   :  { %v7424_v59 = vpop.f32.mrf.mxu0 }
0x14dd   :  { %v7398_v30 = vpop.f32.mrf.mxu2 }
0x14de   :  { %v7399_v44 = vadd.f32 %v13565_v5, %v7398_v30  ;;  %v7580_v30 = vperm.slane %v16181_v57, 0  ;;  %v12012_v57 = vld [vmem:[%s16806_s9 + $0x80] sm:$0xf] }
0x14df   :  { %v7426_v54 = vpop.f32.mrf.mxu0 }
0x14e5   :  { %v7400_v23 = vpop.f32.mrf.mxu2 }
0x14e6   :  { %v12032_v23 = vld [vmem:[%s16806_s9 + $0xa8] sm:$0xf] }
0x14e7   :  { %v12033_v29 = vor.u32 %v13259_v3, %v12032_v23  ;;  %v13241_v3 = vld [vmem:[%s16806_s9 + $0x2c] sm:$0xf] }
0x14e9   :  { %8070 = vmatpush.bf16.msra.mxu0 %v12033_v29  ;;  %v13244_v29 = vld [vmem:[%s16806_s9 + $0x40] sm:$0xf0] }
0x14ed   :  { %v7411_v43 = vpop.f32.mrf.mxu3 }
0x14ee   :  { %v7412_v32 = vadd.f32 %v7411_v43, %v7399_v44  ;;  %v12029_v44 = vor.u32 %v13256_v36, %v12026_v14  ;;  %v12040_v43 = vld [vmem:[%s16806_s9 + $0xb0] sm:$0xf]  ;;  %v13238_v14 = vld [vmem:[%s16806_s9 + $0x10] sm:$0xf0] }
0x14f0   :  { %v7425_v9 = vadd.f32 %v7424_v59, %v7412_v32  ;;  %v12025_v59 = vor.u32 %v13258_v18, %v12024_v61  ;;  %v13260_v32 = vld [vmem:[%s16806_s9 + $0xc0] sm:$0xf0]  ;;  %8057 = vmatpush.bf16.msrb.mxu3 %v12029_v44  ;;  %v13254_v18 = vld [vmem:[%s16806_s9 + $0x90] sm:$0xf0] }
0x14f1   :  { %v12013_v41 = vor.u32 %v13254_v18, %v12012_v57  ;;  %v13566_v57 = vld [vmem:[#allocation2 + $0x3a] ss:$0 sm:$0xff] }
0x14f2   :  { %v7428_v60 = vadd.f32 %v7425_v9, %v16162_v2  ;;  %v13232_v2 = vld [vmem:[#allocation43 + $0xa0] sm:$0xff]  ;;  %8044 = vmatpush.bf16.msra.mxu2 %v12025_v59  ;;  %v13246_v59 = vld [vmem:[%s16806_s9 + $0x54] sm:$0xf] }
0x14f3   :  { %8071 = vmatpush.bf16.msra.mxu0 %v12013_v41  ;;  %v11989_v4 = vor.u32 %v13246_v59, %v11986_v52  ;;  %v13288_v52 = vld [vmem:[%s16807_s11 + $0xb0] sm:$0xff] }
0x14f4   :  { %v7429_v19 = vpack.c.bf16 %v7428_v60, %v7428_v60  ;;  %v12041_v60 = vor.u32 %v13260_v32, %v12040_v43  ;;  %8058 = vmatpush.bf16.msrb.mxu3 %v12009_v1  ;;  %v13262_v43 = vld [vmem:[%s16806_s9 + $0xd4] sm:$0xf]  ;;  %v12054_v32 = vld [vmem:[%s16806_s9 + $0xe4] sm:$0xf0] }
0x14f5   :  { %v7413_v58 = vpop.f32.mrf.mxu3 }
0x14f6   :  { %11842 = vmatmul.msk.bf16.vlgmr.msra.gmra.mxu1 %vm5000_vm9, %v7429_v19  ;;  %11844 = vmatmul.msk.bf16.vlgmr.msrb.gmra.mxu2 %vm5000_vm9, %v7429_v19  ;;  %v7571_v58 = vperm.slane %v16178_v26, 2  ;;  %v11984_v26 = vld [vmem:[%s16806_s9 + $0x50] sm:$0xf] }
0x14f7   :  { %7820 = vmatpush.bf16.msra.mxu1 %v13235_v24  ;;  %8045 = vmatpush.bf16.msra.mxu2 %v12005_v21  ;;  %v11985_v61 = vor.u32 %v13248_v34, %v11984_v26  ;;  %v12057_v21 = vor.u32 %v13262_v43, %v12054_v32  ;;  %v13273_v34 = vld [vmem:[%s16807_s11 + $0x38] sm:$0xff]  ;;  %v13267_v43 = vld [vmem:[%s16807_s11 + $0x8] sm:$0xff] }
0x14f8   :  { %8059 = vmatpush.bf16.msrb.mxu3 %v11989_v4  ;;  %v13286_v4 = vld [vmem:[%s16807_s11 + $0xa0] sm:$0xff]  ;;  %v13275_v32 = vld [vmem:[%s16807_s11 + $0x48] sm:$0xff] }
0x14fb   :  { %7821 = vmatpush.bf16.msra.mxu1 %v13234_v0  ;;  %8046 = vmatpush.bf16.msra.mxu2 %v11985_v61  ;;  %v13272_v61 = vld [vmem:[%s16807_s11 + $0x30] sm:$0xff] }
0x14ff   :  { %7822 = vmatpush.bf16.msra.mxu1 %v13233_v31  ;;  %8047 = vmatpush.bf16.msra.mxu2 %v11965_v33  ;;  %v13287_v33 = vld [vmem:[%s16807_s11 + $0xa8] sm:$0xff] }
0x1503   :  { %7823 = vmatpush.bf16.msra.mxu1 %v13232_v2 }
0x1506   :  { %11843 = vmatmul.msk.bf16.vlgmr.msrb.gmra.mxu1 %vm5000_vm9, %v7429_v19 }
0x1507   :  { %7824 = vmatpush.bf16.msra.mxu1 %v13231_v39 }
0x150b   :  { %7825 = vmatpush.bf16.msra.mxu1 %v13230_v11 }
0x150f   :  { %7826 = vmatpush.bf16.msra.mxu1 %v13229_v47 }
0x1513   :  { %7827 = vmatpush.bf16.msra.mxu1 %v13228_v28 }
0x1517   :  { %8095 = vmatpush.bf16.msrb.mxu1 %v12061_v45 }
0x151b   :  { %8096 = vmatpush.bf16.msrb.mxu1 %v12041_v60  ;;  %v11980_v60 = vld [vmem:[%s16806_s9 + $0x38] sm:$0xf] }
0x1573   :  { %v7530_v51 = vpop.f32.mrf.mxu1 }
0x1574   :  { %v7531_v48 = vadd.f32 %v7530_v51, %v7448_v62 }
0x1576   :  { %v7560_v20 = vmax.f32 %v7531_v48, 0.0 }
0x1578   :  { %v7563_v46 = vmin.f32 %v7560_v20, 6.0  ;;  %v12020_v20 = vld [vmem:[%s16806_s9 + $0x88] sm:$0xf] }
0x1579   :  { %v7556_v54 = vpop.f32.mrf.mxu2 }
0x157a   :  { %v7575_v5 = vmul.f32 %v7569_v50, %v7563_v46  ;;  %v7557_v37 = vadd.f32 %v7556_v54, %v7450_v12  ;;  %v13255_v12 = vld [vmem:[%s16806_s9 + $0x98] sm:$0xf0]  ;;  %v13249_v46 = vld [vmem:[%s16806_s9 + $0x68] sm:$0xf0]  ;;  %v11944_v54 = vld [vmem:[%s16806_s9] sm:$0xf] }
0x157b   :  { %v7532_v9 = vpop.f32.mrf.mxu1  ;;  %v12021_v13 = vor.u32 %v13255_v12, %v12020_v20  ;;  %v11993_v45 = vor.u32 %v13249_v46, %v11992_v15  ;;  %v11945_v23 = vor.u32 %v13238_v14, %v11944_v54  ;;  %v13271_v15 = vld [vmem:[%s16807_s11 + $0x28] sm:$0xff]  ;;  %v13269_v54 = vld [vmem:[%s16807_s11 + $0x18] sm:$0xff] }
0x157c   :  { %v7586_v24 = vadd.f32 %v7580_v30, %v7575_v5  ;;  %v7562_v19 = vmax.f32 %v7557_v37, 0.0  ;;  %v12000_v30 = vld [vmem:[%s16806_s9 + $0x60] sm:$0xf]  ;;  %v11972_v37 = vld [vmem:[%s16806_s9 + $0x30] sm:$0xf]  ;;  %v13279_v46 = vld [vmem:[%s16807_s11 + $0x68] sm:$0xff] }
0x157d   :  { %8097 = vmatpush.bf16.msrb.mxu1 %v12021_v13  ;;  %v12001_v36 = vor.u32 %v13250_v42, %v12000_v30  ;;  %8072 = vmatpush.bf16.msra.mxu0 %v11993_v45  ;;  %v11966_v5 = vld [vmem:[%s16806_s9 + $0x3c] sm:$0xf0]  ;;  %v11973_v9 = vor.u32 %v13244_v29, %v11972_v37  ;;  %v13285_v30 = vld [vmem:[%s16807_s11 + $0x98] sm:$0xff]  ;;  %v13276_v37 = vld [vmem:[%s16807_s11 + $0x50] sm:$0xff] }
0x157e   :  { %v7589_v0 = vmax.f32 %v7586_v24, 0.0  ;;  %v7565_v31 = vmin.f32 %v7562_v19, 6.0  ;;  %v11969_v44 = vor.u32 %v13241_v3, %v11966_v5  ;;  %8048 = vmatpush.bf16.msra.mxu2 %v11945_v23  ;;  %v13245_v24 = vld [vmem:[%s16806_s9 + $0x48] sm:$0xf0]  ;;  %v13270_v45 = vld [vmem:[%s16807_s11 + $0x20] sm:$0xff]  ;;  %v13277_v14 = vld [vmem:[%s16807_s11 + $0x58] sm:$0xff] }
0x157f   :  { %v11981_v19 = vor.u32 %v13245_v24, %v11980_v60  ;;  %v13278_v42 = vld [vmem:[%s16807_s11 + $0x60] sm:$0xff]  ;;  %v13297_v23 = vld [vmem:[%s16807_s11 + $0xf8] sm:$0xff]  ;;  %v13283_v3 = vld [vmem:[%s16807_s11 + $0x88] sm:$0xff] }
0x1580   :  { %v7592_v27 = vmin.f32 %v7589_v0, 6.0  ;;  %v7577_v2 = vmul.f32 %v7571_v58, %v7565_v31  ;;  %8060 = vmatpush.bf16.msrb.mxu3 %v11969_v44  ;;  %v13236_v58 = vld [vmem:[%s16806_s9 + $0x4] sm:$0xf]  ;;  %v11946_v0 = vld [vmem:[%s16806_s9 + $0x14] sm:$0xf0]  ;;  %v13268_v5 = vld [vmem:[%s16807_s11 + $0x10] sm:$0xff] }
0x1581   :  { %v7558_v35 = vpop.f32.mrf.mxu2  ;;  %8098 = vmatpush.bf16.msrb.mxu1 %v12001_v36  ;;  %8073 = vmatpush.bf16.msra.mxu0 %v11973_v9  ;;  %v11952_v31 = vld [vmem:[%s16806_s9 + $0x8] sm:$0xf]  ;;  %v13284_v36 = vld [vmem:[%s16807_s11 + $0x90] sm:$0xff]  ;;  %v13282_v29 = vld [vmem:[%s16807_s11 + $0x80] sm:$0xff] }
0x1582   :  { %v7595_v39 = vpack.c.bf16 %v7592_v27, %v7592_v27  ;;  %v7588_v25 = vadd.f32 %v7582_v22, %v7577_v2  ;;  %8082 = vmatpush.bf16.msrb.mxu2 %v12057_v21  ;;  %v11949_v22 = vor.u32 %v13236_v58, %v11946_v0  ;;  %v13239_v27 = vld [vmem:[%s16806_s9 + $0x18] sm:$0xf0]  ;;  %v13257_v2 = vld [vmem:[%s16806_s9 + $0xac] sm:$0xf]  ;;  %v13296_v44 = vld [vmem:[%s16807_s11 + $0xf0] sm:$0xff] }
0x1583   :  { %v7543_v10 = vpop.f32.mrf.mxu1  ;;  %v11953_v35 = vor.u32 %v13239_v27, %v11952_v31  ;;  %v13295_v9 = vld [vmem:[%s16807_s11 + $0xe8] sm:$0xff]  ;;  %v13266_v21 = vld [vmem:[%s16807_s11] sm:$0xff]  ;;  %v13301_v58 = vld [vmem:[%s16807_s11 + $0x118] sm:$0xff] }
0x1584   :  { %v7591_v11 = vmax.f32 %v7588_v25, 0.0  ;;  %v7544_v56 = vadd.f32 %v7543_v10, %v7449_v40  ;;  %7802 = vmatmul.bf16.vlgmr.msra.gmra.mxu3 %v7595_v39  ;;  %v12034_v40 = vld [vmem:[%s16806_s9 + $0xbc] sm:$0xf0]  ;;  %v11960_v25 = vld [vmem:[%s16806_s9 + $0x10] sm:$0xf] }
0x1585   :  { %8099 = vmatpush.bf16.msrb.mxu1 %v11981_v19  ;;  %v12037_v39 = vor.u32 %v13257_v2, %v12034_v40  ;;  %v13240_v10 = vld [vmem:[%s16806_s9 + $0x20] sm:$0xf0]  ;;  %8061 = vmatpush.bf16.msrb.mxu3 %v11949_v22  ;;  %v13293_v19 = vld [vmem:[%s16807_s11 + $0xd8] sm:$0xff]  ;;  %v13292_v27 = vld [vmem:[%s16807_s11 + $0xd0] sm:$0xff] }
0x1586   :  { %v7594_v49 = vmin.f32 %v7591_v11, 6.0  ;;  %v7561_v47 = vmax.f32 %v7544_v56, 0.0  ;;  %v11961_v11 = vor.u32 %v13240_v10, %v11960_v25  ;;  %8074 = vmatpush.bf16.msra.mxu0 %v11953_v35  ;;  %v13252_v56 = vld [vmem:[%s16806_s9 + $0x84] sm:$0xf]  ;;  %v16289_v0 = vld [vmem:[#allocation2 + $0x3b] sm:$0x1f] }
0x1587   :  { %8083 = vmatpush.bf16.msrb.mxu2 %v12037_v39  ;;  %v13274_v60 = vld [vmem:[%s16807_s11 + $0x40] sm:$0xff]  ;;  %v13300_v2 = vld [vmem:[%s16807_s11 + $0x110] sm:$0xff]  ;;  %v7874_v40 = vperm.slane %v16289_v0, 2  ;;  %v13291_v10 = vld [vmem:[%s16807_s11 + $0xc8] sm:$0xff] }
0x1588   :  { %v7597_v28 = vpack.c.bf16 %v7594_v49, %v7594_v49  ;;  %v7564_v63 = vmin.f32 %v7561_v47, 6.0  ;;  %v12014_v49 = vld [vmem:[%s16806_s9 + $0x94] sm:$0xf0]  ;;  %v13294_v24 = vld [vmem:[%s16807_s11 + $0xe0] sm:$0xff] }
0x1589   :  { %8100 = vmatpush.bf16.msrb.mxu1 %v11961_v11  ;;  %v12017_v47 = vor.u32 %v13252_v56, %v12014_v49  ;;  %8463 = vmatpush.bf16.msra.mxu3 %v13273_v34  ;;  %v12067_v31 = vld [vmem:[%s16777_s10 + $0xc4] ss:$8 sm:$0xf] }
0x158a   :  { %v7576_v17 = vmul.f32 %v7570_v6, %v7564_v63  ;;  %7828 = vmatmul.bf16.vlgmr.msra.gmra.mxu1 %v7597_v28  ;;  %v13247_v6 = vld [vmem:[%s16806_s9 + $0x5c] sm:$0xf]  ;;  %v11994_v28 = vld [vmem:[%s16806_s9 + $0x6c] sm:$0xf0]  ;;  %v13299_v11 = vld [vmem:[%s16807_s11 + $0x108] sm:$0xff] }
0x158b   :  { %v7545_v62 = vpop.f32.mrf.mxu1  ;;  %8084 = vmatpush.bf16.msrb.mxu2 %v12017_v47  ;;  %v11997_v63 = vor.u32 %v13247_v6, %v11994_v28  ;;  %v12068_v22 = vld [vmem:[%s16777_s10 + $0xc4] ss:$8 sm:$0x10]  ;;  %v7872_v47 = vperm.slane %v16289_v0, 0  ;;  %v7873_v6 = vperm.slane %v16289_v0, 1 }
0x158c   :  { %v7587_v53 = vadd.f32 %v7581_v38, %v7576_v17  ;;  %v13242_v38 = vld [vmem:[%s16806_s9 + $0x34] sm:$0xf]  ;;  %v11974_v17 = vld [vmem:[%s16806_s9 + $0x44] sm:$0xf0]  ;;  %v16296_v35 = vor.u32 %v12068_v22, %v12067_v31  ;;  %v16300_v49 = vld [vmem:[#allocation2 + $0x40] sm:$0x1f] }
0x158d   :  { %v11977_v62 = vor.u32 %v13242_v38, %v11974_v17  ;;  %8464 = vmatpush.bf16.msra.mxu3 %v13272_v61  ;;  %8502 = vmatpush.bf16.msra.mxu1 %v13297_v23  ;;  %v7876_v38 = vperm.slane %v16289_v0, 4  ;;  %v13290_v17 = vld [vmem:[%s16807_s11 + $0xc0] sm:$0xff] }
0x158e   :  { %v7590_v51 = vmax.f32 %v7587_v53, 0.0  ;;  %v13237_v53 = vld [vmem:[%s16806_s9 + $0xc] sm:$0xf]  ;;  %v8121_v61 = vperm.slane %v16296_v35, 0  ;;  %v8124_v22 = vperm.slane %v16296_v35, 3 }
0x158f   :  { %8085 = vmatpush.bf16.msrb.mxu2 %v11997_v63  ;;  %v8123_v63 = vperm.slane %v16296_v35, 2 }
0x1590   :  { %v7593_v50 = vmin.f32 %v7590_v51, 6.0  ;;  %v11954_v51 = vld [vmem:[%s16806_s9 + $0x1c] sm:$0xf0] }
0x1591   :  { %8465 = vmatpush.bf16.msra.mxu3 %v13271_v15  ;;  %8503 = vmatpush.bf16.msra.mxu1 %v13296_v44 }
0x1592   :  { %v7596_v48 = vpack.c.bf16 %v7593_v50, %v7593_v50  ;;  %v11957_v50 = vor.u32 %v13237_v53, %v11954_v51  ;;  %v8140_v51 = vperm.slane %v16300_v49, 2 }
0x1593   :  { %8086 = vmatpush.bf16.msrb.mxu2 %v11977_v62  ;;  %v13298_v62 = vld [vmem:[%s16807_s11 + $0x100] sm:$0xff] }
0x1594   :  { %7815 = vmatmul.bf16.vlgmr.msrb.gmra.mxu0 %v7596_v48 }
0x1595   :  { %8476 = vmatpush.bf16.msrb.mxu0 %v13281_v7  ;;  %8466 = vmatpush.bf16.msra.mxu3 %v13270_v45 }
0x1596   :  { %8504 = vmatpush.bf16.msra.mxu1 %v13295_v9  ;;  %v8142_v9 = vperm.slane %v16300_v49, 4 }
0x1597   :  { %8087 = vmatpush.bf16.msrb.mxu2 %v11957_v50 }
0x1599   :  { %8477 = vmatpush.bf16.msrb.mxu0 %v13280_v55  ;;  %8467 = vmatpush.bf16.msra.mxu3 %v13269_v54 }
0x159a   :  { %8505 = vmatpush.bf16.msra.mxu1 %v13294_v24 }
0x159d   :  { %8478 = vmatpush.bf16.msrb.mxu0 %v13279_v46  ;;  %8468 = vmatpush.bf16.msra.mxu3 %v13268_v5 }
0x159e   :  { %8506 = vmatpush.bf16.msra.mxu1 %v13293_v19 }
0x15a1   :  { %8479 = vmatpush.bf16.msrb.mxu0 %v13278_v42  ;;  %8469 = vmatpush.bf16.msra.mxu3 %v13267_v43  ;;  %v7875_v43 = vperm.slane %v16289_v0, 3 }
0x15a2   :  { %8507 = vmatpush.bf16.msra.mxu1 %v13292_v27 }
0x15a5   :  { %8480 = vmatpush.bf16.msrb.mxu0 %v13277_v14  ;;  %8470 = vmatpush.bf16.msra.mxu3 %v13266_v21 }
0x15a6   :  { %8508 = vmatpush.bf16.msra.mxu1 %v13291_v10 }
0x15a9   :  { %8481 = vmatpush.bf16.msrb.mxu0 %v13276_v37 }
0x15aa   :  { %8509 = vmatpush.bf16.msra.mxu1 %v13290_v17 }
0x15ad   :  { %8482 = vmatpush.bf16.msrb.mxu0 %v13275_v32 }
0x15b1   :  { %8483 = vmatpush.bf16.msrb.mxu0 %v13274_v60 }
0x1607   :  { %v7803_v48 = vpop.f32.mrf.mxu3  ;;  %v7829_v26 = vpop.f32.mrf.mxu1 }
0x1608   :  { %v7804_v41 = vadd.f32 %v13566_v57, %v7803_v48 }
0x160f   :  { %v7805_v18 = vpop.f32.mrf.mxu3  ;;  %v7831_v1 = vpop.f32.mrf.mxu1 }
0x1610   :  { %v8122_v1 = vperm.slane %v16296_v35, 1 }
0x1611   :  { %v7816_v20 = vpop.f32.mrf.mxu0 }
0x1612   :  { %v7817_v12 = vadd.f32 %v7816_v20, %v7804_v41 }
0x1614   :  { %v16254_v16 = vadd.f32 %v7829_v26, %v7817_v12 }
0x1616   :  { %v7833_v13 = vpack.c.bf16 %v16254_v16, %v16254_v16 }
0x1618   :  { %12062 = vmatmul.msk.bf16.vlgmr.msra.gmra.mxu2 %vm2832_vm5, %v7833_v13  ;;  %12063 = vmatmul.msk.bf16.vlgmr.msrb.gmra.mxu3 %vm2832_vm5, %v7833_v13 }
0x1619   :  { %12064 = vmatmul.msk.bf16.vlgmr.msra.gmra.mxu0 %vm2832_vm5, %v7833_v13  ;;  %12066 = vmatmul.msk.bf16.vlgmr.msrb.gmra.mxu1 %vm2832_vm5, %v7833_v13  ;;  %v7818_v59 = vpop.f32.mrf.mxu0 }
0x161a   :  { %8489 = vmatpush.bf16.msra.mxu2 %v13289_v8  ;;  %8519 = vmatpush.bf16.msrb.mxu3 %v13301_v58  ;;  %v8138_v8 = vperm.slane %v16300_v49, 0 }
0x161e   :  { %8490 = vmatpush.bf16.msra.mxu2 %v13288_v52  ;;  %8520 = vmatpush.bf16.msrb.mxu3 %v13300_v2  ;;  %v8139_v52 = vperm.slane %v16300_v49, 1  ;;  %v8141_v2 = vperm.slane %v16300_v49, 3  ;;  %v13329_v49 = vld [vmem:[%s16808_s0 + $0xd8] sm:$0xf0] }
0x1622   :  { %8491 = vmatpush.bf16.msra.mxu2 %v13287_v33  ;;  %8521 = vmatpush.bf16.msrb.mxu3 %v13299_v11 }
0x1626   :  { %8492 = vmatpush.bf16.msra.mxu2 %v13286_v4  ;;  %8522 = vmatpush.bf16.msrb.mxu3 %v13298_v62  ;;  %v13327_v62 = vld [vmem:[%s16808_s0 + $0xcc] sm:$0xf] }
0x1628   :  { %12065 = vmatmul.msk.bf16.vlgmr.msrb.gmra.mxu2 %vm2832_vm5, %v7833_v13 }
0x162a   :  { %8493 = vmatpush.bf16.msra.mxu2 %v13285_v30 }
0x162e   :  { %8494 = vmatpush.bf16.msra.mxu2 %v13284_v36 }
0x1632   :  { %8495 = vmatpush.bf16.msra.mxu2 %v13283_v3  ;;  %v8125_v3 = vperm.slane %v16296_v35, 4  ;;  %v12316_v35 = vld [vmem:[%s16808_s0 + $0xc8] sm:$0xf] }
0x1636   :  { %8496 = vmatpush.bf16.msra.mxu2 %v13282_v29 }
0x1696   :  { %v8076_v39 = vpop.f32.mrf.mxu0  ;;  %v8102_v25 = vpop.f32.mrf.mxu1 }
0x1697   :  { %v8077_v56 = vadd.f32 %v8076_v39, %v7874_v40  ;;  %v8103_v55 = vadd.f32 %v8102_v25, %v7876_v38  ;;  %v13324_v38 = vld [vmem:[%s16808_s0 + $0xb0] sm:$0xf0] }
0x1699   :  { %v8108_v28 = vmax.f32 %v8077_v56, 0.0  ;;  %v8110_v4 = vmax.f32 %v8103_v55, 0.0  ;;  %v12276_v55 = vld [vmem:[%s16808_s0 + $0x78] sm:$0xf] }
0x169b   :  { %v8113_v53 = vmin.f32 %v8108_v28, 6.0  ;;  %v8050_v50 = vpop.f32.mrf.mxu2  ;;  %v8063_v48 = vpop.f32.mrf.mxu3  ;;  %v8115_v23 = vmin.f32 %v8110_v4, 6.0  ;;  %v12296_v28 = vld [vmem:[%s16808_s0 + $0xa0] sm:$0xf] }
0x169c   :  { %v8051_v26 = vadd.f32 %v8050_v50, %v7872_v47  ;;  %v8064_v34 = vadd.f32 %v8063_v48, %v7873_v6  ;;  %v12297_v17 = vor.u32 %v13324_v38, %v12296_v28  ;;  %v13330_v48 = vld [vmem:[%s16808_s0 + $0xe0] sm:$0xf0]  ;;  %v12218_v38 = vld [vmem:[%s16808_s0 + $0x14] sm:$0xf0] }
0x169d   :  { %v8133_v7 = vmul.f32 %v8123_v63, %v8113_v53  ;;  %v8135_v32 = vmul.f32 %v8125_v3, %v8115_v23  ;;  %v12317_v63 = vor.u32 %v13329_v49, %v12316_v35  ;;  %v12318_v53 = vld [vmem:[%s16808_s0 + $0xdc] sm:$0xf0]  ;;  %v12286_v23 = vld [vmem:[%s16808_s0 + $0x94] sm:$0xf0]  ;;  %v13331_v49 = vld [vmem:[%s16808_s0 + $0xe8] sm:$0xf0] }
0x169e   :  { %v8106_v57 = vmax.f32 %v8051_v26, 0.0  ;;  %v8107_v18 = vmax.f32 %v8064_v34, 0.0  ;;  %v8078_v41 = vpop.f32.mrf.mxu0  ;;  %v8104_v20 = vpop.f32.mrf.mxu1  ;;  %v12321_v50 = vor.u32 %v13327_v62, %v12318_v53  ;;  %v13328_v26 = vld [vmem:[%s16808_s0 + $0xd4] sm:$0xf]  ;;  %v12326_v34 = vld [vmem:[%s16808_s0 + $0xe4] sm:$0xf0] }
0x169f   :  { %v8150_v12 = vadd.f32 %v8140_v51, %v8133_v7  ;;  %v8152_v58 = vadd.f32 %v8142_v9, %v8135_v32  ;;  %8739 = vmatpush.bf16.msra.mxu0 %v12317_v63  ;;  %v12324_v51 = vld [vmem:[%s16808_s0 + $0xd0] sm:$0xf]  ;;  %v12298_v41 = vld [vmem:[%s16808_s0 + $0xb4] sm:$0xf0]  ;;  %v12304_v20 = vld [vmem:[%s16808_s0 + $0xa8] sm:$0xf] }
0x16a0   :  { %v8111_v13 = vmin.f32 %v8106_v57, 6.0  ;;  %v8112_v59 = vmin.f32 %v8107_v18, 6.0  ;;  %v12325_v7 = vor.u32 %v13330_v48, %v12324_v51  ;;  %8752 = vmatpush.bf16.msrb.mxu2 %v12321_v50  ;;  %v13319_v57 = vld [vmem:[%s16808_s0 + $0x88] sm:$0xf0]  ;;  %v13322_v18 = vld [vmem:[%s16808_s0 + $0xa4] sm:$0xf] }
0x16a1   :  { %v8155_v33 = vmax.f32 %v8150_v12, 0.0  ;;  %v8157_v0 = vmax.f32 %v8152_v58, 0.0  ;;  %v13325_v12 = vld [vmem:[%s16808_s0 + $0xb8] sm:$0xf0]  ;;  %v12258_v32 = vld [vmem:[%s16808_s0 + $0x64] sm:$0xf0] }
0x16a2   :  { %v8131_v15 = vmul.f32 %v8121_v61, %v8111_v13  ;;  %v8132_v46 = vmul.f32 %v8122_v1, %v8112_v59  ;;  %v12329_v61 = vor.u32 %v13328_v26, %v12326_v34  ;;  %8765 = vmatpush.bf16.msrb.mxu1 %v12325_v7  ;;  %v12277_v1 = vor.u32 %v13319_v57, %v12276_v55  ;;  %v13323_v59 = vld [vmem:[%s16808_s0 + $0xac] sm:$0xf]  ;;  %v12264_v9 = vld [vmem:[%s16808_s0 + $0x58] sm:$0xf]  ;;  %v12266_v58 = vld [vmem:[%s16808_s0 + $0x6c] sm:$0xf0] }
0x16a3   :  { %v8160_v30 = vmin.f32 %v8155_v33, 6.0  ;;  %v8052_v45 = vpop.f32.mrf.mxu2  ;;  %v8065_v42 = vpop.f32.mrf.mxu3  ;;  %v8162_v10 = vmin.f32 %v8157_v0, 6.0  ;;  %8740 = vmatpush.bf16.msra.mxu0 %v12297_v17  ;;  %v12301_v13 = vor.u32 %v13322_v18, %v12298_v41  ;;  %v12256_v33 = vld [vmem:[%s16808_s0 + $0x50] sm:$0xf]  ;;  %v13307_v0 = vld [vmem:[%s16808_s0 + $0x2c] sm:$0xf] }
0x16a4   :  { %v8148_v36 = vadd.f32 %v8138_v8, %v8131_v15  ;;  %v8149_v54 = vadd.f32 %v8139_v52, %v8132_v46  ;;  %v12305_v8 = vor.u32 %v13325_v12, %v12304_v20  ;;  %v12306_v52 = vld [vmem:[%s16808_s0 + $0xbc] sm:$0xf0]  ;;  %v13314_v15 = vld [vmem:[%s16808_s0 + $0x60] sm:$0xf0]  ;;  %v12278_v45 = vld [vmem:[%s16808_s0 + $0x8c] sm:$0xf0] }
0x16a5   :  { %v8165_v14 = vpack.c.bf16 %v8160_v30, %v8160_v30  ;;  %v8167_v47 = vpack.c.bf16 %v8162_v10, %v8162_v10  ;;  %v12309_v4 = vor.u32 %v13323_v59, %v12306_v52  ;;  %8753 = vmatpush.bf16.msrb.mxu2 %v12301_v13  ;;  %v12257_v46 = vor.u32 %v13314_v15, %v12256_v33  ;;  %v13317_v30 = vld [vmem:[%s16808_s0 + $0x7c] sm:$0xf]  ;;  %v12284_v42 = vld [vmem:[%s16808_s0 + $0x80] sm:$0xf]  ;;  %v13310_v10 = vld [vmem:[%s16808_s0 + $0x40] sm:$0xf0] }
0x16a6   :  { %v8153_v5 = vmax.f32 %v8148_v36, 0.0  ;;  %v8154_v37 = vmax.f32 %v8149_v54, 0.0  ;;  %8766 = vmatpush.bf16.msrb.mxu1 %v12305_v8  ;;  %v12281_v36 = vor.u32 %v13317_v30, %v12278_v45  ;;  %v13320_v54 = vld [vmem:[%s16808_s0 + $0x90] sm:$0xf0]  ;;  %v12332_v35 = vld [vmem:[%s16808_s0 + $0xd8] sm:$0xf] }
0x16a7   :  { %8497 = vmatmul.bf16.vlgmr.msra.gmra.mxu2 %v8165_v14  ;;  %8741 = vmatpush.bf16.msra.mxu0 %v12277_v1  ;;  %v13318_v14 = vld [vmem:[%s16808_s0 + $0x84] sm:$0xf]  ;;  %v12285_v3 = vor.u32 %v13320_v54, %v12284_v42  ;;  %v12333_v28 = vor.u32 %v13331_v49, %v12332_v35  ;;  %v12224_v17 = vld [vmem:[%s16808_s0 + $0x8] sm:$0xf]  ;;  %v13305_v53 = vld [vmem:[%s16808_s0 + $0x18] sm:$0xf0] }
0x16a8   :  { %v8158_v44 = vmin.f32 %v8153_v5, 6.0  ;;  %v8159_v29 = vmin.f32 %v8154_v37, 6.0  ;;  %v12289_v5 = vor.u32 %v13318_v14, %v12286_v23  ;;  %v12236_v37 = vld [vmem:[%s16808_s0 + $0x28] sm:$0xf]  ;;  %v13302_v63 = vld [vmem:[%s16808_s0 + $0x4] sm:$0xf]  ;;  %v12225_v48 = vor.u32 %v13305_v53, %v12224_v17 }
0x16a9   :  { %8754 = vmatpush.bf16.msrb.mxu2 %v12281_v36  ;;  %v12221_v62 = vor.u32 %v13302_v63, %v12218_v38  ;;  %v13303_v51 = vld [vmem:[%s16808_s0 + $0xc] sm:$0xf]  ;;  %v12226_v50 = vld [vmem:[%s16808_s0 + $0x1c] sm:$0xf0]  ;;  %v12312_v34 = vld [vmem:[%s16808_s0 + $0xb0] sm:$0xf] }
0x16aa   :  { %v8163_v21 = vpack.c.bf16 %v8158_v44, %v8158_v44  ;;  %v8164_v60 = vpack.c.bf16 %v8159_v29, %v8159_v29  ;;  %v13309_v44 = vld [vmem:[%s16808_s0 + $0x38] sm:$0xf0]  ;;  %v13312_v29 = vld [vmem:[%s16808_s0 + $0x54] sm:$0xf]  ;;  %8767 = vmatpush.bf16.msrb.mxu1 %v12285_v3  ;;  %v12229_v26 = vor.u32 %v13303_v51, %v12226_v50  ;;  %v13326_v7 = vld [vmem:[%s16808_s0 + $0xc0] sm:$0xf0] }
0x16ab   :  { %v8089_v24 = vpop.f32.mrf.mxu2  ;;  %8742 = vmatpush.bf16.msra.mxu0 %v12257_v46  ;;  %v12292_v55 = vld [vmem:[%s16808_s0 + $0x88] sm:$0xf]  ;;  %v13321_v57 = vld [vmem:[%s16808_s0 + $0x98] sm:$0xf0]  ;;  %v12272_v41 = vld [vmem:[%s16808_s0 + $0x60] sm:$0xf] }
0x16ac   :  { %v8090_v19 = vadd.f32 %v8089_v24, %v7875_v43  ;;  %8471 = vmatmul.bf16.vlgmr.msra.gmra.mxu3 %v8163_v21  ;;  %8484 = vmatmul.bf16.vlgmr.msrb.gmra.mxu0 %v8164_v60  ;;  %v12237_v43 = vor.u32 %v13309_v44, %v12236_v37  ;;  %v13315_v21 = vld [vmem:[%s16808_s0 + $0x68] sm:$0xf0]  ;;  %v12261_v60 = vor.u32 %v13312_v29, %v12258_v32  ;;  %v13316_v20 = vld [vmem:[%s16808_s0 + $0x70] sm:$0xf0]  ;;  %v12252_v8 = vld [vmem:[%s16808_s0 + $0x38] sm:$0xf] }
0x16ad   :  { %8778 = vmatpush.bf16.msra.mxu3 %v12329_v61  ;;  %v12265_v24 = vor.u32 %v13315_v21, %v12264_v9  ;;  %v12313_v61 = vor.u32 %v13326_v7, %v12312_v34  ;;  %v12293_v18 = vor.u32 %v13321_v57, %v12292_v55  ;;  %v12273_v13 = vor.u32 %v13316_v20, %v12272_v41  ;;  %v13311_v59 = vld [vmem:[%s16808_s0 + $0x48] sm:$0xf0]  ;;  %v13567_v33 = vld [vmem:[#allocation2 + $0x45] ss:$0 sm:$0xff]  ;;  %v12232_v46 = vld [vmem:[%s16808_s0 + $0x10] sm:$0xf] }
0x16ae   :  { %v8109_v31 = vmax.f32 %v8090_v19, 0.0  ;;  %v13313_v19 = vld [vmem:[%s16808_s0 + $0x5c] sm:$0xf]  ;;  %8755 = vmatpush.bf16.msrb.mxu2 %v12261_v60  ;;  %v13306_v30 = vld [vmem:[%s16808_s0 + $0x20] sm:$0xf0]  ;;  %v13338_v37 = vld [vmem:[%s16809_s12 + $0x30] sm:$0xff] }
0x16af   :  { %8743 = vmatpush.bf16.msra.mxu0 %v12237_v43  ;;  %8768 = vmatpush.bf16.msrb.mxu1 %v12265_v24  ;;  %v12233_v36 = vor.u32 %v13306_v30, %v12232_v46  ;;  %v13339_v54 = vld [vmem:[%s16809_s12 + $0x38] sm:$0xff]  ;;  %v13354_v29 = vld [vmem:[%s16809_s12 + $0xb0] sm:$0xff]  ;;  %v13337_v9 = vld [vmem:[%s16809_s12 + $0x28] sm:$0xff] }
0x16b0   :  { %v8114_v27 = vmin.f32 %v8109_v31, 6.0  ;;  %v12216_v31 = vld [vmem:[%s16808_s0] sm:$0xf]  ;;  %v13355_v14 = vld [vmem:[%s16809_s12 + $0xb8] sm:$0xff]  ;;  %v13346_v43 = vld [vmem:[%s16809_s12 + $0x70] sm:$0xff] }
0x16b1   :  { %8779 = vmatpush.bf16.msra.mxu3 %v12309_v4  ;;  %v12253_v4 = vor.u32 %v13311_v59, %v12252_v8  ;;  %v13347_v3 = vld [vmem:[%s16809_s12 + $0x78] sm:$0xff]  ;;  %v13353_v21 = vld [vmem:[%s16809_s12 + $0xa8] sm:$0xff]  ;;  %v13350_v35 = vld [vmem:[%s16809_s12 + $0x90] sm:$0xff] }
0x16b2   :  { %v8134_v40 = vmul.f32 %v8124_v22, %v8114_v27  ;;  %v12269_v22 = vor.u32 %v13313_v19, %v12266_v58  ;;  %v13304_v27 = vld [vmem:[%s16808_s0 + $0x10] sm:$0xf0]  ;;  %v13336_v58 = vld [vmem:[%s16809_s12 + $0x20] sm:$0xff]  ;;  %v13343_v49 = vld [vmem:[%s16809_s12 + $0x58] sm:$0xff] }
0x16b3   :  { %v8091_v39 = vpop.f32.mrf.mxu2  ;;  %v13333_v63 = vld [vmem:[%s16809_s12 + $0x8] sm:$0xff]  ;;  %v13342_v17 = vld [vmem:[%s16809_s12 + $0x50] sm:$0xff]  ;;  %v13332_v53 = vld [vmem:[%s16809_s12] sm:$0xff] }
0x16b4   :  { %v8151_v25 = vadd.f32 %v8141_v2, %v8134_v40  ;;  %v12217_v2 = vor.u32 %v13304_v27, %v12216_v31  ;;  %v12238_v40 = vld [vmem:[%s16808_s0 + $0x3c] sm:$0xf0]  ;;  %v12244_v39 = vld [vmem:[%s16808_s0 + $0x30] sm:$0xf]  ;;  %v13349_v38 = vld [vmem:[%s16809_s12 + $0x88] sm:$0xff] }
0x16b5   :  { %8780 = vmatpush.bf16.msra.mxu3 %v12289_v5  ;;  %v13348_v51 = vld [vmem:[%s16809_s12 + $0x80] sm:$0xff]  ;;  %v13341_v50 = vld [vmem:[%s16809_s12 + $0x48] sm:$0xff] }
0x16b6   :  { %v8156_v11 = vmax.f32 %v8151_v25, 0.0  ;;  %v12241_v25 = vor.u32 %v13307_v0, %v12238_v40  ;;  %8744 = vmatpush.bf16.msra.mxu0 %v12217_v2  ;;  %v13363_v0 = vld [vmem:[%s16809_s12 + $0xf8] sm:$0xff]  ;;  %v13362_v40 = vld [vmem:[%s16809_s12 + $0xf0] sm:$0xff]  ;;  %v13340_v34 = vld [vmem:[%s16809_s12 + $0x40] sm:$0xff] }
0x16b7   :  { %v13356_v7 = vld [vmem:[%s16809_s12 + $0xc0] sm:$0xff]  ;;  %v13365_v57 = vld [vmem:[%s16809_s12 + $0x108] sm:$0xff] }
0x16b8   :  { %v8161_v56 = vmin.f32 %v8156_v11, 6.0  ;;  %v13308_v11 = vld [vmem:[%s16808_s0 + $0x34] sm:$0xf]  ;;  %8756 = vmatpush.bf16.msrb.mxu2 %v12241_v25  ;;  %v13361_v25 = vld [vmem:[%s16809_s12 + $0xe8] sm:$0xff] }
0x16b9   :  { %8781 = vmatpush.bf16.msra.mxu3 %v12269_v22  ;;  %v13352_v22 = vld [vmem:[%s16809_s12 + $0xa0] sm:$0xff]  ;;  %v16436_v46 = vld [vmem:[#allocation2 + $0x4b] sm:$0x1f] }
0x16ba   :  { %v8166_v6 = vpack.c.bf16 %v8161_v56, %v8161_v56  ;;  %v12246_v56 = vld [vmem:[%s16808_s0 + $0x44] sm:$0xf0]  ;;  %8791 = vmatpush.bf16.msrb.mxu0 %v12333_v28  ;;  %v13359_v28 = vld [vmem:[%s16809_s12 + $0xd8] sm:$0xff] }
0x16bb   :  { %v16423_v55 = vld [vmem:[#allocation2 + $0x46] sm:$0x1f] }
0x16bc   :  { %8510 = vmatmul.bf16.vlgmr.msra.gmra.mxu1 %v8166_v6  ;;  %12213 = vmatmul.msk.bf16.vlgmr.msrb.gmra.mxu3 %vm5000_vm9, %v8167_v47  ;;  %v12245_v47 = vor.u32 %v13310_v10, %v12244_v39  ;;  %v12249_v6 = vor.u32 %v13308_v11, %v12246_v56  ;;  %v13345_v39 = vld [vmem:[%s16809_s12 + $0x68] sm:$0xff]  ;;  %v13335_v10 = vld [vmem:[%s16809_s12 + $0x18] sm:$0xff]  ;;  %v13344_v56 = vld [vmem:[%s16809_s12 + $0x60] sm:$0xff]  ;;  %v8568_v41 = vperm.slane %v16423_v55, 0  ;;  %v8570_v20 = vperm.slane %v16423_v55, 2 }
0x16bd   :  { %8757 = vmatpush.bf16.msrb.mxu2 %v12221_v62  ;;  %v13351_v11 = vld [vmem:[%s16809_s12 + $0x98] sm:$0xff]  ;;  %v13358_v62 = vld [vmem:[%s16809_s12 + $0xd0] sm:$0xff] }
0x16be   :  { %8769 = vmatpush.bf16.msrb.mxu1 %v12245_v47  ;;  %8782 = vmatpush.bf16.msra.mxu3 %v12249_v6  ;;  %v13360_v47 = vld [vmem:[%s16809_s12 + $0xe0] sm:$0xff]  ;;  %v13334_v6 = vld [vmem:[%s16809_s12 + $0x10] sm:$0xff] }
0x16bf   :  { %8792 = vmatpush.bf16.msrb.mxu0 %v12313_v61  ;;  %v13366_v61 = vld [vmem:[%s16809_s12 + $0x110] sm:$0xff] }
0x16c1   :  { %9159 = vmatpush.bf16.msra.mxu2 %v13339_v54 }
0x16c2   :  { %8770 = vmatpush.bf16.msrb.mxu1 %v12225_v48  ;;  %8783 = vmatpush.bf16.msra.mxu3 %v12229_v26  ;;  %v13357_v48 = vld [vmem:[%s16809_s12 + $0xc8] sm:$0xff]  ;;  %v13367_v26 = vld [vmem:[%s16809_s12 + $0x118] sm:$0xff] }
0x16c3   :  { %8793 = vmatpush.bf16.msrb.mxu0 %v12293_v18  ;;  %v12339_v18 = vld [vmem:[%s16777_s10 + $0xec] ss:$8 sm:$0xf] }
0x16c5   :  { %9160 = vmatpush.bf16.msra.mxu2 %v13338_v37 }
0x16c6   :  { %9185 = vmatpush.bf16.msrb.mxu3 %v13355_v14  ;;  %9172 = vmatpush.bf16.msra.mxu1 %v13347_v3  ;;  %v8569_v14 = vperm.slane %v16423_v55, 1 }
0x16c7   :  { %8794 = vmatpush.bf16.msrb.mxu0 %v12273_v13  ;;  %v13364_v13 = vld [vmem:[%s16809_s12 + $0x100] sm:$0xff] }
0x16c9   :  { %9161 = vmatpush.bf16.msra.mxu2 %v13337_v9 }
0x16ca   :  { %9186 = vmatpush.bf16.msrb.mxu3 %v13354_v29  ;;  %9173 = vmatpush.bf16.msra.mxu1 %v13346_v43  ;;  %v8834_v29 = vperm.slane %v16436_v46, 0 }
0x16cb   :  { %8795 = vmatpush.bf16.msrb.mxu0 %v12253_v4  ;;  %v13395_v4 = vld [vmem:[%s16810_s5 + $0xd8] sm:$0xf0] }
0x16cd   :  { %9162 = vmatpush.bf16.msra.mxu2 %v13336_v58 }
0x16ce   :  { %9187 = vmatpush.bf16.msrb.mxu3 %v13353_v21  ;;  %9174 = vmatpush.bf16.msra.mxu1 %v13345_v39 }
0x16cf   :  { %8796 = vmatpush.bf16.msrb.mxu0 %v12233_v36 }
0x16d1   :  { %9163 = vmatpush.bf16.msra.mxu2 %v13335_v10 }
0x16d2   :  { %9188 = vmatpush.bf16.msrb.mxu3 %v13352_v22  ;;  %9175 = vmatpush.bf16.msra.mxu1 %v13344_v56  ;;  %v8835_v56 = vperm.slane %v16436_v46, 1 }
0x16d5   :  { %9164 = vmatpush.bf16.msra.mxu2 %v13334_v6 }
0x16d6   :  { %9189 = vmatpush.bf16.msrb.mxu3 %v13351_v11  ;;  %9176 = vmatpush.bf16.msra.mxu1 %v13343_v49 }
0x16d9   :  { %9165 = vmatpush.bf16.msra.mxu2 %v13333_v63  ;;  %v8572_v63 = vperm.slane %v16423_v55, 4 }
0x16da   :  { %9190 = vmatpush.bf16.msrb.mxu3 %v13350_v35  ;;  %9177 = vmatpush.bf16.msra.mxu1 %v13342_v17  ;;  %v8837_v35 = vperm.slane %v16436_v46, 3 }
0x16dd   :  { %9166 = vmatpush.bf16.msra.mxu2 %v13332_v53 }
0x16de   :  { %9191 = vmatpush.bf16.msrb.mxu3 %v13349_v38  ;;  %9178 = vmatpush.bf16.msra.mxu1 %v13341_v50 }
0x16e2   :  { %9192 = vmatpush.bf16.msrb.mxu3 %v13348_v51  ;;  %9179 = vmatpush.bf16.msra.mxu1 %v13340_v34 }
0x1729   :  { %v8485_v1 = vpop.f32.mrf.mxu0 }
0x172a   :  { %v8498_v12 = vpop.f32.mrf.mxu2 }
0x172f   :  { %v8472_v52 = vpop.f32.mrf.mxu3 }
0x1730   :  { %v8473_v42 = vadd.f32 %v13567_v33, %v8472_v52  ;;  %v12588_v33 = vld [vmem:[%s16810_s5 + $0xc8] sm:$0xf] }
0x1731   :  { %v8487_v15 = vpop.f32.mrf.mxu0 }
0x1732   :  { %v8500_v45 = vpop.f32.mrf.mxu2  ;;  %v8486_v5 = vadd.f32 %v8485_v1, %v8473_v42  ;;  %v12340_v1 = vld [vmem:[%s16777_s10 + $0xec] ss:$8 sm:$0x10]  ;;  %v12568_v15 = vld [vmem:[%s16810_s5 + $0xa0] sm:$0xf] }
0x1733   :  { %v12589_v45 = vor.u32 %v13395_v4, %v12588_v33  ;;  %v13390_v42 = vld [vmem:[%s16810_s5 + $0xb0] sm:$0xf0] }
0x1734   :  { %v8499_v32 = vadd.f32 %v8498_v12, %v8486_v5  ;;  %v16430_v12 = vor.u32 %v12340_v1, %v12339_v18  ;;  %v8571_v5 = vperm.slane %v16423_v55, 3  ;;  %v12569_v37 = vor.u32 %v13390_v42, %v12568_v15  ;;  %v12590_v42 = vld [vmem:[%s16810_s5 + $0xdc] sm:$0xf0] }
0x1736   :  { %v8817_v54 = vperm.slane %v16430_v12, 0  ;;  %v8819_v3 = vperm.slane %v16430_v12, 2 }
0x1737   :  { %v8474_v23 = vpop.f32.mrf.mxu3 }
0x1739   :  { %v8511_v44 = vpop.f32.mrf.mxu1 }
0x173a   :  { %v8512_v60 = vadd.f32 %v8511_v44, %v8499_v32  ;;  %v8836_v32 = vperm.slane %v16436_v46, 2 }
0x173f   :  { %v8524_v24 = vpop.f32.mrf.mxu3 }
0x1740   :  { %v8525_v19 = vadd.f32 %v8524_v24, %v8512_v60 }
0x1741   :  { %v8513_v31 = vpop.f32.mrf.mxu1 }
0x1742   :  { %v16390_v27 = vadd.f32 %v8525_v19, %v16254_v16 }
0x1744   :  { %v8529_v2 = vpack.c.bf16 %v16390_v27, %v16390_v27 }
0x1746   :  { %12334 = vmatmul.msk.bf16.vlgmr.msra.gmra.mxu0 %vm2832_vm5, %v8529_v2  ;;  %12335 = vmatmul.msk.bf16.vlgmr.msrb.gmra.mxu2 %vm2832_vm5, %v8529_v2 }
0x1747   :  { %12336 = vmatmul.msk.bf16.vlgmr.msrb.gmra.mxu1 %vm2832_vm5, %v8529_v2  ;;  %12337 = vmatmul.msk.bf16.vlgmr.msra.gmra.mxu3 %vm2832_vm5, %v8529_v2  ;;  %v8526_v16 = vpop.f32.mrf.mxu3 }
0x1748   :  { %9198 = vmatpush.bf16.msra.mxu0 %v13363_v0  ;;  %9215 = vmatpush.bf16.msrb.mxu2 %v13367_v26  ;;  %v8818_v0 = vperm.slane %v16430_v12, 1 }
0x1749   :  { %9435 = vmatpush.bf16.msrb.mxu1 %v12589_v45  ;;  %v13393_v45 = vld [vmem:[%s16810_s5 + $0xcc] sm:$0xf] }
0x174c   :  { %9199 = vmatpush.bf16.msra.mxu0 %v13362_v40  ;;  %9216 = vmatpush.bf16.msrb.mxu2 %v13366_v61 }
0x174d   :  { %9436 = vmatpush.bf16.msrb.mxu1 %v12569_v37  ;;  %v12548_v37 = vld [vmem:[%s16810_s5 + $0x78] sm:$0xf] }
0x1750   :  { %9200 = vmatpush.bf16.msra.mxu0 %v13361_v25  ;;  %9217 = vmatpush.bf16.msrb.mxu2 %v13365_v57  ;;  %v8820_v25 = vperm.slane %v16430_v12, 3 }
0x1754   :  { %9201 = vmatpush.bf16.msra.mxu0 %v13360_v47  ;;  %9218 = vmatpush.bf16.msrb.mxu2 %v13364_v13 }
0x1756   :  { %12338 = vmatmul.msk.bf16.vlgmr.msrb.gmra.mxu0 %vm2832_vm5, %v8529_v2 }
0x1758   :  { %9202 = vmatpush.bf16.msra.mxu0 %v13359_v28 }
0x175c   :  { %9203 = vmatpush.bf16.msra.mxu0 %v13358_v62 }
0x1760   :  { %9204 = vmatpush.bf16.msra.mxu0 %v13357_v48 }
0x1764   :  { %9205 = vmatpush.bf16.msra.mxu0 %v13356_v7 }
0x17c3   :  { %v8746_v8 = vpop.f32.mrf.mxu0 }
0x17c4   :  { %v8747_v59 = vadd.f32 %v8746_v8, %v8568_v41  ;;  %v8772_v52 = vpop.f32.mrf.mxu1  ;;  %v8821_v41 = vperm.slane %v16430_v12, 4  ;;  %v8838_v8 = vperm.slane %v16436_v46, 4  ;;  %v12596_v46 = vld [vmem:[%s16810_s5 + $0xd0] sm:$0xf] }
0x17c5   :  { %v8773_v30 = vadd.f32 %v8772_v52, %v8570_v20 }
0x17c6   :  { %v8802_v36 = vmax.f32 %v8747_v59, 0.0 }
0x17c7   :  { %v8804_v23 = vmax.f32 %v8773_v30, 0.0 }
0x17c8   :  { %v8807_v44 = vmin.f32 %v8802_v36, 6.0  ;;  %v12593_v36 = vor.u32 %v13393_v45, %v12590_v42  ;;  %v13371_v42 = vld [vmem:[%s16810_s5 + $0x18] sm:$0xf0] }
0x17c9   :  { %v8809_v43 = vmin.f32 %v8804_v23, 6.0  ;;  %v8759_v9 = vpop.f32.mrf.mxu2  ;;  %v12598_v23 = vld [vmem:[%s16810_s5 + $0xe4] sm:$0xf0] }
0x17ca   :  { %v8827_v21 = vmul.f32 %v8817_v54, %v8807_v44  ;;  %v8760_v60 = vadd.f32 %v8759_v9, %v8569_v14  ;;  %v8785_v24 = vpop.f32.mrf.mxu3  ;;  %v13396_v54 = vld [vmem:[%s16810_s5 + $0xe0] sm:$0xf0]  ;;  %v13394_v14 = vld [vmem:[%s16810_s5 + $0xd4] sm:$0xf]  ;;  %9448 = vmatpush.bf16.msra.mxu3 %v12593_v36  ;;  %v13385_v44 = vld [vmem:[%s16810_s5 + $0x88] sm:$0xf0] }
0x17cb   :  { %v8829_v19 = vmul.f32 %v8819_v3, %v8809_v43  ;;  %v8786_v58 = vadd.f32 %v8785_v24, %v8571_v5  ;;  %v8748_v31 = vpop.f32.mrf.mxu0  ;;  %v12597_v3 = vor.u32 %v13396_v54, %v12596_v46  ;;  %v12601_v5 = vor.u32 %v13394_v14, %v12598_v23  ;;  %v13388_v43 = vld [vmem:[%s16810_s5 + $0xa4] sm:$0xf]  ;;  %v12576_v9 = vld [vmem:[%s16810_s5 + $0xa8] sm:$0xf]  ;;  %v13389_v24 = vld [vmem:[%s16810_s5 + $0xac] sm:$0xf] }
0x17cc   :  { %v8844_v22 = vadd.f32 %v8834_v29, %v8827_v21  ;;  %v8803_v2 = vmax.f32 %v8760_v60, 0.0  ;;  %v8774_v16 = vpop.f32.mrf.mxu1  ;;  %v12549_v29 = vor.u32 %v13385_v44, %v12548_v37  ;;  %v13391_v60 = vld [vmem:[%s16810_s5 + $0xb8] sm:$0xf0]  ;;  %v13369_v46 = vld [vmem:[%s16810_s5 + $0xc] sm:$0xf] }
0x17cd   :  { %v8846_v40 = vadd.f32 %v8836_v32, %v8829_v19  ;;  %v8805_v39 = vmax.f32 %v8786_v58, 0.0  ;;  %9474 = vmatpush.bf16.msrb.mxu0 %v12601_v5  ;;  %v12570_v32 = vld [vmem:[%s16810_s5 + $0xb4] sm:$0xf0]  ;;  %v12578_v19 = vld [vmem:[%s16810_s5 + $0xbc] sm:$0xf0]  ;;  %v12577_v58 = vor.u32 %v13391_v60, %v12576_v9 }
0x17ce   :  { %v8849_v10 = vmax.f32 %v8844_v22, 0.0  ;;  %v8808_v11 = vmin.f32 %v8803_v2, 6.0  ;;  %v12573_v21 = vor.u32 %v13388_v43, %v12570_v32  ;;  %9437 = vmatpush.bf16.msrb.mxu1 %v12549_v29  ;;  %v12581_v31 = vor.u32 %v13389_v24, %v12578_v19  ;;  %v12528_v22 = vld [vmem:[%s16810_s5 + $0x50] sm:$0xf]  ;;  %v13380_v2 = vld [vmem:[%s16810_s5 + $0x60] sm:$0xf0] }
0x17cf   :  { %v8851_v47 = vmax.f32 %v8846_v40, 0.0  ;;  %v8810_v6 = vmin.f32 %v8805_v39, 6.0  ;;  %v13383_v16 = vld [vmem:[%s16810_s5 + $0x7c] sm:$0xf]  ;;  %v12550_v40 = vld [vmem:[%s16810_s5 + $0x8c] sm:$0xf0] }
0x17d0   :  { %v8854_v49 = vmin.f32 %v8849_v10, 6.0  ;;  %v8828_v28 = vmul.f32 %v8818_v0, %v8808_v11  ;;  %9449 = vmatpush.bf16.msra.mxu3 %v12573_v21  ;;  %v12529_v0 = vor.u32 %v13380_v2, %v12528_v22  ;;  %v12556_v39 = vld [vmem:[%s16810_s5 + $0x80] sm:$0xf]  ;;  %v13386_v10 = vld [vmem:[%s16810_s5 + $0x90] sm:$0xf0] }
0x17d1   :  { %v8856_v38 = vmin.f32 %v8851_v47, 6.0  ;;  %v8830_v17 = vmul.f32 %v8820_v25, %v8810_v6  ;;  %v8761_v62 = vpop.f32.mrf.mxu2  ;;  %9475 = vmatpush.bf16.msrb.mxu0 %v12581_v31  ;;  %v12553_v25 = vor.u32 %v13383_v16, %v12550_v40  ;;  %v13384_v11 = vld [vmem:[%s16810_s5 + $0x84] sm:$0xf]  ;;  %v12557_v47 = vor.u32 %v13386_v10, %v12556_v39  ;;  %v12498_v36 = vld [vmem:[%s16810_s5 + $0x1c] sm:$0xf0] }
0x17d2   :  { %v8859_v53 = vpack.c.bf16 %v8854_v49, %v8854_v49  ;;  %v8845_v51 = vadd.f32 %v8835_v56, %v8828_v28  ;;  %v8787_v50 = vpop.f32.mrf.mxu3  ;;  %v12558_v56 = vld [vmem:[%s16810_s5 + $0x94] sm:$0xf0]  ;;  %9438 = vmatpush.bf16.msrb.mxu1 %v12529_v0  ;;  %v13375_v49 = vld [vmem:[%s16810_s5 + $0x38] sm:$0xf0]  ;;  %v13378_v28 = vld [vmem:[%s16810_s5 + $0x54] sm:$0xf]  ;;  %v12501_v14 = vor.u32 %v13369_v46, %v12498_v36 }
0x17d3   :  { %v8861_v48 = vpack.c.bf16 %v8856_v38, %v8856_v38  ;;  %v8847_v26 = vadd.f32 %v8837_v35, %v8830_v17  ;;  %v8798_v34 = vpop.f32.mrf.mxu0  ;;  %v12561_v6 = vor.u32 %v13384_v11, %v12558_v56  ;;  %v12508_v35 = vld [vmem:[%s16810_s5 + $0x28] sm:$0xf]  ;;  %v12536_v17 = vld [vmem:[%s16810_s5 + $0x58] sm:$0xf]  ;;  %v13381_v62 = vld [vmem:[%s16810_s5 + $0x68] sm:$0xf0] }
0x17d4   :  { %v8850_v7 = vmax.f32 %v8845_v51, 0.0  ;;  %v8799_v61 = vadd.f32 %v8798_v34, %v8572_v63  ;;  %9167 = vmatmul.bf16.vlgmr.msra.gmra.mxu2 %v8859_v53  ;;  %9450 = vmatpush.bf16.msra.mxu3 %v12553_v25  ;;  %v12509_v63 = vor.u32 %v13375_v49, %v12508_v35  ;;  %v12530_v38 = vld [vmem:[%s16810_s5 + $0x64] sm:$0xf0]  ;;  %v12537_v51 = vor.u32 %v13381_v62, %v12536_v17  ;;  %v13379_v50 = vld [vmem:[%s16810_s5 + $0x5c] sm:$0xf] }
0x17d5   :  { %v8852_v57 = vmax.f32 %v8847_v26, 0.0  ;;  %9193 = vmatmul.bf16.vlgmr.msrb.gmra.mxu3 %v8861_v48  ;;  %9461 = vmatpush.bf16.msra.mxu2 %v12597_v3  ;;  %v12533_v53 = vor.u32 %v13378_v28, %v12530_v38  ;;  %v12538_v48 = vld [vmem:[%s16810_s5 + $0x6c] sm:$0xf0]  ;;  %v12488_v26 = vld [vmem:[%s16810_s5] sm:$0xf] }
0x17d6   :  { %v8855_v18 = vmin.f32 %v8850_v7, 6.0  ;;  %v8806_v1 = vmax.f32 %v8799_v61, 0.0  ;;  %9476 = vmatpush.bf16.msrb.mxu0 %v12561_v6  ;;  %v12541_v34 = vor.u32 %v13379_v50, %v12538_v48  ;;  %v13370_v7 = vld [vmem:[%s16810_s5 + $0x10] sm:$0xf0]  ;;  %9439 = vmatpush.bf16.msrb.mxu1 %v12509_v63  ;;  %v12584_v23 = vld [vmem:[%s16810_s5 + $0xb0] sm:$0xf] }
0x17d7   :  { %v8857_v55 = vmin.f32 %v8852_v57, 6.0  ;;  %v12489_v61 = vor.u32 %v13370_v7, %v12488_v26  ;;  %v13373_v57 = vld [vmem:[%s16810_s5 + $0x2c] sm:$0xf]  ;;  %v13392_v3 = vld [vmem:[%s16810_s5 + $0xc0] sm:$0xf0] }
0x17d8   :  { %v8860_v20 = vpack.c.bf16 %v8855_v18, %v8855_v18  ;;  %v8811_v13 = vmin.f32 %v8806_v1, 6.0  ;;  %9451 = vmatpush.bf16.msra.mxu3 %v12533_v53  ;;  %v12510_v18 = vld [vmem:[%s16810_s5 + $0x3c] sm:$0xf0]  ;;  %v12516_v1 = vld [vmem:[%s16810_s5 + $0x30] sm:$0xf]  ;;  %v12585_v5 = vor.u32 %v13392_v3, %v12584_v23 }
0x17d9   :  { %v8862_v59 = vpack.c.bf16 %v8857_v55, %v8857_v55  ;;  %9462 = vmatpush.bf16.msra.mxu2 %v12577_v58  ;;  %v13376_v55 = vld [vmem:[%s16810_s5 + $0x40] sm:$0xf0]  ;;  %v12564_v37 = vld [vmem:[%s16810_s5 + $0x88] sm:$0xf]  ;;  %v13387_v44 = vld [vmem:[%s16810_s5 + $0x98] sm:$0xf0] }
0x17da   :  { %v8831_v52 = vmul.f32 %v8821_v41, %v8811_v13  ;;  %9180 = vmatmul.bf16.vlgmr.msra.gmra.mxu1 %v8860_v20  ;;  %9477 = vmatpush.bf16.msrb.mxu0 %v12541_v34  ;;  %v12513_v41 = vor.u32 %v13373_v57, %v12510_v18  ;;  %v13374_v20 = vld [vmem:[%s16810_s5 + $0x34] sm:$0xf]  ;;  %v12518_v13 = vld [vmem:[%s16810_s5 + $0x44] sm:$0xf0]  ;;  %v12565_v29 = vor.u32 %v13387_v44, %v12564_v37  ;;  %v12544_v43 = vld [vmem:[%s16810_s5 + $0x60] sm:$0xf] }
0x17db   :  { %9206 = vmatmul.bf16.vlgmr.msra.gmra.mxu0 %v8862_v59  ;;  %v8800_v33 = vpop.f32.mrf.mxu0  ;;  %9440 = vmatpush.bf16.msrb.mxu1 %v12489_v61  ;;  %v12521_v59 = vor.u32 %v13374_v20, %v12518_v13  ;;  %v13382_v32 = vld [vmem:[%s16810_s5 + $0x70] sm:$0xf0]  ;;  %v12524_v21 = vld [vmem:[%s16810_s5 + $0x38] sm:$0xf]  ;;  %v13377_v60 = vld [vmem:[%s16810_s5 + $0x48] sm:$0xf0] }
0x17dc   :  { %v8848_v4 = vadd.f32 %v8838_v8, %v8831_v52  ;;  %v12517_v8 = vor.u32 %v13376_v55, %v12516_v1  ;;  %v12604_v52 = vld [vmem:[%s16810_s5 + $0xd8] sm:$0xf]  ;;  %v13397_v33 = vld [vmem:[%s16810_s5 + $0xe8] sm:$0xf0]  ;;  %9452 = vmatpush.bf16.msra.mxu3 %v12513_v41  ;;  %v12545_v9 = vor.u32 %v13382_v32, %v12544_v43  ;;  %v13568_v24 = vld [vmem:[#allocation2 + $0x50] ss:$0 sm:$0xff]  ;;  %v12525_v2 = vor.u32 %v13377_v60, %v12524_v21 }
0x17dd   :  { %9463 = vmatpush.bf16.msra.mxu2 %v12557_v47  ;;  %v12504_v0 = vld [vmem:[%s16810_s5 + $0x10] sm:$0xf]  ;;  %v13372_v16 = vld [vmem:[%s16810_s5 + $0x20] sm:$0xf0]  ;;  %v13413_v47 = vld [vmem:[%s16811_s19 + $0x74] sm:$0xf0] }
0x17de   :  { %v8853_v15 = vmax.f32 %v8848_v4, 0.0  ;;  %v12605_v4 = vor.u32 %v13397_v33, %v12604_v52  ;;  %9478 = vmatpush.bf16.msrb.mxu0 %v12521_v59  ;;  %v12505_v39 = vor.u32 %v13372_v16, %v12504_v0  ;;  %v12671_v10 = vld [vmem:[%s16811_s19 + $0x70] sm:$0xf]  ;;  %v13429_v63 = vld [vmem:[%s16811_s19 + $0xf4] sm:$0xf0] }
0x17df   :  { %v12672_v49 = vor.u32 %v13413_v47, %v12671_v10  ;;  %v12735_v28 = vld [vmem:[%s16811_s19 + $0xf0] sm:$0xf]  ;;  %v13445_v62 = vld [vmem:[%s16811_s19 + $0x174] sm:$0xf0]  ;;  %v12663_v53 = vld [vmem:[%s16811_s19 + $0x60] sm:$0xf] }
0x17e0   :  { %v8858_v12 = vmin.f32 %v8853_v15, 6.0  ;;  %v13368_v15 = vld [vmem:[%s16810_s5 + $0x4] sm:$0xf]  ;;  %9487 = vmatpush.bf16.msra.mxu1 %v12605_v4  ;;  %v12799_v38 = vld [vmem:[%s16811_s19 + $0x170] sm:$0xf]  ;;  %v12736_v17 = vor.u32 %v13429_v63, %v12735_v28 }
0x17e1   :  { %9464 = vmatpush.bf16.msra.mxu2 %v12537_v51  ;;  %v13411_v51 = vld [vmem:[%s16811_s19 + $0x64] sm:$0xf0]  ;;  %v12800_v48 = vor.u32 %v13445_v62, %v12799_v38  ;;  %v12727_v34 = vld [vmem:[%s16811_s19 + $0xe0] sm:$0xf]  ;;  %v12655_v41 = vld [vmem:[%s16811_s19 + $0x50] sm:$0xf] }
0x17e2   :  { %v8863_v30 = vpack.c.bf16 %v8858_v12, %v8858_v12  ;;  %v12490_v12 = vld [vmem:[%s16810_s5 + $0x14] sm:$0xf0]  ;;  %9479 = vmatpush.bf16.msrb.mxu0 %v12501_v14  ;;  %v12664_v26 = vor.u32 %v13411_v51, %v12663_v53  ;;  %v13427_v7 = vld [vmem:[%s16811_s19 + $0xe4] sm:$0xf0]  ;;  %v12791_v61 = vld [vmem:[%s16811_s19 + $0x160] sm:$0xf] }
0x17e3   :  { %v12493_v45 = vor.u32 %v13368_v15, %v12490_v12  ;;  %v13443_v57 = vld [vmem:[%s16811_s19 + $0x164] sm:$0xf0]  ;;  %v12728_v18 = vor.u32 %v13427_v7, %v12727_v34  ;;  %v13409_v55 = vld [vmem:[%s16811_s19 + $0x54] sm:$0xf0]  ;;  %v12719_v20 = vld [vmem:[%s16811_s19 + $0xd0] sm:$0xf] }
0x17e4   :  { %12485 = vmatmul.msk.bf16.vlgmr.msrb.gmra.mxu2 %vm5000_vm9, %v8863_v30  ;;  %v12496_v30 = vld [vmem:[%s16810_s5 + $0x8] sm:$0xf]  ;;  %9488 = vmatpush.bf16.msra.mxu1 %v12585_v5  ;;  %v12792_v1 = vor.u32 %v13443_v57, %v12791_v61  ;;  %v13425_v13 = vld [vmem:[%s16811_s19 + $0xd4] sm:$0xf0]  ;;  %v12656_v59 = vor.u32 %v13409_v55, %v12655_v41  ;;  %v12783_v52 = vld [vmem:[%s16811_s19 + $0x150] sm:$0xf] }
0x17e5   :  { %9465 = vmatpush.bf16.msra.mxu2 %v12517_v8  ;;  %v12497_v54 = vor.u32 %v13371_v42, %v12496_v30  ;;  %9453 = vmatpush.bf16.msra.mxu3 %v12493_v45  ;;  %v13441_v33 = vld [vmem:[%s16811_s19 + $0x154] sm:$0xf0]  ;;  %v12720_v15 = vor.u32 %v13425_v13, %v12719_v20  ;;  %v12863_v30 = vld [vmem:[%s16811_s19 + $0x1f0] sm:$0xf]  ;;  %v12647_v46 = vld [vmem:[%s16811_s19 + $0x40] sm:$0xf] }
0x17e6   :  { %10027 = vmatpush.bf16.msra.mxu0 %v12800_v48  ;;  %v13461_v45 = vld [vmem:[%s16811_s19 + $0x1f4] sm:$0xf0]  ;;  %v12784_v42 = vor.u32 %v13441_v33, %v12783_v52  ;;  %v13407_v36 = vld [vmem:[%s16811_s19 + $0x44] sm:$0xf0]  ;;  %v12775_v3 = vld [vmem:[%s16811_s19 + $0x140] sm:$0xf] }
0x17e7   :  { %v13423_v23 = vld [vmem:[%s16811_s19 + $0xc4] sm:$0xf0]  ;;  %v12864_v44 = vor.u32 %v13461_v45, %v12863_v30  ;;  %v12648_v32 = vor.u32 %v13407_v36, %v12647_v46  ;;  %v13405_v60 = vld [vmem:[%s16811_s19 + $0x34] sm:$0xf0]  ;;  %v12847_v0 = vld [vmem:[%s16811_s19 + $0x1d0] sm:$0xf] }
0x17e8   :  { %9489 = vmatpush.bf16.msra.mxu1 %v12565_v29  ;;  %v13439_v5 = vld [vmem:[%s16811_s19 + $0x144] sm:$0xf0]  ;;  %v12855_v29 = vld [vmem:[%s16811_s19 + $0x1e0] sm:$0xf]  ;;  %v13457_v16 = vld [vmem:[%s16811_s19 + $0x1d4] sm:$0xf0] }
0x17e9   :  { %9466 = vmatpush.bf16.msra.mxu2 %v12497_v54  ;;  %10001 = vmatpush.bf16.msrb.mxu3 %v12672_v49  ;;  %v12711_v54 = vld [vmem:[%s16811_s19 + $0xc0] sm:$0xf]  ;;  %v13459_v43 = vld [vmem:[%s16811_s19 + $0x1e4] sm:$0xf0]  ;;  %v12776_v21 = vor.u32 %v13439_v5, %v12775_v3  ;;  %v12848_v49 = vor.u32 %v13457_v16, %v12847_v0  ;;  %v12831_v51 = vld [vmem:[%s16811_s19 + $0x1b0] sm:$0xf] }
0x17ea   :  { %10028 = vmatpush.bf16.msra.mxu0 %v12792_v1  ;;  %v12631_v10 = vld [vmem:[%s16811_s19 + $0x20] sm:$0xf]  ;;  %v13419_v47 = vld [vmem:[%s16811_s19 + $0xa4] sm:$0xf0]  ;;  %v12815_v61 = vld [vmem:[%s16811_s19 + $0x190] sm:$0xf] }
0x17eb   :  { %v12839_v63 = vld [vmem:[%s16811_s19 + $0x1c0] sm:$0xf]  ;;  %v13455_v38 = vld [vmem:[%s16811_s19 + $0x1c4] sm:$0xf0]  ;;  %v13449_v57 = vld [vmem:[%s16811_s19 + $0x194] sm:$0xf0] }
0x17ec   :  { %9490 = vmatpush.bf16.msra.mxu1 %v12545_v9  ;;  %v12712_v9 = vor.u32 %v13423_v23, %v12711_v54  ;;  %v12840_v53 = vor.u32 %v13455_v38, %v12839_v63  ;;  %v13451_v34 = vld [vmem:[%s16811_s19 + $0x1a4] sm:$0xf0]  ;;  %v12623_v1 = vld [vmem:[%s16811_s19 + $0x10] sm:$0xf]  ;;  %v13401_v41 = vld [vmem:[%s16811_s19 + $0x14] sm:$0xf0] }
0x17ed   :  { %10014 = vmatpush.bf16.msrb.mxu2 %v12736_v17  ;;  %10002 = vmatpush.bf16.msrb.mxu3 %v12664_v26  ;;  %v12823_v26 = vld [vmem:[%s16811_s19 + $0x1a0] sm:$0xf]  ;;  %v12624_v55 = vor.u32 %v13401_v41, %v12623_v1  ;;  %v13447_v13 = vld [vmem:[%s16811_s19 + $0x184] sm:$0xf0]  ;;  %v12865_v52 = vld [vmem:[%s16811_s19 + $0x1f8] sm:$0xf0] }
0x17ee   :  { %10029 = vmatpush.bf16.msra.mxu0 %v12784_v42  ;;  %v12824_v7 = vor.u32 %v13451_v34, %v12823_v26  ;;  %v12807_v20 = vld [vmem:[%s16811_s19 + $0x180] sm:$0xf]  ;;  %v13433_v45 = vld [vmem:[%s16811_s19 + $0x114] sm:$0xf0]  ;;  %v13399_v46 = vld [vmem:[%s16811_s19 + $0x4] sm:$0xf0] }
0x17ef   :  { %v12615_v42 = vld [vmem:[%s16811_s19] sm:$0xf]  ;;  %v13469_v23 = vld [vmem:[%s16811_s19 + $0x234] sm:$0xf0]  ;;  %v13458_v3 = vld [vmem:[%s16811_s19 + $0x1e4] sm:$0xf] }
0x17f0   :  { %9491 = vmatpush.bf16.msra.mxu1 %v12525_v2  ;;  %v12856_v2 = vor.u32 %v13459_v43, %v12855_v29  ;;  %v12616_v54 = vor.u32 %v13399_v46, %v12615_v42  ;;  %v13415_v29 = vld [vmem:[%s16811_s19 + $0x84] sm:$0xf0]  ;;  %v13456_v16 = vld [vmem:[%s16811_s19 + $0x1d4] sm:$0xf]  ;;  %v13454_v63 = vld [vmem:[%s16811_s19 + $0x1c4] sm:$0xf] }
0x17f1   :  { %10015 = vmatpush.bf16.msrb.mxu2 %v12728_v18  ;;  %10003 = vmatpush.bf16.msrb.mxu3 %v12656_v59  ;;  %v12816_v18 = vor.u32 %v13449_v57, %v12815_v61  ;;  %v13460_v59 = vld [vmem:[%s16811_s19 + $0x1f4] sm:$0xf]  ;;  %v13467_v0 = vld [vmem:[%s16811_s19 + $0x224] sm:$0xf0]  ;;  %v12841_v38 = vld [vmem:[%s16811_s19 + $0x1c8] sm:$0xf0] }
0x17f2   :  { %10030 = vmatpush.bf16.msra.mxu0 %v12776_v21  ;;  %v12868_v33 = vor.u32 %v13460_v59, %v12865_v52  ;;  %v13431_v21 = vld [vmem:[%s16811_s19 + $0x104] sm:$0xf0]  ;;  %v12721_v26 = vld [vmem:[%s16811_s19 + $0xd8] sm:$0xf0]  ;;  %v12871_v34 = vld [vmem:[%s16811_s19 + $0x200] sm:$0xf] }
0x17f3   :  { %v13463_v61 = vld [vmem:[%s16811_s19 + $0x204] sm:$0xf0]  ;;  %v12833_v1 = vld [vmem:[%s16811_s19 + $0x1b8] sm:$0xf0]  ;;  %v12713_v59 = vld [vmem:[%s16811_s19 + $0xc8] sm:$0xf0] }
0x17f4   :  { %9492 = vmatpush.bf16.msra.mxu1 %v12505_v39  ;;  %v12872_v57 = vor.u32 %v13463_v61, %v12871_v34  ;;  %v16618_v42 = vld [vmem:[#allocation2 + $0x51] sm:$0x1f] }
0x17f5   :  { %10016 = vmatpush.bf16.msrb.mxu2 %v12720_v15  ;;  %10004 = vmatpush.bf16.msrb.mxu3 %v12648_v32  ;;  %v13417_v15 = vld [vmem:[%s16811_s19 + $0x94] sm:$0xf0] }
0x17f9   :  { %10017 = vmatpush.bf16.msrb.mxu2 %v12712_v9  ;;  %v12743_v9 = vld [vmem:[%s16811_s19 + $0x100] sm:$0xf] }
0x1857   :  { %v9168_v19 = vpop.f32.mrf.mxu2  ;;  %v9181_v58 = vpop.f32.mrf.mxu1 }
0x1858   :  { %v9194_v31 = vpop.f32.mrf.mxu3  ;;  %v9207_v22 = vpop.f32.mrf.mxu0  ;;  %v9169_v40 = vadd.f32 %v13568_v24, %v9168_v19  ;;  %v12703_v24 = vld [vmem:[%s16811_s19 + $0xb0] sm:$0xf]  ;;  %v13421_v19 = vld [vmem:[%s16811_s19 + $0xb4] sm:$0xf0] }
0x1859   :  { %v12704_v39 = vor.u32 %v13421_v19, %v12703_v24  ;;  %v12673_v24 = vld [vmem:[%s16811_s19 + $0x78] sm:$0xf0] }
0x185a   :  { %v9182_v25 = vadd.f32 %v9181_v58, %v9169_v40  ;;  %v12767_v58 = vld [vmem:[%s16811_s19 + $0x130] sm:$0xf] }
0x185b   :  { %10018 = vmatpush.bf16.msrb.mxu2 %v12704_v39 }
0x185c   :  { %v9195_v50 = vadd.f32 %v9194_v31, %v9182_v25  ;;  %v13437_v31 = vld [vmem:[%s16811_s19 + $0x134] sm:$0xf0] }
0x185d   :  { %v12768_v25 = vor.u32 %v13437_v31, %v12767_v58  ;;  %v13428_v58 = vld [vmem:[%s16811_s19 + $0xf4] sm:$0xf]  ;;  %v12737_v31 = vld [vmem:[%s16811_s19 + $0xf8] sm:$0xf0] }
0x185e   :  { %v9208_v8 = vadd.f32 %v9207_v22, %v9195_v50  ;;  %v13453_v50 = vld [vmem:[%s16811_s19 + $0x1b4] sm:$0xf0] }
0x185f   :  { %v9170_v11 = vpop.f32.mrf.mxu2  ;;  %v9183_v56 = vpop.f32.mrf.mxu1  ;;  %10031 = vmatpush.bf16.msra.mxu0 %v12768_v25  ;;  %v12832_v48 = vor.u32 %v13453_v50, %v12831_v51  ;;  %v12657_v51 = vld [vmem:[%s16811_s19 + $0x58] sm:$0xf0] }
0x1860   :  { %v9196_v6 = vpop.f32.mrf.mxu3  ;;  %v9209_v35 = vpop.f32.mrf.mxu0  ;;  %v13403_v11 = vld [vmem:[%s16811_s19 + $0x24] sm:$0xf0]  ;;  %v12695_v56 = vld [vmem:[%s16811_s19 + $0xa0] sm:$0xf] }
0x1861   :  { %v12759_v6 = vld [vmem:[%s16811_s19 + $0x120] sm:$0xf]  ;;  %v13435_v35 = vld [vmem:[%s16811_s19 + $0x124] sm:$0xf0]  ;;  %v12632_v28 = vor.u32 %v13403_v11, %v12631_v10  ;;  %v12696_v17 = vor.u32 %v13419_v47, %v12695_v56  ;;  %v13410_v10 = vld [vmem:[%s16811_s19 + $0x64] sm:$0xf] }
0x1862   :  { %v12760_v62 = vor.u32 %v13435_v35, %v12759_v6  ;;  %v12665_v11 = vld [vmem:[%s16811_s19 + $0x68] sm:$0xf0]  ;;  %v13426_v56 = vld [vmem:[%s16811_s19 + $0xe4] sm:$0xf]  ;;  %v12879_v35 = vld [vmem:[%s16811_s19 + $0x210] sm:$0xf] }
0x1863   :  { %10019 = vmatpush.bf16.msrb.mxu2 %v12696_v17  ;;  %v12668_v47 = vor.u32 %v13410_v10, %v12665_v11  ;;  %v12729_v6 = vld [vmem:[%s16811_s19 + $0xe8] sm:$0xf0] }
0x1864   :  { %10032 = vmatpush.bf16.msra.mxu0 %v12760_v62  ;;  %v12844_v62 = vor.u32 %v13454_v63, %v12841_v38  ;;  %v12617_v63 = vld [vmem:[%s16811_s19 + $0x8] sm:$0xf0]  ;;  %v13414_v38 = vld [vmem:[%s16811_s19 + $0x84] sm:$0xf] }
0x1867   :  { %v9220_v4 = vpop.f32.mrf.mxu2 }
0x1868   :  { %v9221_v12 = vadd.f32 %v9220_v4, %v9208_v8  ;;  %v12808_v8 = vor.u32 %v13447_v13, %v12807_v20  ;;  %v12687_v4 = vld [vmem:[%s16811_s19 + $0x90] sm:$0xf]  ;;  %v12649_v20 = vld [vmem:[%s16811_s19 + $0x48] sm:$0xf0]  ;;  %v13422_v13 = vld [vmem:[%s16811_s19 + $0xc4] sm:$0xf] }
0x1869   :  { %v12688_v30 = vor.u32 %v13417_v15, %v12687_v4  ;;  %v12716_v52 = vor.u32 %v13422_v13, %v12713_v59  ;;  %v12825_v4 = vld [vmem:[%s16811_s19 + $0x1a8] sm:$0xf0] }
0x186a   :  { %v9224_v14 = vadd.f32 %v9221_v12, %v16390_v27  ;;  %v12639_v27 = vld [vmem:[%s16811_s19 + $0x30] sm:$0xf] }
0x186b   :  { %v12640_v40 = vor.u32 %v13405_v60, %v12639_v27  ;;  %v12751_v12 = vld [vmem:[%s16811_s19 + $0x110] sm:$0xf]  ;;  %10020 = vmatpush.bf16.msrb.mxu2 %v12688_v30  ;;  %v12744_v27 = vor.u32 %v13431_v21, %v12743_v9  ;;  %v13412_v60 = vld [vmem:[%s16811_s19 + $0x74] sm:$0xf]  ;;  %v12641_v30 = vld [vmem:[%s16811_s19 + $0x38] sm:$0xf0] }
0x186c   :  { %v9225_v37 = vpack.c.bf16 %v9224_v14, %v9224_v14  ;;  %v12752_v36 = vor.u32 %v13433_v45, %v12751_v12  ;;  %v12895_v14 = vld [vmem:[%s16811_s19 + $0x230] sm:$0xf]  ;;  %v12676_v19 = vor.u32 %v13412_v60, %v12673_v24  ;;  %v13404_v12 = vld [vmem:[%s16811_s19 + $0x34] sm:$0xf]  ;;  %v12697_v21 = vld [vmem:[%s16811_s19 + $0xa8] sm:$0xf0] }
0x186d   :  { %10005 = vmatpush.bf16.msrb.mxu3 %v12640_v40  ;;  %v12896_v5 = vor.u32 %v13469_v23, %v12895_v14  ;;  %v12849_v40 = vld [vmem:[%s16811_s19 + $0x1d8] sm:$0xf0]  ;;  %v13420_v45 = vld [vmem:[%s16811_s19 + $0xb4] sm:$0xf]  ;;  %v12644_v46 = vor.u32 %v13404_v12, %v12641_v30  ;;  %v9267_v60 = vperm.slane %v16618_v42, 3 }
0x186e   :  { %12606 = vmatmul.msk.bf16.vlgmr.msrb.gmra.mxu1 %vm2832_vm5, %v9225_v37  ;;  %12607 = vmatmul.msk.bf16.vlgmr.msra.gmra.mxu3 %vm2832_vm5, %v9225_v37  ;;  %v12852_v25 = vor.u32 %v13456_v16, %v12849_v40  ;;  %v13448_v23 = vld [vmem:[%s16811_s19 + $0x194] sm:$0xf]  ;;  %v12689_v40 = vld [vmem:[%s16811_s19 + $0x98] sm:$0xf0] }
0x186f   :  { %12608 = vmatmul.msk.bf16.vlgmr.msra.gmra.mxu2 %vm2832_vm5, %v9225_v37  ;;  %12609 = vmatmul.msk.bf16.vlgmr.msrb.gmra.mxu0 %vm2832_vm5, %v9225_v37  ;;  %v9222_v22 = vpop.f32.mrf.mxu2  ;;  %v13416_v16 = vld [vmem:[%s16811_s19 + $0x94] sm:$0xf] }
0x1870   :  { %10040 = vmatpush.bf16.msrb.mxu1 %v12864_v44  ;;  %10033 = vmatpush.bf16.msra.mxu0 %v12752_v36  ;;  %v12679_v44 = vld [vmem:[%s16811_s19 + $0x80] sm:$0xf]  ;;  %v12705_v36 = vld [vmem:[%s16811_s19 + $0xb8] sm:$0xf0] }
0x1871   :  { %10006 = vmatpush.bf16.msrb.mxu3 %v12632_v28  ;;  %v12680_v32 = vor.u32 %v13415_v29, %v12679_v44  ;;  %v12887_v22 = vld [vmem:[%s16811_s19 + $0x220] sm:$0xf]  ;;  %v13465_v28 = vld [vmem:[%s16811_s19 + $0x214] sm:$0xf0]  ;;  %v12708_v14 = vor.u32 %v13420_v45, %v12705_v36  ;;  %v13402_v44 = vld [vmem:[%s16811_s19 + $0x24] sm:$0xf] }
0x1872   :  { %v12888_v39 = vor.u32 %v13467_v0, %v12887_v22  ;;  %v12880_v17 = vor.u32 %v13465_v28, %v12879_v35  ;;  %v12633_v29 = vld [vmem:[%s16811_s19 + $0x28] sm:$0xf0]  ;;  %v12625_v22 = vld [vmem:[%s16811_s19 + $0x18] sm:$0xf0]  ;;  %v13398_v35 = vld [vmem:[%s16811_s19 + $0x4] sm:$0xf] }
0x1873   :  { %10021 = vmatpush.bf16.msrb.mxu2 %v12680_v32  ;;  %v9264_v32 = vperm.slane %v16618_v42, 0  ;;  %v12636_v9 = vor.u32 %v13402_v44, %v12633_v29  ;;  %v9265_v28 = vperm.slane %v16618_v42, 1  ;;  %v13444_v36 = vld [vmem:[%s16811_s19 + $0x174] sm:$0xf]  ;;  %v9268_v44 = vperm.slane %v16618_v42, 4 }
0x1874   :  { %10041 = vmatpush.bf16.msrb.mxu1 %v12856_v2  ;;  %10034 = vmatpush.bf16.msra.mxu0 %v12744_v27  ;;  %v12740_v2 = vor.u32 %v13428_v58, %v12737_v31  ;;  %v12809_v58 = vld [vmem:[%s16811_s19 + $0x188] sm:$0xf0]  ;;  %v13400_v31 = vld [vmem:[%s16811_s19 + $0x14] sm:$0xf] }
0x1875   :  { %10007 = vmatpush.bf16.msrb.mxu3 %v12624_v55  ;;  %v13406_v55 = vld [vmem:[%s16811_s19 + $0x44] sm:$0xf]  ;;  %v12628_v10 = vor.u32 %v13400_v31, %v12625_v22 }
0x1877   :  { %10066 = vmatpush.bf16.msra.mxu2 %v12676_v19  ;;  %v13446_v19 = vld [vmem:[%s16811_s19 + $0x184] sm:$0xf] }
0x1878   :  { %10042 = vmatpush.bf16.msrb.mxu1 %v12848_v49  ;;  %10079 = vmatpush.bf16.msrb.mxu0 %v12740_v2  ;;  %v12732_v49 = vor.u32 %v13426_v56, %v12729_v6  ;;  %v12812_v0 = vor.u32 %v13446_v19, %v12809_v58  ;;  %v16640_v56 = vld [vmem:[#allocation2 + $0x56] sm:$0x1f]  ;;  %v12692_v6 = vor.u32 %v13416_v16, %v12689_v40  ;;  %v13442_v19 = vld [vmem:[%s16811_s19 + $0x164] sm:$0xf]  ;;  %v12793_v58 = vld [vmem:[%s16811_s19 + $0x168] sm:$0xf0] }
0x1879   :  { %10008 = vmatpush.bf16.msrb.mxu3 %v12616_v54  ;;  %v12611_v54 = vld [vmem:[%s16777_s10 + $0x114] ss:$8 sm:$0xf] }
0x187a   :  { %v12897_v40 = vld [vmem:[%s16811_s19 + $0x238] sm:$0xf0] }
0x187b   :  { %10067 = vmatpush.bf16.msra.mxu2 %v12668_v47 }
0x187c   :  { %10043 = vmatpush.bf16.msrb.mxu1 %v12840_v53  ;;  %v13408_v53 = vld [vmem:[%s16811_s19 + $0x54] sm:$0xf]  ;;  %10080 = vmatpush.bf16.msrb.mxu0 %v12732_v49 }
0x187d   :  { %10057 = vmatpush.bf16.msra.mxu3 %v12896_v5  ;;  %v12660_v50 = vor.u32 %v13408_v53, %v12657_v51  ;;  %v12817_v5 = vld [vmem:[%s16811_s19 + $0x198] sm:$0xf0]  ;;  %v9266_v53 = vperm.slane %v16618_v42, 2  ;;  %v12681_v51 = vld [vmem:[%s16811_s19 + $0x88] sm:$0xf0] }
0x187e   :  { %12610 = vmatmul.msk.bf16.vlgmr.msra.gmra.mxu1 %vm2832_vm5, %v9225_v37  ;;  %v12857_v37 = vld [vmem:[%s16811_s19 + $0x1e8] sm:$0xf0]  ;;  %v13468_v42 = vld [vmem:[%s16811_s19 + $0x234] sm:$0xf] }
0x187f   :  { %v12860_v43 = vor.u32 %v13458_v3, %v12857_v37  ;;  %10068 = vmatpush.bf16.msra.mxu2 %v12660_v50  ;;  %v12612_v3 = vld [vmem:[%s16777_s10 + $0x114] ss:$8 sm:$0x10]  ;;  %v12820_v37 = vor.u32 %v13448_v23, %v12817_v5 }
0x1880   :  { %10044 = vmatpush.bf16.msrb.mxu1 %v12832_v48  ;;  %v13424_v48 = vld [vmem:[%s16811_s19 + $0xd4] sm:$0xf]  ;;  %v16630_v27 = vor.u32 %v12612_v3, %v12611_v54  ;;  %v12801_v54 = vld [vmem:[%s16811_s19 + $0x178] sm:$0xf0]  ;;  %v9532_v3 = vperm.slane %v16640_v56, 2 }
0x1881   :  { %10058 = vmatpush.bf16.msra.mxu3 %v12888_v39 }
0x1882   :  { %v9513_v11 = vperm.slane %v16630_v27, 0  ;;  %v9515_v30 = vperm.slane %v16630_v27, 2 }
0x1884   :  { %10045 = vmatpush.bf16.msrb.mxu1 %v12824_v7  ;;  %v12724_v7 = vor.u32 %v13424_v48, %v12721_v26  ;;  %v9530_v48 = vperm.slane %v16640_v56, 0  ;;  %v12620_v26 = vor.u32 %v13398_v35, %v12617_v63  ;;  %v12785_v35 = vld [vmem:[%s16811_s19 + $0x158] sm:$0xf0] }
0x1885   :  { %10059 = vmatpush.bf16.msra.mxu3 %v12880_v17 }
0x1886   :  { %10081 = vmatpush.bf16.msrb.mxu0 %v12724_v7  ;;  %v9533_v7 = vperm.slane %v16640_v56, 3 }
0x1888   :  { %10046 = vmatpush.bf16.msrb.mxu1 %v12816_v18  ;;  %v13452_v18 = vld [vmem:[%s16811_s19 + $0x1b4] sm:$0xf] }
0x1889   :  { %v12836_v41 = vor.u32 %v13452_v18, %v12833_v1  ;;  %10060 = vmatpush.bf16.msra.mxu3 %v12872_v57  ;;  %v12684_v57 = vor.u32 %v13414_v38, %v12681_v51 }
0x188a   :  { %10082 = vmatpush.bf16.msrb.mxu0 %v12716_v52  ;;  %v9514_v52 = vperm.slane %v16630_v27, 1 }
0x188c   :  { %10047 = vmatpush.bf16.msrb.mxu1 %v12808_v8  ;;  %v12652_v8 = vor.u32 %v13406_v55, %v12649_v20 }
0x188e   :  { %10069 = vmatpush.bf16.msra.mxu2 %v12652_v8  ;;  %10083 = vmatpush.bf16.msrb.mxu0 %v12708_v14 }
0x1890   :  { %10105 = vmatpush.bf16.msra.mxu1 %v12868_v33  ;;  %v13450_v33 = vld [vmem:[%s16811_s19 + $0x1a4] sm:$0xf] }
0x1891   :  { %v12828_v15 = vor.u32 %v13450_v33, %v12825_v4 }
0x1892   :  { %10070 = vmatpush.bf16.msra.mxu2 %v12644_v46 }
0x1894   :  { %10106 = vmatpush.bf16.msra.mxu1 %v12860_v43  ;;  %v13418_v43 = vld [vmem:[%s16811_s19 + $0xa4] sm:$0xf] }
0x1895   :  { %v12700_v24 = vor.u32 %v13418_v43, %v12697_v21 }
0x1896   :  { %10071 = vmatpush.bf16.msra.mxu2 %v12636_v9  ;;  %v12804_v9 = vor.u32 %v13444_v36, %v12801_v54  ;;  %v13430_v54 = vld [vmem:[%s16811_s19 + $0x104] sm:$0xf] }
0x1897   :  { %10084 = vmatpush.bf16.msrb.mxu0 %v12700_v24 }
0x1898   :  { %10107 = vmatpush.bf16.msra.mxu1 %v12852_v25 }
0x189a   :  { %10072 = vmatpush.bf16.msra.mxu2 %v12628_v10  ;;  %v12796_v10 = vor.u32 %v13442_v19, %v12793_v58 }
0x189b   :  { %10085 = vmatpush.bf16.msrb.mxu0 %v12692_v6  ;;  %v13440_v6 = vld [vmem:[%s16811_s19 + $0x154] sm:$0xf] }
0x189c   :  { %10108 = vmatpush.bf16.msra.mxu1 %v12844_v62  ;;  %v9516_v62 = vperm.slane %v16630_v27, 3  ;;  %v12788_v51 = vor.u32 %v13440_v6, %v12785_v35 }
0x189e   :  { %10073 = vmatpush.bf16.msra.mxu2 %v12620_v26  ;;  %v12777_v26 = vld [vmem:[%s16811_s19 + $0x148] sm:$0xf0] }
0x189f   :  { %10086 = vmatpush.bf16.msrb.mxu0 %v12684_v57  ;;  %v12881_v57 = vld [vmem:[%s16811_s19 + $0x218] sm:$0xf0] }
0x18a0   :  { %10109 = vmatpush.bf16.msra.mxu1 %v12836_v41 }
0x18a4   :  { %10110 = vmatpush.bf16.msra.mxu1 %v12828_v15  ;;  %v9531_v15 = vperm.slane %v16640_v56, 1 }
0x18a8   :  { %10111 = vmatpush.bf16.msra.mxu1 %v12820_v37 }
0x18ac   :  { %10112 = vmatpush.bf16.msra.mxu1 %v12812_v0 }
0x18eb   :  { %v9442_v2 = vpop.f32.mrf.mxu1 }
0x18ec   :  { %v9443_v39 = vadd.f32 %v9442_v2, %v9264_v32  ;;  %v9481_v25 = vpop.f32.mrf.mxu0 }
0x18ed   :  { %v9482_v47 = vadd.f32 %v9481_v25, %v9267_v60  ;;  %v9517_v25 = vperm.slane %v16630_v27, 4 }
0x18ee   :  { %v9498_v49 = vmax.f32 %v9443_v39, 0.0 }
0x18ef   :  { %v9501_v17 = vmax.f32 %v9482_v47, 0.0 }
0x18f0   :  { %v9503_v50 = vmin.f32 %v9498_v49, 6.0 }
0x18f1   :  { %v9506_v34 = vmin.f32 %v9501_v17, 6.0  ;;  %v9455_v61 = vpop.f32.mrf.mxu3  ;;  %v9534_v17 = vperm.slane %v16640_v56, 4  ;;  %v13464_v56 = vld [vmem:[%s16811_s19 + $0x214] sm:$0xf] }
0x18f2   :  { %v9523_v18 = vmul.f32 %v9513_v11, %v9503_v50  ;;  %v9456_v1 = vadd.f32 %v9455_v61, %v9265_v28  ;;  %v9468_v41 = vpop.f32.mrf.mxu2  ;;  %v12900_v28 = vor.u32 %v13468_v42, %v12897_v40 }
0x18f3   :  { %v9526_v55 = vmul.f32 %v9516_v62, %v9506_v34  ;;  %v9469_v20 = vadd.f32 %v9468_v41, %v9266_v53  ;;  %v9444_v13 = vpop.f32.mrf.mxu1  ;;  %v13466_v62 = vld [vmem:[%s16811_s19 + $0x224] sm:$0xf]  ;;  %v12889_v53 = vld [vmem:[%s16811_s19 + $0x228] sm:$0xf0]  ;;  %v13436_v41 = vld [vmem:[%s16811_s19 + $0x134] sm:$0xf] }
0x18f4   :  { %v9540_v8 = vadd.f32 %v9530_v48, %v9523_v18  ;;  %v9499_v59 = vmax.f32 %v9456_v1, 0.0  ;;  %v9483_v33 = vpop.f32.mrf.mxu0  ;;  %v13438_v48 = vld [vmem:[%s16811_s19 + $0x144] sm:$0xf] }
0x18f5   :  { %v9543_v4 = vadd.f32 %v9533_v7, %v9526_v55  ;;  %v9500_v12 = vmax.f32 %v9469_v20, 0.0  ;;  %v12892_v7 = vor.u32 %v13466_v62, %v12889_v53  ;;  %v12780_v18 = vor.u32 %v13438_v48, %v12777_v26  ;;  %v12769_v55 = vld [vmem:[%s16811_s19 + $0x138] sm:$0xf0] }
0x18f6   :  { %v9545_v45 = vmax.f32 %v9540_v8, 0.0  ;;  %v9504_v46 = vmin.f32 %v9499_v59, 6.0  ;;  %v12884_v20 = vor.u32 %v13464_v56, %v12881_v57  ;;  %v13462_v8 = vld [vmem:[%s16811_s19 + $0x204] sm:$0xf]  ;;  %v12873_v59 = vld [vmem:[%s16811_s19 + $0x208] sm:$0xf0] }
0x18f7   :  { %v9548_v14 = vmax.f32 %v9543_v4, 0.0  ;;  %v9505_v23 = vmin.f32 %v9500_v12, 6.0  ;;  %v13434_v4 = vld [vmem:[%s16811_s19 + $0x124] sm:$0xf]  ;;  %v12876_v12 = vor.u32 %v13462_v8, %v12873_v59 }
0x18f8   :  { %v9550_v5 = vmin.f32 %v9545_v45, 6.0  ;;  %v9524_v37 = vmul.f32 %v9514_v52, %v9504_v46  ;;  %v12772_v52 = vor.u32 %v13436_v41, %v12769_v55  ;;  %v13432_v45 = vld [vmem:[%s16811_s19 + $0x114] sm:$0xf]  ;;  %v12753_v46 = vld [vmem:[%s16811_s19 + $0x118] sm:$0xf0] }
0x18f9   :  { %v9553_v29 = vmin.f32 %v9548_v14, 6.0  ;;  %v9525_v43 = vmul.f32 %v9515_v30, %v9505_v23  ;;  %v9457_v32 = vpop.f32.mrf.mxu3  ;;  %v12756_v36 = vor.u32 %v13432_v45, %v12753_v46  ;;  %v12745_v14 = vld [vmem:[%s16811_s19 + $0x108] sm:$0xf0] }
0x18fa   :  { %v16658_v21 = vpack.c.bf16 %v9550_v5, %v9550_v5  ;;  %v9541_v60 = vadd.f32 %v9531_v15, %v9524_v37  ;;  %v9470_v24 = vpop.f32.mrf.mxu2  ;;  %v12761_v15 = vld [vmem:[%s16811_s19 + $0x128] sm:$0xf0]  ;;  %v12748_v23 = vor.u32 %v13430_v54, %v12745_v14 }
0x18fb   :  { %v9558_v31 = vpack.c.bf16 %v9553_v29, %v9553_v29  ;;  %v9542_v22 = vadd.f32 %v9532_v3, %v9525_v43  ;;  %v9494_v2 = vpop.f32.mrf.mxu1  ;;  %v12764_v30 = vor.u32 %v13434_v4, %v12761_v15 }
0x18fc   :  { %v9546_v0 = vmax.f32 %v9541_v60, 0.0  ;;  %v9495_v16 = vadd.f32 %v9494_v2, %v9268_v44  ;;  %10009 = vmatmul.bf16.vlgmr.msrb.gmra.mxu3 %v16658_v21 }
0x18fd   :  { %v9547_v39 = vmax.f32 %v9542_v22, 0.0  ;;  %10048 = vmatmul.bf16.vlgmr.msrb.gmra.mxu1 %v9558_v31  ;;  %10092 = vmatpush.bf16.msrb.mxu3 %v12804_v9 }
0x18fe   :  { %v9551_v11 = vmin.f32 %v9546_v0, 6.0  ;;  %v9502_v47 = vmax.f32 %v9495_v16, 0.0 }
0x18ff   :  { %v9552_v49 = vmin.f32 %v9547_v39, 6.0 }
0x1900   :  { %v9556_v63 = vpack.c.bf16 %v9551_v11, %v9551_v11  ;;  %v9507_v38 = vmin.f32 %v9502_v47, 6.0 }
0x1901   :  { %v9557_v27 = vpack.c.bf16 %v9552_v49, %v9552_v49  ;;  %10093 = vmatpush.bf16.msrb.mxu3 %v12796_v10 }
0x1902   :  { %v9527_v50 = vmul.f32 %v9517_v25, %v9507_v38  ;;  %10022 = vmatmul.bf16.vlgmr.msrb.gmra.mxu2 %v9556_v63 }
0x1903   :  { %10035 = vmatmul.bf16.vlgmr.msra.gmra.mxu0 %v9557_v27  ;;  %v9496_v34 = vpop.f32.mrf.mxu1  ;;  %10122 = vmatpush.bf16.msrb.mxu2 %v12900_v28 }
0x1904   :  { %v9544_v61 = vadd.f32 %v9534_v17, %v9527_v50 }
0x1905   :  { %10094 = vmatpush.bf16.msrb.mxu3 %v12788_v51 }
0x1906   :  { %v9549_v1 = vmax.f32 %v9544_v61, 0.0 }
0x1907   :  { %10123 = vmatpush.bf16.msrb.mxu2 %v12892_v7 }
0x1908   :  { %v9554_v13 = vmin.f32 %v9549_v1, 6.0 }
0x1909   :  { %10095 = vmatpush.bf16.msrb.mxu3 %v12780_v18 }
0x190a   :  { %v9559_v33 = vpack.c.bf16 %v9554_v13, %v9554_v13 }
0x190b   :  { %10124 = vmatpush.bf16.msrb.mxu2 %v12884_v20 }
0x190c   :  { %12901 = vmatmul.msk.bf16.vlgmr.msra.gmra.mxu3 %vm5000_vm9, %v9559_v33 }
0x190d   :  { %10113 = vmatmul.bf16.vlgmr.msra.gmra.mxu1 %v9558_v31  ;;  %10096 = vmatpush.bf16.msrb.mxu3 %v12772_v52 }
0x190f   :  { %10125 = vmatpush.bf16.msrb.mxu2 %v12876_v12 }
0x1911   :  { %10097 = vmatpush.bf16.msrb.mxu3 %v12764_v30 }
0x1912   :  { %10074 = vmatmul.bf16.vlgmr.msra.gmra.mxu2 %v16658_v21 }
0x1913   :  { %10087 = vmatmul.bf16.vlgmr.msrb.gmra.mxu0 %v9556_v63 }
0x1915   :  { %10098 = vmatpush.bf16.msrb.mxu3 %v12756_v36 }
0x1919   :  { %10099 = vmatpush.bf16.msrb.mxu3 %v12748_v23 }
0x191c   :  { %10100 = vmatmul.bf16.vlgmr.msrb.gmra.mxu3 %v9557_v27 }
0x1922   :  { %12902 = vmatmul.msk.bf16.vlgmr.msrb.gmra.mxu2 %vm5000_vm9, %v9559_v33 }
0x1923   :  { %14241 = shalt.err (!%p14238_p13)
}
0x1924   :  { %s16812_s18 = sld [smem:[#allocation91_spill]]  ;;  %s14427_s20 = smov [#allocation44]  }
0x1925   :  { %10165 = dma.vmem_to_hbm [thread:$0]  %s10158_s16, 512, %s10160_s22, [#allocation46], %s14397_s29, %s14397_s29, %s14398_s15  }
0x1926   :  { %s10144_s7 = sshll.u32 %s14427_s20, 4  ;;  %s10145_s7 = int_to_ptr.vmem [resolvable:$true] %s10144_s7 }
0x192a   :  { %s10146_s24 = sshll.u32 %s16812_s18, 4  ;;  %s14258_s21 = scalar_lea.hbm %s16812_s18, 128  ;;  %s10147_s24 = int_to_ptr.hbm [resolvable:$true] %s10146_s24 }
0x192b   :  { %s14254_s2 = sshra.s32 %s10147_s24, 4  ;;  %s14255_s2 = int_to_ptr.hbm [resolvable:$true] %s14254_s2 }
0x192c   :  { %s14256_s30 = scalar_lea.hbm %s14255_s2, 128  ;;  %p14259_p1 = scmp.lt.s32.totalorder %s14255_s2, %s16812_s18 }
0x192d   :  { %p14257_p0 = scmp.ne.s32.totalorder %s14255_s2, %s14256_s30  ;;  %p14260_p2 = scmp.lt.s32.totalorder %s14258_s21, %s14256_s30 }
0x192f   :  { %p14261_p3 = por %p14260_p2, %p14259_p1 }
0x1931   :  { %p14262_p4 = pnand %p14261_p3, %p14257_p0 }
0x1933   :  { %14265 = shalt.err (!%p14262_p4)
}
0x1934   :  { %10152 = dma.vmem_to_hbm [thread:$0]  %s10145_s7, 2048, %s10147_s24, [#allocation4], %s14397_s29, %s14397_s29, %s14398_s15  }
0x1935   :  { %s14428_s13 = smov [#allocation47]   ;;  %s10173_s28 = sshll.u32 %s14638_s3, 4  ;;  %s10174_s28 = int_to_ptr.hbm [resolvable:$true] %s10173_s28 }
0x1936   :  { %s10171_s17 = sshll.u32 %s14428_s13, 4  ;;  %s14278_s1 = sshra.s32 %s10174_s28, 4  ;;  %s10172_s17 = int_to_ptr.vmem [resolvable:$true] %s10171_s17  ;;  %s14279_s1 = int_to_ptr.hbm [resolvable:$true] %s14278_s1 }
0x1937   :  { %s14280_s10 = scalar_lea.hbm %s14279_s1, 8  ;;  %s14282_s6 = scalar_lea.hbm %s14638_s3, 8 }
0x1938   :  { %p14281_p5 = scmp.ne.s32.totalorder %s14279_s1, %s14280_s10  ;;  %p14283_p6 = scmp.lt.s32.totalorder %s14279_s1, %s14638_s3 }
0x1939   :  { %p14284_p7 = scmp.lt.s32.totalorder %s14282_s6, %s14280_s10 }
0x193b   :  { %p14285_p8 = por %p14284_p7, %p14283_p6 }
0x193d   :  { %p14286_p9 = pnand %p14285_p8, %p14281_p5 }
0x193f   :  { %14289 = shalt.err (!%p14286_p9)
}
0x1940   :  { %10176 = dma.vmem_to_hbm [thread:$0]  %s10172_s17, 128, %s10174_s28, [#allocation46]  }
0x1941   :  { %s10184_s29 = sshll.u32 %s14643_s4, 4  ;;  %s14429_s15 = smov [#allocation48]   ;;  %s10185_s29 = int_to_ptr.hbm [resolvable:$true] %s10184_s29 }
0x1942   :  { %s10182_s8 = sshll.u32 %s14429_s15, 4  ;;  %s14302_s9 = sshra.s32 %s10185_s29, 4  ;;  %s10183_s8 = int_to_ptr.vmem [resolvable:$true] %s10182_s8  ;;  %s14303_s9 = int_to_ptr.hbm [resolvable:$true] %s14302_s9 }
0x1943   :  { %s14304_s11 = scalar_lea.hbm %s14303_s9, 2  ;;  %s14306_s0 = scalar_lea.hbm %s14643_s4, 2 }
0x1944   :  { %p14305_p10 = scmp.ne.s32.totalorder %s14303_s9, %s14304_s11  ;;  %p14307_p11 = scmp.lt.s32.totalorder %s14303_s9, %s14643_s4 }
0x1945   :  { %p14308_p12 = scmp.lt.s32.totalorder %s14306_s0, %s14304_s11 }
0x1947   :  { %p14309_p13 = por %p14308_p12, %p14307_p11 }
0x1949   :  { %p14310_p0 = pnand %p14309_p13, %p14305_p10 }
0x194b   :  { %14313 = shalt.err (!%p14310_p0)
}
0x194c   :  { %10187 = dma.vmem_to_hbm [thread:$0]  %s10183_s8, 32, %s10185_s29, [#allocation49]   ;;  %v9632_v58 = vld [vmem:[#allocation2 + $0x5b] sm:$0x3]  ;;  %vm10134_vm11 = vcmask 1041408   ;;  %vm10137_vm12 = vcmask 257026  }
0x194d   :  { %v9635_v22 = vperm.slane %v9632_v58, 1  ;;  %v9634_v0 = vperm.slane %v9632_v58, 0  ;;  %vm10138_vm13 = vmor %vm10137_vm12, %vm10134_vm11 }
0x197a   :  { %v10049_v3 = vpop.f32.mrf.mxu1 }
0x197f   :  { %v10010_v5 = vpop.f32.mrf.mxu3 }
0x1980   :  { %v10036_v37 = vpop.f32.mrf.mxu0  ;;  %v10011_v40 = vadd.f32 %v10010_v5, %v9634_v0 }
0x1982   :  { %v10051_v44 = vpop.f32.mrf.mxu1 }
0x1985   :  { %v10023_v29 = vpop.f32.mrf.mxu2 }
0x1986   :  { %v10024_v25 = vadd.f32 %v10023_v29, %v10011_v40 }
0x1987   :  { %v10012_v43 = vpop.f32.mrf.mxu3 }
0x1988   :  { %v10038_v32 = vpop.f32.mrf.mxu0  ;;  %v10037_v6 = vadd.f32 %v10036_v37, %v10024_v25 }
0x198a   :  { %v10114_v9 = vpop.f32.mrf.mxu1  ;;  %v10050_v28 = vadd.f32 %v10049_v3, %v10037_v6 }
0x198d   :  { %v10025_v21 = vpop.f32.mrf.mxu2 }
0x198f   :  { %v10062_v60 = vpop.f32.mrf.mxu3 }
0x1990   :  { %v10088_v24 = vpop.f32.mrf.mxu0  ;;  %v10063_v17 = vadd.f32 %v10062_v60, %v10050_v28 }
0x1992   :  { %v10116_v19 = vpop.f32.mrf.mxu1 }
0x1995   :  { %v10075_v31 = vpop.f32.mrf.mxu2 }
0x1996   :  { %v10076_v42 = vadd.f32 %v10075_v31, %v9635_v22 }
0x1997   :  { %v10064_v2 = vpop.f32.mrf.mxu3 }
0x1998   :  { %v10090_v16 = vpop.f32.mrf.mxu0  ;;  %v10089_v10 = vadd.f32 %v10088_v24, %v10076_v42 }
0x199d   :  { %v10077_v39 = vpop.f32.mrf.mxu2 }
0x199f   :  { %v10101_v11 = vpop.f32.mrf.mxu3 }
0x19a0   :  { %v10102_v47 = vadd.f32 %v10101_v11, %v10089_v10 }
0x19a2   :  { %v10115_v35 = vadd.f32 %v10114_v9, %v10102_v47 }
0x19a5   :  { %v10127_v49 = vpop.f32.mrf.mxu2 }
0x19a6   :  { %v10128_v63 = vadd.f32 %v10127_v49, %v10115_v35 }
0x19a7   :  { %v10103_v38 = vpop.f32.mrf.mxu3 }
0x19a8   :  { %v10133_v62 = vrot.slane %v10128_v63, 6 }
0x19aa   :  { %v10135_v53 = vsel %vm10134_vm11, %v10063_v17, %v10133_v62 }
0x19ab   :  { %10139 = vst.msk [vmem:[%s14648_s25] sm:$0xf] %vm10138_vm13, %v10135_v53 }
0x19ad   :  { %v10129_v27 = vpop.f32.mrf.mxu2 }
0x19ae   :  { %14342 = dma.done.wait [#allocation4], 2048  }
0x19af   :  { %14343 = vsyncadd [#allocation4], 4294965248 }
0x19b0   :  { %14344 = dma.done.wait [#allocation46], 640  }
0x19b1   :  { %14345 = vsyncadd [#allocation46], 4294966656 }
0x19b2   :  { %14346 = dma.done.wait [#allocation49], 32  }
0x19b3   :  { %14347 = vsyncadd [#allocation49], 4294967264 }
0x19b4   :  { %10208 = vsyncpa [#allocation3], 1 }
0x19b5   :  { %10209 = vsyncpa [#allocation6], 1 }
0x19b6   :  { %10210 = vsyncpa [#allocation9], 1 }
0x19b7   :  { %10211 = vsyncpa [#allocation12], 1 }
0x19b8   :  { %10212 = vsyncpa [#allocation15], 1 }
0x19b9   :  { %10213 = vsyncpa [#allocation18], 1 }
0x19ba   :  { %10214 = vsyncpa [#allocation21], 1 }
0x19bb   :  { %10215 = vsyncpa [#allocation24], 1 }
0x19bc   :  { %10216 = vsyncpa [#allocation27], 1 }
0x19bd   :  { %10217 = vsyncpa [#allocation30], 1 }
0x19be   :  { %10218 = vsyncpa [#allocation33], 1 }
0x19bf   :  { %10219 = vsyncpa [#allocation36], 1 }
0x19c0   :  { %10220 = vsyncpa [#allocation39], 1 }
0x19c1   :  { %10221 = vsyncpa [#allocation42], 1 }
0x19c2   :  { %10222 = vsyncpa [#allocation4], 1 }
0x19c3   :  { %10223 = vsyncpa [#allocation46], 1 }
0x19c4   :  { %10224 = vsyncpa [#allocation49], 1 }

</bundles_post_ra>
